<compile_context>
chip_gen: v7x
topology: tpu7x:2x2x1
jax: 0.10.0
libtpu: 0.0.40
codegen_flags: <defaults>
</compile_context>

<pallas_src>
import functools
import math

import numpy as np
import jax
import jax.numpy as jnp
from jax.experimental import pallas as pl
from jax.experimental.pallas import tpu as pltpu


# ----------------------------- configuration --------------------------------
IMAGE_SIZE = 128          # -> fmap_size = 128 // 2**4 = 8
NUM_CLASSES = 10
DIM_KEY = 16
DIM_VALUE = 16
FACTORS = (2, 2, 2)
EMBED_DIMS = (32, 16, 8)
DEPTHS = (2, 2, 2)
NUM_HEADS = (2, 2, 2)
DISTILL = True

PAD = 128                 # lane-dense channel padding used by every kernel tile


# ----------------------------- small helpers ---------------------------------
def _erf(x):
    # Abramowitz & Stegun 7.1.26 rational approximation, |err| <= 1.5e-7.
    a1, a2, a3, a4, a5 = (0.254829592, -0.284496736, 1.421413741,
                          -1.453152027, 1.061405429)
    p = 0.3275911
    z = jnp.where(x >= 0.0, x, -x)
    t = 1.0 / (1.0 + p * z)
    poly = ((((a5 * t + a4) * t + a3) * t + a2) * t + a1) * t
    y = 1.0 - poly * jnp.exp(-z * z)
    return jnp.where(x >= 0.0, y, -y)


def _gelu_exact(x):
    return 0.5 * x * (1.0 + _erf(x * 0.7071067811865476))


def _hardswish(x):
    return x * jnp.clip(x + 3.0, 0.0, 6.0) * (1.0 / 6.0)


def _const_map(ndim):
    zeros = (0,) * ndim
    return lambda b: zeros


def _pad_mat(w, rows=PAD, cols=PAD):
    out = jnp.zeros((rows, cols), jnp.float32)
    return out.at[:w.shape[0], :w.shape[1]].set(w)


def _pad_vec(b, n=PAD):
    return jnp.zeros((1, n), jnp.float32).at[0, :b.shape[0]].set(b)


# ----------------------------- fused stage kernel -----------------------------
def _stage_kernel(*refs, depth, heads, dk, dv, inner_k, scale,
                  downsample, attn_residual, final_head):
    it = iter(refs)
    x_ref = next(it)
    xq_ref = next(it) if downsample else None
    (wq_ref, bq_ref, wkv_ref, bkv_ref, bias_ref,
     wo_ref, bo_ref, w1_ref, b1_ref, w2_ref, b2_ref) = [next(it) for _ in range(11)]
    wh_ref = bh_ref = None
    if final_head:
        wh_ref = next(it)
        bh_ref = next(it)
    o_ref = next(it)

    x = x_ref[0].astype(jnp.float32)                       # (Nk, 128) f32
    for d in range(depth):                                 # static depth unroll
        xq = xq_ref[0].astype(jnp.float32) if downsample else x    # (Nq, 128)

        # fused q and k|v projections (1x1 convs + folded BN), lane-dense K=128
        q_all = jnp.dot(xq.astype(jnp.bfloat16), wq_ref[d],
                        preferred_element_type=jnp.float32) + bq_ref[d]
        kv = jnp.dot(x.astype(jnp.bfloat16), wkv_ref[d],
                     preferred_element_type=jnp.float32) + bkv_ref[d]
        kv_b = kv.astype(jnp.bfloat16)

        head_out = []
        for h in range(heads):                             # heads in {2, 4}
            q = q_all[:, h * dk:(h + 1) * dk].astype(jnp.bfloat16)
            k = kv_b[:, h * dk:(h + 1) * dk]
            v = kv_b[:, inner_k + h * dv: inner_k + (h + 1) * dv]
            dots = jax.lax.dot_general(q, k, (((1,), (1,)), ((), ())),
                                       preferred_element_type=jnp.float32)
            dots = dots * scale + bias_ref[d, h]
            m = jnp.max(dots, axis=-1, keepdims=True)
            p = jnp.exp(dots - m)
            s = jnp.sum(p, axis=-1, keepdims=True)
            attn = p * pl.reciprocal(s, approx=True)       # softmax denom on EUP
            head_out.append(jnp.dot(attn.astype(jnp.bfloat16), v,
                                    preferred_element_type=jnp.float32))
        o_cat = head_out[0] if heads == 1 else jnp.concatenate(head_out, axis=-1)
        o_cat = _gelu_exact(o_cat)                         # (Nq, heads*dv)

        # single output projection across all heads (K = heads*dv)
        attn_out = jnp.dot(o_cat.astype(jnp.bfloat16), wo_ref[d],
                           preferred_element_type=jnp.float32) + bo_ref[d]
        if attn_residual:
            attn_out = attn_out + xq

        # hardswish MLP + residual
        h1 = _hardswish(jnp.dot(attn_out.astype(jnp.bfloat16), w1_ref[d],
                                preferred_element_type=jnp.float32) + b1_ref[d])
        x = jnp.dot(h1.astype(jnp.bfloat16), w2_ref[d],
                    preferred_element_type=jnp.float32) + b2_ref[d] + attn_out

    if final_head:
        # fused AdaptiveAvgPool2d(1) + (mlp_head | distill_head) epilogue
        pooled = jnp.sum(x, axis=0, keepdims=True) * (1.0 / x.shape[0])
        logits = jnp.dot(pooled.astype(jnp.bfloat16), wh_ref[...],
                         preferred_element_type=jnp.float32) + bh_ref[...]
        o_ref[0] = logits
    else:
        o_ref[0] = x.astype(o_ref.dtype)                   # bf16 activation out


def transformer_stage_forward(x, blk, w_heads=None, b_heads=None):
    """One whole TransformerBlock (all depth layers) in a single pallas_call."""
    B, Nk, CP = x.shape
    depth = blk["depth"]
    heads = blk["heads"]
    downsample = blk["downsample"]
    final_head = w_heads is not None

    args = [x]
    in_specs = [pl.BlockSpec((1, Nk, CP), lambda b: (b, 0, 0))]
    Nq = Nk
    if downsample:
        fmap = blk["fmap"]
        xq = x.reshape(B, fmap, fmap, CP)[:, ::2, ::2, :]   # stride-2 q tokens
        side = xq.shape[1]
        Nq = side * side
        xq = xq.reshape(B, Nq, CP)
        args.append(xq)
        in_specs.append(pl.BlockSpec((1, Nq, CP), lambda b: (b, 0, 0)))

    weights = [blk["w_q"], blk["b_q"], blk["w_kv"], blk["b_kv"], blk["bias"],
               blk["wo"], blk["bo"], blk["w1"], blk["b1"], blk["w2"], blk["b2"]]
    for arr in weights:
        args.append(arr)
        in_specs.append(pl.BlockSpec(arr.shape, _const_map(arr.ndim)))

    if final_head:
        args += [w_heads, b_heads]
        in_specs += [pl.BlockSpec(w_heads.shape, _const_map(w_heads.ndim)),
                     pl.BlockSpec(b_heads.shape, _const_map(b_heads.ndim))]
        out_shape = jax.ShapeDtypeStruct((B, 1, CP), jnp.float32)
        out_spec = pl.BlockSpec((1, 1, CP), lambda b: (b, 0, 0))
    else:
        out_shape = jax.ShapeDtypeStruct((B, Nq, CP), jnp.bfloat16)
        out_spec = pl.BlockSpec((1, Nq, CP), lambda b: (b, 0, 0))

    kern = functools.partial(
        _stage_kernel, depth=depth, heads=heads,
        dk=blk["dim_key"], dv=blk["dim_value"], inner_k=blk["inner_k"],
        scale=blk["dim_key"] ** -0.5, downsample=downsample,
        attn_residual=blk["attn_residual"], final_head=final_head)

    return pl.pallas_call(
        kern, out_shape=out_shape, grid=(B,),
        in_specs=in_specs, out_specs=out_spec,
        compiler_params=pltpu.CompilerParams(dimension_semantics=("parallel",)),
    )(*args)


# ----------------------------- conv stem + forward ----------------------------
def conv_stem(img_nchw, convs):
    # TODO(synk): conv stem uses XLA conv (perf-review option A), not Pallas.
    x = jnp.transpose(img_nchw, (0, 2, 3, 1)).astype(jnp.float32)   # NHWC
    for c in convs:
        x = jax.lax.conv_general_dilated(
            x, c["w"], window_strides=(2, 2), padding=((1, 1), (1, 1)),
            dimension_numbers=("NHWC", "HWIO", "NHWC"))
        x = x + c["b"]
    return x                                                        # (B,8,8,PAD)


def levit_forward(img, params):
    x = conv_stem(img, params["conv_embed"])
    B, H, W, CP = x.shape
    x = x.reshape(B, H * W, CP).astype(jnp.bfloat16)        # token-major, padded
    blocks = params["blocks"]
    for i, blk in enumerate(blocks):
        last = i == len(blocks) - 1
        x = transformer_stage_forward(
            x, blk,
            params["w_heads"] if last else None,
            params["b_heads"] if last else None)
    logits = x.reshape(B, PAD)                  # final stage emits pooled logits
    out = logits[:, :NUM_CLASSES]
    if DISTILL:
        return out, logits[:, NUM_CLASSES:2 * NUM_CLASSES]
    return out


# ----------------------------- parameter building -----------------------------
class ParamInit:
    def __init__(self, key):
        self._key = key

    def normal(self, shape, scale=0.05):
        self._key, sub = jax.random.split(self._key)
        return scale * jax.random.normal(sub, shape, dtype=jnp.float32)


def compute_pos_indices(fmap, downsample):
    step = 2 if downsample else 1
    q_range = np.arange(0, fmap, step)
    k_range = np.arange(fmap)
    qg = np.stack(np.meshgrid(q_range, q_range, indexing="ij"), -1).reshape(-1, 2)
    kg = np.stack(np.meshgrid(k_range, k_range, indexing="ij"), -1).reshape(-1, 2)
    rel = np.abs(qg[:, None, :] - kg[None, :, :])
    return (rel[..., 0] * fmap + rel[..., 1]).astype(np.int32)


def make_block(init, dim, fmap, depth, heads, dim_key, dim_value,
               mlp_mult, dim_out, downsample):
    inner_k = dim_key * heads
    inner_v = dim_value * heads
    hidden = dim_out * mlp_mult
    assert max(dim, dim_out, hidden, inner_k + inner_v) <= PAD
    pos_idx = jnp.asarray(compute_pos_indices(fmap, downsample))

    names = ("w_q", "b_q", "w_kv", "b_kv", "bias",
             "wo", "bo", "w1", "b1", "w2", "b2")
    stacks = {k: [] for k in names}
    for _ in range(depth):
        # TODO(synk): eval-mode BatchNorms folded as identity affines; the
        # projection "biases" stand in for the folded BN betas.
        wq = init.normal((dim, inner_k)); bq = init.normal((inner_k,))
        wk = init.normal((dim, inner_k)); bk = init.normal((inner_k,))
        wv = init.normal((dim, inner_v)); bv = init.normal((inner_v,))
        wo = init.normal((inner_v, dim_out)); bo = init.normal((dim_out,))
        w1 = init.normal((dim_out, hidden)); b1 = init.normal((hidden,))
        w2 = init.normal((hidden, dim_out)); b2 = init.normal((dim_out,))
        pos_emb = init.normal((fmap * fmap, heads))
        # static positional-bias gather precomputed at build time
        bias = jnp.transpose(jnp.take(pos_emb, pos_idx, axis=0), (2, 0, 1))
        stacks["w_q"].append(_pad_mat(wq))
        stacks["b_q"].append(_pad_vec(bq))
        stacks["w_kv"].append(_pad_mat(jnp.concatenate([wk, wv], axis=1)))
        stacks["b_kv"].append(_pad_vec(jnp.concatenate([bk, bv])))
        stacks["bias"].append(bias)                         # (heads, Nq, Nk)
        stacks["wo"].append(_pad_mat(wo, rows=inner_v))     # (inner_v, 128)
        stacks["bo"].append(_pad_vec(bo))
        stacks["w1"].append(_pad_mat(w1))
        stacks["b1"].append(_pad_vec(b1))
        stacks["w2"].append(_pad_mat(w2))
        stacks["b2"].append(_pad_vec(b2))

    blk = {k: jnp.stack(v) for k, v in stacks.items()}
    for k in ("w_q", "w_kv", "wo", "w1", "w2"):
        blk[k] = blk[k].astype(jnp.bfloat16)
    blk.update(depth=depth, heads=heads, fmap=fmap,
               dim_key=dim_key, dim_value=dim_value,
               inner_k=inner_k, inner_v=inner_v, downsample=downsample,
               attn_residual=(not downsample) and (dim == dim_out))
    return blk


def build_params(key):
    init = ParamInit(key)
    params = {}
    chans = [3, 32, 64, 128, EMBED_DIMS[0]]                 # fixed by the module
    convs = []
    for i in range(4):
        cout = chans[i + 1]
        w = init.normal((3, 3, chans[i], cout))             # HWIO
        b = init.normal((cout,))
        if i == 3:                        # pad last conv's out channels to 128
            w = jnp.pad(w, ((0, 0), (0, 0), (0, 0), (0, PAD - cout)))
            b = jnp.pad(b, (0, PAD - cout))
        convs.append({"w": w, "b": b})
    params["conv_embed"] = convs

    fmap = IMAGE_SIZE // 2 ** 4
    blocks = []
    stages = len(EMBED_DIMS)
    for idx in range(stages):
        E, depth, heads, factor = (EMBED_DIMS[idx], DEPTHS[idx],
                                   NUM_HEADS[idx], FACTORS[idx])
        blocks.append(make_block(init, E, fmap, depth, heads,
                                 DIM_KEY, DIM_VALUE, factor,
                                 dim_out=E, downsample=False))
        if idx != stages - 1:
            nxt = EMBED_DIMS[idx + 1]
            blocks.append(make_block(init, E, fmap, 1, heads * 2,
                                     DIM_KEY, DIM_VALUE, 2,   # default mlp_mult
                                     dim_out=nxt, downsample=True))
            fmap = math.ceil(fmap / 2)
    params["blocks"] = blocks

    w_mlp = init.normal((EMBED_DIMS[-1], NUM_CLASSES))
    b_mlp = init.normal((NUM_CLASSES,))
    w_dis = init.normal((EMBED_DIMS[-1], NUM_CLASSES))
    b_dis = init.normal((NUM_CLASSES,))
    # mlp_head | distill_head fused into one lane-dense (128, 128) matmul
    params["w_heads"] = _pad_mat(
        jnp.concatenate([w_mlp, w_dis], axis=1)).astype(jnp.bfloat16)
    params["b_heads"] = _pad_vec(jnp.concatenate([b_mlp, b_dis]))
    return params


# --------------------------------- main ---------------------------------------
if __name__ == "__main__":
    key = jax.random.PRNGKey(0)
    pkey, xkey = jax.random.split(key)
    params = build_params(pkey)
    img = jax.random.normal(xkey, (2, 3, IMAGE_SIZE, IMAGE_SIZE),
                            dtype=jnp.float32)               # NCHW, like PyTorch
    fwd = jax.jit(functools.partial(levit_forward, params=params))
    out, distill = fwd(img)
    out, distill = jax.block_until_ready((out, distill))
    assert out.shape == (2, NUM_CLASSES) and distill.shape == (2, NUM_CLASSES)
    assert bool(jnp.all(jnp.isfinite(out))) and bool(jnp.all(jnp.isfinite(distill)))
    print("KERNEL_OK")
</pallas_src>

<mosaic_0001>
module attributes {stable_mosaic.version = 11 : i64} {
  func.func @_stage_kernel(%arg0: i32, %arg1: memref<1x64x128xbf16, #tpu.memory_space<vmem>>, %arg2: memref<2x128x128xbf16, #tpu.memory_space<vmem>>, %arg3: memref<2x1x128xf32, #tpu.memory_space<vmem>>, %arg4: memref<2x128x128xbf16, #tpu.memory_space<vmem>>, %arg5: memref<2x1x128xf32, #tpu.memory_space<vmem>>, %arg6: memref<2x2x64x64xf32, #tpu.memory_space<vmem>>, %arg7: memref<2x32x128xbf16, #tpu.memory_space<vmem>>, %arg8: memref<2x1x128xf32, #tpu.memory_space<vmem>>, %arg9: memref<2x128x128xbf16, #tpu.memory_space<vmem>>, %arg10: memref<2x1x128xf32, #tpu.memory_space<vmem>>, %arg11: memref<2x128x128xbf16, #tpu.memory_space<vmem>>, %arg12: memref<2x1x128xf32, #tpu.memory_space<vmem>>, %arg13: memref<1x64x128xbf16, #tpu.memory_space<vmem>>) attributes {dimension_semantics = [#tpu.dimension_semantics<parallel>], iteration_bounds = array<i64: 2>, scalar_prefetch = 0 : i64, scratch_operands = 0 : i64, tpu.core_type = #tpu.core_type<tc>, window_params = [{transform_indices = @transform_0, window_bounds = array<i64: 1, 64, 128>}, {pipeline_mode = #tpu.pipeline_mode<synchronous>, transform_indices = @transform_1, window_bounds = array<i64: 2, 128, 128>}, {pipeline_mode = #tpu.pipeline_mode<synchronous>, transform_indices = @transform_2, window_bounds = array<i64: 2, 1, 128>}, {pipeline_mode = #tpu.pipeline_mode<synchronous>, transform_indices = @transform_3, window_bounds = array<i64: 2, 128, 128>}, {pipeline_mode = #tpu.pipeline_mode<synchronous>, transform_indices = @transform_4, window_bounds = array<i64: 2, 1, 128>}, {pipeline_mode = #tpu.pipeline_mode<synchronous>, transform_indices = @transform_5, window_bounds = array<i64: 2, 2, 64, 64>}, {pipeline_mode = #tpu.pipeline_mode<synchronous>, transform_indices = @transform_6, window_bounds = array<i64: 2, 32, 128>}, {pipeline_mode = #tpu.pipeline_mode<synchronous>, transform_indices = @transform_7, window_bounds = array<i64: 2, 1, 128>}, {pipeline_mode = #tpu.pipeline_mode<synchronous>, transform_indices = @transform_8, window_bounds = array<i64: 2, 128, 128>}, {pipeline_mode = #tpu.pipeline_mode<synchronous>, transform_indices = @transform_9, window_bounds = array<i64: 2, 1, 128>}, {pipeline_mode = #tpu.pipeline_mode<synchronous>, transform_indices = @transform_10, window_bounds = array<i64: 2, 128, 128>}, {pipeline_mode = #tpu.pipeline_mode<synchronous>, transform_indices = @transform_11, window_bounds = array<i64: 2, 1, 128>}, {transform_indices = @transform_12, window_bounds = array<i64: 1, 64, 128>}]} {
    %c0 = arith.constant 0 : index
    %c0_0 = arith.constant 0 : index
    %c0_1 = arith.constant 0 : index
    %0 = vector.load %arg1[%c0, %c0_0, %c0_1] : memref<1x64x128xbf16, #tpu.memory_space<vmem>>, vector<1x64x128xbf16>
    %1 = vector.shape_cast %0 : vector<1x64x128xbf16> to vector<64x128xbf16>
    %2 = arith.extf %1 : vector<64x128xbf16> to vector<64x128xf32>
    %3 = arith.truncf %2 : vector<64x128xf32> to vector<64x128xbf16>
    %c0_2 = arith.constant 0 : index
    %c0_3 = arith.constant 0 : index
    %c0_4 = arith.constant 0 : index
    %4 = vector.load %arg2[%c0_2, %c0_3, %c0_4] : memref<2x128x128xbf16, #tpu.memory_space<vmem>>, vector<1x128x128xbf16>
    %5 = vector.shape_cast %4 : vector<1x128x128xbf16> to vector<128x128xbf16>
    %cst = arith.constant dense<0.000000e+00> : vector<64x128xf32>
    %6 = tpu.matmul %3, %5, %cst {dimension_numbers = #tpu.dot_dimension_numbers<[1], [0], [0], [1], [0, 0, 1, 1], [], []>} : vector<64x128xbf16>, vector<128x128xbf16>, vector<64x128xf32> -> vector<64x128xf32>
    %c0_5 = arith.constant 0 : index
    %c0_6 = arith.constant 0 : index
    %c0_7 = arith.constant 0 : index
    %7 = vector.load %arg3[%c0_5, %c0_6, %c0_7] : memref<2x1x128xf32, #tpu.memory_space<vmem>>, vector<1x1x128xf32>
    %8 = vector.shape_cast %7 : vector<1x1x128xf32> to vector<1x128xf32>
    %9 = vector.broadcast %8 : vector<1x128xf32> to vector<64x128xf32>
    %10 = arith.addf %6, %9 : vector<64x128xf32>
    %11 = arith.truncf %2 : vector<64x128xf32> to vector<64x128xbf16>
    %c0_8 = arith.constant 0 : index
    %c0_9 = arith.constant 0 : index
    %c0_10 = arith.constant 0 : index
    %12 = vector.load %arg4[%c0_8, %c0_9, %c0_10] : memref<2x128x128xbf16, #tpu.memory_space<vmem>>, vector<1x128x128xbf16>
    %13 = vector.shape_cast %12 : vector<1x128x128xbf16> to vector<128x128xbf16>
    %cst_11 = arith.constant dense<0.000000e+00> : vector<64x128xf32>
    %14 = tpu.matmul %11, %13, %cst_11 {dimension_numbers = #tpu.dot_dimension_numbers<[1], [0], [0], [1], [0, 0, 1, 1], [], []>} : vector<64x128xbf16>, vector<128x128xbf16>, vector<64x128xf32> -> vector<64x128xf32>
    %c0_12 = arith.constant 0 : index
    %c0_13 = arith.constant 0 : index
    %c0_14 = arith.constant 0 : index
    %15 = vector.load %arg5[%c0_12, %c0_13, %c0_14] : memref<2x1x128xf32, #tpu.memory_space<vmem>>, vector<1x1x128xf32>
    %16 = vector.shape_cast %15 : vector<1x1x128xf32> to vector<1x128xf32>
    %17 = vector.broadcast %16 : vector<1x128xf32> to vector<64x128xf32>
    %18 = arith.addf %14, %17 : vector<64x128xf32>
    %19 = arith.truncf %18 : vector<64x128xf32> to vector<64x128xbf16>
    %20 = vector.extract_strided_slice %10 {offsets = [0, 0], sizes = [64, 16], strides = [1, 1]} : vector<64x128xf32> to vector<64x16xf32>
    %21 = arith.truncf %20 : vector<64x16xf32> to vector<64x16xbf16>
    %22 = vector.extract_strided_slice %19 {offsets = [0, 0], sizes = [64, 16], strides = [1, 1]} : vector<64x128xbf16> to vector<64x16xbf16>
    %23 = vector.extract_strided_slice %19 {offsets = [0, 32], sizes = [64, 16], strides = [1, 1]} : vector<64x128xbf16> to vector<64x16xbf16>
    %cst_15 = arith.constant dense<0.000000e+00> : vector<64x64xf32>
    %24 = tpu.matmul %21, %22, %cst_15 {dimension_numbers = #tpu.dot_dimension_numbers<[1], [1], [0], [0], [0, 0, 1, 0], [], []>} : vector<64x16xbf16>, vector<64x16xbf16>, vector<64x64xf32> -> vector<64x64xf32>
    %cst_16 = arith.constant 2.500000e-01 : f32
    %25 = vector.broadcast %cst_16 : f32 to vector<64x64xf32>
    %26 = arith.mulf %24, %25 : vector<64x64xf32>
    %c0_17 = arith.constant 0 : index
    %c0_18 = arith.constant 0 : index
    %c0_19 = arith.constant 0 : index
    %c0_20 = arith.constant 0 : index
    %27 = vector.load %arg6[%c0_17, %c0_18, %c0_19, %c0_20] : memref<2x2x64x64xf32, #tpu.memory_space<vmem>>, vector<1x1x64x64xf32>
    %28 = vector.shape_cast %27 : vector<1x1x64x64xf32> to vector<64x64xf32>
    %29 = arith.addf %26, %28 : vector<64x64xf32>
    %cst_21 = arith.constant dense<0xFF800000> : vector<64xf32>
    %30 = vector.multi_reduction <maximumf>, %29, %cst_21 [1] : vector<64x64xf32> to vector<64xf32>
    %31 = vector.shape_cast %30 : vector<64xf32> to vector<64x1xf32>
    %32 = vector.broadcast %31 : vector<64x1xf32> to vector<64x64xf32>
    %33 = arith.subf %29, %32 : vector<64x64xf32>
    %34 = math.exp %33 : vector<64x64xf32>
    %cst_22 = arith.constant dense<0.000000e+00> : vector<64xf32>
    %35 = vector.multi_reduction <add>, %34, %cst_22 [1] : vector<64x64xf32> to vector<64xf32>
    %36 = vector.shape_cast %35 : vector<64xf32> to vector<64x1xf32>
    %37 = tpu.reciprocal %36 {approx = true} : vector<64x1xf32> -> vector<64x1xf32>
    %38 = vector.broadcast %37 : vector<64x1xf32> to vector<64x64xf32>
    %39 = arith.mulf %34, %38 : vector<64x64xf32>
    %40 = arith.truncf %39 : vector<64x64xf32> to vector<64x64xbf16>
    %cst_23 = arith.constant dense<0.000000e+00> : vector<64x16xf32>
    %41 = tpu.matmul %40, %23, %cst_23 {dimension_numbers = #tpu.dot_dimension_numbers<[1], [0], [0], [1], [0, 0, 1, 1], [], []>} : vector<64x64xbf16>, vector<64x16xbf16>, vector<64x16xf32> -> vector<64x16xf32>
    %42 = vector.extract_strided_slice %10 {offsets = [0, 16], sizes = [64, 16], strides = [1, 1]} : vector<64x128xf32> to vector<64x16xf32>
    %43 = arith.truncf %42 : vector<64x16xf32> to vector<64x16xbf16>
    %44 = vector.extract_strided_slice %19 {offsets = [0, 16], sizes = [64, 16], strides = [1, 1]} : vector<64x128xbf16> to vector<64x16xbf16>
    %45 = vector.extract_strided_slice %19 {offsets = [0, 48], sizes = [64, 16], strides = [1, 1]} : vector<64x128xbf16> to vector<64x16xbf16>
    %cst_24 = arith.constant dense<0.000000e+00> : vector<64x64xf32>
    %46 = tpu.matmul %43, %44, %cst_24 {dimension_numbers = #tpu.dot_dimension_numbers<[1], [1], [0], [0], [0, 0, 1, 0], [], []>} : vector<64x16xbf16>, vector<64x16xbf16>, vector<64x64xf32> -> vector<64x64xf32>
    %cst_25 = arith.constant 2.500000e-01 : f32
    %47 = vector.broadcast %cst_25 : f32 to vector<64x64xf32>
    %48 = arith.mulf %46, %47 : vector<64x64xf32>
    %c0_26 = arith.constant 0 : index
    %c1 = arith.constant 1 : index
    %c0_27 = arith.constant 0 : index
    %c0_28 = arith.constant 0 : index
    %49 = vector.load %arg6[%c0_26, %c1, %c0_27, %c0_28] : memref<2x2x64x64xf32, #tpu.memory_space<vmem>>, vector<1x1x64x64xf32>
    %50 = vector.shape_cast %49 : vector<1x1x64x64xf32> to vector<64x64xf32>
    %51 = arith.addf %48, %50 : vector<64x64xf32>
    %cst_29 = arith.constant dense<0xFF800000> : vector<64xf32>
    %52 = vector.multi_reduction <maximumf>, %51, %cst_29 [1] : vector<64x64xf32> to vector<64xf32>
    %53 = vector.shape_cast %52 : vector<64xf32> to vector<64x1xf32>
    %54 = vector.broadcast %53 : vector<64x1xf32> to vector<64x64xf32>
    %55 = arith.subf %51, %54 : vector<64x64xf32>
    %56 = math.exp %55 : vector<64x64xf32>
    %cst_30 = arith.constant dense<0.000000e+00> : vector<64xf32>
    %57 = vector.multi_reduction <add>, %56, %cst_30 [1] : vector<64x64xf32> to vector<64xf32>
    %58 = vector.shape_cast %57 : vector<64xf32> to vector<64x1xf32>
    %59 = tpu.reciprocal %58 {approx = true} : vector<64x1xf32> -> vector<64x1xf32>
    %60 = vector.broadcast %59 : vector<64x1xf32> to vector<64x64xf32>
    %61 = arith.mulf %56, %60 : vector<64x64xf32>
    %62 = arith.truncf %61 : vector<64x64xf32> to vector<64x64xbf16>
    %cst_31 = arith.constant dense<0.000000e+00> : vector<64x16xf32>
    %63 = tpu.matmul %62, %45, %cst_31 {dimension_numbers = #tpu.dot_dimension_numbers<[1], [0], [0], [1], [0, 0, 1, 1], [], []>} : vector<64x64xbf16>, vector<64x16xbf16>, vector<64x16xf32> -> vector<64x16xf32>
    %64 = tpu.concatenate %41, %63 in 1 : vector<64x16xf32>, vector<64x16xf32> -> vector<64x32xf32>
    %cst_32 = arith.constant 5.000000e-01 : f32
    %65 = vector.broadcast %cst_32 : f32 to vector<64x32xf32>
    %66 = arith.mulf %65, %64 : vector<64x32xf32>
    %cst_33 = arith.constant 0.707106769 : f32
    %67 = vector.broadcast %cst_33 : f32 to vector<64x32xf32>
    %68 = arith.mulf %64, %67 : vector<64x32xf32>
    %cst_34 = arith.constant 0.000000e+00 : f32
    %69 = vector.broadcast %cst_34 : f32 to vector<64x32xf32>
    %70 = arith.cmpf oge, %68, %69 : vector<64x32xf32>
    %cst_35 = arith.constant 0.000000e+00 : f32
    %71 = vector.broadcast %cst_35 : f32 to vector<64x32xf32>
    %72 = arith.subf %71, %68 : vector<64x32xf32>
    %73 = arith.select %70, %68, %72 : vector<64x32xi1>, vector<64x32xf32>
    %cst_36 = arith.constant 0.327591091 : f32
    %74 = vector.broadcast %cst_36 : f32 to vector<64x32xf32>
    %75 = arith.mulf %74, %73 : vector<64x32xf32>
    %cst_37 = arith.constant 1.000000e+00 : f32
    %76 = vector.broadcast %cst_37 : f32 to vector<64x32xf32>
    %77 = arith.addf %76, %75 : vector<64x32xf32>
    %cst_38 = arith.constant 1.000000e+00 : f32
    %78 = vector.broadcast %cst_38 : f32 to vector<64x32xf32>
    %79 = arith.divf %78, %77 : vector<64x32xf32>
    %cst_39 = arith.constant 1.06140542 : f32
    %80 = vector.broadcast %cst_39 : f32 to vector<64x32xf32>
    %81 = arith.mulf %80, %79 : vector<64x32xf32>
    %cst_40 = arith.constant -1.45315206 : f32
    %82 = vector.broadcast %cst_40 : f32 to vector<64x32xf32>
    %83 = arith.addf %81, %82 : vector<64x32xf32>
    %84 = arith.mulf %83, %79 : vector<64x32xf32>
    %cst_41 = arith.constant 1.42141378 : f32
    %85 = vector.broadcast %cst_41 : f32 to vector<64x32xf32>
    %86 = arith.addf %84, %85 : vector<64x32xf32>
    %87 = arith.mulf %86, %79 : vector<64x32xf32>
    %cst_42 = arith.constant -0.284496725 : f32
    %88 = vector.broadcast %cst_42 : f32 to vector<64x32xf32>
    %89 = arith.addf %87, %88 : vector<64x32xf32>
    %90 = arith.mulf %89, %79 : vector<64x32xf32>
    %cst_43 = arith.constant 0.254829586 : f32
    %91 = vector.broadcast %cst_43 : f32 to vector<64x32xf32>
    %92 = arith.addf %90, %91 : vector<64x32xf32>
    %93 = arith.mulf %92, %79 : vector<64x32xf32>
    %cst_44 = arith.constant 0.000000e+00 : f32
    %94 = vector.broadcast %cst_44 : f32 to vector<64x32xf32>
    %95 = arith.subf %94, %73 : vector<64x32xf32>
    %96 = arith.mulf %95, %73 : vector<64x32xf32>
    %97 = math.exp %96 : vector<64x32xf32>
    %98 = arith.mulf %93, %97 : vector<64x32xf32>
    %cst_45 = arith.constant 1.000000e+00 : f32
    %99 = vector.broadcast %cst_45 : f32 to vector<64x32xf32>
    %100 = arith.subf %99, %98 : vector<64x32xf32>
    %cst_46 = arith.constant 0.000000e+00 : f32
    %101 = vector.broadcast %cst_46 : f32 to vector<64x32xf32>
    %102 = arith.cmpf oge, %68, %101 : vector<64x32xf32>
    %cst_47 = arith.constant 0.000000e+00 : f32
    %103 = vector.broadcast %cst_47 : f32 to vector<64x32xf32>
    %104 = arith.subf %103, %100 : vector<64x32xf32>
    %105 = arith.select %102, %100, %104 : vector<64x32xi1>, vector<64x32xf32>
    %cst_48 = arith.constant 1.000000e+00 : f32
    %106 = vector.broadcast %cst_48 : f32 to vector<64x32xf32>
    %107 = arith.addf %106, %105 : vector<64x32xf32>
    %108 = arith.mulf %66, %107 : vector<64x32xf32>
    %109 = arith.truncf %108 : vector<64x32xf32> to vector<64x32xbf16>
    %c0_49 = arith.constant 0 : index
    %c0_50 = arith.constant 0 : index
    %c0_51 = arith.constant 0 : index
    %110 = vector.load %arg7[%c0_49, %c0_50, %c0_51] : memref<2x32x128xbf16, #tpu.memory_space<vmem>>, vector<1x32x128xbf16>
    %111 = vector.shape_cast %110 : vector<1x32x128xbf16> to vector<32x128xbf16>
    %cst_52 = arith.constant dense<0.000000e+00> : vector<64x128xf32>
    %112 = tpu.matmul %109, %111, %cst_52 {dimension_numbers = #tpu.dot_dimension_numbers<[1], [0], [0], [1], [0, 0, 1, 1], [], []>} : vector<64x32xbf16>, vector<32x128xbf16>, vector<64x128xf32> -> vector<64x128xf32>
    %c0_53 = arith.constant 0 : index
    %c0_54 = arith.constant 0 : index
    %c0_55 = arith.constant 0 : index
    %113 = vector.load %arg8[%c0_53, %c0_54, %c0_55] : memref<2x1x128xf32, #tpu.memory_space<vmem>>, vector<1x1x128xf32>
    %114 = vector.shape_cast %113 : vector<1x1x128xf32> to vector<1x128xf32>
    %115 = vector.broadcast %114 : vector<1x128xf32> to vector<64x128xf32>
    %116 = arith.addf %112, %115 : vector<64x128xf32>
    %117 = arith.addf %116, %2 : vector<64x128xf32>
    %118 = arith.truncf %117 : vector<64x128xf32> to vector<64x128xbf16>
    %c0_56 = arith.constant 0 : index
    %c0_57 = arith.constant 0 : index
    %c0_58 = arith.constant 0 : index
    %119 = vector.load %arg9[%c0_56, %c0_57, %c0_58] : memref<2x128x128xbf16, #tpu.memory_space<vmem>>, vector<1x128x128xbf16>
    %120 = vector.shape_cast %119 : vector<1x128x128xbf16> to vector<128x128xbf16>
    %cst_59 = arith.constant dense<0.000000e+00> : vector<64x128xf32>
    %121 = tpu.matmul %118, %120, %cst_59 {dimension_numbers = #tpu.dot_dimension_numbers<[1], [0], [0], [1], [0, 0, 1, 1], [], []>} : vector<64x128xbf16>, vector<128x128xbf16>, vector<64x128xf32> -> vector<64x128xf32>
    %c0_60 = arith.constant 0 : index
    %c0_61 = arith.constant 0 : index
    %c0_62 = arith.constant 0 : index
    %122 = vector.load %arg10[%c0_60, %c0_61, %c0_62] : memref<2x1x128xf32, #tpu.memory_space<vmem>>, vector<1x1x128xf32>
    %123 = vector.shape_cast %122 : vector<1x1x128xf32> to vector<1x128xf32>
    %124 = vector.broadcast %123 : vector<1x128xf32> to vector<64x128xf32>
    %125 = arith.addf %121, %124 : vector<64x128xf32>
    %cst_63 = arith.constant 3.000000e+00 : f32
    %126 = vector.broadcast %cst_63 : f32 to vector<64x128xf32>
    %127 = arith.addf %125, %126 : vector<64x128xf32>
    %cst_64 = arith.constant 0.000000e+00 : f32
    %cst_65 = arith.constant 6.000000e+00 : f32
    %128 = vector.broadcast %cst_64 : f32 to vector<64x128xf32>
    %129 = arith.maximumf %128, %127 : vector<64x128xf32>
    %130 = vector.broadcast %cst_65 : f32 to vector<64x128xf32>
    %131 = arith.minimumf %130, %129 : vector<64x128xf32>
    %132 = arith.mulf %125, %131 : vector<64x128xf32>
    %cst_66 = arith.constant 0.166666672 : f32
    %133 = vector.broadcast %cst_66 : f32 to vector<64x128xf32>
    %134 = arith.mulf %132, %133 : vector<64x128xf32>
    %135 = arith.truncf %134 : vector<64x128xf32> to vector<64x128xbf16>
    %c0_67 = arith.constant 0 : index
    %c0_68 = arith.constant 0 : index
    %c0_69 = arith.constant 0 : index
    %136 = vector.load %arg11[%c0_67, %c0_68, %c0_69] : memref<2x128x128xbf16, #tpu.memory_space<vmem>>, vector<1x128x128xbf16>
    %137 = vector.shape_cast %136 : vector<1x128x128xbf16> to vector<128x128xbf16>
    %cst_70 = arith.constant dense<0.000000e+00> : vector<64x128xf32>
    %138 = tpu.matmul %135, %137, %cst_70 {dimension_numbers = #tpu.dot_dimension_numbers<[1], [0], [0], [1], [0, 0, 1, 1], [], []>} : vector<64x128xbf16>, vector<128x128xbf16>, vector<64x128xf32> -> vector<64x128xf32>
    %c0_71 = arith.constant 0 : index
    %c0_72 = arith.constant 0 : index
    %c0_73 = arith.constant 0 : index
    %139 = vector.load %arg12[%c0_71, %c0_72, %c0_73] : memref<2x1x128xf32, #tpu.memory_space<vmem>>, vector<1x1x128xf32>
    %140 = vector.shape_cast %139 : vector<1x1x128xf32> to vector<1x128xf32>
    %141 = vector.broadcast %140 : vector<1x128xf32> to vector<64x128xf32>
    %142 = arith.addf %138, %141 : vector<64x128xf32>
    %143 = arith.addf %142, %117 : vector<64x128xf32>
    %144 = arith.truncf %143 : vector<64x128xf32> to vector<64x128xbf16>
    %c1_74 = arith.constant 1 : index
    %c0_75 = arith.constant 0 : index
    %c0_76 = arith.constant 0 : index
    %145 = vector.load %arg2[%c1_74, %c0_75, %c0_76] : memref<2x128x128xbf16, #tpu.memory_space<vmem>>, vector<1x128x128xbf16>
    %146 = vector.shape_cast %145 : vector<1x128x128xbf16> to vector<128x128xbf16>
    %cst_77 = arith.constant dense<0.000000e+00> : vector<64x128xf32>
    %147 = tpu.matmul %144, %146, %cst_77 {dimension_numbers = #tpu.dot_dimension_numbers<[1], [0], [0], [1], [0, 0, 1, 1], [], []>} : vector<64x128xbf16>, vector<128x128xbf16>, vector<64x128xf32> -> vector<64x128xf32>
    %c1_78 = arith.constant 1 : index
    %c0_79 = arith.constant 0 : index
    %c0_80 = arith.constant 0 : index
    %148 = vector.load %arg3[%c1_78, %c0_79, %c0_80] : memref<2x1x128xf32, #tpu.memory_space<vmem>>, vector<1x1x128xf32>
    %149 = vector.shape_cast %148 : vector<1x1x128xf32> to vector<1x128xf32>
    %150 = vector.broadcast %149 : vector<1x128xf32> to vector<64x128xf32>
    %151 = arith.addf %147, %150 : vector<64x128xf32>
    %152 = arith.truncf %143 : vector<64x128xf32> to vector<64x128xbf16>
    %c1_81 = arith.constant 1 : index
    %c0_82 = arith.constant 0 : index
    %c0_83 = arith.constant 0 : index
    %153 = vector.load %arg4[%c1_81, %c0_82, %c0_83] : memref<2x128x128xbf16, #tpu.memory_space<vmem>>, vector<1x128x128xbf16>
    %154 = vector.shape_cast %153 : vector<1x128x128xbf16> to vector<128x128xbf16>
    %cst_84 = arith.constant dense<0.000000e+00> : vector<64x128xf32>
    %155 = tpu.matmul %152, %154, %cst_84 {dimension_numbers = #tpu.dot_dimension_numbers<[1], [0], [0], [1], [0, 0, 1, 1], [], []>} : vector<64x128xbf16>, vector<128x128xbf16>, vector<64x128xf32> -> vector<64x128xf32>
    %c1_85 = arith.constant 1 : index
    %c0_86 = arith.constant 0 : index
    %c0_87 = arith.constant 0 : index
    %156 = vector.load %arg5[%c1_85, %c0_86, %c0_87] : memref<2x1x128xf32, #tpu.memory_space<vmem>>, vector<1x1x128xf32>
    %157 = vector.shape_cast %156 : vector<1x1x128xf32> to vector<1x128xf32>
    %158 = vector.broadcast %157 : vector<1x128xf32> to vector<64x128xf32>
    %159 = arith.addf %155, %158 : vector<64x128xf32>
    %160 = arith.truncf %159 : vector<64x128xf32> to vector<64x128xbf16>
    %161 = vector.extract_strided_slice %151 {offsets = [0, 0], sizes = [64, 16], strides = [1, 1]} : vector<64x128xf32> to vector<64x16xf32>
    %162 = arith.truncf %161 : vector<64x16xf32> to vector<64x16xbf16>
    %163 = vector.extract_strided_slice %160 {offsets = [0, 0], sizes = [64, 16], strides = [1, 1]} : vector<64x128xbf16> to vector<64x16xbf16>
    %164 = vector.extract_strided_slice %160 {offsets = [0, 32], sizes = [64, 16], strides = [1, 1]} : vector<64x128xbf16> to vector<64x16xbf16>
    %cst_88 = arith.constant dense<0.000000e+00> : vector<64x64xf32>
    %165 = tpu.matmul %162, %163, %cst_88 {dimension_numbers = #tpu.dot_dimension_numbers<[1], [1], [0], [0], [0, 0, 1, 0], [], []>} : vector<64x16xbf16>, vector<64x16xbf16>, vector<64x64xf32> -> vector<64x64xf32>
    %cst_89 = arith.constant 2.500000e-01 : f32
    %166 = vector.broadcast %cst_89 : f32 to vector<64x64xf32>
    %167 = arith.mulf %165, %166 : vector<64x64xf32>
    %c1_90 = arith.constant 1 : index
    %c0_91 = arith.constant 0 : index
    %c0_92 = arith.constant 0 : index
    %c0_93 = arith.constant 0 : index
    %168 = vector.load %arg6[%c1_90, %c0_91, %c0_92, %c0_93] : memref<2x2x64x64xf32, #tpu.memory_space<vmem>>, vector<1x1x64x64xf32>
    %169 = vector.shape_cast %168 : vector<1x1x64x64xf32> to vector<64x64xf32>
    %170 = arith.addf %167, %169 : vector<64x64xf32>
    %cst_94 = arith.constant dense<0xFF800000> : vector<64xf32>
    %171 = vector.multi_reduction <maximumf>, %170, %cst_94 [1] : vector<64x64xf32> to vector<64xf32>
    %172 = vector.shape_cast %171 : vector<64xf32> to vector<64x1xf32>
    %173 = vector.broadcast %172 : vector<64x1xf32> to vector<64x64xf32>
    %174 = arith.subf %170, %173 : vector<64x64xf32>
    %175 = math.exp %174 : vector<64x64xf32>
    %cst_95 = arith.constant dense<0.000000e+00> : vector<64xf32>
    %176 = vector.multi_reduction <add>, %175, %cst_95 [1] : vector<64x64xf32> to vector<64xf32>
    %177 = vector.shape_cast %176 : vector<64xf32> to vector<64x1xf32>
    %178 = tpu.reciprocal %177 {approx = true} : vector<64x1xf32> -> vector<64x1xf32>
    %179 = vector.broadcast %178 : vector<64x1xf32> to vector<64x64xf32>
    %180 = arith.mulf %175, %179 : vector<64x64xf32>
    %181 = arith.truncf %180 : vector<64x64xf32> to vector<64x64xbf16>
    %cst_96 = arith.constant dense<0.000000e+00> : vector<64x16xf32>
    %182 = tpu.matmul %181, %164, %cst_96 {dimension_numbers = #tpu.dot_dimension_numbers<[1], [0], [0], [1], [0, 0, 1, 1], [], []>} : vector<64x64xbf16>, vector<64x16xbf16>, vector<64x16xf32> -> vector<64x16xf32>
    %183 = vector.extract_strided_slice %151 {offsets = [0, 16], sizes = [64, 16], strides = [1, 1]} : vector<64x128xf32> to vector<64x16xf32>
    %184 = arith.truncf %183 : vector<64x16xf32> to vector<64x16xbf16>
    %185 = vector.extract_strided_slice %160 {offsets = [0, 16], sizes = [64, 16], strides = [1, 1]} : vector<64x128xbf16> to vector<64x16xbf16>
    %186 = vector.extract_strided_slice %160 {offsets = [0, 48], sizes = [64, 16], strides = [1, 1]} : vector<64x128xbf16> to vector<64x16xbf16>
    %cst_97 = arith.constant dense<0.000000e+00> : vector<64x64xf32>
    %187 = tpu.matmul %184, %185, %cst_97 {dimension_numbers = #tpu.dot_dimension_numbers<[1], [1], [0], [0], [0, 0, 1, 0], [], []>} : vector<64x16xbf16>, vector<64x16xbf16>, vector<64x64xf32> -> vector<64x64xf32>
    %cst_98 = arith.constant 2.500000e-01 : f32
    %188 = vector.broadcast %cst_98 : f32 to vector<64x64xf32>
    %189 = arith.mulf %187, %188 : vector<64x64xf32>
    %c1_99 = arith.constant 1 : index
    %c1_100 = arith.constant 1 : index
    %c0_101 = arith.constant 0 : index
    %c0_102 = arith.constant 0 : index
    %190 = vector.load %arg6[%c1_99, %c1_100, %c0_101, %c0_102] : memref<2x2x64x64xf32, #tpu.memory_space<vmem>>, vector<1x1x64x64xf32>
    %191 = vector.shape_cast %190 : vector<1x1x64x64xf32> to vector<64x64xf32>
    %192 = arith.addf %189, %191 : vector<64x64xf32>
    %cst_103 = arith.constant dense<0xFF800000> : vector<64xf32>
    %193 = vector.multi_reduction <maximumf>, %192, %cst_103 [1] : vector<64x64xf32> to vector<64xf32>
    %194 = vector.shape_cast %193 : vector<64xf32> to vector<64x1xf32>
    %195 = vector.broadcast %194 : vector<64x1xf32> to vector<64x64xf32>
    %196 = arith.subf %192, %195 : vector<64x64xf32>
    %197 = math.exp %196 : vector<64x64xf32>
    %cst_104 = arith.constant dense<0.000000e+00> : vector<64xf32>
    %198 = vector.multi_reduction <add>, %197, %cst_104 [1] : vector<64x64xf32> to vector<64xf32>
    %199 = vector.shape_cast %198 : vector<64xf32> to vector<64x1xf32>
    %200 = tpu.reciprocal %199 {approx = true} : vector<64x1xf32> -> vector<64x1xf32>
    %201 = vector.broadcast %200 : vector<64x1xf32> to vector<64x64xf32>
    %202 = arith.mulf %197, %201 : vector<64x64xf32>
    %203 = arith.truncf %202 : vector<64x64xf32> to vector<64x64xbf16>
    %cst_105 = arith.constant dense<0.000000e+00> : vector<64x16xf32>
    %204 = tpu.matmul %203, %186, %cst_105 {dimension_numbers = #tpu.dot_dimension_numbers<[1], [0], [0], [1], [0, 0, 1, 1], [], []>} : vector<64x64xbf16>, vector<64x16xbf16>, vector<64x16xf32> -> vector<64x16xf32>
    %205 = tpu.concatenate %182, %204 in 1 : vector<64x16xf32>, vector<64x16xf32> -> vector<64x32xf32>
    %cst_106 = arith.constant 5.000000e-01 : f32
    %206 = vector.broadcast %cst_106 : f32 to vector<64x32xf32>
    %207 = arith.mulf %206, %205 : vector<64x32xf32>
    %cst_107 = arith.constant 0.707106769 : f32
    %208 = vector.broadcast %cst_107 : f32 to vector<64x32xf32>
    %209 = arith.mulf %205, %208 : vector<64x32xf32>
    %cst_108 = arith.constant 0.000000e+00 : f32
    %210 = vector.broadcast %cst_108 : f32 to vector<64x32xf32>
    %211 = arith.cmpf oge, %209, %210 : vector<64x32xf32>
    %cst_109 = arith.constant 0.000000e+00 : f32
    %212 = vector.broadcast %cst_109 : f32 to vector<64x32xf32>
    %213 = arith.subf %212, %209 : vector<64x32xf32>
    %214 = arith.select %211, %209, %213 : vector<64x32xi1>, vector<64x32xf32>
    %cst_110 = arith.constant 0.327591091 : f32
    %215 = vector.broadcast %cst_110 : f32 to vector<64x32xf32>
    %216 = arith.mulf %215, %214 : vector<64x32xf32>
    %cst_111 = arith.constant 1.000000e+00 : f32
    %217 = vector.broadcast %cst_111 : f32 to vector<64x32xf32>
    %218 = arith.addf %217, %216 : vector<64x32xf32>
    %cst_112 = arith.constant 1.000000e+00 : f32
    %219 = vector.broadcast %cst_112 : f32 to vector<64x32xf32>
    %220 = arith.divf %219, %218 : vector<64x32xf32>
    %cst_113 = arith.constant 1.06140542 : f32
    %221 = vector.broadcast %cst_113 : f32 to vector<64x32xf32>
    %222 = arith.mulf %221, %220 : vector<64x32xf32>
    %cst_114 = arith.constant -1.45315206 : f32
    %223 = vector.broadcast %cst_114 : f32 to vector<64x32xf32>
    %224 = arith.addf %222, %223 : vector<64x32xf32>
    %225 = arith.mulf %224, %220 : vector<64x32xf32>
    %cst_115 = arith.constant 1.42141378 : f32
    %226 = vector.broadcast %cst_115 : f32 to vector<64x32xf32>
    %227 = arith.addf %225, %226 : vector<64x32xf32>
    %228 = arith.mulf %227, %220 : vector<64x32xf32>
    %cst_116 = arith.constant -0.284496725 : f32
    %229 = vector.broadcast %cst_116 : f32 to vector<64x32xf32>
    %230 = arith.addf %228, %229 : vector<64x32xf32>
    %231 = arith.mulf %230, %220 : vector<64x32xf32>
    %cst_117 = arith.constant 0.254829586 : f32
    %232 = vector.broadcast %cst_117 : f32 to vector<64x32xf32>
    %233 = arith.addf %231, %232 : vector<64x32xf32>
    %234 = arith.mulf %233, %220 : vector<64x32xf32>
    %cst_118 = arith.constant 0.000000e+00 : f32
    %235 = vector.broadcast %cst_118 : f32 to vector<64x32xf32>
    %236 = arith.subf %235, %214 : vector<64x32xf32>
    %237 = arith.mulf %236, %214 : vector<64x32xf32>
    %238 = math.exp %237 : vector<64x32xf32>
    %239 = arith.mulf %234, %238 : vector<64x32xf32>
    %cst_119 = arith.constant 1.000000e+00 : f32
    %240 = vector.broadcast %cst_119 : f32 to vector<64x32xf32>
    %241 = arith.subf %240, %239 : vector<64x32xf32>
    %cst_120 = arith.constant 0.000000e+00 : f32
    %242 = vector.broadcast %cst_120 : f32 to vector<64x32xf32>
    %243 = arith.cmpf oge, %209, %242 : vector<64x32xf32>
    %cst_121 = arith.constant 0.000000e+00 : f32
    %244 = vector.broadcast %cst_121 : f32 to vector<64x32xf32>
    %245 = arith.subf %244, %241 : vector<64x32xf32>
    %246 = arith.select %243, %241, %245 : vector<64x32xi1>, vector<64x32xf32>
    %cst_122 = arith.constant 1.000000e+00 : f32
    %247 = vector.broadcast %cst_122 : f32 to vector<64x32xf32>
    %248 = arith.addf %247, %246 : vector<64x32xf32>
    %249 = arith.mulf %207, %248 : vector<64x32xf32>
    %250 = arith.truncf %249 : vector<64x32xf32> to vector<64x32xbf16>
    %c1_123 = arith.constant 1 : index
    %c0_124 = arith.constant 0 : index
    %c0_125 = arith.constant 0 : index
    %251 = vector.load %arg7[%c1_123, %c0_124, %c0_125] : memref<2x32x128xbf16, #tpu.memory_space<vmem>>, vector<1x32x128xbf16>
    %252 = vector.shape_cast %251 : vector<1x32x128xbf16> to vector<32x128xbf16>
    %cst_126 = arith.constant dense<0.000000e+00> : vector<64x128xf32>
    %253 = tpu.matmul %250, %252, %cst_126 {dimension_numbers = #tpu.dot_dimension_numbers<[1], [0], [0], [1], [0, 0, 1, 1], [], []>} : vector<64x32xbf16>, vector<32x128xbf16>, vector<64x128xf32> -> vector<64x128xf32>
    %c1_127 = arith.constant 1 : index
    %c0_128 = arith.constant 0 : index
    %c0_129 = arith.constant 0 : index
    %254 = vector.load %arg8[%c1_127, %c0_128, %c0_129] : memref<2x1x128xf32, #tpu.memory_space<vmem>>, vector<1x1x128xf32>
    %255 = vector.shape_cast %254 : vector<1x1x128xf32> to vector<1x128xf32>
    %256 = vector.broadcast %255 : vector<1x128xf32> to vector<64x128xf32>
    %257 = arith.addf %253, %256 : vector<64x128xf32>
    %258 = arith.addf %257, %143 : vector<64x128xf32>
    %259 = arith.truncf %258 : vector<64x128xf32> to vector<64x128xbf16>
    %c1_130 = arith.constant 1 : index
    %c0_131 = arith.constant 0 : index
    %c0_132 = arith.constant 0 : index
    %260 = vector.load %arg9[%c1_130, %c0_131, %c0_132] : memref<2x128x128xbf16, #tpu.memory_space<vmem>>, vector<1x128x128xbf16>
    %261 = vector.shape_cast %260 : vector<1x128x128xbf16> to vector<128x128xbf16>
    %cst_133 = arith.constant dense<0.000000e+00> : vector<64x128xf32>
    %262 = tpu.matmul %259, %261, %cst_133 {dimension_numbers = #tpu.dot_dimension_numbers<[1], [0], [0], [1], [0, 0, 1, 1], [], []>} : vector<64x128xbf16>, vector<128x128xbf16>, vector<64x128xf32> -> vector<64x128xf32>
    %c1_134 = arith.constant 1 : index
    %c0_135 = arith.constant 0 : index
    %c0_136 = arith.constant 0 : index
    %263 = vector.load %arg10[%c1_134, %c0_135, %c0_136] : memref<2x1x128xf32, #tpu.memory_space<vmem>>, vector<1x1x128xf32>
    %264 = vector.shape_cast %263 : vector<1x1x128xf32> to vector<1x128xf32>
    %265 = vector.broadcast %264 : vector<1x128xf32> to vector<64x128xf32>
    %266 = arith.addf %262, %265 : vector<64x128xf32>
    %cst_137 = arith.constant 3.000000e+00 : f32
    %267 = vector.broadcast %cst_137 : f32 to vector<64x128xf32>
    %268 = arith.addf %266, %267 : vector<64x128xf32>
    %cst_138 = arith.constant 0.000000e+00 : f32
    %cst_139 = arith.constant 6.000000e+00 : f32
    %269 = vector.broadcast %cst_138 : f32 to vector<64x128xf32>
    %270 = arith.maximumf %269, %268 : vector<64x128xf32>
    %271 = vector.broadcast %cst_139 : f32 to vector<64x128xf32>
    %272 = arith.minimumf %271, %270 : vector<64x128xf32>
    %273 = arith.mulf %266, %272 : vector<64x128xf32>
    %cst_140 = arith.constant 0.166666672 : f32
    %274 = vector.broadcast %cst_140 : f32 to vector<64x128xf32>
    %275 = arith.mulf %273, %274 : vector<64x128xf32>
    %276 = arith.truncf %275 : vector<64x128xf32> to vector<64x128xbf16>
    %c1_141 = arith.constant 1 : index
    %c0_142 = arith.constant 0 : index
    %c0_143 = arith.constant 0 : index
    %277 = vector.load %arg11[%c1_141, %c0_142, %c0_143] : memref<2x128x128xbf16, #tpu.memory_space<vmem>>, vector<1x128x128xbf16>
    %278 = vector.shape_cast %277 : vector<1x128x128xbf16> to vector<128x128xbf16>
    %cst_144 = arith.constant dense<0.000000e+00> : vector<64x128xf32>
    %279 = tpu.matmul %276, %278, %cst_144 {dimension_numbers = #tpu.dot_dimension_numbers<[1], [0], [0], [1], [0, 0, 1, 1], [], []>} : vector<64x128xbf16>, vector<128x128xbf16>, vector<64x128xf32> -> vector<64x128xf32>
    %c1_145 = arith.constant 1 : index
    %c0_146 = arith.constant 0 : index
    %c0_147 = arith.constant 0 : index
    %280 = vector.load %arg12[%c1_145, %c0_146, %c0_147] : memref<2x1x128xf32, #tpu.memory_space<vmem>>, vector<1x1x128xf32>
    %281 = vector.shape_cast %280 : vector<1x1x128xf32> to vector<1x128xf32>
    %282 = vector.broadcast %281 : vector<1x128xf32> to vector<64x128xf32>
    %283 = arith.addf %279, %282 : vector<64x128xf32>
    %284 = arith.addf %283, %258 : vector<64x128xf32>
    %285 = arith.truncf %284 : vector<64x128xf32> to vector<64x128xbf16>
    %c0_148 = arith.constant 0 : index
    %c0_149 = arith.constant 0 : index
    %c0_150 = arith.constant 0 : index
    %286 = vector.load %arg13[%c0_148, %c0_149, %c0_150] : memref<1x64x128xbf16, #tpu.memory_space<vmem>>, vector<1x64x128xbf16>
    %287 = vector.shape_cast %286 : vector<1x64x128xbf16> to vector<64x128xbf16>
    %288 = vector.shape_cast %285 : vector<64x128xbf16> to vector<1x64x128xbf16>
    tpu.vector_store %arg13[%c0_148, %c0_149, %c0_150], %288 {strides = array<i32>} : memref<1x64x128xbf16, #tpu.memory_space<vmem>>, vector<1x64x128xbf16>,
    return
  }
  func.func @transform_0(%arg0: i32) -> (i32, i32, i32) {
    %c0_i32 = arith.constant 0 : i32
    %c0_i32_0 = arith.constant 0 : i32
    %c0_i32_1 = arith.constant 0 : i32
    return %arg0, %c0_i32, %c0_i32_0 : i32, i32, i32
  }
  func.func @transform_1(%arg0: i32) -> (i32, i32, i32) {
    %c0_i32 = arith.constant 0 : i32
    %c0_i32_0 = arith.constant 0 : i32
    %c0_i32_1 = arith.constant 0 : i32
    %c0_i32_2 = arith.constant 0 : i32
    return %c0_i32, %c0_i32_0, %c0_i32_1 : i32, i32, i32
  }
  func.func @transform_2(%arg0: i32) -> (i32, i32, i32) {
    %c0_i32 = arith.constant 0 : i32
    %c0_i32_0 = arith.constant 0 : i32
    %c0_i32_1 = arith.constant 0 : i32
    %c0_i32_2 = arith.constant 0 : i32
    return %c0_i32, %c0_i32_0, %c0_i32_1 : i32, i32, i32
  }
  func.func @transform_3(%arg0: i32) -> (i32, i32, i32) {
    %c0_i32 = arith.constant 0 : i32
    %c0_i32_0 = arith.constant 0 : i32
    %c0_i32_1 = arith.constant 0 : i32
    %c0_i32_2 = arith.constant 0 : i32
    return %c0_i32, %c0_i32_0, %c0_i32_1 : i32, i32, i32
  }
  func.func @transform_4(%arg0: i32) -> (i32, i32, i32) {
    %c0_i32 = arith.constant 0 : i32
    %c0_i32_0 = arith.constant 0 : i32
    %c0_i32_1 = arith.constant 0 : i32
    %c0_i32_2 = arith.constant 0 : i32
    return %c0_i32, %c0_i32_0, %c0_i32_1 : i32, i32, i32
  }
  func.func @transform_5(%arg0: i32) -> (i32, i32, i32, i32) {
    %c0_i32 = arith.constant 0 : i32
    %c0_i32_0 = arith.constant 0 : i32
    %c0_i32_1 = arith.constant 0 : i32
    %c0_i32_2 = arith.constant 0 : i32
    %c0_i32_3 = arith.constant 0 : i32
    return %c0_i32, %c0_i32_0, %c0_i32_1, %c0_i32_2 : i32, i32, i32, i32
  }
  func.func @transform_6(%arg0: i32) -> (i32, i32, i32) {
    %c0_i32 = arith.constant 0 : i32
    %c0_i32_0 = arith.constant 0 : i32
    %c0_i32_1 = arith.constant 0 : i32
    %c0_i32_2 = arith.constant 0 : i32
    return %c0_i32, %c0_i32_0, %c0_i32_1 : i32, i32, i32
  }
  func.func @transform_7(%arg0: i32) -> (i32, i32, i32) {
    %c0_i32 = arith.constant 0 : i32
    %c0_i32_0 = arith.constant 0 : i32
    %c0_i32_1 = arith.constant 0 : i32
    %c0_i32_2 = arith.constant 0 : i32
    return %c0_i32, %c0_i32_0, %c0_i32_1 : i32, i32, i32
  }
  func.func @transform_8(%arg0: i32) -> (i32, i32, i32) {
    %c0_i32 = arith.constant 0 : i32
    %c0_i32_0 = arith.constant 0 : i32
    %c0_i32_1 = arith.constant 0 : i32
    %c0_i32_2 = arith.constant 0 : i32
    return %c0_i32, %c0_i32_0, %c0_i32_1 : i32, i32, i32
  }
  func.func @transform_9(%arg0: i32) -> (i32, i32, i32) {
    %c0_i32 = arith.constant 0 : i32
    %c0_i32_0 = arith.constant 0 : i32
    %c0_i32_1 = arith.constant 0 : i32
    %c0_i32_2 = arith.constant 0 : i32
    return %c0_i32, %c0_i32_0, %c0_i32_1 : i32, i32, i32
  }
  func.func @transform_10(%arg0: i32) -> (i32, i32, i32) {
    %c0_i32 = arith.constant 0 : i32
    %c0_i32_0 = arith.constant 0 : i32
    %c0_i32_1 = arith.constant 0 : i32
    %c0_i32_2 = arith.constant 0 : i32
    return %c0_i32, %c0_i32_0, %c0_i32_1 : i32, i32, i32
  }
  func.func @transform_11(%arg0: i32) -> (i32, i32, i32) {
    %c0_i32 = arith.constant 0 : i32
    %c0_i32_0 = arith.constant 0 : i32
    %c0_i32_1 = arith.constant 0 : i32
    %c0_i32_2 = arith.constant 0 : i32
    return %c0_i32, %c0_i32_0, %c0_i32_1 : i32, i32, i32
  }
  func.func @transform_12(%arg0: i32) -> (i32, i32, i32) {
    %c0_i32 = arith.constant 0 : i32
    %c0_i32_0 = arith.constant 0 : i32
    %c0_i32_1 = arith.constant 0 : i32
    return %arg0, %c0_i32, %c0_i32_0 : i32, i32, i32
  }
}

module attributes {stable_mosaic.version = 11 : i64} {
  func.func @_stage_kernel(%arg0: i32, %arg1: memref<1x64x128xbf16, #tpu.memory_space<vmem>>, %arg2: memref<1x16x128xbf16, #tpu.memory_space<vmem>>, %arg3: memref<1x128x128xbf16, #tpu.memory_space<vmem>>, %arg4: memref<1x1x128xf32, #tpu.memory_space<vmem>>, %arg5: memref<1x128x128xbf16, #tpu.memory_space<vmem>>, %arg6: memref<1x1x128xf32, #tpu.memory_space<vmem>>, %arg7: memref<1x4x16x64xf32, #tpu.memory_space<vmem>>, %arg8: memref<1x64x128xbf16, #tpu.memory_space<vmem>>, %arg9: memref<1x1x128xf32, #tpu.memory_space<vmem>>, %arg10: memref<1x128x128xbf16, #tpu.memory_space<vmem>>, %arg11: memref<1x1x128xf32, #tpu.memory_space<vmem>>, %arg12: memref<1x128x128xbf16, #tpu.memory_space<vmem>>, %arg13: memref<1x1x128xf32, #tpu.memory_space<vmem>>, %arg14: memref<1x16x128xbf16, #tpu.memory_space<vmem>>) attributes {dimension_semantics = [#tpu.dimension_semantics<parallel>], iteration_bounds = array<i64: 2>, scalar_prefetch = 0 : i64, scratch_operands = 0 : i64, tpu.core_type = #tpu.core_type<tc>, window_params = [{transform_indices = @transform_0, window_bounds = array<i64: 1, 64, 128>}, {transform_indices = @transform_1, window_bounds = array<i64: 1, 16, 128>}, {pipeline_mode = #tpu.pipeline_mode<synchronous>, transform_indices = @transform_2, window_bounds = array<i64: 1, 128, 128>}, {pipeline_mode = #tpu.pipeline_mode<synchronous>, transform_indices = @transform_3, window_bounds = array<i64: 1, 1, 128>}, {pipeline_mode = #tpu.pipeline_mode<synchronous>, transform_indices = @transform_4, window_bounds = array<i64: 1, 128, 128>}, {pipeline_mode = #tpu.pipeline_mode<synchronous>, transform_indices = @transform_5, window_bounds = array<i64: 1, 1, 128>}, {pipeline_mode = #tpu.pipeline_mode<synchronous>, transform_indices = @transform_6, window_bounds = array<i64: 1, 4, 16, 64>}, {pipeline_mode = #tpu.pipeline_mode<synchronous>, transform_indices = @transform_7, window_bounds = array<i64: 1, 64, 128>}, {pipeline_mode = #tpu.pipeline_mode<synchronous>, transform_indices = @transform_8, window_bounds = array<i64: 1, 1, 128>}, {pipeline_mode = #tpu.pipeline_mode<synchronous>, transform_indices = @transform_9, window_bounds = array<i64: 1, 128, 128>}, {pipeline_mode = #tpu.pipeline_mode<synchronous>, transform_indices = @transform_10, window_bounds = array<i64: 1, 1, 128>}, {pipeline_mode = #tpu.pipeline_mode<synchronous>, transform_indices = @transform_11, window_bounds = array<i64: 1, 128, 128>}, {pipeline_mode = #tpu.pipeline_mode<synchronous>, transform_indices = @transform_12, window_bounds = array<i64: 1, 1, 128>}, {transform_indices = @transform_13, window_bounds = array<i64: 1, 16, 128>}]} {
    %c0 = arith.constant 0 : index
    %c0_0 = arith.constant 0 : index
    %c0_1 = arith.constant 0 : index
    %0 = vector.load %arg1[%c0, %c0_0, %c0_1] : memref<1x64x128xbf16, #tpu.memory_space<vmem>>, vector<1x64x128xbf16>
    %1 = vector.shape_cast %0 : vector<1x64x128xbf16> to vector<64x128xbf16>
    %2 = arith.extf %1 : vector<64x128xbf16> to vector<64x128xf32>
    %c0_2 = arith.constant 0 : index
    %c0_3 = arith.constant 0 : index
    %c0_4 = arith.constant 0 : index
    %3 = vector.load %arg2[%c0_2, %c0_3, %c0_4] : memref<1x16x128xbf16, #tpu.memory_space<vmem>>, vector<1x16x128xbf16>
    %4 = vector.shape_cast %3 : vector<1x16x128xbf16> to vector<16x128xbf16>
    %5 = arith.extf %4 : vector<16x128xbf16> to vector<16x128xf32>
    %6 = arith.truncf %5 : vector<16x128xf32> to vector<16x128xbf16>
    %c0_5 = arith.constant 0 : index
    %c0_6 = arith.constant 0 : index
    %c0_7 = arith.constant 0 : index
    %7 = vector.load %arg3[%c0_5, %c0_6, %c0_7] : memref<1x128x128xbf16, #tpu.memory_space<vmem>>, vector<1x128x128xbf16>
    %8 = vector.shape_cast %7 : vector<1x128x128xbf16> to vector<128x128xbf16>
    %cst = arith.constant dense<0.000000e+00> : vector<16x128xf32>
    %9 = tpu.matmul %6, %8, %cst {dimension_numbers = #tpu.dot_dimension_numbers<[1], [0], [0], [1], [0, 0, 1, 1], [], []>} : vector<16x128xbf16>, vector<128x128xbf16>, vector<16x128xf32> -> vector<16x128xf32>
    %c0_8 = arith.constant 0 : index
    %c0_9 = arith.constant 0 : index
    %c0_10 = arith.constant 0 : index
    %10 = vector.load %arg4[%c0_8, %c0_9, %c0_10] : memref<1x1x128xf32, #tpu.memory_space<vmem>>, vector<1x1x128xf32>
    %11 = vector.shape_cast %10 : vector<1x1x128xf32> to vector<1x128xf32>
    %12 = vector.broadcast %11 : vector<1x128xf32> to vector<16x128xf32>
    %13 = arith.addf %9, %12 : vector<16x128xf32>
    %14 = arith.truncf %2 : vector<64x128xf32> to vector<64x128xbf16>
    %c0_11 = arith.constant 0 : index
    %c0_12 = arith.constant 0 : index
    %c0_13 = arith.constant 0 : index
    %15 = vector.load %arg5[%c0_11, %c0_12, %c0_13] : memref<1x128x128xbf16, #tpu.memory_space<vmem>>, vector<1x128x128xbf16>
    %16 = vector.shape_cast %15 : vector<1x128x128xbf16> to vector<128x128xbf16>
    %cst_14 = arith.constant dense<0.000000e+00> : vector<64x128xf32>
    %17 = tpu.matmul %14, %16, %cst_14 {dimension_numbers = #tpu.dot_dimension_numbers<[1], [0], [0], [1], [0, 0, 1, 1], [], []>} : vector<64x128xbf16>, vector<128x128xbf16>, vector<64x128xf32> -> vector<64x128xf32>
    %c0_15 = arith.constant 0 : index
    %c0_16 = arith.constant 0 : index
    %c0_17 = arith.constant 0 : index
    %18 = vector.load %arg6[%c0_15, %c0_16, %c0_17] : memref<1x1x128xf32, #tpu.memory_space<vmem>>, vector<1x1x128xf32>
    %19 = vector.shape_cast %18 : vector<1x1x128xf32> to vector<1x128xf32>
    %20 = vector.broadcast %19 : vector<1x128xf32> to vector<64x128xf32>
    %21 = arith.addf %17, %20 : vector<64x128xf32>
    %22 = arith.truncf %21 : vector<64x128xf32> to vector<64x128xbf16>
    %23 = vector.extract_strided_slice %13 {offsets = [0, 0], sizes = [16, 16], strides = [1, 1]} : vector<16x128xf32> to vector<16x16xf32>
    %24 = arith.truncf %23 : vector<16x16xf32> to vector<16x16xbf16>
    %25 = vector.extract_strided_slice %22 {offsets = [0, 0], sizes = [64, 16], strides = [1, 1]} : vector<64x128xbf16> to vector<64x16xbf16>
    %26 = vector.extract_strided_slice %22 {offsets = [0, 64], sizes = [64, 16], strides = [1, 1]} : vector<64x128xbf16> to vector<64x16xbf16>
    %cst_18 = arith.constant dense<0.000000e+00> : vector<16x64xf32>
    %27 = tpu.matmul %24, %25, %cst_18 {dimension_numbers = #tpu.dot_dimension_numbers<[1], [1], [0], [0], [0, 0, 1, 0], [], []>} : vector<16x16xbf16>, vector<64x16xbf16>, vector<16x64xf32> -> vector<16x64xf32>
    %cst_19 = arith.constant 2.500000e-01 : f32
    %28 = vector.broadcast %cst_19 : f32 to vector<16x64xf32>
    %29 = arith.mulf %27, %28 : vector<16x64xf32>
    %c0_20 = arith.constant 0 : index
    %c0_21 = arith.constant 0 : index
    %c0_22 = arith.constant 0 : index
    %c0_23 = arith.constant 0 : index
    %30 = vector.load %arg7[%c0_20, %c0_21, %c0_22, %c0_23] : memref<1x4x16x64xf32, #tpu.memory_space<vmem>>, vector<1x1x16x64xf32>
    %31 = vector.shape_cast %30 : vector<1x1x16x64xf32> to vector<16x64xf32>
    %32 = arith.addf %29, %31 : vector<16x64xf32>
    %cst_24 = arith.constant dense<0xFF800000> : vector<16xf32>
    %33 = vector.multi_reduction <maximumf>, %32, %cst_24 [1] : vector<16x64xf32> to vector<16xf32>
    %34 = vector.shape_cast %33 : vector<16xf32> to vector<16x1xf32>
    %35 = vector.broadcast %34 : vector<16x1xf32> to vector<16x64xf32>
    %36 = arith.subf %32, %35 : vector<16x64xf32>
    %37 = math.exp %36 : vector<16x64xf32>
    %cst_25 = arith.constant dense<0.000000e+00> : vector<16xf32>
    %38 = vector.multi_reduction <add>, %37, %cst_25 [1] : vector<16x64xf32> to vector<16xf32>
    %39 = vector.shape_cast %38 : vector<16xf32> to vector<16x1xf32>
    %40 = tpu.reciprocal %39 {approx = true} : vector<16x1xf32> -> vector<16x1xf32>
    %41 = vector.broadcast %40 : vector<16x1xf32> to vector<16x64xf32>
    %42 = arith.mulf %37, %41 : vector<16x64xf32>
    %43 = arith.truncf %42 : vector<16x64xf32> to vector<16x64xbf16>
    %cst_26 = arith.constant dense<0.000000e+00> : vector<16x16xf32>
    %44 = tpu.matmul %43, %26, %cst_26 {dimension_numbers = #tpu.dot_dimension_numbers<[1], [0], [0], [1], [0, 0, 1, 1], [], []>} : vector<16x64xbf16>, vector<64x16xbf16>, vector<16x16xf32> -> vector<16x16xf32>
    %45 = vector.extract_strided_slice %13 {offsets = [0, 16], sizes = [16, 16], strides = [1, 1]} : vector<16x128xf32> to vector<16x16xf32>
    %46 = arith.truncf %45 : vector<16x16xf32> to vector<16x16xbf16>
    %47 = vector.extract_strided_slice %22 {offsets = [0, 16], sizes = [64, 16], strides = [1, 1]} : vector<64x128xbf16> to vector<64x16xbf16>
    %48 = vector.extract_strided_slice %22 {offsets = [0, 80], sizes = [64, 16], strides = [1, 1]} : vector<64x128xbf16> to vector<64x16xbf16>
    %cst_27 = arith.constant dense<0.000000e+00> : vector<16x64xf32>
    %49 = tpu.matmul %46, %47, %cst_27 {dimension_numbers = #tpu.dot_dimension_numbers<[1], [1], [0], [0], [0, 0, 1, 0], [], []>} : vector<16x16xbf16>, vector<64x16xbf16>, vector<16x64xf32> -> vector<16x64xf32>
    %cst_28 = arith.constant 2.500000e-01 : f32
    %50 = vector.broadcast %cst_28 : f32 to vector<16x64xf32>
    %51 = arith.mulf %49, %50 : vector<16x64xf32>
    %c0_29 = arith.constant 0 : index
    %c1 = arith.constant 1 : index
    %c0_30 = arith.constant 0 : index
    %c0_31 = arith.constant 0 : index
    %52 = vector.load %arg7[%c0_29, %c1, %c0_30, %c0_31] : memref<1x4x16x64xf32, #tpu.memory_space<vmem>>, vector<1x1x16x64xf32>
    %53 = vector.shape_cast %52 : vector<1x1x16x64xf32> to vector<16x64xf32>
    %54 = arith.addf %51, %53 : vector<16x64xf32>
    %cst_32 = arith.constant dense<0xFF800000> : vector<16xf32>
    %55 = vector.multi_reduction <maximumf>, %54, %cst_32 [1] : vector<16x64xf32> to vector<16xf32>
    %56 = vector.shape_cast %55 : vector<16xf32> to vector<16x1xf32>
    %57 = vector.broadcast %56 : vector<16x1xf32> to vector<16x64xf32>
    %58 = arith.subf %54, %57 : vector<16x64xf32>
    %59 = math.exp %58 : vector<16x64xf32>
    %cst_33 = arith.constant dense<0.000000e+00> : vector<16xf32>
    %60 = vector.multi_reduction <add>, %59, %cst_33 [1] : vector<16x64xf32> to vector<16xf32>
    %61 = vector.shape_cast %60 : vector<16xf32> to vector<16x1xf32>
    %62 = tpu.reciprocal %61 {approx = true} : vector<16x1xf32> -> vector<16x1xf32>
    %63 = vector.broadcast %62 : vector<16x1xf32> to vector<16x64xf32>
    %64 = arith.mulf %59, %63 : vector<16x64xf32>
    %65 = arith.truncf %64 : vector<16x64xf32> to vector<16x64xbf16>
    %cst_34 = arith.constant dense<0.000000e+00> : vector<16x16xf32>
    %66 = tpu.matmul %65, %48, %cst_34 {dimension_numbers = #tpu.dot_dimension_numbers<[1], [0], [0], [1], [0, 0, 1, 1], [], []>} : vector<16x64xbf16>, vector<64x16xbf16>, vector<16x16xf32> -> vector<16x16xf32>
    %67 = vector.extract_strided_slice %13 {offsets = [0, 32], sizes = [16, 16], strides = [1, 1]} : vector<16x128xf32> to vector<16x16xf32>
    %68 = arith.truncf %67 : vector<16x16xf32> to vector<16x16xbf16>
    %69 = vector.extract_strided_slice %22 {offsets = [0, 32], sizes = [64, 16], strides = [1, 1]} : vector<64x128xbf16> to vector<64x16xbf16>
    %70 = vector.extract_strided_slice %22 {offsets = [0, 96], sizes = [64, 16], strides = [1, 1]} : vector<64x128xbf16> to vector<64x16xbf16>
    %cst_35 = arith.constant dense<0.000000e+00> : vector<16x64xf32>
    %71 = tpu.matmul %68, %69, %cst_35 {dimension_numbers = #tpu.dot_dimension_numbers<[1], [1], [0], [0], [0, 0, 1, 0], [], []>} : vector<16x16xbf16>, vector<64x16xbf16>, vector<16x64xf32> -> vector<16x64xf32>
    %cst_36 = arith.constant 2.500000e-01 : f32
    %72 = vector.broadcast %cst_36 : f32 to vector<16x64xf32>
    %73 = arith.mulf %71, %72 : vector<16x64xf32>
    %c0_37 = arith.constant 0 : index
    %c2 = arith.constant 2 : index
    %c0_38 = arith.constant 0 : index
    %c0_39 = arith.constant 0 : index
    %74 = vector.load %arg7[%c0_37, %c2, %c0_38, %c0_39] : memref<1x4x16x64xf32, #tpu.memory_space<vmem>>, vector<1x1x16x64xf32>
    %75 = vector.shape_cast %74 : vector<1x1x16x64xf32> to vector<16x64xf32>
    %76 = arith.addf %73, %75 : vector<16x64xf32>
    %cst_40 = arith.constant dense<0xFF800000> : vector<16xf32>
    %77 = vector.multi_reduction <maximumf>, %76, %cst_40 [1] : vector<16x64xf32> to vector<16xf32>
    %78 = vector.shape_cast %77 : vector<16xf32> to vector<16x1xf32>
    %79 = vector.broadcast %78 : vector<16x1xf32> to vector<16x64xf32>
    %80 = arith.subf %76, %79 : vector<16x64xf32>
    %81 = math.exp %80 : vector<16x64xf32>
    %cst_41 = arith.constant dense<0.000000e+00> : vector<16xf32>
    %82 = vector.multi_reduction <add>, %81, %cst_41 [1] : vector<16x64xf32> to vector<16xf32>
    %83 = vector.shape_cast %82 : vector<16xf32> to vector<16x1xf32>
    %84 = tpu.reciprocal %83 {approx = true} : vector<16x1xf32> -> vector<16x1xf32>
    %85 = vector.broadcast %84 : vector<16x1xf32> to vector<16x64xf32>
    %86 = arith.mulf %81, %85 : vector<16x64xf32>
    %87 = arith.truncf %86 : vector<16x64xf32> to vector<16x64xbf16>
    %cst_42 = arith.constant dense<0.000000e+00> : vector<16x16xf32>
    %88 = tpu.matmul %87, %70, %cst_42 {dimension_numbers = #tpu.dot_dimension_numbers<[1], [0], [0], [1], [0, 0, 1, 1], [], []>} : vector<16x64xbf16>, vector<64x16xbf16>, vector<16x16xf32> -> vector<16x16xf32>
    %89 = vector.extract_strided_slice %13 {offsets = [0, 48], sizes = [16, 16], strides = [1, 1]} : vector<16x128xf32> to vector<16x16xf32>
    %90 = arith.truncf %89 : vector<16x16xf32> to vector<16x16xbf16>
    %91 = vector.extract_strided_slice %22 {offsets = [0, 48], sizes = [64, 16], strides = [1, 1]} : vector<64x128xbf16> to vector<64x16xbf16>
    %92 = vector.extract_strided_slice %22 {offsets = [0, 112], sizes = [64, 16], strides = [1, 1]} : vector<64x128xbf16> to vector<64x16xbf16>
    %cst_43 = arith.constant dense<0.000000e+00> : vector<16x64xf32>
    %93 = tpu.matmul %90, %91, %cst_43 {dimension_numbers = #tpu.dot_dimension_numbers<[1], [1], [0], [0], [0, 0, 1, 0], [], []>} : vector<16x16xbf16>, vector<64x16xbf16>, vector<16x64xf32> -> vector<16x64xf32>
    %cst_44 = arith.constant 2.500000e-01 : f32
    %94 = vector.broadcast %cst_44 : f32 to vector<16x64xf32>
    %95 = arith.mulf %93, %94 : vector<16x64xf32>
    %c0_45 = arith.constant 0 : index
    %c3 = arith.constant 3 : index
    %c0_46 = arith.constant 0 : index
    %c0_47 = arith.constant 0 : index
    %96 = vector.load %arg7[%c0_45, %c3, %c0_46, %c0_47] : memref<1x4x16x64xf32, #tpu.memory_space<vmem>>, vector<1x1x16x64xf32>
    %97 = vector.shape_cast %96 : vector<1x1x16x64xf32> to vector<16x64xf32>
    %98 = arith.addf %95, %97 : vector<16x64xf32>
    %cst_48 = arith.constant dense<0xFF800000> : vector<16xf32>
    %99 = vector.multi_reduction <maximumf>, %98, %cst_48 [1] : vector<16x64xf32> to vector<16xf32>
    %100 = vector.shape_cast %99 : vector<16xf32> to vector<16x1xf32>
    %101 = vector.broadcast %100 : vector<16x1xf32> to vector<16x64xf32>
    %102 = arith.subf %98, %101 : vector<16x64xf32>
    %103 = math.exp %102 : vector<16x64xf32>
    %cst_49 = arith.constant dense<0.000000e+00> : vector<16xf32>
    %104 = vector.multi_reduction <add>, %103, %cst_49 [1] : vector<16x64xf32> to vector<16xf32>
    %105 = vector.shape_cast %104 : vector<16xf32> to vector<16x1xf32>
    %106 = tpu.reciprocal %105 {approx = true} : vector<16x1xf32> -> vector<16x1xf32>
    %107 = vector.broadcast %106 : vector<16x1xf32> to vector<16x64xf32>
    %108 = arith.mulf %103, %107 : vector<16x64xf32>
    %109 = arith.truncf %108 : vector<16x64xf32> to vector<16x64xbf16>
    %cst_50 = arith.constant dense<0.000000e+00> : vector<16x16xf32>
    %110 = tpu.matmul %109, %92, %cst_50 {dimension_numbers = #tpu.dot_dimension_numbers<[1], [0], [0], [1], [0, 0, 1, 1], [], []>} : vector<16x64xbf16>, vector<64x16xbf16>, vector<16x16xf32> -> vector<16x16xf32>
    %111 = tpu.concatenate %44, %66, %88, %110 in 1 : vector<16x16xf32>, vector<16x16xf32>, vector<16x16xf32>, vector<16x16xf32> -> vector<16x64xf32>
    %cst_51 = arith.constant 5.000000e-01 : f32
    %112 = vector.broadcast %cst_51 : f32 to vector<16x64xf32>
    %113 = arith.mulf %112, %111 : vector<16x64xf32>
    %cst_52 = arith.constant 0.707106769 : f32
    %114 = vector.broadcast %cst_52 : f32 to vector<16x64xf32>
    %115 = arith.mulf %111, %114 : vector<16x64xf32>
    %cst_53 = arith.constant 0.000000e+00 : f32
    %116 = vector.broadcast %cst_53 : f32 to vector<16x64xf32>
    %117 = arith.cmpf oge, %115, %116 : vector<16x64xf32>
    %cst_54 = arith.constant 0.000000e+00 : f32
    %118 = vector.broadcast %cst_54 : f32 to vector<16x64xf32>
    %119 = arith.subf %118, %115 : vector<16x64xf32>
    %120 = arith.select %117, %115, %119 : vector<16x64xi1>, vector<16x64xf32>
    %cst_55 = arith.constant 0.327591091 : f32
    %121 = vector.broadcast %cst_55 : f32 to vector<16x64xf32>
    %122 = arith.mulf %121, %120 : vector<16x64xf32>
    %cst_56 = arith.constant 1.000000e+00 : f32
    %123 = vector.broadcast %cst_56 : f32 to vector<16x64xf32>
    %124 = arith.addf %123, %122 : vector<16x64xf32>
    %cst_57 = arith.constant 1.000000e+00 : f32
    %125 = vector.broadcast %cst_57 : f32 to vector<16x64xf32>
    %126 = arith.divf %125, %124 : vector<16x64xf32>
    %cst_58 = arith.constant 1.06140542 : f32
    %127 = vector.broadcast %cst_58 : f32 to vector<16x64xf32>
    %128 = arith.mulf %127, %126 : vector<16x64xf32>
    %cst_59 = arith.constant -1.45315206 : f32
    %129 = vector.broadcast %cst_59 : f32 to vector<16x64xf32>
    %130 = arith.addf %128, %129 : vector<16x64xf32>
    %131 = arith.mulf %130, %126 : vector<16x64xf32>
    %cst_60 = arith.constant 1.42141378 : f32
    %132 = vector.broadcast %cst_60 : f32 to vector<16x64xf32>
    %133 = arith.addf %131, %132 : vector<16x64xf32>
    %134 = arith.mulf %133, %126 : vector<16x64xf32>
    %cst_61 = arith.constant -0.284496725 : f32
    %135 = vector.broadcast %cst_61 : f32 to vector<16x64xf32>
    %136 = arith.addf %134, %135 : vector<16x64xf32>
    %137 = arith.mulf %136, %126 : vector<16x64xf32>
    %cst_62 = arith.constant 0.254829586 : f32
    %138 = vector.broadcast %cst_62 : f32 to vector<16x64xf32>
    %139 = arith.addf %137, %138 : vector<16x64xf32>
    %140 = arith.mulf %139, %126 : vector<16x64xf32>
    %cst_63 = arith.constant 0.000000e+00 : f32
    %141 = vector.broadcast %cst_63 : f32 to vector<16x64xf32>
    %142 = arith.subf %141, %120 : vector<16x64xf32>
    %143 = arith.mulf %142, %120 : vector<16x64xf32>
    %144 = math.exp %143 : vector<16x64xf32>
    %145 = arith.mulf %140, %144 : vector<16x64xf32>
    %cst_64 = arith.constant 1.000000e+00 : f32
    %146 = vector.broadcast %cst_64 : f32 to vector<16x64xf32>
    %147 = arith.subf %146, %145 : vector<16x64xf32>
    %cst_65 = arith.constant 0.000000e+00 : f32
    %148 = vector.broadcast %cst_65 : f32 to vector<16x64xf32>
    %149 = arith.cmpf oge, %115, %148 : vector<16x64xf32>
    %cst_66 = arith.constant 0.000000e+00 : f32
    %150 = vector.broadcast %cst_66 : f32 to vector<16x64xf32>
    %151 = arith.subf %150, %147 : vector<16x64xf32>
    %152 = arith.select %149, %147, %151 : vector<16x64xi1>, vector<16x64xf32>
    %cst_67 = arith.constant 1.000000e+00 : f32
    %153 = vector.broadcast %cst_67 : f32 to vector<16x64xf32>
    %154 = arith.addf %153, %152 : vector<16x64xf32>
    %155 = arith.mulf %113, %154 : vector<16x64xf32>
    %156 = arith.truncf %155 : vector<16x64xf32> to vector<16x64xbf16>
    %c0_68 = arith.constant 0 : index
    %c0_69 = arith.constant 0 : index
    %c0_70 = arith.constant 0 : index
    %157 = vector.load %arg8[%c0_68, %c0_69, %c0_70] : memref<1x64x128xbf16, #tpu.memory_space<vmem>>, vector<1x64x128xbf16>
    %158 = vector.shape_cast %157 : vector<1x64x128xbf16> to vector<64x128xbf16>
    %cst_71 = arith.constant dense<0.000000e+00> : vector<16x128xf32>
    %159 = tpu.matmul %156, %158, %cst_71 {dimension_numbers = #tpu.dot_dimension_numbers<[1], [0], [0], [1], [0, 0, 1, 1], [], []>} : vector<16x64xbf16>, vector<64x128xbf16>, vector<16x128xf32> -> vector<16x128xf32>
    %c0_72 = arith.constant 0 : index
    %c0_73 = arith.constant 0 : index
    %c0_74 = arith.constant 0 : index
    %160 = vector.load %arg9[%c0_72, %c0_73, %c0_74] : memref<1x1x128xf32, #tpu.memory_space<vmem>>, vector<1x1x128xf32>
    %161 = vector.shape_cast %160 : vector<1x1x128xf32> to vector<1x128xf32>
    %162 = vector.broadcast %161 : vector<1x128xf32> to vector<16x128xf32>
    %163 = arith.addf %159, %162 : vector<16x128xf32>
    %164 = arith.truncf %163 : vector<16x128xf32> to vector<16x128xbf16>
    %c0_75 = arith.constant 0 : index
    %c0_76 = arith.constant 0 : index
    %c0_77 = arith.constant 0 : index
    %165 = vector.load %arg10[%c0_75, %c0_76, %c0_77] : memref<1x128x128xbf16, #tpu.memory_space<vmem>>, vector<1x128x128xbf16>
    %166 = vector.shape_cast %165 : vector<1x128x128xbf16> to vector<128x128xbf16>
    %cst_78 = arith.constant dense<0.000000e+00> : vector<16x128xf32>
    %167 = tpu.matmul %164, %166, %cst_78 {dimension_numbers = #tpu.dot_dimension_numbers<[1], [0], [0], [1], [0, 0, 1, 1], [], []>} : vector<16x128xbf16>, vector<128x128xbf16>, vector<16x128xf32> -> vector<16x128xf32>
    %c0_79 = arith.constant 0 : index
    %c0_80 = arith.constant 0 : index
    %c0_81 = arith.constant 0 : index
    %168 = vector.load %arg11[%c0_79, %c0_80, %c0_81] : memref<1x1x128xf32, #tpu.memory_space<vmem>>, vector<1x1x128xf32>
    %169 = vector.shape_cast %168 : vector<1x1x128xf32> to vector<1x128xf32>
    %170 = vector.broadcast %169 : vector<1x128xf32> to vector<16x128xf32>
    %171 = arith.addf %167, %170 : vector<16x128xf32>
    %cst_82 = arith.constant 3.000000e+00 : f32
    %172 = vector.broadcast %cst_82 : f32 to vector<16x128xf32>
    %173 = arith.addf %171, %172 : vector<16x128xf32>
    %cst_83 = arith.constant 0.000000e+00 : f32
    %cst_84 = arith.constant 6.000000e+00 : f32
    %174 = vector.broadcast %cst_83 : f32 to vector<16x128xf32>
    %175 = arith.maximumf %174, %173 : vector<16x128xf32>
    %176 = vector.broadcast %cst_84 : f32 to vector<16x128xf32>
    %177 = arith.minimumf %176, %175 : vector<16x128xf32>
    %178 = arith.mulf %171, %177 : vector<16x128xf32>
    %cst_85 = arith.constant 0.166666672 : f32
    %179 = vector.broadcast %cst_85 : f32 to vector<16x128xf32>
    %180 = arith.mulf %178, %179 : vector<16x128xf32>
    %181 = arith.truncf %180 : vector<16x128xf32> to vector<16x128xbf16>
    %c0_86 = arith.constant 0 : index
    %c0_87 = arith.constant 0 : index
    %c0_88 = arith.constant 0 : index
    %182 = vector.load %arg12[%c0_86, %c0_87, %c0_88] : memref<1x128x128xbf16, #tpu.memory_space<vmem>>, vector<1x128x128xbf16>
    %183 = vector.shape_cast %182 : vector<1x128x128xbf16> to vector<128x128xbf16>
    %cst_89 = arith.constant dense<0.000000e+00> : vector<16x128xf32>
    %184 = tpu.matmul %181, %183, %cst_89 {dimension_numbers = #tpu.dot_dimension_numbers<[1], [0], [0], [1], [0, 0, 1, 1], [], []>} : vector<16x128xbf16>, vector<128x128xbf16>, vector<16x128xf32> -> vector<16x128xf32>
    %c0_90 = arith.constant 0 : index
    %c0_91 = arith.constant 0 : index
    %c0_92 = arith.constant 0 : index
    %185 = vector.load %arg13[%c0_90, %c0_91, %c0_92] : memref<1x1x128xf32, #tpu.memory_space<vmem>>, vector<1x1x128xf32>
    %186 = vector.shape_cast %185 : vector<1x1x128xf32> to vector<1x128xf32>
    %187 = vector.broadcast %186 : vector<1x128xf32> to vector<16x128xf32>
    %188 = arith.addf %184, %187 : vector<16x128xf32>
    %189 = arith.addf %188, %163 : vector<16x128xf32>
    %190 = arith.truncf %189 : vector<16x128xf32> to vector<16x128xbf16>
    %c0_93 = arith.constant 0 : index
    %c0_94 = arith.constant 0 : index
    %c0_95 = arith.constant 0 : index
    %191 = vector.load %arg14[%c0_93, %c0_94, %c0_95] : memref<1x16x128xbf16, #tpu.memory_space<vmem>>, vector<1x16x128xbf16>
    %192 = vector.shape_cast %191 : vector<1x16x128xbf16> to vector<16x128xbf16>
    %193 = vector.shape_cast %190 : vector<16x128xbf16> to vector<1x16x128xbf16>
    tpu.vector_store %arg14[%c0_93, %c0_94, %c0_95], %193 {strides = array<i32>} : memref<1x16x128xbf16, #tpu.memory_space<vmem>>, vector<1x16x128xbf16>,
    return
  }
  func.func @transform_0(%arg0: i32) -> (i32, i32, i32) {
    %c0_i32 = arith.constant 0 : i32
    %c0_i32_0 = arith.constant 0 : i32
    %c0_i32_1 = arith.constant 0 : i32
    return %arg0, %c0_i32, %c0_i32_0 : i32, i32, i32
  }
  func.func @transform_1(%arg0: i32) -> (i32, i32, i32) {
    %c0_i32 = arith.constant 0 : i32
    %c0_i32_0 = arith.constant 0 : i32
    %c0_i32_1 = arith.constant 0 : i32
    return %arg0, %c0_i32, %c0_i32_0 : i32, i32, i32
  }
  func.func @transform_2(%arg0: i32) -> (i32, i32, i32) {
    %c0_i32 = arith.constant 0 : i32
    %c0_i32_0 = arith.constant 0 : i32
    %c0_i32_1 = arith.constant 0 : i32
    %c0_i32_2 = arith.constant 0 : i32
    return %c0_i32, %c0_i32_0, %c0_i32_1 : i32, i32, i32
  }
  func.func @transform_3(%arg0: i32) -> (i32, i32, i32) {
    %c0_i32 = arith.constant 0 : i32
    %c0_i32_0 = arith.constant 0 : i32
    %c0_i32_1 = arith.constant 0 : i32
    %c0_i32_2 = arith.constant 0 : i32
    return %c0_i32, %c0_i32_0, %c0_i32_1 : i32, i32, i32
  }
  func.func @transform_4(%arg0: i32) -> (i32, i32, i32) {
    %c0_i32 = arith.constant 0 : i32
    %c0_i32_0 = arith.constant 0 : i32
    %c0_i32_1 = arith.constant 0 : i32
    %c0_i32_2 = arith.constant 0 : i32
    return %c0_i32, %c0_i32_0, %c0_i32_1 : i32, i32, i32
  }
  func.func @transform_5(%arg0: i32) -> (i32, i32, i32) {
    %c0_i32 = arith.constant 0 : i32
    %c0_i32_0 = arith.constant 0 : i32
    %c0_i32_1 = arith.constant 0 : i32
    %c0_i32_2 = arith.constant 0 : i32
    return %c0_i32, %c0_i32_0, %c0_i32_1 : i32, i32, i32
  }
  func.func @transform_6(%arg0: i32) -> (i32, i32, i32, i32) {
    %c0_i32 = arith.constant 0 : i32
    %c0_i32_0 = arith.constant 0 : i32
    %c0_i32_1 = arith.constant 0 : i32
    %c0_i32_2 = arith.constant 0 : i32
    %c0_i32_3 = arith.constant 0 : i32
    return %c0_i32, %c0_i32_0, %c0_i32_1, %c0_i32_2 : i32, i32, i32, i32
  }
  func.func @transform_7(%arg0: i32) -> (i32, i32, i32) {
    %c0_i32 = arith.constant 0 : i32
    %c0_i32_0 = arith.constant 0 : i32
    %c0_i32_1 = arith.constant 0 : i32
    %c0_i32_2 = arith.constant 0 : i32
    return %c0_i32, %c0_i32_0, %c0_i32_1 : i32, i32, i32
  }
  func.func @transform_8(%arg0: i32) -> (i32, i32, i32) {
    %c0_i32 = arith.constant 0 : i32
    %c0_i32_0 = arith.constant 0 : i32
    %c0_i32_1 = arith.constant 0 : i32
    %c0_i32_2 = arith.constant 0 : i32
    return %c0_i32, %c0_i32_0, %c0_i32_1 : i32, i32, i32
  }
  func.func @transform_9(%arg0: i32) -> (i32, i32, i32) {
    %c0_i32 = arith.constant 0 : i32
    %c0_i32_0 = arith.constant 0 : i32
    %c0_i32_1 = arith.constant 0 : i32
    %c0_i32_2 = arith.constant 0 : i32
    return %c0_i32, %c0_i32_0, %c0_i32_1 : i32, i32, i32
  }
  func.func @transform_10(%arg0: i32) -> (i32, i32, i32) {
    %c0_i32 = arith.constant 0 : i32
    %c0_i32_0 = arith.constant 0 : i32
    %c0_i32_1 = arith.constant 0 : i32
    %c0_i32_2 = arith.constant 0 : i32
    return %c0_i32, %c0_i32_0, %c0_i32_1 : i32, i32, i32
  }
  func.func @transform_11(%arg0: i32) -> (i32, i32, i32) {
    %c0_i32 = arith.constant 0 : i32
    %c0_i32_0 = arith.constant 0 : i32
    %c0_i32_1 = arith.constant 0 : i32
    %c0_i32_2 = arith.constant 0 : i32
    return %c0_i32, %c0_i32_0, %c0_i32_1 : i32, i32, i32
  }
  func.func @transform_12(%arg0: i32) -> (i32, i32, i32) {
    %c0_i32 = arith.constant 0 : i32
    %c0_i32_0 = arith.constant 0 : i32
    %c0_i32_1 = arith.constant 0 : i32
    %c0_i32_2 = arith.constant 0 : i32
    return %c0_i32, %c0_i32_0, %c0_i32_1 : i32, i32, i32
  }
  func.func @transform_13(%arg0: i32) -> (i32, i32, i32) {
    %c0_i32 = arith.constant 0 : i32
    %c0_i32_0 = arith.constant 0 : i32
    %c0_i32_1 = arith.constant 0 : i32
    return %arg0, %c0_i32, %c0_i32_0 : i32, i32, i32
  }
}

module attributes {stable_mosaic.version = 11 : i64} {
  func.func @_stage_kernel(%arg0: i32, %arg1: memref<1x16x128xbf16, #tpu.memory_space<vmem>>, %arg2: memref<2x128x128xbf16, #tpu.memory_space<vmem>>, %arg3: memref<2x1x128xf32, #tpu.memory_space<vmem>>, %arg4: memref<2x128x128xbf16, #tpu.memory_space<vmem>>, %arg5: memref<2x1x128xf32, #tpu.memory_space<vmem>>, %arg6: memref<2x2x16x16xf32, #tpu.memory_space<vmem>>, %arg7: memref<2x32x128xbf16, #tpu.memory_space<vmem>>, %arg8: memref<2x1x128xf32, #tpu.memory_space<vmem>>, %arg9: memref<2x128x128xbf16, #tpu.memory_space<vmem>>, %arg10: memref<2x1x128xf32, #tpu.memory_space<vmem>>, %arg11: memref<2x128x128xbf16, #tpu.memory_space<vmem>>, %arg12: memref<2x1x128xf32, #tpu.memory_space<vmem>>, %arg13: memref<1x16x128xbf16, #tpu.memory_space<vmem>>) attributes {dimension_semantics = [#tpu.dimension_semantics<parallel>], iteration_bounds = array<i64: 2>, scalar_prefetch = 0 : i64, scratch_operands = 0 : i64, tpu.core_type = #tpu.core_type<tc>, window_params = [{transform_indices = @transform_0, window_bounds = array<i64: 1, 16, 128>}, {pipeline_mode = #tpu.pipeline_mode<synchronous>, transform_indices = @transform_1, window_bounds = array<i64: 2, 128, 128>}, {pipeline_mode = #tpu.pipeline_mode<synchronous>, transform_indices = @transform_2, window_bounds = array<i64: 2, 1, 128>}, {pipeline_mode = #tpu.pipeline_mode<synchronous>, transform_indices = @transform_3, window_bounds = array<i64: 2, 128, 128>}, {pipeline_mode = #tpu.pipeline_mode<synchronous>, transform_indices = @transform_4, window_bounds = array<i64: 2, 1, 128>}, {pipeline_mode = #tpu.pipeline_mode<synchronous>, transform_indices = @transform_5, window_bounds = array<i64: 2, 2, 16, 16>}, {pipeline_mode = #tpu.pipeline_mode<synchronous>, transform_indices = @transform_6, window_bounds = array<i64: 2, 32, 128>}, {pipeline_mode = #tpu.pipeline_mode<synchronous>, transform_indices = @transform_7, window_bounds = array<i64: 2, 1, 128>}, {pipeline_mode = #tpu.pipeline_mode<synchronous>, transform_indices = @transform_8, window_bounds = array<i64: 2, 128, 128>}, {pipeline_mode = #tpu.pipeline_mode<synchronous>, transform_indices = @transform_9, window_bounds = array<i64: 2, 1, 128>}, {pipeline_mode = #tpu.pipeline_mode<synchronous>, transform_indices = @transform_10, window_bounds = array<i64: 2, 128, 128>}, {pipeline_mode = #tpu.pipeline_mode<synchronous>, transform_indices = @transform_11, window_bounds = array<i64: 2, 1, 128>}, {transform_indices = @transform_12, window_bounds = array<i64: 1, 16, 128>}]} {
    %c0 = arith.constant 0 : index
    %c0_0 = arith.constant 0 : index
    %c0_1 = arith.constant 0 : index
    %0 = vector.load %arg1[%c0, %c0_0, %c0_1] : memref<1x16x128xbf16, #tpu.memory_space<vmem>>, vector<1x16x128xbf16>
    %1 = vector.shape_cast %0 : vector<1x16x128xbf16> to vector<16x128xbf16>
    %2 = arith.extf %1 : vector<16x128xbf16> to vector<16x128xf32>
    %3 = arith.truncf %2 : vector<16x128xf32> to vector<16x128xbf16>
    %c0_2 = arith.constant 0 : index
    %c0_3 = arith.constant 0 : index
    %c0_4 = arith.constant 0 : index
    %4 = vector.load %arg2[%c0_2, %c0_3, %c0_4] : memref<2x128x128xbf16, #tpu.memory_space<vmem>>, vector<1x128x128xbf16>
    %5 = vector.shape_cast %4 : vector<1x128x128xbf16> to vector<128x128xbf16>
    %cst = arith.constant dense<0.000000e+00> : vector<16x128xf32>
    %6 = tpu.matmul %3, %5, %cst {dimension_numbers = #tpu.dot_dimension_numbers<[1], [0], [0], [1], [0, 0, 1, 1], [], []>} : vector<16x128xbf16>, vector<128x128xbf16>, vector<16x128xf32> -> vector<16x128xf32>
    %c0_5 = arith.constant 0 : index
    %c0_6 = arith.constant 0 : index
    %c0_7 = arith.constant 0 : index
    %7 = vector.load %arg3[%c0_5, %c0_6, %c0_7] : memref<2x1x128xf32, #tpu.memory_space<vmem>>, vector<1x1x128xf32>
    %8 = vector.shape_cast %7 : vector<1x1x128xf32> to vector<1x128xf32>
    %9 = vector.broadcast %8 : vector<1x128xf32> to vector<16x128xf32>
    %10 = arith.addf %6, %9 : vector<16x128xf32>
    %11 = arith.truncf %2 : vector<16x128xf32> to vector<16x128xbf16>
    %c0_8 = arith.constant 0 : index
    %c0_9 = arith.constant 0 : index
    %c0_10 = arith.constant 0 : index
    %12 = vector.load %arg4[%c0_8, %c0_9, %c0_10] : memref<2x128x128xbf16, #tpu.memory_space<vmem>>, vector<1x128x128xbf16>
    %13 = vector.shape_cast %12 : vector<1x128x128xbf16> to vector<128x128xbf16>
    %cst_11 = arith.constant dense<0.000000e+00> : vector<16x128xf32>
    %14 = tpu.matmul %11, %13, %cst_11 {dimension_numbers = #tpu.dot_dimension_numbers<[1], [0], [0], [1], [0, 0, 1, 1], [], []>} : vector<16x128xbf16>, vector<128x128xbf16>, vector<16x128xf32> -> vector<16x128xf32>
    %c0_12 = arith.constant 0 : index
    %c0_13 = arith.constant 0 : index
    %c0_14 = arith.constant 0 : index
    %15 = vector.load %arg5[%c0_12, %c0_13, %c0_14] : memref<2x1x128xf32, #tpu.memory_space<vmem>>, vector<1x1x128xf32>
    %16 = vector.shape_cast %15 : vector<1x1x128xf32> to vector<1x128xf32>
    %17 = vector.broadcast %16 : vector<1x128xf32> to vector<16x128xf32>
    %18 = arith.addf %14, %17 : vector<16x128xf32>
    %19 = arith.truncf %18 : vector<16x128xf32> to vector<16x128xbf16>
    %20 = vector.extract_strided_slice %10 {offsets = [0, 0], sizes = [16, 16], strides = [1, 1]} : vector<16x128xf32> to vector<16x16xf32>
    %21 = arith.truncf %20 : vector<16x16xf32> to vector<16x16xbf16>
    %22 = vector.extract_strided_slice %19 {offsets = [0, 0], sizes = [16, 16], strides = [1, 1]} : vector<16x128xbf16> to vector<16x16xbf16>
    %23 = vector.extract_strided_slice %19 {offsets = [0, 32], sizes = [16, 16], strides = [1, 1]} : vector<16x128xbf16> to vector<16x16xbf16>
    %cst_15 = arith.constant dense<0.000000e+00> : vector<16x16xf32>
    %24 = tpu.matmul %21, %22, %cst_15 {dimension_numbers = #tpu.dot_dimension_numbers<[1], [1], [0], [0], [0, 0, 1, 0], [], []>} : vector<16x16xbf16>, vector<16x16xbf16>, vector<16x16xf32> -> vector<16x16xf32>
    %cst_16 = arith.constant 2.500000e-01 : f32
    %25 = vector.broadcast %cst_16 : f32 to vector<16x16xf32>
    %26 = arith.mulf %24, %25 : vector<16x16xf32>
    %c0_17 = arith.constant 0 : index
    %c0_18 = arith.constant 0 : index
    %c0_19 = arith.constant 0 : index
    %c0_20 = arith.constant 0 : index
    %27 = vector.load %arg6[%c0_17, %c0_18, %c0_19, %c0_20] : memref<2x2x16x16xf32, #tpu.memory_space<vmem>>, vector<1x1x16x16xf32>
    %28 = vector.shape_cast %27 : vector<1x1x16x16xf32> to vector<16x16xf32>
    %29 = arith.addf %26, %28 : vector<16x16xf32>
    %cst_21 = arith.constant dense<0xFF800000> : vector<16xf32>
    %30 = vector.multi_reduction <maximumf>, %29, %cst_21 [1] : vector<16x16xf32> to vector<16xf32>
    %31 = vector.shape_cast %30 : vector<16xf32> to vector<16x1xf32>
    %32 = vector.broadcast %31 : vector<16x1xf32> to vector<16x16xf32>
    %33 = arith.subf %29, %32 : vector<16x16xf32>
    %34 = math.exp %33 : vector<16x16xf32>
    %cst_22 = arith.constant dense<0.000000e+00> : vector<16xf32>
    %35 = vector.multi_reduction <add>, %34, %cst_22 [1] : vector<16x16xf32> to vector<16xf32>
    %36 = vector.shape_cast %35 : vector<16xf32> to vector<16x1xf32>
    %37 = tpu.reciprocal %36 {approx = true} : vector<16x1xf32> -> vector<16x1xf32>
    %38 = vector.broadcast %37 : vector<16x1xf32> to vector<16x16xf32>
    %39 = arith.mulf %34, %38 : vector<16x16xf32>
    %40 = arith.truncf %39 : vector<16x16xf32> to vector<16x16xbf16>
    %cst_23 = arith.constant dense<0.000000e+00> : vector<16x16xf32>
    %41 = tpu.matmul %40, %23, %cst_23 {dimension_numbers = #tpu.dot_dimension_numbers<[1], [0], [0], [1], [0, 0, 1, 1], [], []>} : vector<16x16xbf16>, vector<16x16xbf16>, vector<16x16xf32> -> vector<16x16xf32>
    %42 = vector.extract_strided_slice %10 {offsets = [0, 16], sizes = [16, 16], strides = [1, 1]} : vector<16x128xf32> to vector<16x16xf32>
    %43 = arith.truncf %42 : vector<16x16xf32> to vector<16x16xbf16>
    %44 = vector.extract_strided_slice %19 {offsets = [0, 16], sizes = [16, 16], strides = [1, 1]} : vector<16x128xbf16> to vector<16x16xbf16>
    %45 = vector.extract_strided_slice %19 {offsets = [0, 48], sizes = [16, 16], strides = [1, 1]} : vector<16x128xbf16> to vector<16x16xbf16>
    %cst_24 = arith.constant dense<0.000000e+00> : vector<16x16xf32>
    %46 = tpu.matmul %43, %44, %cst_24 {dimension_numbers = #tpu.dot_dimension_numbers<[1], [1], [0], [0], [0, 0, 1, 0], [], []>} : vector<16x16xbf16>, vector<16x16xbf16>, vector<16x16xf32> -> vector<16x16xf32>
    %cst_25 = arith.constant 2.500000e-01 : f32
    %47 = vector.broadcast %cst_25 : f32 to vector<16x16xf32>
    %48 = arith.mulf %46, %47 : vector<16x16xf32>
    %c0_26 = arith.constant 0 : index
    %c1 = arith.constant 1 : index
    %c0_27 = arith.constant 0 : index
    %c0_28 = arith.constant 0 : index
    %49 = vector.load %arg6[%c0_26, %c1, %c0_27, %c0_28] : memref<2x2x16x16xf32, #tpu.memory_space<vmem>>, vector<1x1x16x16xf32>
    %50 = vector.shape_cast %49 : vector<1x1x16x16xf32> to vector<16x16xf32>
    %51 = arith.addf %48, %50 : vector<16x16xf32>
    %cst_29 = arith.constant dense<0xFF800000> : vector<16xf32>
    %52 = vector.multi_reduction <maximumf>, %51, %cst_29 [1] : vector<16x16xf32> to vector<16xf32>
    %53 = vector.shape_cast %52 : vector<16xf32> to vector<16x1xf32>
    %54 = vector.broadcast %53 : vector<16x1xf32> to vector<16x16xf32>
    %55 = arith.subf %51, %54 : vector<16x16xf32>
    %56 = math.exp %55 : vector<16x16xf32>
    %cst_30 = arith.constant dense<0.000000e+00> : vector<16xf32>
    %57 = vector.multi_reduction <add>, %56, %cst_30 [1] : vector<16x16xf32> to vector<16xf32>
    %58 = vector.shape_cast %57 : vector<16xf32> to vector<16x1xf32>
    %59 = tpu.reciprocal %58 {approx = true} : vector<16x1xf32> -> vector<16x1xf32>
    %60 = vector.broadcast %59 : vector<16x1xf32> to vector<16x16xf32>
    %61 = arith.mulf %56, %60 : vector<16x16xf32>
    %62 = arith.truncf %61 : vector<16x16xf32> to vector<16x16xbf16>
    %cst_31 = arith.constant dense<0.000000e+00> : vector<16x16xf32>
    %63 = tpu.matmul %62, %45, %cst_31 {dimension_numbers = #tpu.dot_dimension_numbers<[1], [0], [0], [1], [0, 0, 1, 1], [], []>} : vector<16x16xbf16>, vector<16x16xbf16>, vector<16x16xf32> -> vector<16x16xf32>
    %64 = tpu.concatenate %41, %63 in 1 : vector<16x16xf32>, vector<16x16xf32> -> vector<16x32xf32>
    %cst_32 = arith.constant 5.000000e-01 : f32
    %65 = vector.broadcast %cst_32 : f32 to vector<16x32xf32>
    %66 = arith.mulf %65, %64 : vector<16x32xf32>
    %cst_33 = arith.constant 0.707106769 : f32
    %67 = vector.broadcast %cst_33 : f32 to vector<16x32xf32>
    %68 = arith.mulf %64, %67 : vector<16x32xf32>
    %cst_34 = arith.constant 0.000000e+00 : f32
    %69 = vector.broadcast %cst_34 : f32 to vector<16x32xf32>
    %70 = arith.cmpf oge, %68, %69 : vector<16x32xf32>
    %cst_35 = arith.constant 0.000000e+00 : f32
    %71 = vector.broadcast %cst_35 : f32 to vector<16x32xf32>
    %72 = arith.subf %71, %68 : vector<16x32xf32>
    %73 = arith.select %70, %68, %72 : vector<16x32xi1>, vector<16x32xf32>
    %cst_36 = arith.constant 0.327591091 : f32
    %74 = vector.broadcast %cst_36 : f32 to vector<16x32xf32>
    %75 = arith.mulf %74, %73 : vector<16x32xf32>
    %cst_37 = arith.constant 1.000000e+00 : f32
    %76 = vector.broadcast %cst_37 : f32 to vector<16x32xf32>
    %77 = arith.addf %76, %75 : vector<16x32xf32>
    %cst_38 = arith.constant 1.000000e+00 : f32
    %78 = vector.broadcast %cst_38 : f32 to vector<16x32xf32>
    %79 = arith.divf %78, %77 : vector<16x32xf32>
    %cst_39 = arith.constant 1.06140542 : f32
    %80 = vector.broadcast %cst_39 : f32 to vector<16x32xf32>
    %81 = arith.mulf %80, %79 : vector<16x32xf32>
    %cst_40 = arith.constant -1.45315206 : f32
    %82 = vector.broadcast %cst_40 : f32 to vector<16x32xf32>
    %83 = arith.addf %81, %82 : vector<16x32xf32>
    %84 = arith.mulf %83, %79 : vector<16x32xf32>
    %cst_41 = arith.constant 1.42141378 : f32
    %85 = vector.broadcast %cst_41 : f32 to vector<16x32xf32>
    %86 = arith.addf %84, %85 : vector<16x32xf32>
    %87 = arith.mulf %86, %79 : vector<16x32xf32>
    %cst_42 = arith.constant -0.284496725 : f32
    %88 = vector.broadcast %cst_42 : f32 to vector<16x32xf32>
    %89 = arith.addf %87, %88 : vector<16x32xf32>
    %90 = arith.mulf %89, %79 : vector<16x32xf32>
    %cst_43 = arith.constant 0.254829586 : f32
    %91 = vector.broadcast %cst_43 : f32 to vector<16x32xf32>
    %92 = arith.addf %90, %91 : vector<16x32xf32>
    %93 = arith.mulf %92, %79 : vector<16x32xf32>
    %cst_44 = arith.constant 0.000000e+00 : f32
    %94 = vector.broadcast %cst_44 : f32 to vector<16x32xf32>
    %95 = arith.subf %94, %73 : vector<16x32xf32>
    %96 = arith.mulf %95, %73 : vector<16x32xf32>
    %97 = math.exp %96 : vector<16x32xf32>
    %98 = arith.mulf %93, %97 : vector<16x32xf32>
    %cst_45 = arith.constant 1.000000e+00 : f32
    %99 = vector.broadcast %cst_45 : f32 to vector<16x32xf32>
    %100 = arith.subf %99, %98 : vector<16x32xf32>
    %cst_46 = arith.constant 0.000000e+00 : f32
    %101 = vector.broadcast %cst_46 : f32 to vector<16x32xf32>
    %102 = arith.cmpf oge, %68, %101 : vector<16x32xf32>
    %cst_47 = arith.constant 0.000000e+00 : f32
    %103 = vector.broadcast %cst_47 : f32 to vector<16x32xf32>
    %104 = arith.subf %103, %100 : vector<16x32xf32>
    %105 = arith.select %102, %100, %104 : vector<16x32xi1>, vector<16x32xf32>
    %cst_48 = arith.constant 1.000000e+00 : f32
    %106 = vector.broadcast %cst_48 : f32 to vector<16x32xf32>
    %107 = arith.addf %106, %105 : vector<16x32xf32>
    %108 = arith.mulf %66, %107 : vector<16x32xf32>
    %109 = arith.truncf %108 : vector<16x32xf32> to vector<16x32xbf16>
    %c0_49 = arith.constant 0 : index
    %c0_50 = arith.constant 0 : index
    %c0_51 = arith.constant 0 : index
    %110 = vector.load %arg7[%c0_49, %c0_50, %c0_51] : memref<2x32x128xbf16, #tpu.memory_space<vmem>>, vector<1x32x128xbf16>
    %111 = vector.shape_cast %110 : vector<1x32x128xbf16> to vector<32x128xbf16>
    %cst_52 = arith.constant dense<0.000000e+00> : vector<16x128xf32>
    %112 = tpu.matmul %109, %111, %cst_52 {dimension_numbers = #tpu.dot_dimension_numbers<[1], [0], [0], [1], [0, 0, 1, 1], [], []>} : vector<16x32xbf16>, vector<32x128xbf16>, vector<16x128xf32> -> vector<16x128xf32>
    %c0_53 = arith.constant 0 : index
    %c0_54 = arith.constant 0 : index
    %c0_55 = arith.constant 0 : index
    %113 = vector.load %arg8[%c0_53, %c0_54, %c0_55] : memref<2x1x128xf32, #tpu.memory_space<vmem>>, vector<1x1x128xf32>
    %114 = vector.shape_cast %113 : vector<1x1x128xf32> to vector<1x128xf32>
    %115 = vector.broadcast %114 : vector<1x128xf32> to vector<16x128xf32>
    %116 = arith.addf %112, %115 : vector<16x128xf32>
    %117 = arith.addf %116, %2 : vector<16x128xf32>
    %118 = arith.truncf %117 : vector<16x128xf32> to vector<16x128xbf16>
    %c0_56 = arith.constant 0 : index
    %c0_57 = arith.constant 0 : index
    %c0_58 = arith.constant 0 : index
    %119 = vector.load %arg9[%c0_56, %c0_57, %c0_58] : memref<2x128x128xbf16, #tpu.memory_space<vmem>>, vector<1x128x128xbf16>
    %120 = vector.shape_cast %119 : vector<1x128x128xbf16> to vector<128x128xbf16>
    %cst_59 = arith.constant dense<0.000000e+00> : vector<16x128xf32>
    %121 = tpu.matmul %118, %120, %cst_59 {dimension_numbers = #tpu.dot_dimension_numbers<[1], [0], [0], [1], [0, 0, 1, 1], [], []>} : vector<16x128xbf16>, vector<128x128xbf16>, vector<16x128xf32> -> vector<16x128xf32>
    %c0_60 = arith.constant 0 : index
    %c0_61 = arith.constant 0 : index
    %c0_62 = arith.constant 0 : index
    %122 = vector.load %arg10[%c0_60, %c0_61, %c0_62] : memref<2x1x128xf32, #tpu.memory_space<vmem>>, vector<1x1x128xf32>
    %123 = vector.shape_cast %122 : vector<1x1x128xf32> to vector<1x128xf32>
    %124 = vector.broadcast %123 : vector<1x128xf32> to vector<16x128xf32>
    %125 = arith.addf %121, %124 : vector<16x128xf32>
    %cst_63 = arith.constant 3.000000e+00 : f32
    %126 = vector.broadcast %cst_63 : f32 to vector<16x128xf32>
    %127 = arith.addf %125, %126 : vector<16x128xf32>
    %cst_64 = arith.constant 0.000000e+00 : f32
    %cst_65 = arith.constant 6.000000e+00 : f32
    %128 = vector.broadcast %cst_64 : f32 to vector<16x128xf32>
    %129 = arith.maximumf %128, %127 : vector<16x128xf32>
    %130 = vector.broadcast %cst_65 : f32 to vector<16x128xf32>
    %131 = arith.minimumf %130, %129 : vector<16x128xf32>
    %132 = arith.mulf %125, %131 : vector<16x128xf32>
    %cst_66 = arith.constant 0.166666672 : f32
    %133 = vector.broadcast %cst_66 : f32 to vector<16x128xf32>
    %134 = arith.mulf %132, %133 : vector<16x128xf32>
    %135 = arith.truncf %134 : vector<16x128xf32> to vector<16x128xbf16>
    %c0_67 = arith.constant 0 : index
    %c0_68 = arith.constant 0 : index
    %c0_69 = arith.constant 0 : index
    %136 = vector.load %arg11[%c0_67, %c0_68, %c0_69] : memref<2x128x128xbf16, #tpu.memory_space<vmem>>, vector<1x128x128xbf16>
    %137 = vector.shape_cast %136 : vector<1x128x128xbf16> to vector<128x128xbf16>
    %cst_70 = arith.constant dense<0.000000e+00> : vector<16x128xf32>
    %138 = tpu.matmul %135, %137, %cst_70 {dimension_numbers = #tpu.dot_dimension_numbers<[1], [0], [0], [1], [0, 0, 1, 1], [], []>} : vector<16x128xbf16>, vector<128x128xbf16>, vector<16x128xf32> -> vector<16x128xf32>
    %c0_71 = arith.constant 0 : index
    %c0_72 = arith.constant 0 : index
    %c0_73 = arith.constant 0 : index
    %139 = vector.load %arg12[%c0_71, %c0_72, %c0_73] : memref<2x1x128xf32, #tpu.memory_space<vmem>>, vector<1x1x128xf32>
    %140 = vector.shape_cast %139 : vector<1x1x128xf32> to vector<1x128xf32>
    %141 = vector.broadcast %140 : vector<1x128xf32> to vector<16x128xf32>
    %142 = arith.addf %138, %141 : vector<16x128xf32>
    %143 = arith.addf %142, %117 : vector<16x128xf32>
    %144 = arith.truncf %143 : vector<16x128xf32> to vector<16x128xbf16>
    %c1_74 = arith.constant 1 : index
    %c0_75 = arith.constant 0 : index
    %c0_76 = arith.constant 0 : index
    %145 = vector.load %arg2[%c1_74, %c0_75, %c0_76] : memref<2x128x128xbf16, #tpu.memory_space<vmem>>, vector<1x128x128xbf16>
    %146 = vector.shape_cast %145 : vector<1x128x128xbf16> to vector<128x128xbf16>
    %cst_77 = arith.constant dense<0.000000e+00> : vector<16x128xf32>
    %147 = tpu.matmul %144, %146, %cst_77 {dimension_numbers = #tpu.dot_dimension_numbers<[1], [0], [0], [1], [0, 0, 1, 1], [], []>} : vector<16x128xbf16>, vector<128x128xbf16>, vector<16x128xf32> -> vector<16x128xf32>
    %c1_78 = arith.constant 1 : index
    %c0_79 = arith.constant 0 : index
    %c0_80 = arith.constant 0 : index
    %148 = vector.load %arg3[%c1_78, %c0_79, %c0_80] : memref<2x1x128xf32, #tpu.memory_space<vmem>>, vector<1x1x128xf32>
    %149 = vector.shape_cast %148 : vector<1x1x128xf32> to vector<1x128xf32>
    %150 = vector.broadcast %149 : vector<1x128xf32> to vector<16x128xf32>
    %151 = arith.addf %147, %150 : vector<16x128xf32>
    %152 = arith.truncf %143 : vector<16x128xf32> to vector<16x128xbf16>
    %c1_81 = arith.constant 1 : index
    %c0_82 = arith.constant 0 : index
    %c0_83 = arith.constant 0 : index
    %153 = vector.load %arg4[%c1_81, %c0_82, %c0_83] : memref<2x128x128xbf16, #tpu.memory_space<vmem>>, vector<1x128x128xbf16>
    %154 = vector.shape_cast %153 : vector<1x128x128xbf16> to vector<128x128xbf16>
    %cst_84 = arith.constant dense<0.000000e+00> : vector<16x128xf32>
    %155 = tpu.matmul %152, %154, %cst_84 {dimension_numbers = #tpu.dot_dimension_numbers<[1], [0], [0], [1], [0, 0, 1, 1], [], []>} : vector<16x128xbf16>, vector<128x128xbf16>, vector<16x128xf32> -> vector<16x128xf32>
    %c1_85 = arith.constant 1 : index
    %c0_86 = arith.constant 0 : index
    %c0_87 = arith.constant 0 : index
    %156 = vector.load %arg5[%c1_85, %c0_86, %c0_87] : memref<2x1x128xf32, #tpu.memory_space<vmem>>, vector<1x1x128xf32>
    %157 = vector.shape_cast %156 : vector<1x1x128xf32> to vector<1x128xf32>
    %158 = vector.broadcast %157 : vector<1x128xf32> to vector<16x128xf32>
    %159 = arith.addf %155, %158 : vector<16x128xf32>
    %160 = arith.truncf %159 : vector<16x128xf32> to vector<16x128xbf16>
    %161 = vector.extract_strided_slice %151 {offsets = [0, 0], sizes = [16, 16], strides = [1, 1]} : vector<16x128xf32> to vector<16x16xf32>
    %162 = arith.truncf %161 : vector<16x16xf32> to vector<16x16xbf16>
    %163 = vector.extract_strided_slice %160 {offsets = [0, 0], sizes = [16, 16], strides = [1, 1]} : vector<16x128xbf16> to vector<16x16xbf16>
    %164 = vector.extract_strided_slice %160 {offsets = [0, 32], sizes = [16, 16], strides = [1, 1]} : vector<16x128xbf16> to vector<16x16xbf16>
    %cst_88 = arith.constant dense<0.000000e+00> : vector<16x16xf32>
    %165 = tpu.matmul %162, %163, %cst_88 {dimension_numbers = #tpu.dot_dimension_numbers<[1], [1], [0], [0], [0, 0, 1, 0], [], []>} : vector<16x16xbf16>, vector<16x16xbf16>, vector<16x16xf32> -> vector<16x16xf32>
    %cst_89 = arith.constant 2.500000e-01 : f32
    %166 = vector.broadcast %cst_89 : f32 to vector<16x16xf32>
    %167 = arith.mulf %165, %166 : vector<16x16xf32>
    %c1_90 = arith.constant 1 : index
    %c0_91 = arith.constant 0 : index
    %c0_92 = arith.constant 0 : index
    %c0_93 = arith.constant 0 : index
    %168 = vector.load %arg6[%c1_90, %c0_91, %c0_92, %c0_93] : memref<2x2x16x16xf32, #tpu.memory_space<vmem>>, vector<1x1x16x16xf32>
    %169 = vector.shape_cast %168 : vector<1x1x16x16xf32> to vector<16x16xf32>
    %170 = arith.addf %167, %169 : vector<16x16xf32>
    %cst_94 = arith.constant dense<0xFF800000> : vector<16xf32>
    %171 = vector.multi_reduction <maximumf>, %170, %cst_94 [1] : vector<16x16xf32> to vector<16xf32>
    %172 = vector.shape_cast %171 : vector<16xf32> to vector<16x1xf32>
    %173 = vector.broadcast %172 : vector<16x1xf32> to vector<16x16xf32>
    %174 = arith.subf %170, %173 : vector<16x16xf32>
    %175 = math.exp %174 : vector<16x16xf32>
    %cst_95 = arith.constant dense<0.000000e+00> : vector<16xf32>
    %176 = vector.multi_reduction <add>, %175, %cst_95 [1] : vector<16x16xf32> to vector<16xf32>
    %177 = vector.shape_cast %176 : vector<16xf32> to vector<16x1xf32>
    %178 = tpu.reciprocal %177 {approx = true} : vector<16x1xf32> -> vector<16x1xf32>
    %179 = vector.broadcast %178 : vector<16x1xf32> to vector<16x16xf32>
    %180 = arith.mulf %175, %179 : vector<16x16xf32>
    %181 = arith.truncf %180 : vector<16x16xf32> to vector<16x16xbf16>
    %cst_96 = arith.constant dense<0.000000e+00> : vector<16x16xf32>
    %182 = tpu.matmul %181, %164, %cst_96 {dimension_numbers = #tpu.dot_dimension_numbers<[1], [0], [0], [1], [0, 0, 1, 1], [], []>} : vector<16x16xbf16>, vector<16x16xbf16>, vector<16x16xf32> -> vector<16x16xf32>
    %183 = vector.extract_strided_slice %151 {offsets = [0, 16], sizes = [16, 16], strides = [1, 1]} : vector<16x128xf32> to vector<16x16xf32>
    %184 = arith.truncf %183 : vector<16x16xf32> to vector<16x16xbf16>
    %185 = vector.extract_strided_slice %160 {offsets = [0, 16], sizes = [16, 16], strides = [1, 1]} : vector<16x128xbf16> to vector<16x16xbf16>
    %186 = vector.extract_strided_slice %160 {offsets = [0, 48], sizes = [16, 16], strides = [1, 1]} : vector<16x128xbf16> to vector<16x16xbf16>
    %cst_97 = arith.constant dense<0.000000e+00> : vector<16x16xf32>
    %187 = tpu.matmul %184, %185, %cst_97 {dimension_numbers = #tpu.dot_dimension_numbers<[1], [1], [0], [0], [0, 0, 1, 0], [], []>} : vector<16x16xbf16>, vector<16x16xbf16>, vector<16x16xf32> -> vector<16x16xf32>
    %cst_98 = arith.constant 2.500000e-01 : f32
    %188 = vector.broadcast %cst_98 : f32 to vector<16x16xf32>
    %189 = arith.mulf %187, %188 : vector<16x16xf32>
    %c1_99 = arith.constant 1 : index
    %c1_100 = arith.constant 1 : index
    %c0_101 = arith.constant 0 : index
    %c0_102 = arith.constant 0 : index
    %190 = vector.load %arg6[%c1_99, %c1_100, %c0_101, %c0_102] : memref<2x2x16x16xf32, #tpu.memory_space<vmem>>, vector<1x1x16x16xf32>
    %191 = vector.shape_cast %190 : vector<1x1x16x16xf32> to vector<16x16xf32>
    %192 = arith.addf %189, %191 : vector<16x16xf32>
    %cst_103 = arith.constant dense<0xFF800000> : vector<16xf32>
    %193 = vector.multi_reduction <maximumf>, %192, %cst_103 [1] : vector<16x16xf32> to vector<16xf32>
    %194 = vector.shape_cast %193 : vector<16xf32> to vector<16x1xf32>
    %195 = vector.broadcast %194 : vector<16x1xf32> to vector<16x16xf32>
    %196 = arith.subf %192, %195 : vector<16x16xf32>
    %197 = math.exp %196 : vector<16x16xf32>
    %cst_104 = arith.constant dense<0.000000e+00> : vector<16xf32>
    %198 = vector.multi_reduction <add>, %197, %cst_104 [1] : vector<16x16xf32> to vector<16xf32>
    %199 = vector.shape_cast %198 : vector<16xf32> to vector<16x1xf32>
    %200 = tpu.reciprocal %199 {approx = true} : vector<16x1xf32> -> vector<16x1xf32>
    %201 = vector.broadcast %200 : vector<16x1xf32> to vector<16x16xf32>
    %202 = arith.mulf %197, %201 : vector<16x16xf32>
    %203 = arith.truncf %202 : vector<16x16xf32> to vector<16x16xbf16>
    %cst_105 = arith.constant dense<0.000000e+00> : vector<16x16xf32>
    %204 = tpu.matmul %203, %186, %cst_105 {dimension_numbers = #tpu.dot_dimension_numbers<[1], [0], [0], [1], [0, 0, 1, 1], [], []>} : vector<16x16xbf16>, vector<16x16xbf16>, vector<16x16xf32> -> vector<16x16xf32>
    %205 = tpu.concatenate %182, %204 in 1 : vector<16x16xf32>, vector<16x16xf32> -> vector<16x32xf32>
    %cst_106 = arith.constant 5.000000e-01 : f32
    %206 = vector.broadcast %cst_106 : f32 to vector<16x32xf32>
    %207 = arith.mulf %206, %205 : vector<16x32xf32>
    %cst_107 = arith.constant 0.707106769 : f32
    %208 = vector.broadcast %cst_107 : f32 to vector<16x32xf32>
    %209 = arith.mulf %205, %208 : vector<16x32xf32>
    %cst_108 = arith.constant 0.000000e+00 : f32
    %210 = vector.broadcast %cst_108 : f32 to vector<16x32xf32>
    %211 = arith.cmpf oge, %209, %210 : vector<16x32xf32>
    %cst_109 = arith.constant 0.000000e+00 : f32
    %212 = vector.broadcast %cst_109 : f32 to vector<16x32xf32>
    %213 = arith.subf %212, %209 : vector<16x32xf32>
    %214 = arith.select %211, %209, %213 : vector<16x32xi1>, vector<16x32xf32>
    %cst_110 = arith.constant 0.327591091 : f32
    %215 = vector.broadcast %cst_110 : f32 to vector<16x32xf32>
    %216 = arith.mulf %215, %214 : vector<16x32xf32>
    %cst_111 = arith.constant 1.000000e+00 : f32
    %217 = vector.broadcast %cst_111 : f32 to vector<16x32xf32>
    %218 = arith.addf %217, %216 : vector<16x32xf32>
    %cst_112 = arith.constant 1.000000e+00 : f32
    %219 = vector.broadcast %cst_112 : f32 to vector<16x32xf32>
    %220 = arith.divf %219, %218 : vector<16x32xf32>
    %cst_113 = arith.constant 1.06140542 : f32
    %221 = vector.broadcast %cst_113 : f32 to vector<16x32xf32>
    %222 = arith.mulf %221, %220 : vector<16x32xf32>
    %cst_114 = arith.constant -1.45315206 : f32
    %223 = vector.broadcast %cst_114 : f32 to vector<16x32xf32>
    %224 = arith.addf %222, %223 : vector<16x32xf32>
    %225 = arith.mulf %224, %220 : vector<16x32xf32>
    %cst_115 = arith.constant 1.42141378 : f32
    %226 = vector.broadcast %cst_115 : f32 to vector<16x32xf32>
    %227 = arith.addf %225, %226 : vector<16x32xf32>
    %228 = arith.mulf %227, %220 : vector<16x32xf32>
    %cst_116 = arith.constant -0.284496725 : f32
    %229 = vector.broadcast %cst_116 : f32 to vector<16x32xf32>
    %230 = arith.addf %228, %229 : vector<16x32xf32>
    %231 = arith.mulf %230, %220 : vector<16x32xf32>
    %cst_117 = arith.constant 0.254829586 : f32
    %232 = vector.broadcast %cst_117 : f32 to vector<16x32xf32>
    %233 = arith.addf %231, %232 : vector<16x32xf32>
    %234 = arith.mulf %233, %220 : vector<16x32xf32>
    %cst_118 = arith.constant 0.000000e+00 : f32
    %235 = vector.broadcast %cst_118 : f32 to vector<16x32xf32>
    %236 = arith.subf %235, %214 : vector<16x32xf32>
    %237 = arith.mulf %236, %214 : vector<16x32xf32>
    %238 = math.exp %237 : vector<16x32xf32>
    %239 = arith.mulf %234, %238 : vector<16x32xf32>
    %cst_119 = arith.constant 1.000000e+00 : f32
    %240 = vector.broadcast %cst_119 : f32 to vector<16x32xf32>
    %241 = arith.subf %240, %239 : vector<16x32xf32>
    %cst_120 = arith.constant 0.000000e+00 : f32
    %242 = vector.broadcast %cst_120 : f32 to vector<16x32xf32>
    %243 = arith.cmpf oge, %209, %242 : vector<16x32xf32>
    %cst_121 = arith.constant 0.000000e+00 : f32
    %244 = vector.broadcast %cst_121 : f32 to vector<16x32xf32>
    %245 = arith.subf %244, %241 : vector<16x32xf32>
    %246 = arith.select %243, %241, %245 : vector<16x32xi1>, vector<16x32xf32>
    %cst_122 = arith.constant 1.000000e+00 : f32
    %247 = vector.broadcast %cst_122 : f32 to vector<16x32xf32>
    %248 = arith.addf %247, %246 : vector<16x32xf32>
    %249 = arith.mulf %207, %248 : vector<16x32xf32>
    %250 = arith.truncf %249 : vector<16x32xf32> to vector<16x32xbf16>
    %c1_123 = arith.constant 1 : index
    %c0_124 = arith.constant 0 : index
    %c0_125 = arith.constant 0 : index
    %251 = vector.load %arg7[%c1_123, %c0_124, %c0_125] : memref<2x32x128xbf16, #tpu.memory_space<vmem>>, vector<1x32x128xbf16>
    %252 = vector.shape_cast %251 : vector<1x32x128xbf16> to vector<32x128xbf16>
    %cst_126 = arith.constant dense<0.000000e+00> : vector<16x128xf32>
    %253 = tpu.matmul %250, %252, %cst_126 {dimension_numbers = #tpu.dot_dimension_numbers<[1], [0], [0], [1], [0, 0, 1, 1], [], []>} : vector<16x32xbf16>, vector<32x128xbf16>, vector<16x128xf32> -> vector<16x128xf32>
    %c1_127 = arith.constant 1 : index
    %c0_128 = arith.constant 0 : index
    %c0_129 = arith.constant 0 : index
    %254 = vector.load %arg8[%c1_127, %c0_128, %c0_129] : memref<2x1x128xf32, #tpu.memory_space<vmem>>, vector<1x1x128xf32>
    %255 = vector.shape_cast %254 : vector<1x1x128xf32> to vector<1x128xf32>
    %256 = vector.broadcast %255 : vector<1x128xf32> to vector<16x128xf32>
    %257 = arith.addf %253, %256 : vector<16x128xf32>
    %258 = arith.addf %257, %143 : vector<16x128xf32>
    %259 = arith.truncf %258 : vector<16x128xf32> to vector<16x128xbf16>
    %c1_130 = arith.constant 1 : index
    %c0_131 = arith.constant 0 : index
    %c0_132 = arith.constant 0 : index
    %260 = vector.load %arg9[%c1_130, %c0_131, %c0_132] : memref<2x128x128xbf16, #tpu.memory_space<vmem>>, vector<1x128x128xbf16>
    %261 = vector.shape_cast %260 : vector<1x128x128xbf16> to vector<128x128xbf16>
    %cst_133 = arith.constant dense<0.000000e+00> : vector<16x128xf32>
    %262 = tpu.matmul %259, %261, %cst_133 {dimension_numbers = #tpu.dot_dimension_numbers<[1], [0], [0], [1], [0, 0, 1, 1], [], []>} : vector<16x128xbf16>, vector<128x128xbf16>, vector<16x128xf32> -> vector<16x128xf32>
    %c1_134 = arith.constant 1 : index
    %c0_135 = arith.constant 0 : index
    %c0_136 = arith.constant 0 : index
    %263 = vector.load %arg10[%c1_134, %c0_135, %c0_136] : memref<2x1x128xf32, #tpu.memory_space<vmem>>, vector<1x1x128xf32>
    %264 = vector.shape_cast %263 : vector<1x1x128xf32> to vector<1x128xf32>
    %265 = vector.broadcast %264 : vector<1x128xf32> to vector<16x128xf32>
    %266 = arith.addf %262, %265 : vector<16x128xf32>
    %cst_137 = arith.constant 3.000000e+00 : f32
    %267 = vector.broadcast %cst_137 : f32 to vector<16x128xf32>
    %268 = arith.addf %266, %267 : vector<16x128xf32>
    %cst_138 = arith.constant 0.000000e+00 : f32
    %cst_139 = arith.constant 6.000000e+00 : f32
    %269 = vector.broadcast %cst_138 : f32 to vector<16x128xf32>
    %270 = arith.maximumf %269, %268 : vector<16x128xf32>
    %271 = vector.broadcast %cst_139 : f32 to vector<16x128xf32>
    %272 = arith.minimumf %271, %270 : vector<16x128xf32>
    %273 = arith.mulf %266, %272 : vector<16x128xf32>
    %cst_140 = arith.constant 0.166666672 : f32
    %274 = vector.broadcast %cst_140 : f32 to vector<16x128xf32>
    %275 = arith.mulf %273, %274 : vector<16x128xf32>
    %276 = arith.truncf %275 : vector<16x128xf32> to vector<16x128xbf16>
    %c1_141 = arith.constant 1 : index
    %c0_142 = arith.constant 0 : index
    %c0_143 = arith.constant 0 : index
    %277 = vector.load %arg11[%c1_141, %c0_142, %c0_143] : memref<2x128x128xbf16, #tpu.memory_space<vmem>>, vector<1x128x128xbf16>
    %278 = vector.shape_cast %277 : vector<1x128x128xbf16> to vector<128x128xbf16>
    %cst_144 = arith.constant dense<0.000000e+00> : vector<16x128xf32>
    %279 = tpu.matmul %276, %278, %cst_144 {dimension_numbers = #tpu.dot_dimension_numbers<[1], [0], [0], [1], [0, 0, 1, 1], [], []>} : vector<16x128xbf16>, vector<128x128xbf16>, vector<16x128xf32> -> vector<16x128xf32>
    %c1_145 = arith.constant 1 : index
    %c0_146 = arith.constant 0 : index
    %c0_147 = arith.constant 0 : index
    %280 = vector.load %arg12[%c1_145, %c0_146, %c0_147] : memref<2x1x128xf32, #tpu.memory_space<vmem>>, vector<1x1x128xf32>
    %281 = vector.shape_cast %280 : vector<1x1x128xf32> to vector<1x128xf32>
    %282 = vector.broadcast %281 : vector<1x128xf32> to vector<16x128xf32>
    %283 = arith.addf %279, %282 : vector<16x128xf32>
    %284 = arith.addf %283, %258 : vector<16x128xf32>
    %285 = arith.truncf %284 : vector<16x128xf32> to vector<16x128xbf16>
    %c0_148 = arith.constant 0 : index
    %c0_149 = arith.constant 0 : index
    %c0_150 = arith.constant 0 : index
    %286 = vector.load %arg13[%c0_148, %c0_149, %c0_150] : memref<1x16x128xbf16, #tpu.memory_space<vmem>>, vector<1x16x128xbf16>
    %287 = vector.shape_cast %286 : vector<1x16x128xbf16> to vector<16x128xbf16>
    %288 = vector.shape_cast %285 : vector<16x128xbf16> to vector<1x16x128xbf16>
    tpu.vector_store %arg13[%c0_148, %c0_149, %c0_150], %288 {strides = array<i32>} : memref<1x16x128xbf16, #tpu.memory_space<vmem>>, vector<1x16x128xbf16>,
    return
  }
  func.func @transform_0(%arg0: i32) -> (i32, i32, i32) {
    %c0_i32 = arith.constant 0 : i32
    %c0_i32_0 = arith.constant 0 : i32
    %c0_i32_1 = arith.constant 0 : i32
    return %arg0, %c0_i32, %c0_i32_0 : i32, i32, i32
  }
  func.func @transform_1(%arg0: i32) -> (i32, i32, i32) {
    %c0_i32 = arith.constant 0 : i32
    %c0_i32_0 = arith.constant 0 : i32
    %c0_i32_1 = arith.constant 0 : i32
    %c0_i32_2 = arith.constant 0 : i32
    return %c0_i32, %c0_i32_0, %c0_i32_1 : i32, i32, i32
  }
  func.func @transform_2(%arg0: i32) -> (i32, i32, i32) {
    %c0_i32 = arith.constant 0 : i32
    %c0_i32_0 = arith.constant 0 : i32
    %c0_i32_1 = arith.constant 0 : i32
    %c0_i32_2 = arith.constant 0 : i32
    return %c0_i32, %c0_i32_0, %c0_i32_1 : i32, i32, i32
  }
  func.func @transform_3(%arg0: i32) -> (i32, i32, i32) {
    %c0_i32 = arith.constant 0 : i32
    %c0_i32_0 = arith.constant 0 : i32
    %c0_i32_1 = arith.constant 0 : i32
    %c0_i32_2 = arith.constant 0 : i32
    return %c0_i32, %c0_i32_0, %c0_i32_1 : i32, i32, i32
  }
  func.func @transform_4(%arg0: i32) -> (i32, i32, i32) {
    %c0_i32 = arith.constant 0 : i32
    %c0_i32_0 = arith.constant 0 : i32
    %c0_i32_1 = arith.constant 0 : i32
    %c0_i32_2 = arith.constant 0 : i32
    return %c0_i32, %c0_i32_0, %c0_i32_1 : i32, i32, i32
  }
  func.func @transform_5(%arg0: i32) -> (i32, i32, i32, i32) {
    %c0_i32 = arith.constant 0 : i32
    %c0_i32_0 = arith.constant 0 : i32
    %c0_i32_1 = arith.constant 0 : i32
    %c0_i32_2 = arith.constant 0 : i32
    %c0_i32_3 = arith.constant 0 : i32
    return %c0_i32, %c0_i32_0, %c0_i32_1, %c0_i32_2 : i32, i32, i32, i32
  }
  func.func @transform_6(%arg0: i32) -> (i32, i32, i32) {
    %c0_i32 = arith.constant 0 : i32
    %c0_i32_0 = arith.constant 0 : i32
    %c0_i32_1 = arith.constant 0 : i32
    %c0_i32_2 = arith.constant 0 : i32
    return %c0_i32, %c0_i32_0, %c0_i32_1 : i32, i32, i32
  }
  func.func @transform_7(%arg0: i32) -> (i32, i32, i32) {
    %c0_i32 = arith.constant 0 : i32
    %c0_i32_0 = arith.constant 0 : i32
    %c0_i32_1 = arith.constant 0 : i32
    %c0_i32_2 = arith.constant 0 : i32
    return %c0_i32, %c0_i32_0, %c0_i32_1 : i32, i32, i32
  }
  func.func @transform_8(%arg0: i32) -> (i32, i32, i32) {
    %c0_i32 = arith.constant 0 : i32
    %c0_i32_0 = arith.constant 0 : i32
    %c0_i32_1 = arith.constant 0 : i32
    %c0_i32_2 = arith.constant 0 : i32
    return %c0_i32, %c0_i32_0, %c0_i32_1 : i32, i32, i32
  }
  func.func @transform_9(%arg0: i32) -> (i32, i32, i32) {
    %c0_i32 = arith.constant 0 : i32
    %c0_i32_0 = arith.constant 0 : i32
    %c0_i32_1 = arith.constant 0 : i32
    %c0_i32_2 = arith.constant 0 : i32
    return %c0_i32, %c0_i32_0, %c0_i32_1 : i32, i32, i32
  }
  func.func @transform_10(%arg0: i32) -> (i32, i32, i32) {
    %c0_i32 = arith.constant 0 : i32
    %c0_i32_0 = arith.constant 0 : i32
    %c0_i32_1 = arith.constant 0 : i32
    %c0_i32_2 = arith.constant 0 : i32
    return %c0_i32, %c0_i32_0, %c0_i32_1 : i32, i32, i32
  }
  func.func @transform_11(%arg0: i32) -> (i32, i32, i32) {
    %c0_i32 = arith.constant 0 : i32
    %c0_i32_0 = arith.constant 0 : i32
    %c0_i32_1 = arith.constant 0 : i32
    %c0_i32_2 = arith.constant 0 : i32
    return %c0_i32, %c0_i32_0, %c0_i32_1 : i32, i32, i32
  }
  func.func @transform_12(%arg0: i32) -> (i32, i32, i32) {
    %c0_i32 = arith.constant 0 : i32
    %c0_i32_0 = arith.constant 0 : i32
    %c0_i32_1 = arith.constant 0 : i32
    return %arg0, %c0_i32, %c0_i32_0 : i32, i32, i32
  }
}

module attributes {stable_mosaic.version = 11 : i64} {
  func.func @_stage_kernel(%arg0: i32, %arg1: memref<1x16x128xbf16, #tpu.memory_space<vmem>>, %arg2: memref<1x4x128xbf16, #tpu.memory_space<vmem>>, %arg3: memref<1x128x128xbf16, #tpu.memory_space<vmem>>, %arg4: memref<1x1x128xf32, #tpu.memory_space<vmem>>, %arg5: memref<1x128x128xbf16, #tpu.memory_space<vmem>>, %arg6: memref<1x1x128xf32, #tpu.memory_space<vmem>>, %arg7: memref<1x4x4x16xf32, #tpu.memory_space<vmem>>, %arg8: memref<1x64x128xbf16, #tpu.memory_space<vmem>>, %arg9: memref<1x1x128xf32, #tpu.memory_space<vmem>>, %arg10: memref<1x128x128xbf16, #tpu.memory_space<vmem>>, %arg11: memref<1x1x128xf32, #tpu.memory_space<vmem>>, %arg12: memref<1x128x128xbf16, #tpu.memory_space<vmem>>, %arg13: memref<1x1x128xf32, #tpu.memory_space<vmem>>, %arg14: memref<1x4x128xbf16, #tpu.memory_space<vmem>>) attributes {dimension_semantics = [#tpu.dimension_semantics<parallel>], iteration_bounds = array<i64: 2>, scalar_prefetch = 0 : i64, scratch_operands = 0 : i64, tpu.core_type = #tpu.core_type<tc>, window_params = [{transform_indices = @transform_0, window_bounds = array<i64: 1, 16, 128>}, {transform_indices = @transform_1, window_bounds = array<i64: 1, 4, 128>}, {pipeline_mode = #tpu.pipeline_mode<synchronous>, transform_indices = @transform_2, window_bounds = array<i64: 1, 128, 128>}, {pipeline_mode = #tpu.pipeline_mode<synchronous>, transform_indices = @transform_3, window_bounds = array<i64: 1, 1, 128>}, {pipeline_mode = #tpu.pipeline_mode<synchronous>, transform_indices = @transform_4, window_bounds = array<i64: 1, 128, 128>}, {pipeline_mode = #tpu.pipeline_mode<synchronous>, transform_indices = @transform_5, window_bounds = array<i64: 1, 1, 128>}, {pipeline_mode = #tpu.pipeline_mode<synchronous>, transform_indices = @transform_6, window_bounds = array<i64: 1, 4, 4, 16>}, {pipeline_mode = #tpu.pipeline_mode<synchronous>, transform_indices = @transform_7, window_bounds = array<i64: 1, 64, 128>}, {pipeline_mode = #tpu.pipeline_mode<synchronous>, transform_indices = @transform_8, window_bounds = array<i64: 1, 1, 128>}, {pipeline_mode = #tpu.pipeline_mode<synchronous>, transform_indices = @transform_9, window_bounds = array<i64: 1, 128, 128>}, {pipeline_mode = #tpu.pipeline_mode<synchronous>, transform_indices = @transform_10, window_bounds = array<i64: 1, 1, 128>}, {pipeline_mode = #tpu.pipeline_mode<synchronous>, transform_indices = @transform_11, window_bounds = array<i64: 1, 128, 128>}, {pipeline_mode = #tpu.pipeline_mode<synchronous>, transform_indices = @transform_12, window_bounds = array<i64: 1, 1, 128>}, {transform_indices = @transform_13, window_bounds = array<i64: 1, 4, 128>}]} {
    %c0 = arith.constant 0 : index
    %c0_0 = arith.constant 0 : index
    %c0_1 = arith.constant 0 : index
    %0 = vector.load %arg1[%c0, %c0_0, %c0_1] : memref<1x16x128xbf16, #tpu.memory_space<vmem>>, vector<1x16x128xbf16>
    %1 = vector.shape_cast %0 : vector<1x16x128xbf16> to vector<16x128xbf16>
    %2 = arith.extf %1 : vector<16x128xbf16> to vector<16x128xf32>
    %c0_2 = arith.constant 0 : index
    %c0_3 = arith.constant 0 : index
    %c0_4 = arith.constant 0 : index
    %3 = vector.load %arg2[%c0_2, %c0_3, %c0_4] : memref<1x4x128xbf16, #tpu.memory_space<vmem>>, vector<1x4x128xbf16>
    %4 = vector.shape_cast %3 : vector<1x4x128xbf16> to vector<4x128xbf16>
    %5 = arith.extf %4 : vector<4x128xbf16> to vector<4x128xf32>
    %6 = arith.truncf %5 : vector<4x128xf32> to vector<4x128xbf16>
    %c0_5 = arith.constant 0 : index
    %c0_6 = arith.constant 0 : index
    %c0_7 = arith.constant 0 : index
    %7 = vector.load %arg3[%c0_5, %c0_6, %c0_7] : memref<1x128x128xbf16, #tpu.memory_space<vmem>>, vector<1x128x128xbf16>
    %8 = vector.shape_cast %7 : vector<1x128x128xbf16> to vector<128x128xbf16>
    %cst = arith.constant dense<0.000000e+00> : vector<4x128xf32>
    %9 = tpu.matmul %6, %8, %cst {dimension_numbers = #tpu.dot_dimension_numbers<[1], [0], [0], [1], [0, 0, 1, 1], [], []>} : vector<4x128xbf16>, vector<128x128xbf16>, vector<4x128xf32> -> vector<4x128xf32>
    %c0_8 = arith.constant 0 : index
    %c0_9 = arith.constant 0 : index
    %c0_10 = arith.constant 0 : index
    %10 = vector.load %arg4[%c0_8, %c0_9, %c0_10] : memref<1x1x128xf32, #tpu.memory_space<vmem>>, vector<1x1x128xf32>
    %11 = vector.shape_cast %10 : vector<1x1x128xf32> to vector<1x128xf32>
    %12 = vector.broadcast %11 : vector<1x128xf32> to vector<4x128xf32>
    %13 = arith.addf %9, %12 : vector<4x128xf32>
    %14 = arith.truncf %2 : vector<16x128xf32> to vector<16x128xbf16>
    %c0_11 = arith.constant 0 : index
    %c0_12 = arith.constant 0 : index
    %c0_13 = arith.constant 0 : index
    %15 = vector.load %arg5[%c0_11, %c0_12, %c0_13] : memref<1x128x128xbf16, #tpu.memory_space<vmem>>, vector<1x128x128xbf16>
    %16 = vector.shape_cast %15 : vector<1x128x128xbf16> to vector<128x128xbf16>
    %cst_14 = arith.constant dense<0.000000e+00> : vector<16x128xf32>
    %17 = tpu.matmul %14, %16, %cst_14 {dimension_numbers = #tpu.dot_dimension_numbers<[1], [0], [0], [1], [0, 0, 1, 1], [], []>} : vector<16x128xbf16>, vector<128x128xbf16>, vector<16x128xf32> -> vector<16x128xf32>
    %c0_15 = arith.constant 0 : index
    %c0_16 = arith.constant 0 : index
    %c0_17 = arith.constant 0 : index
    %18 = vector.load %arg6[%c0_15, %c0_16, %c0_17] : memref<1x1x128xf32, #tpu.memory_space<vmem>>, vector<1x1x128xf32>
    %19 = vector.shape_cast %18 : vector<1x1x128xf32> to vector<1x128xf32>
    %20 = vector.broadcast %19 : vector<1x128xf32> to vector<16x128xf32>
    %21 = arith.addf %17, %20 : vector<16x128xf32>
    %22 = arith.truncf %21 : vector<16x128xf32> to vector<16x128xbf16>
    %23 = vector.extract_strided_slice %13 {offsets = [0, 0], sizes = [4, 16], strides = [1, 1]} : vector<4x128xf32> to vector<4x16xf32>
    %24 = arith.truncf %23 : vector<4x16xf32> to vector<4x16xbf16>
    %25 = vector.extract_strided_slice %22 {offsets = [0, 0], sizes = [16, 16], strides = [1, 1]} : vector<16x128xbf16> to vector<16x16xbf16>
    %26 = vector.extract_strided_slice %22 {offsets = [0, 64], sizes = [16, 16], strides = [1, 1]} : vector<16x128xbf16> to vector<16x16xbf16>
    %cst_18 = arith.constant dense<0.000000e+00> : vector<4x16xf32>
    %27 = tpu.matmul %24, %25, %cst_18 {dimension_numbers = #tpu.dot_dimension_numbers<[1], [1], [0], [0], [0, 0, 1, 0], [], []>} : vector<4x16xbf16>, vector<16x16xbf16>, vector<4x16xf32> -> vector<4x16xf32>
    %cst_19 = arith.constant 2.500000e-01 : f32
    %28 = vector.broadcast %cst_19 : f32 to vector<4x16xf32>
    %29 = arith.mulf %27, %28 : vector<4x16xf32>
    %c0_20 = arith.constant 0 : index
    %c0_21 = arith.constant 0 : index
    %c0_22 = arith.constant 0 : index
    %c0_23 = arith.constant 0 : index
    %30 = vector.load %arg7[%c0_20, %c0_21, %c0_22, %c0_23] : memref<1x4x4x16xf32, #tpu.memory_space<vmem>>, vector<1x1x4x16xf32>
    %31 = vector.shape_cast %30 : vector<1x1x4x16xf32> to vector<4x16xf32>
    %32 = arith.addf %29, %31 : vector<4x16xf32>
    %cst_24 = arith.constant dense<0xFF800000> : vector<4xf32>
    %33 = vector.multi_reduction <maximumf>, %32, %cst_24 [1] : vector<4x16xf32> to vector<4xf32>
    %34 = vector.shape_cast %33 : vector<4xf32> to vector<4x1xf32>
    %35 = vector.broadcast %34 : vector<4x1xf32> to vector<4x16xf32>
    %36 = arith.subf %32, %35 : vector<4x16xf32>
    %37 = math.exp %36 : vector<4x16xf32>
    %cst_25 = arith.constant dense<0.000000e+00> : vector<4xf32>
    %38 = vector.multi_reduction <add>, %37, %cst_25 [1] : vector<4x16xf32> to vector<4xf32>
    %39 = vector.shape_cast %38 : vector<4xf32> to vector<4x1xf32>
    %40 = tpu.reciprocal %39 {approx = true} : vector<4x1xf32> -> vector<4x1xf32>
    %41 = vector.broadcast %40 : vector<4x1xf32> to vector<4x16xf32>
    %42 = arith.mulf %37, %41 : vector<4x16xf32>
    %43 = arith.truncf %42 : vector<4x16xf32> to vector<4x16xbf16>
    %cst_26 = arith.constant dense<0.000000e+00> : vector<4x16xf32>
    %44 = tpu.matmul %43, %26, %cst_26 {dimension_numbers = #tpu.dot_dimension_numbers<[1], [0], [0], [1], [0, 0, 1, 1], [], []>} : vector<4x16xbf16>, vector<16x16xbf16>, vector<4x16xf32> -> vector<4x16xf32>
    %45 = vector.extract_strided_slice %13 {offsets = [0, 16], sizes = [4, 16], strides = [1, 1]} : vector<4x128xf32> to vector<4x16xf32>
    %46 = arith.truncf %45 : vector<4x16xf32> to vector<4x16xbf16>
    %47 = vector.extract_strided_slice %22 {offsets = [0, 16], sizes = [16, 16], strides = [1, 1]} : vector<16x128xbf16> to vector<16x16xbf16>
    %48 = vector.extract_strided_slice %22 {offsets = [0, 80], sizes = [16, 16], strides = [1, 1]} : vector<16x128xbf16> to vector<16x16xbf16>
    %cst_27 = arith.constant dense<0.000000e+00> : vector<4x16xf32>
    %49 = tpu.matmul %46, %47, %cst_27 {dimension_numbers = #tpu.dot_dimension_numbers<[1], [1], [0], [0], [0, 0, 1, 0], [], []>} : vector<4x16xbf16>, vector<16x16xbf16>, vector<4x16xf32> -> vector<4x16xf32>
    %cst_28 = arith.constant 2.500000e-01 : f32
    %50 = vector.broadcast %cst_28 : f32 to vector<4x16xf32>
    %51 = arith.mulf %49, %50 : vector<4x16xf32>
    %c0_29 = arith.constant 0 : index
    %c1 = arith.constant 1 : index
    %c0_30 = arith.constant 0 : index
    %c0_31 = arith.constant 0 : index
    %52 = vector.load %arg7[%c0_29, %c1, %c0_30, %c0_31] : memref<1x4x4x16xf32, #tpu.memory_space<vmem>>, vector<1x1x4x16xf32>
    %53 = vector.shape_cast %52 : vector<1x1x4x16xf32> to vector<4x16xf32>
    %54 = arith.addf %51, %53 : vector<4x16xf32>
    %cst_32 = arith.constant dense<0xFF800000> : vector<4xf32>
    %55 = vector.multi_reduction <maximumf>, %54, %cst_32 [1] : vector<4x16xf32> to vector<4xf32>
    %56 = vector.shape_cast %55 : vector<4xf32> to vector<4x1xf32>
    %57 = vector.broadcast %56 : vector<4x1xf32> to vector<4x16xf32>
    %58 = arith.subf %54, %57 : vector<4x16xf32>
    %59 = math.exp %58 : vector<4x16xf32>
    %cst_33 = arith.constant dense<0.000000e+00> : vector<4xf32>
    %60 = vector.multi_reduction <add>, %59, %cst_33 [1] : vector<4x16xf32> to vector<4xf32>
    %61 = vector.shape_cast %60 : vector<4xf32> to vector<4x1xf32>
    %62 = tpu.reciprocal %61 {approx = true} : vector<4x1xf32> -> vector<4x1xf32>
    %63 = vector.broadcast %62 : vector<4x1xf32> to vector<4x16xf32>
    %64 = arith.mulf %59, %63 : vector<4x16xf32>
    %65 = arith.truncf %64 : vector<4x16xf32> to vector<4x16xbf16>
    %cst_34 = arith.constant dense<0.000000e+00> : vector<4x16xf32>
    %66 = tpu.matmul %65, %48, %cst_34 {dimension_numbers = #tpu.dot_dimension_numbers<[1], [0], [0], [1], [0, 0, 1, 1], [], []>} : vector<4x16xbf16>, vector<16x16xbf16>, vector<4x16xf32> -> vector<4x16xf32>
    %67 = vector.extract_strided_slice %13 {offsets = [0, 32], sizes = [4, 16], strides = [1, 1]} : vector<4x128xf32> to vector<4x16xf32>
    %68 = arith.truncf %67 : vector<4x16xf32> to vector<4x16xbf16>
    %69 = vector.extract_strided_slice %22 {offsets = [0, 32], sizes = [16, 16], strides = [1, 1]} : vector<16x128xbf16> to vector<16x16xbf16>
    %70 = vector.extract_strided_slice %22 {offsets = [0, 96], sizes = [16, 16], strides = [1, 1]} : vector<16x128xbf16> to vector<16x16xbf16>
    %cst_35 = arith.constant dense<0.000000e+00> : vector<4x16xf32>
    %71 = tpu.matmul %68, %69, %cst_35 {dimension_numbers = #tpu.dot_dimension_numbers<[1], [1], [0], [0], [0, 0, 1, 0], [], []>} : vector<4x16xbf16>, vector<16x16xbf16>, vector<4x16xf32> -> vector<4x16xf32>
    %cst_36 = arith.constant 2.500000e-01 : f32
    %72 = vector.broadcast %cst_36 : f32 to vector<4x16xf32>
    %73 = arith.mulf %71, %72 : vector<4x16xf32>
    %c0_37 = arith.constant 0 : index
    %c2 = arith.constant 2 : index
    %c0_38 = arith.constant 0 : index
    %c0_39 = arith.constant 0 : index
    %74 = vector.load %arg7[%c0_37, %c2, %c0_38, %c0_39] : memref<1x4x4x16xf32, #tpu.memory_space<vmem>>, vector<1x1x4x16xf32>
    %75 = vector.shape_cast %74 : vector<1x1x4x16xf32> to vector<4x16xf32>
    %76 = arith.addf %73, %75 : vector<4x16xf32>
    %cst_40 = arith.constant dense<0xFF800000> : vector<4xf32>
    %77 = vector.multi_reduction <maximumf>, %76, %cst_40 [1] : vector<4x16xf32> to vector<4xf32>
    %78 = vector.shape_cast %77 : vector<4xf32> to vector<4x1xf32>
    %79 = vector.broadcast %78 : vector<4x1xf32> to vector<4x16xf32>
    %80 = arith.subf %76, %79 : vector<4x16xf32>
    %81 = math.exp %80 : vector<4x16xf32>
    %cst_41 = arith.constant dense<0.000000e+00> : vector<4xf32>
    %82 = vector.multi_reduction <add>, %81, %cst_41 [1] : vector<4x16xf32> to vector<4xf32>
    %83 = vector.shape_cast %82 : vector<4xf32> to vector<4x1xf32>
    %84 = tpu.reciprocal %83 {approx = true} : vector<4x1xf32> -> vector<4x1xf32>
    %85 = vector.broadcast %84 : vector<4x1xf32> to vector<4x16xf32>
    %86 = arith.mulf %81, %85 : vector<4x16xf32>
    %87 = arith.truncf %86 : vector<4x16xf32> to vector<4x16xbf16>
    %cst_42 = arith.constant dense<0.000000e+00> : vector<4x16xf32>
    %88 = tpu.matmul %87, %70, %cst_42 {dimension_numbers = #tpu.dot_dimension_numbers<[1], [0], [0], [1], [0, 0, 1, 1], [], []>} : vector<4x16xbf16>, vector<16x16xbf16>, vector<4x16xf32> -> vector<4x16xf32>
    %89 = vector.extract_strided_slice %13 {offsets = [0, 48], sizes = [4, 16], strides = [1, 1]} : vector<4x128xf32> to vector<4x16xf32>
    %90 = arith.truncf %89 : vector<4x16xf32> to vector<4x16xbf16>
    %91 = vector.extract_strided_slice %22 {offsets = [0, 48], sizes = [16, 16], strides = [1, 1]} : vector<16x128xbf16> to vector<16x16xbf16>
    %92 = vector.extract_strided_slice %22 {offsets = [0, 112], sizes = [16, 16], strides = [1, 1]} : vector<16x128xbf16> to vector<16x16xbf16>
    %cst_43 = arith.constant dense<0.000000e+00> : vector<4x16xf32>
    %93 = tpu.matmul %90, %91, %cst_43 {dimension_numbers = #tpu.dot_dimension_numbers<[1], [1], [0], [0], [0, 0, 1, 0], [], []>} : vector<4x16xbf16>, vector<16x16xbf16>, vector<4x16xf32> -> vector<4x16xf32>
    %cst_44 = arith.constant 2.500000e-01 : f32
    %94 = vector.broadcast %cst_44 : f32 to vector<4x16xf32>
    %95 = arith.mulf %93, %94 : vector<4x16xf32>
    %c0_45 = arith.constant 0 : index
    %c3 = arith.constant 3 : index
    %c0_46 = arith.constant 0 : index
    %c0_47 = arith.constant 0 : index
    %96 = vector.load %arg7[%c0_45, %c3, %c0_46, %c0_47] : memref<1x4x4x16xf32, #tpu.memory_space<vmem>>, vector<1x1x4x16xf32>
    %97 = vector.shape_cast %96 : vector<1x1x4x16xf32> to vector<4x16xf32>
    %98 = arith.addf %95, %97 : vector<4x16xf32>
    %cst_48 = arith.constant dense<0xFF800000> : vector<4xf32>
    %99 = vector.multi_reduction <maximumf>, %98, %cst_48 [1] : vector<4x16xf32> to vector<4xf32>
    %100 = vector.shape_cast %99 : vector<4xf32> to vector<4x1xf32>
    %101 = vector.broadcast %100 : vector<4x1xf32> to vector<4x16xf32>
    %102 = arith.subf %98, %101 : vector<4x16xf32>
    %103 = math.exp %102 : vector<4x16xf32>
    %cst_49 = arith.constant dense<0.000000e+00> : vector<4xf32>
    %104 = vector.multi_reduction <add>, %103, %cst_49 [1] : vector<4x16xf32> to vector<4xf32>
    %105 = vector.shape_cast %104 : vector<4xf32> to vector<4x1xf32>
    %106 = tpu.reciprocal %105 {approx = true} : vector<4x1xf32> -> vector<4x1xf32>
    %107 = vector.broadcast %106 : vector<4x1xf32> to vector<4x16xf32>
    %108 = arith.mulf %103, %107 : vector<4x16xf32>
    %109 = arith.truncf %108 : vector<4x16xf32> to vector<4x16xbf16>
    %cst_50 = arith.constant dense<0.000000e+00> : vector<4x16xf32>
    %110 = tpu.matmul %109, %92, %cst_50 {dimension_numbers = #tpu.dot_dimension_numbers<[1], [0], [0], [1], [0, 0, 1, 1], [], []>} : vector<4x16xbf16>, vector<16x16xbf16>, vector<4x16xf32> -> vector<4x16xf32>
    %111 = tpu.concatenate %44, %66, %88, %110 in 1 : vector<4x16xf32>, vector<4x16xf32>, vector<4x16xf32>, vector<4x16xf32> -> vector<4x64xf32>
    %cst_51 = arith.constant 5.000000e-01 : f32
    %112 = vector.broadcast %cst_51 : f32 to vector<4x64xf32>
    %113 = arith.mulf %112, %111 : vector<4x64xf32>
    %cst_52 = arith.constant 0.707106769 : f32
    %114 = vector.broadcast %cst_52 : f32 to vector<4x64xf32>
    %115 = arith.mulf %111, %114 : vector<4x64xf32>
    %cst_53 = arith.constant 0.000000e+00 : f32
    %116 = vector.broadcast %cst_53 : f32 to vector<4x64xf32>
    %117 = arith.cmpf oge, %115, %116 : vector<4x64xf32>
    %cst_54 = arith.constant 0.000000e+00 : f32
    %118 = vector.broadcast %cst_54 : f32 to vector<4x64xf32>
    %119 = arith.subf %118, %115 : vector<4x64xf32>
    %120 = arith.select %117, %115, %119 : vector<4x64xi1>, vector<4x64xf32>
    %cst_55 = arith.constant 0.327591091 : f32
    %121 = vector.broadcast %cst_55 : f32 to vector<4x64xf32>
    %122 = arith.mulf %121, %120 : vector<4x64xf32>
    %cst_56 = arith.constant 1.000000e+00 : f32
    %123 = vector.broadcast %cst_56 : f32 to vector<4x64xf32>
    %124 = arith.addf %123, %122 : vector<4x64xf32>
    %cst_57 = arith.constant 1.000000e+00 : f32
    %125 = vector.broadcast %cst_57 : f32 to vector<4x64xf32>
    %126 = arith.divf %125, %124 : vector<4x64xf32>
    %cst_58 = arith.constant 1.06140542 : f32
    %127 = vector.broadcast %cst_58 : f32 to vector<4x64xf32>
    %128 = arith.mulf %127, %126 : vector<4x64xf32>
    %cst_59 = arith.constant -1.45315206 : f32
    %129 = vector.broadcast %cst_59 : f32 to vector<4x64xf32>
    %130 = arith.addf %128, %129 : vector<4x64xf32>
    %131 = arith.mulf %130, %126 : vector<4x64xf32>
    %cst_60 = arith.constant 1.42141378 : f32
    %132 = vector.broadcast %cst_60 : f32 to vector<4x64xf32>
    %133 = arith.addf %131, %132 : vector<4x64xf32>
    %134 = arith.mulf %133, %126 : vector<4x64xf32>
    %cst_61 = arith.constant -0.284496725 : f32
    %135 = vector.broadcast %cst_61 : f32 to vector<4x64xf32>
    %136 = arith.addf %134, %135 : vector<4x64xf32>
    %137 = arith.mulf %136, %126 : vector<4x64xf32>
    %cst_62 = arith.constant 0.254829586 : f32
    %138 = vector.broadcast %cst_62 : f32 to vector<4x64xf32>
    %139 = arith.addf %137, %138 : vector<4x64xf32>
    %140 = arith.mulf %139, %126 : vector<4x64xf32>
    %cst_63 = arith.constant 0.000000e+00 : f32
    %141 = vector.broadcast %cst_63 : f32 to vector<4x64xf32>
    %142 = arith.subf %141, %120 : vector<4x64xf32>
    %143 = arith.mulf %142, %120 : vector<4x64xf32>
    %144 = math.exp %143 : vector<4x64xf32>
    %145 = arith.mulf %140, %144 : vector<4x64xf32>
    %cst_64 = arith.constant 1.000000e+00 : f32
    %146 = vector.broadcast %cst_64 : f32 to vector<4x64xf32>
    %147 = arith.subf %146, %145 : vector<4x64xf32>
    %cst_65 = arith.constant 0.000000e+00 : f32
    %148 = vector.broadcast %cst_65 : f32 to vector<4x64xf32>
    %149 = arith.cmpf oge, %115, %148 : vector<4x64xf32>
    %cst_66 = arith.constant 0.000000e+00 : f32
    %150 = vector.broadcast %cst_66 : f32 to vector<4x64xf32>
    %151 = arith.subf %150, %147 : vector<4x64xf32>
    %152 = arith.select %149, %147, %151 : vector<4x64xi1>, vector<4x64xf32>
    %cst_67 = arith.constant 1.000000e+00 : f32
    %153 = vector.broadcast %cst_67 : f32 to vector<4x64xf32>
    %154 = arith.addf %153, %152 : vector<4x64xf32>
    %155 = arith.mulf %113, %154 : vector<4x64xf32>
    %156 = arith.truncf %155 : vector<4x64xf32> to vector<4x64xbf16>
    %c0_68 = arith.constant 0 : index
    %c0_69 = arith.constant 0 : index
    %c0_70 = arith.constant 0 : index
    %157 = vector.load %arg8[%c0_68, %c0_69, %c0_70] : memref<1x64x128xbf16, #tpu.memory_space<vmem>>, vector<1x64x128xbf16>
    %158 = vector.shape_cast %157 : vector<1x64x128xbf16> to vector<64x128xbf16>
    %cst_71 = arith.constant dense<0.000000e+00> : vector<4x128xf32>
    %159 = tpu.matmul %156, %158, %cst_71 {dimension_numbers = #tpu.dot_dimension_numbers<[1], [0], [0], [1], [0, 0, 1, 1], [], []>} : vector<4x64xbf16>, vector<64x128xbf16>, vector<4x128xf32> -> vector<4x128xf32>
    %c0_72 = arith.constant 0 : index
    %c0_73 = arith.constant 0 : index
    %c0_74 = arith.constant 0 : index
    %160 = vector.load %arg9[%c0_72, %c0_73, %c0_74] : memref<1x1x128xf32, #tpu.memory_space<vmem>>, vector<1x1x128xf32>
    %161 = vector.shape_cast %160 : vector<1x1x128xf32> to vector<1x128xf32>
    %162 = vector.broadcast %161 : vector<1x128xf32> to vector<4x128xf32>
    %163 = arith.addf %159, %162 : vector<4x128xf32>
    %164 = arith.truncf %163 : vector<4x128xf32> to vector<4x128xbf16>
    %c0_75 = arith.constant 0 : index
    %c0_76 = arith.constant 0 : index
    %c0_77 = arith.constant 0 : index
    %165 = vector.load %arg10[%c0_75, %c0_76, %c0_77] : memref<1x128x128xbf16, #tpu.memory_space<vmem>>, vector<1x128x128xbf16>
    %166 = vector.shape_cast %165 : vector<1x128x128xbf16> to vector<128x128xbf16>
    %cst_78 = arith.constant dense<0.000000e+00> : vector<4x128xf32>
    %167 = tpu.matmul %164, %166, %cst_78 {dimension_numbers = #tpu.dot_dimension_numbers<[1], [0], [0], [1], [0, 0, 1, 1], [], []>} : vector<4x128xbf16>, vector<128x128xbf16>, vector<4x128xf32> -> vector<4x128xf32>
    %c0_79 = arith.constant 0 : index
    %c0_80 = arith.constant 0 : index
    %c0_81 = arith.constant 0 : index
    %168 = vector.load %arg11[%c0_79, %c0_80, %c0_81] : memref<1x1x128xf32, #tpu.memory_space<vmem>>, vector<1x1x128xf32>
    %169 = vector.shape_cast %168 : vector<1x1x128xf32> to vector<1x128xf32>
    %170 = vector.broadcast %169 : vector<1x128xf32> to vector<4x128xf32>
    %171 = arith.addf %167, %170 : vector<4x128xf32>
    %cst_82 = arith.constant 3.000000e+00 : f32
    %172 = vector.broadcast %cst_82 : f32 to vector<4x128xf32>
    %173 = arith.addf %171, %172 : vector<4x128xf32>
    %cst_83 = arith.constant 0.000000e+00 : f32
    %cst_84 = arith.constant 6.000000e+00 : f32
    %174 = vector.broadcast %cst_83 : f32 to vector<4x128xf32>
    %175 = arith.maximumf %174, %173 : vector<4x128xf32>
    %176 = vector.broadcast %cst_84 : f32 to vector<4x128xf32>
    %177 = arith.minimumf %176, %175 : vector<4x128xf32>
    %178 = arith.mulf %171, %177 : vector<4x128xf32>
    %cst_85 = arith.constant 0.166666672 : f32
    %179 = vector.broadcast %cst_85 : f32 to vector<4x128xf32>
    %180 = arith.mulf %178, %179 : vector<4x128xf32>
    %181 = arith.truncf %180 : vector<4x128xf32> to vector<4x128xbf16>
    %c0_86 = arith.constant 0 : index
    %c0_87 = arith.constant 0 : index
    %c0_88 = arith.constant 0 : index
    %182 = vector.load %arg12[%c0_86, %c0_87, %c0_88] : memref<1x128x128xbf16, #tpu.memory_space<vmem>>, vector<1x128x128xbf16>
    %183 = vector.shape_cast %182 : vector<1x128x128xbf16> to vector<128x128xbf16>
    %cst_89 = arith.constant dense<0.000000e+00> : vector<4x128xf32>
    %184 = tpu.matmul %181, %183, %cst_89 {dimension_numbers = #tpu.dot_dimension_numbers<[1], [0], [0], [1], [0, 0, 1, 1], [], []>} : vector<4x128xbf16>, vector<128x128xbf16>, vector<4x128xf32> -> vector<4x128xf32>
    %c0_90 = arith.constant 0 : index
    %c0_91 = arith.constant 0 : index
    %c0_92 = arith.constant 0 : index
    %185 = vector.load %arg13[%c0_90, %c0_91, %c0_92] : memref<1x1x128xf32, #tpu.memory_space<vmem>>, vector<1x1x128xf32>
    %186 = vector.shape_cast %185 : vector<1x1x128xf32> to vector<1x128xf32>
    %187 = vector.broadcast %186 : vector<1x128xf32> to vector<4x128xf32>
    %188 = arith.addf %184, %187 : vector<4x128xf32>
    %189 = arith.addf %188, %163 : vector<4x128xf32>
    %190 = arith.truncf %189 : vector<4x128xf32> to vector<4x128xbf16>
    %c0_93 = arith.constant 0 : index
    %c0_94 = arith.constant 0 : index
    %c0_95 = arith.constant 0 : index
    %191 = vector.load %arg14[%c0_93, %c0_94, %c0_95] : memref<1x4x128xbf16, #tpu.memory_space<vmem>>, vector<1x4x128xbf16>
    %192 = vector.shape_cast %191 : vector<1x4x128xbf16> to vector<4x128xbf16>
    %193 = vector.shape_cast %190 : vector<4x128xbf16> to vector<1x4x128xbf16>
    tpu.vector_store %arg14[%c0_93, %c0_94, %c0_95], %193 {strides = array<i32>} : memref<1x4x128xbf16, #tpu.memory_space<vmem>>, vector<1x4x128xbf16>,
    return
  }
  func.func @transform_0(%arg0: i32) -> (i32, i32, i32) {
    %c0_i32 = arith.constant 0 : i32
    %c0_i32_0 = arith.constant 0 : i32
    %c0_i32_1 = arith.constant 0 : i32
    return %arg0, %c0_i32, %c0_i32_0 : i32, i32, i32
  }
  func.func @transform_1(%arg0: i32) -> (i32, i32, i32) {
    %c0_i32 = arith.constant 0 : i32
    %c0_i32_0 = arith.constant 0 : i32
    %c0_i32_1 = arith.constant 0 : i32
    return %arg0, %c0_i32, %c0_i32_0 : i32, i32, i32
  }
  func.func @transform_2(%arg0: i32) -> (i32, i32, i32) {
    %c0_i32 = arith.constant 0 : i32
    %c0_i32_0 = arith.constant 0 : i32
    %c0_i32_1 = arith.constant 0 : i32
    %c0_i32_2 = arith.constant 0 : i32
    return %c0_i32, %c0_i32_0, %c0_i32_1 : i32, i32, i32
  }
  func.func @transform_3(%arg0: i32) -> (i32, i32, i32) {
    %c0_i32 = arith.constant 0 : i32
    %c0_i32_0 = arith.constant 0 : i32
    %c0_i32_1 = arith.constant 0 : i32
    %c0_i32_2 = arith.constant 0 : i32
    return %c0_i32, %c0_i32_0, %c0_i32_1 : i32, i32, i32
  }
  func.func @transform_4(%arg0: i32) -> (i32, i32, i32) {
    %c0_i32 = arith.constant 0 : i32
    %c0_i32_0 = arith.constant 0 : i32
    %c0_i32_1 = arith.constant 0 : i32
    %c0_i32_2 = arith.constant 0 : i32
    return %c0_i32, %c0_i32_0, %c0_i32_1 : i32, i32, i32
  }
  func.func @transform_5(%arg0: i32) -> (i32, i32, i32) {
    %c0_i32 = arith.constant 0 : i32
    %c0_i32_0 = arith.constant 0 : i32
    %c0_i32_1 = arith.constant 0 : i32
    %c0_i32_2 = arith.constant 0 : i32
    return %c0_i32, %c0_i32_0, %c0_i32_1 : i32, i32, i32
  }
  func.func @transform_6(%arg0: i32) -> (i32, i32, i32, i32) {
    %c0_i32 = arith.constant 0 : i32
    %c0_i32_0 = arith.constant 0 : i32
    %c0_i32_1 = arith.constant 0 : i32
    %c0_i32_2 = arith.constant 0 : i32
    %c0_i32_3 = arith.constant 0 : i32
    return %c0_i32, %c0_i32_0, %c0_i32_1, %c0_i32_2 : i32, i32, i32, i32
  }
  func.func @transform_7(%arg0: i32) -> (i32, i32, i32) {
    %c0_i32 = arith.constant 0 : i32
    %c0_i32_0 = arith.constant 0 : i32
    %c0_i32_1 = arith.constant 0 : i32
    %c0_i32_2 = arith.constant 0 : i32
    return %c0_i32, %c0_i32_0, %c0_i32_1 : i32, i32, i32
  }
  func.func @transform_8(%arg0: i32) -> (i32, i32, i32) {
    %c0_i32 = arith.constant 0 : i32
    %c0_i32_0 = arith.constant 0 : i32
    %c0_i32_1 = arith.constant 0 : i32
    %c0_i32_2 = arith.constant 0 : i32
    return %c0_i32, %c0_i32_0, %c0_i32_1 : i32, i32, i32
  }
  func.func @transform_9(%arg0: i32) -> (i32, i32, i32) {
    %c0_i32 = arith.constant 0 : i32
    %c0_i32_0 = arith.constant 0 : i32
    %c0_i32_1 = arith.constant 0 : i32
    %c0_i32_2 = arith.constant 0 : i32
    return %c0_i32, %c0_i32_0, %c0_i32_1 : i32, i32, i32
  }
  func.func @transform_10(%arg0: i32) -> (i32, i32, i32) {
    %c0_i32 = arith.constant 0 : i32
    %c0_i32_0 = arith.constant 0 : i32
    %c0_i32_1 = arith.constant 0 : i32
    %c0_i32_2 = arith.constant 0 : i32
    return %c0_i32, %c0_i32_0, %c0_i32_1 : i32, i32, i32
  }
  func.func @transform_11(%arg0: i32) -> (i32, i32, i32) {
    %c0_i32 = arith.constant 0 : i32
    %c0_i32_0 = arith.constant 0 : i32
    %c0_i32_1 = arith.constant 0 : i32
    %c0_i32_2 = arith.constant 0 : i32
    return %c0_i32, %c0_i32_0, %c0_i32_1 : i32, i32, i32
  }
  func.func @transform_12(%arg0: i32) -> (i32, i32, i32) {
    %c0_i32 = arith.constant 0 : i32
    %c0_i32_0 = arith.constant 0 : i32
    %c0_i32_1 = arith.constant 0 : i32
    %c0_i32_2 = arith.constant 0 : i32
    return %c0_i32, %c0_i32_0, %c0_i32_1 : i32, i32, i32
  }
  func.func @transform_13(%arg0: i32) -> (i32, i32, i32) {
    %c0_i32 = arith.constant 0 : i32
    %c0_i32_0 = arith.constant 0 : i32
    %c0_i32_1 = arith.constant 0 : i32
    return %arg0, %c0_i32, %c0_i32_0 : i32, i32, i32
  }
}

module attributes {stable_mosaic.version = 11 : i64} {
  func.func @_stage_kernel(%arg0: i32, %arg1: memref<1x4x128xbf16, #tpu.memory_space<vmem>>, %arg2: memref<2x128x128xbf16, #tpu.memory_space<vmem>>, %arg3: memref<2x1x128xf32, #tpu.memory_space<vmem>>, %arg4: memref<2x128x128xbf16, #tpu.memory_space<vmem>>, %arg5: memref<2x1x128xf32, #tpu.memory_space<vmem>>, %arg6: memref<2x2x4x4xf32, #tpu.memory_space<vmem>>, %arg7: memref<2x32x128xbf16, #tpu.memory_space<vmem>>, %arg8: memref<2x1x128xf32, #tpu.memory_space<vmem>>, %arg9: memref<2x128x128xbf16, #tpu.memory_space<vmem>>, %arg10: memref<2x1x128xf32, #tpu.memory_space<vmem>>, %arg11: memref<2x128x128xbf16, #tpu.memory_space<vmem>>, %arg12: memref<2x1x128xf32, #tpu.memory_space<vmem>>, %arg13: memref<128x128xbf16, #tpu.memory_space<vmem>>, %arg14: memref<1x128xf32, #tpu.memory_space<vmem>>, %arg15: memref<1x1x128xf32, #tpu.memory_space<vmem>>) attributes {dimension_semantics = [#tpu.dimension_semantics<parallel>], iteration_bounds = array<i64: 2>, scalar_prefetch = 0 : i64, scratch_operands = 0 : i64, tpu.core_type = #tpu.core_type<tc>, window_params = [{transform_indices = @transform_0, window_bounds = array<i64: 1, 4, 128>}, {pipeline_mode = #tpu.pipeline_mode<synchronous>, transform_indices = @transform_1, window_bounds = array<i64: 2, 128, 128>}, {pipeline_mode = #tpu.pipeline_mode<synchronous>, transform_indices = @transform_2, window_bounds = array<i64: 2, 1, 128>}, {pipeline_mode = #tpu.pipeline_mode<synchronous>, transform_indices = @transform_3, window_bounds = array<i64: 2, 128, 128>}, {pipeline_mode = #tpu.pipeline_mode<synchronous>, transform_indices = @transform_4, window_bounds = array<i64: 2, 1, 128>}, {pipeline_mode = #tpu.pipeline_mode<synchronous>, transform_indices = @transform_5, window_bounds = array<i64: 2, 2, 4, 4>}, {pipeline_mode = #tpu.pipeline_mode<synchronous>, transform_indices = @transform_6, window_bounds = array<i64: 2, 32, 128>}, {pipeline_mode = #tpu.pipeline_mode<synchronous>, transform_indices = @transform_7, window_bounds = array<i64: 2, 1, 128>}, {pipeline_mode = #tpu.pipeline_mode<synchronous>, transform_indices = @transform_8, window_bounds = array<i64: 2, 128, 128>}, {pipeline_mode = #tpu.pipeline_mode<synchronous>, transform_indices = @transform_9, window_bounds = array<i64: 2, 1, 128>}, {pipeline_mode = #tpu.pipeline_mode<synchronous>, transform_indices = @transform_10, window_bounds = array<i64: 2, 128, 128>}, {pipeline_mode = #tpu.pipeline_mode<synchronous>, transform_indices = @transform_11, window_bounds = array<i64: 2, 1, 128>}, {pipeline_mode = #tpu.pipeline_mode<synchronous>, transform_indices = @transform_12, window_bounds = array<i64: 128, 128>}, {pipeline_mode = #tpu.pipeline_mode<synchronous>, transform_indices = @transform_13, window_bounds = array<i64: 1, 128>}, {transform_indices = @transform_14, window_bounds = array<i64: 1, 1, 128>}]} {
    %c0 = arith.constant 0 : index
    %c0_0 = arith.constant 0 : index
    %c0_1 = arith.constant 0 : index
    %0 = vector.load %arg1[%c0, %c0_0, %c0_1] : memref<1x4x128xbf16, #tpu.memory_space<vmem>>, vector<1x4x128xbf16>
    %1 = vector.shape_cast %0 : vector<1x4x128xbf16> to vector<4x128xbf16>
    %2 = arith.extf %1 : vector<4x128xbf16> to vector<4x128xf32>
    %3 = arith.truncf %2 : vector<4x128xf32> to vector<4x128xbf16>
    %c0_2 = arith.constant 0 : index
    %c0_3 = arith.constant 0 : index
    %c0_4 = arith.constant 0 : index
    %4 = vector.load %arg2[%c0_2, %c0_3, %c0_4] : memref<2x128x128xbf16, #tpu.memory_space<vmem>>, vector<1x128x128xbf16>
    %5 = vector.shape_cast %4 : vector<1x128x128xbf16> to vector<128x128xbf16>
    %cst = arith.constant dense<0.000000e+00> : vector<4x128xf32>
    %6 = tpu.matmul %3, %5, %cst {dimension_numbers = #tpu.dot_dimension_numbers<[1], [0], [0], [1], [0, 0, 1, 1], [], []>} : vector<4x128xbf16>, vector<128x128xbf16>, vector<4x128xf32> -> vector<4x128xf32>
    %c0_5 = arith.constant 0 : index
    %c0_6 = arith.constant 0 : index
    %c0_7 = arith.constant 0 : index
    %7 = vector.load %arg3[%c0_5, %c0_6, %c0_7] : memref<2x1x128xf32, #tpu.memory_space<vmem>>, vector<1x1x128xf32>
    %8 = vector.shape_cast %7 : vector<1x1x128xf32> to vector<1x128xf32>
    %9 = vector.broadcast %8 : vector<1x128xf32> to vector<4x128xf32>
    %10 = arith.addf %6, %9 : vector<4x128xf32>
    %11 = arith.truncf %2 : vector<4x128xf32> to vector<4x128xbf16>
    %c0_8 = arith.constant 0 : index
    %c0_9 = arith.constant 0 : index
    %c0_10 = arith.constant 0 : index
    %12 = vector.load %arg4[%c0_8, %c0_9, %c0_10] : memref<2x128x128xbf16, #tpu.memory_space<vmem>>, vector<1x128x128xbf16>
    %13 = vector.shape_cast %12 : vector<1x128x128xbf16> to vector<128x128xbf16>
    %cst_11 = arith.constant dense<0.000000e+00> : vector<4x128xf32>
    %14 = tpu.matmul %11, %13, %cst_11 {dimension_numbers = #tpu.dot_dimension_numbers<[1], [0], [0], [1], [0, 0, 1, 1], [], []>} : vector<4x128xbf16>, vector<128x128xbf16>, vector<4x128xf32> -> vector<4x128xf32>
    %c0_12 = arith.constant 0 : index
    %c0_13 = arith.constant 0 : index
    %c0_14 = arith.constant 0 : index
    %15 = vector.load %arg5[%c0_12, %c0_13, %c0_14] : memref<2x1x128xf32, #tpu.memory_space<vmem>>, vector<1x1x128xf32>
    %16 = vector.shape_cast %15 : vector<1x1x128xf32> to vector<1x128xf32>
    %17 = vector.broadcast %16 : vector<1x128xf32> to vector<4x128xf32>
    %18 = arith.addf %14, %17 : vector<4x128xf32>
    %19 = arith.truncf %18 : vector<4x128xf32> to vector<4x128xbf16>
    %20 = vector.extract_strided_slice %10 {offsets = [0, 0], sizes = [4, 16], strides = [1, 1]} : vector<4x128xf32> to vector<4x16xf32>
    %21 = arith.truncf %20 : vector<4x16xf32> to vector<4x16xbf16>
    %22 = vector.extract_strided_slice %19 {offsets = [0, 0], sizes = [4, 16], strides = [1, 1]} : vector<4x128xbf16> to vector<4x16xbf16>
    %23 = vector.extract_strided_slice %19 {offsets = [0, 32], sizes = [4, 16], strides = [1, 1]} : vector<4x128xbf16> to vector<4x16xbf16>
    %cst_15 = arith.constant dense<0.000000e+00> : vector<4x4xf32>
    %24 = tpu.matmul %21, %22, %cst_15 {dimension_numbers = #tpu.dot_dimension_numbers<[1], [1], [0], [0], [0, 0, 1, 0], [], []>} : vector<4x16xbf16>, vector<4x16xbf16>, vector<4x4xf32> -> vector<4x4xf32>
    %cst_16 = arith.constant 2.500000e-01 : f32
    %25 = vector.broadcast %cst_16 : f32 to vector<4x4xf32>
    %26 = arith.mulf %24, %25 : vector<4x4xf32>
    %c0_17 = arith.constant 0 : index
    %c0_18 = arith.constant 0 : index
    %c0_19 = arith.constant 0 : index
    %c0_20 = arith.constant 0 : index
    %27 = vector.load %arg6[%c0_17, %c0_18, %c0_19, %c0_20] : memref<2x2x4x4xf32, #tpu.memory_space<vmem>>, vector<1x1x4x4xf32>
    %28 = vector.shape_cast %27 : vector<1x1x4x4xf32> to vector<4x4xf32>
    %29 = arith.addf %26, %28 : vector<4x4xf32>
    %cst_21 = arith.constant dense<0xFF800000> : vector<4xf32>
    %30 = vector.multi_reduction <maximumf>, %29, %cst_21 [1] : vector<4x4xf32> to vector<4xf32>
    %31 = vector.shape_cast %30 : vector<4xf32> to vector<4x1xf32>
    %32 = vector.broadcast %31 : vector<4x1xf32> to vector<4x4xf32>
    %33 = arith.subf %29, %32 : vector<4x4xf32>
    %34 = math.exp %33 : vector<4x4xf32>
    %cst_22 = arith.constant dense<0.000000e+00> : vector<4xf32>
    %35 = vector.multi_reduction <add>, %34, %cst_22 [1] : vector<4x4xf32> to vector<4xf32>
    %36 = vector.shape_cast %35 : vector<4xf32> to vector<4x1xf32>
    %37 = tpu.reciprocal %36 {approx = true} : vector<4x1xf32> -> vector<4x1xf32>
    %38 = vector.broadcast %37 : vector<4x1xf32> to vector<4x4xf32>
    %39 = arith.mulf %34, %38 : vector<4x4xf32>
    %40 = arith.truncf %39 : vector<4x4xf32> to vector<4x4xbf16>
    %cst_23 = arith.constant dense<0.000000e+00> : vector<4x16xf32>
    %41 = tpu.matmul %40, %23, %cst_23 {dimension_numbers = #tpu.dot_dimension_numbers<[1], [0], [0], [1], [0, 0, 1, 1], [], []>} : vector<4x4xbf16>, vector<4x16xbf16>, vector<4x16xf32> -> vector<4x16xf32>
    %42 = vector.extract_strided_slice %10 {offsets = [0, 16], sizes = [4, 16], strides = [1, 1]} : vector<4x128xf32> to vector<4x16xf32>
    %43 = arith.truncf %42 : vector<4x16xf32> to vector<4x16xbf16>
    %44 = vector.extract_strided_slice %19 {offsets = [0, 16], sizes = [4, 16], strides = [1, 1]} : vector<4x128xbf16> to vector<4x16xbf16>
    %45 = vector.extract_strided_slice %19 {offsets = [0, 48], sizes = [4, 16], strides = [1, 1]} : vector<4x128xbf16> to vector<4x16xbf16>
    %cst_24 = arith.constant dense<0.000000e+00> : vector<4x4xf32>
    %46 = tpu.matmul %43, %44, %cst_24 {dimension_numbers = #tpu.dot_dimension_numbers<[1], [1], [0], [0], [0, 0, 1, 0], [], []>} : vector<4x16xbf16>, vector<4x16xbf16>, vector<4x4xf32> -> vector<4x4xf32>
    %cst_25 = arith.constant 2.500000e-01 : f32
    %47 = vector.broadcast %cst_25 : f32 to vector<4x4xf32>
    %48 = arith.mulf %46, %47 : vector<4x4xf32>
    %c0_26 = arith.constant 0 : index
    %c1 = arith.constant 1 : index
    %c0_27 = arith.constant 0 : index
    %c0_28 = arith.constant 0 : index
    %49 = vector.load %arg6[%c0_26, %c1, %c0_27, %c0_28] : memref<2x2x4x4xf32, #tpu.memory_space<vmem>>, vector<1x1x4x4xf32>
    %50 = vector.shape_cast %49 : vector<1x1x4x4xf32> to vector<4x4xf32>
    %51 = arith.addf %48, %50 : vector<4x4xf32>
    %cst_29 = arith.constant dense<0xFF800000> : vector<4xf32>
    %52 = vector.multi_reduction <maximumf>, %51, %cst_29 [1] : vector<4x4xf32> to vector<4xf32>
    %53 = vector.shape_cast %52 : vector<4xf32> to vector<4x1xf32>
    %54 = vector.broadcast %53 : vector<4x1xf32> to vector<4x4xf32>
    %55 = arith.subf %51, %54 : vector<4x4xf32>
    %56 = math.exp %55 : vector<4x4xf32>
    %cst_30 = arith.constant dense<0.000000e+00> : vector<4xf32>
    %57 = vector.multi_reduction <add>, %56, %cst_30 [1] : vector<4x4xf32> to vector<4xf32>
    %58 = vector.shape_cast %57 : vector<4xf32> to vector<4x1xf32>
    %59 = tpu.reciprocal %58 {approx = true} : vector<4x1xf32> -> vector<4x1xf32>
    %60 = vector.broadcast %59 : vector<4x1xf32> to vector<4x4xf32>
    %61 = arith.mulf %56, %60 : vector<4x4xf32>
    %62 = arith.truncf %61 : vector<4x4xf32> to vector<4x4xbf16>
    %cst_31 = arith.constant dense<0.000000e+00> : vector<4x16xf32>
    %63 = tpu.matmul %62, %45, %cst_31 {dimension_numbers = #tpu.dot_dimension_numbers<[1], [0], [0], [1], [0, 0, 1, 1], [], []>} : vector<4x4xbf16>, vector<4x16xbf16>, vector<4x16xf32> -> vector<4x16xf32>
    %64 = tpu.concatenate %41, %63 in 1 : vector<4x16xf32>, vector<4x16xf32> -> vector<4x32xf32>
    %cst_32 = arith.constant 5.000000e-01 : f32
    %65 = vector.broadcast %cst_32 : f32 to vector<4x32xf32>
    %66 = arith.mulf %65, %64 : vector<4x32xf32>
    %cst_33 = arith.constant 0.707106769 : f32
    %67 = vector.broadcast %cst_33 : f32 to vector<4x32xf32>
    %68 = arith.mulf %64, %67 : vector<4x32xf32>
    %cst_34 = arith.constant 0.000000e+00 : f32
    %69 = vector.broadcast %cst_34 : f32 to vector<4x32xf32>
    %70 = arith.cmpf oge, %68, %69 : vector<4x32xf32>
    %cst_35 = arith.constant 0.000000e+00 : f32
    %71 = vector.broadcast %cst_35 : f32 to vector<4x32xf32>
    %72 = arith.subf %71, %68 : vector<4x32xf32>
    %73 = arith.select %70, %68, %72 : vector<4x32xi1>, vector<4x32xf32>
    %cst_36 = arith.constant 0.327591091 : f32
    %74 = vector.broadcast %cst_36 : f32 to vector<4x32xf32>
    %75 = arith.mulf %74, %73 : vector<4x32xf32>
    %cst_37 = arith.constant 1.000000e+00 : f32
    %76 = vector.broadcast %cst_37 : f32 to vector<4x32xf32>
    %77 = arith.addf %76, %75 : vector<4x32xf32>
    %cst_38 = arith.constant 1.000000e+00 : f32
    %78 = vector.broadcast %cst_38 : f32 to vector<4x32xf32>
    %79 = arith.divf %78, %77 : vector<4x32xf32>
    %cst_39 = arith.constant 1.06140542 : f32
    %80 = vector.broadcast %cst_39 : f32 to vector<4x32xf32>
    %81 = arith.mulf %80, %79 : vector<4x32xf32>
    %cst_40 = arith.constant -1.45315206 : f32
    %82 = vector.broadcast %cst_40 : f32 to vector<4x32xf32>
    %83 = arith.addf %81, %82 : vector<4x32xf32>
    %84 = arith.mulf %83, %79 : vector<4x32xf32>
    %cst_41 = arith.constant 1.42141378 : f32
    %85 = vector.broadcast %cst_41 : f32 to vector<4x32xf32>
    %86 = arith.addf %84, %85 : vector<4x32xf32>
    %87 = arith.mulf %86, %79 : vector<4x32xf32>
    %cst_42 = arith.constant -0.284496725 : f32
    %88 = vector.broadcast %cst_42 : f32 to vector<4x32xf32>
    %89 = arith.addf %87, %88 : vector<4x32xf32>
    %90 = arith.mulf %89, %79 : vector<4x32xf32>
    %cst_43 = arith.constant 0.254829586 : f32
    %91 = vector.broadcast %cst_43 : f32 to vector<4x32xf32>
    %92 = arith.addf %90, %91 : vector<4x32xf32>
    %93 = arith.mulf %92, %79 : vector<4x32xf32>
    %cst_44 = arith.constant 0.000000e+00 : f32
    %94 = vector.broadcast %cst_44 : f32 to vector<4x32xf32>
    %95 = arith.subf %94, %73 : vector<4x32xf32>
    %96 = arith.mulf %95, %73 : vector<4x32xf32>
    %97 = math.exp %96 : vector<4x32xf32>
    %98 = arith.mulf %93, %97 : vector<4x32xf32>
    %cst_45 = arith.constant 1.000000e+00 : f32
    %99 = vector.broadcast %cst_45 : f32 to vector<4x32xf32>
    %100 = arith.subf %99, %98 : vector<4x32xf32>
    %cst_46 = arith.constant 0.000000e+00 : f32
    %101 = vector.broadcast %cst_46 : f32 to vector<4x32xf32>
    %102 = arith.cmpf oge, %68, %101 : vector<4x32xf32>
    %cst_47 = arith.constant 0.000000e+00 : f32
    %103 = vector.broadcast %cst_47 : f32 to vector<4x32xf32>
    %104 = arith.subf %103, %100 : vector<4x32xf32>
    %105 = arith.select %102, %100, %104 : vector<4x32xi1>, vector<4x32xf32>
    %cst_48 = arith.constant 1.000000e+00 : f32
    %106 = vector.broadcast %cst_48 : f32 to vector<4x32xf32>
    %107 = arith.addf %106, %105 : vector<4x32xf32>
    %108 = arith.mulf %66, %107 : vector<4x32xf32>
    %109 = arith.truncf %108 : vector<4x32xf32> to vector<4x32xbf16>
    %c0_49 = arith.constant 0 : index
    %c0_50 = arith.constant 0 : index
    %c0_51 = arith.constant 0 : index
    %110 = vector.load %arg7[%c0_49, %c0_50, %c0_51] : memref<2x32x128xbf16, #tpu.memory_space<vmem>>, vector<1x32x128xbf16>
    %111 = vector.shape_cast %110 : vector<1x32x128xbf16> to vector<32x128xbf16>
    %cst_52 = arith.constant dense<0.000000e+00> : vector<4x128xf32>
    %112 = tpu.matmul %109, %111, %cst_52 {dimension_numbers = #tpu.dot_dimension_numbers<[1], [0], [0], [1], [0, 0, 1, 1], [], []>} : vector<4x32xbf16>, vector<32x128xbf16>, vector<4x128xf32> -> vector<4x128xf32>
    %c0_53 = arith.constant 0 : index
    %c0_54 = arith.constant 0 : index
    %c0_55 = arith.constant 0 : index
    %113 = vector.load %arg8[%c0_53, %c0_54, %c0_55] : memref<2x1x128xf32, #tpu.memory_space<vmem>>, vector<1x1x128xf32>
    %114 = vector.shape_cast %113 : vector<1x1x128xf32> to vector<1x128xf32>
    %115 = vector.broadcast %114 : vector<1x128xf32> to vector<4x128xf32>
    %116 = arith.addf %112, %115 : vector<4x128xf32>
    %117 = arith.addf %116, %2 : vector<4x128xf32>
    %118 = arith.truncf %117 : vector<4x128xf32> to vector<4x128xbf16>
    %c0_56 = arith.constant 0 : index
    %c0_57 = arith.constant 0 : index
    %c0_58 = arith.constant 0 : index
    %119 = vector.load %arg9[%c0_56, %c0_57, %c0_58] : memref<2x128x128xbf16, #tpu.memory_space<vmem>>, vector<1x128x128xbf16>
    %120 = vector.shape_cast %119 : vector<1x128x128xbf16> to vector<128x128xbf16>
    %cst_59 = arith.constant dense<0.000000e+00> : vector<4x128xf32>
    %121 = tpu.matmul %118, %120, %cst_59 {dimension_numbers = #tpu.dot_dimension_numbers<[1], [0], [0], [1], [0, 0, 1, 1], [], []>} : vector<4x128xbf16>, vector<128x128xbf16>, vector<4x128xf32> -> vector<4x128xf32>
    %c0_60 = arith.constant 0 : index
    %c0_61 = arith.constant 0 : index
    %c0_62 = arith.constant 0 : index
    %122 = vector.load %arg10[%c0_60, %c0_61, %c0_62] : memref<2x1x128xf32, #tpu.memory_space<vmem>>, vector<1x1x128xf32>
    %123 = vector.shape_cast %122 : vector<1x1x128xf32> to vector<1x128xf32>
    %124 = vector.broadcast %123 : vector<1x128xf32> to vector<4x128xf32>
    %125 = arith.addf %121, %124 : vector<4x128xf32>
    %cst_63 = arith.constant 3.000000e+00 : f32
    %126 = vector.broadcast %cst_63 : f32 to vector<4x128xf32>
    %127 = arith.addf %125, %126 : vector<4x128xf32>
    %cst_64 = arith.constant 0.000000e+00 : f32
    %cst_65 = arith.constant 6.000000e+00 : f32
    %128 = vector.broadcast %cst_64 : f32 to vector<4x128xf32>
    %129 = arith.maximumf %128, %127 : vector<4x128xf32>
    %130 = vector.broadcast %cst_65 : f32 to vector<4x128xf32>
    %131 = arith.minimumf %130, %129 : vector<4x128xf32>
    %132 = arith.mulf %125, %131 : vector<4x128xf32>
    %cst_66 = arith.constant 0.166666672 : f32
    %133 = vector.broadcast %cst_66 : f32 to vector<4x128xf32>
    %134 = arith.mulf %132, %133 : vector<4x128xf32>
    %135 = arith.truncf %134 : vector<4x128xf32> to vector<4x128xbf16>
    %c0_67 = arith.constant 0 : index
    %c0_68 = arith.constant 0 : index
    %c0_69 = arith.constant 0 : index
    %136 = vector.load %arg11[%c0_67, %c0_68, %c0_69] : memref<2x128x128xbf16, #tpu.memory_space<vmem>>, vector<1x128x128xbf16>
    %137 = vector.shape_cast %136 : vector<1x128x128xbf16> to vector<128x128xbf16>
    %cst_70 = arith.constant dense<0.000000e+00> : vector<4x128xf32>
    %138 = tpu.matmul %135, %137, %cst_70 {dimension_numbers = #tpu.dot_dimension_numbers<[1], [0], [0], [1], [0, 0, 1, 1], [], []>} : vector<4x128xbf16>, vector<128x128xbf16>, vector<4x128xf32> -> vector<4x128xf32>
    %c0_71 = arith.constant 0 : index
    %c0_72 = arith.constant 0 : index
    %c0_73 = arith.constant 0 : index
    %139 = vector.load %arg12[%c0_71, %c0_72, %c0_73] : memref<2x1x128xf32, #tpu.memory_space<vmem>>, vector<1x1x128xf32>
    %140 = vector.shape_cast %139 : vector<1x1x128xf32> to vector<1x128xf32>
    %141 = vector.broadcast %140 : vector<1x128xf32> to vector<4x128xf32>
    %142 = arith.addf %138, %141 : vector<4x128xf32>
    %143 = arith.addf %142, %117 : vector<4x128xf32>
    %144 = arith.truncf %143 : vector<4x128xf32> to vector<4x128xbf16>
    %c1_74 = arith.constant 1 : index
    %c0_75 = arith.constant 0 : index
    %c0_76 = arith.constant 0 : index
    %145 = vector.load %arg2[%c1_74, %c0_75, %c0_76] : memref<2x128x128xbf16, #tpu.memory_space<vmem>>, vector<1x128x128xbf16>
    %146 = vector.shape_cast %145 : vector<1x128x128xbf16> to vector<128x128xbf16>
    %cst_77 = arith.constant dense<0.000000e+00> : vector<4x128xf32>
    %147 = tpu.matmul %144, %146, %cst_77 {dimension_numbers = #tpu.dot_dimension_numbers<[1], [0], [0], [1], [0, 0, 1, 1], [], []>} : vector<4x128xbf16>, vector<128x128xbf16>, vector<4x128xf32> -> vector<4x128xf32>
    %c1_78 = arith.constant 1 : index
    %c0_79 = arith.constant 0 : index
    %c0_80 = arith.constant 0 : index
    %148 = vector.load %arg3[%c1_78, %c0_79, %c0_80] : memref<2x1x128xf32, #tpu.memory_space<vmem>>, vector<1x1x128xf32>
    %149 = vector.shape_cast %148 : vector<1x1x128xf32> to vector<1x128xf32>
    %150 = vector.broadcast %149 : vector<1x128xf32> to vector<4x128xf32>
    %151 = arith.addf %147, %150 : vector<4x128xf32>
    %152 = arith.truncf %143 : vector<4x128xf32> to vector<4x128xbf16>
    %c1_81 = arith.constant 1 : index
    %c0_82 = arith.constant 0 : index
    %c0_83 = arith.constant 0 : index
    %153 = vector.load %arg4[%c1_81, %c0_82, %c0_83] : memref<2x128x128xbf16, #tpu.memory_space<vmem>>, vector<1x128x128xbf16>
    %154 = vector.shape_cast %153 : vector<1x128x128xbf16> to vector<128x128xbf16>
    %cst_84 = arith.constant dense<0.000000e+00> : vector<4x128xf32>
    %155 = tpu.matmul %152, %154, %cst_84 {dimension_numbers = #tpu.dot_dimension_numbers<[1], [0], [0], [1], [0, 0, 1, 1], [], []>} : vector<4x128xbf16>, vector<128x128xbf16>, vector<4x128xf32> -> vector<4x128xf32>
    %c1_85 = arith.constant 1 : index
    %c0_86 = arith.constant 0 : index
    %c0_87 = arith.constant 0 : index
    %156 = vector.load %arg5[%c1_85, %c0_86, %c0_87] : memref<2x1x128xf32, #tpu.memory_space<vmem>>, vector<1x1x128xf32>
    %157 = vector.shape_cast %156 : vector<1x1x128xf32> to vector<1x128xf32>
    %158 = vector.broadcast %157 : vector<1x128xf32> to vector<4x128xf32>
    %159 = arith.addf %155, %158 : vector<4x128xf32>
    %160 = arith.truncf %159 : vector<4x128xf32> to vector<4x128xbf16>
    %161 = vector.extract_strided_slice %151 {offsets = [0, 0], sizes = [4, 16], strides = [1, 1]} : vector<4x128xf32> to vector<4x16xf32>
    %162 = arith.truncf %161 : vector<4x16xf32> to vector<4x16xbf16>
    %163 = vector.extract_strided_slice %160 {offsets = [0, 0], sizes = [4, 16], strides = [1, 1]} : vector<4x128xbf16> to vector<4x16xbf16>
    %164 = vector.extract_strided_slice %160 {offsets = [0, 32], sizes = [4, 16], strides = [1, 1]} : vector<4x128xbf16> to vector<4x16xbf16>
    %cst_88 = arith.constant dense<0.000000e+00> : vector<4x4xf32>
    %165 = tpu.matmul %162, %163, %cst_88 {dimension_numbers = #tpu.dot_dimension_numbers<[1], [1], [0], [0], [0, 0, 1, 0], [], []>} : vector<4x16xbf16>, vector<4x16xbf16>, vector<4x4xf32> -> vector<4x4xf32>
    %cst_89 = arith.constant 2.500000e-01 : f32
    %166 = vector.broadcast %cst_89 : f32 to vector<4x4xf32>
    %167 = arith.mulf %165, %166 : vector<4x4xf32>
    %c1_90 = arith.constant 1 : index
    %c0_91 = arith.constant 0 : index
    %c0_92 = arith.constant 0 : index
    %c0_93 = arith.constant 0 : index
    %168 = vector.load %arg6[%c1_90, %c0_91, %c0_92, %c0_93] : memref<2x2x4x4xf32, #tpu.memory_space<vmem>>, vector<1x1x4x4xf32>
    %169 = vector.shape_cast %168 : vector<1x1x4x4xf32> to vector<4x4xf32>
    %170 = arith.addf %167, %169 : vector<4x4xf32>
    %cst_94 = arith.constant dense<0xFF800000> : vector<4xf32>
    %171 = vector.multi_reduction <maximumf>, %170, %cst_94 [1] : vector<4x4xf32> to vector<4xf32>
    %172 = vector.shape_cast %171 : vector<4xf32> to vector<4x1xf32>
    %173 = vector.broadcast %172 : vector<4x1xf32> to vector<4x4xf32>
    %174 = arith.subf %170, %173 : vector<4x4xf32>
    %175 = math.exp %174 : vector<4x4xf32>
    %cst_95 = arith.constant dense<0.000000e+00> : vector<4xf32>
    %176 = vector.multi_reduction <add>, %175, %cst_95 [1] : vector<4x4xf32> to vector<4xf32>
    %177 = vector.shape_cast %176 : vector<4xf32> to vector<4x1xf32>
    %178 = tpu.reciprocal %177 {approx = true} : vector<4x1xf32> -> vector<4x1xf32>
    %179 = vector.broadcast %178 : vector<4x1xf32> to vector<4x4xf32>
    %180 = arith.mulf %175, %179 : vector<4x4xf32>
    %181 = arith.truncf %180 : vector<4x4xf32> to vector<4x4xbf16>
    %cst_96 = arith.constant dense<0.000000e+00> : vector<4x16xf32>
    %182 = tpu.matmul %181, %164, %cst_96 {dimension_numbers = #tpu.dot_dimension_numbers<[1], [0], [0], [1], [0, 0, 1, 1], [], []>} : vector<4x4xbf16>, vector<4x16xbf16>, vector<4x16xf32> -> vector<4x16xf32>
    %183 = vector.extract_strided_slice %151 {offsets = [0, 16], sizes = [4, 16], strides = [1, 1]} : vector<4x128xf32> to vector<4x16xf32>
    %184 = arith.truncf %183 : vector<4x16xf32> to vector<4x16xbf16>
    %185 = vector.extract_strided_slice %160 {offsets = [0, 16], sizes = [4, 16], strides = [1, 1]} : vector<4x128xbf16> to vector<4x16xbf16>
    %186 = vector.extract_strided_slice %160 {offsets = [0, 48], sizes = [4, 16], strides = [1, 1]} : vector<4x128xbf16> to vector<4x16xbf16>
    %cst_97 = arith.constant dense<0.000000e+00> : vector<4x4xf32>
    %187 = tpu.matmul %184, %185, %cst_97 {dimension_numbers = #tpu.dot_dimension_numbers<[1], [1], [0], [0], [0, 0, 1, 0], [], []>} : vector<4x16xbf16>, vector<4x16xbf16>, vector<4x4xf32> -> vector<4x4xf32>
    %cst_98 = arith.constant 2.500000e-01 : f32
    %188 = vector.broadcast %cst_98 : f32 to vector<4x4xf32>
    %189 = arith.mulf %187, %188 : vector<4x4xf32>
    %c1_99 = arith.constant 1 : index
    %c1_100 = arith.constant 1 : index
    %c0_101 = arith.constant 0 : index
    %c0_102 = arith.constant 0 : index
    %190 = vector.load %arg6[%c1_99, %c1_100, %c0_101, %c0_102] : memref<2x2x4x4xf32, #tpu.memory_space<vmem>>, vector<1x1x4x4xf32>
    %191 = vector.shape_cast %190 : vector<1x1x4x4xf32> to vector<4x4xf32>
    %192 = arith.addf %189, %191 : vector<4x4xf32>
    %cst_103 = arith.constant dense<0xFF800000> : vector<4xf32>
    %193 = vector.multi_reduction <maximumf>, %192, %cst_103 [1] : vector<4x4xf32> to vector<4xf32>
    %194 = vector.shape_cast %193 : vector<4xf32> to vector<4x1xf32>
    %195 = vector.broadcast %194 : vector<4x1xf32> to vector<4x4xf32>
    %196 = arith.subf %192, %195 : vector<4x4xf32>
    %197 = math.exp %196 : vector<4x4xf32>
    %cst_104 = arith.constant dense<0.000000e+00> : vector<4xf32>
    %198 = vector.multi_reduction <add>, %197, %cst_104 [1] : vector<4x4xf32> to vector<4xf32>
    %199 = vector.shape_cast %198 : vector<4xf32> to vector<4x1xf32>
    %200 = tpu.reciprocal %199 {approx = true} : vector<4x1xf32> -> vector<4x1xf32>
    %201 = vector.broadcast %200 : vector<4x1xf32> to vector<4x4xf32>
    %202 = arith.mulf %197, %201 : vector<4x4xf32>
    %203 = arith.truncf %202 : vector<4x4xf32> to vector<4x4xbf16>
    %cst_105 = arith.constant dense<0.000000e+00> : vector<4x16xf32>
    %204 = tpu.matmul %203, %186, %cst_105 {dimension_numbers = #tpu.dot_dimension_numbers<[1], [0], [0], [1], [0, 0, 1, 1], [], []>} : vector<4x4xbf16>, vector<4x16xbf16>, vector<4x16xf32> -> vector<4x16xf32>
    %205 = tpu.concatenate %182, %204 in 1 : vector<4x16xf32>, vector<4x16xf32> -> vector<4x32xf32>
    %cst_106 = arith.constant 5.000000e-01 : f32
    %206 = vector.broadcast %cst_106 : f32 to vector<4x32xf32>
    %207 = arith.mulf %206, %205 : vector<4x32xf32>
    %cst_107 = arith.constant 0.707106769 : f32
    %208 = vector.broadcast %cst_107 : f32 to vector<4x32xf32>
    %209 = arith.mulf %205, %208 : vector<4x32xf32>
    %cst_108 = arith.constant 0.000000e+00 : f32
    %210 = vector.broadcast %cst_108 : f32 to vector<4x32xf32>
    %211 = arith.cmpf oge, %209, %210 : vector<4x32xf32>
    %cst_109 = arith.constant 0.000000e+00 : f32
    %212 = vector.broadcast %cst_109 : f32 to vector<4x32xf32>
    %213 = arith.subf %212, %209 : vector<4x32xf32>
    %214 = arith.select %211, %209, %213 : vector<4x32xi1>, vector<4x32xf32>
    %cst_110 = arith.constant 0.327591091 : f32
    %215 = vector.broadcast %cst_110 : f32 to vector<4x32xf32>
    %216 = arith.mulf %215, %214 : vector<4x32xf32>
    %cst_111 = arith.constant 1.000000e+00 : f32
    %217 = vector.broadcast %cst_111 : f32 to vector<4x32xf32>
    %218 = arith.addf %217, %216 : vector<4x32xf32>
    %cst_112 = arith.constant 1.000000e+00 : f32
    %219 = vector.broadcast %cst_112 : f32 to vector<4x32xf32>
    %220 = arith.divf %219, %218 : vector<4x32xf32>
    %cst_113 = arith.constant 1.06140542 : f32
    %221 = vector.broadcast %cst_113 : f32 to vector<4x32xf32>
    %222 = arith.mulf %221, %220 : vector<4x32xf32>
    %cst_114 = arith.constant -1.45315206 : f32
    %223 = vector.broadcast %cst_114 : f32 to vector<4x32xf32>
    %224 = arith.addf %222, %223 : vector<4x32xf32>
    %225 = arith.mulf %224, %220 : vector<4x32xf32>
    %cst_115 = arith.constant 1.42141378 : f32
    %226 = vector.broadcast %cst_115 : f32 to vector<4x32xf32>
    %227 = arith.addf %225, %226 : vector<4x32xf32>
    %228 = arith.mulf %227, %220 : vector<4x32xf32>
    %cst_116 = arith.constant -0.284496725 : f32
    %229 = vector.broadcast %cst_116 : f32 to vector<4x32xf32>
    %230 = arith.addf %228, %229 : vector<4x32xf32>
    %231 = arith.mulf %230, %220 : vector<4x32xf32>
    %cst_117 = arith.constant 0.254829586 : f32
    %232 = vector.broadcast %cst_117 : f32 to vector<4x32xf32>
    %233 = arith.addf %231, %232 : vector<4x32xf32>
    %234 = arith.mulf %233, %220 : vector<4x32xf32>
    %cst_118 = arith.constant 0.000000e+00 : f32
    %235 = vector.broadcast %cst_118 : f32 to vector<4x32xf32>
    %236 = arith.subf %235, %214 : vector<4x32xf32>
    %237 = arith.mulf %236, %214 : vector<4x32xf32>
    %238 = math.exp %237 : vector<4x32xf32>
    %239 = arith.mulf %234, %238 : vector<4x32xf32>
    %cst_119 = arith.constant 1.000000e+00 : f32
    %240 = vector.broadcast %cst_119 : f32 to vector<4x32xf32>
    %241 = arith.subf %240, %239 : vector<4x32xf32>
    %cst_120 = arith.constant 0.000000e+00 : f32
    %242 = vector.broadcast %cst_120 : f32 to vector<4x32xf32>
    %243 = arith.cmpf oge, %209, %242 : vector<4x32xf32>
    %cst_121 = arith.constant 0.000000e+00 : f32
    %244 = vector.broadcast %cst_121 : f32 to vector<4x32xf32>
    %245 = arith.subf %244, %241 : vector<4x32xf32>
    %246 = arith.select %243, %241, %245 : vector<4x32xi1>, vector<4x32xf32>
    %cst_122 = arith.constant 1.000000e+00 : f32
    %247 = vector.broadcast %cst_122 : f32 to vector<4x32xf32>
    %248 = arith.addf %247, %246 : vector<4x32xf32>
    %249 = arith.mulf %207, %248 : vector<4x32xf32>
    %250 = arith.truncf %249 : vector<4x32xf32> to vector<4x32xbf16>
    %c1_123 = arith.constant 1 : index
    %c0_124 = arith.constant 0 : index
    %c0_125 = arith.constant 0 : index
    %251 = vector.load %arg7[%c1_123, %c0_124, %c0_125] : memref<2x32x128xbf16, #tpu.memory_space<vmem>>, vector<1x32x128xbf16>
    %252 = vector.shape_cast %251 : vector<1x32x128xbf16> to vector<32x128xbf16>
    %cst_126 = arith.constant dense<0.000000e+00> : vector<4x128xf32>
    %253 = tpu.matmul %250, %252, %cst_126 {dimension_numbers = #tpu.dot_dimension_numbers<[1], [0], [0], [1], [0, 0, 1, 1], [], []>} : vector<4x32xbf16>, vector<32x128xbf16>, vector<4x128xf32> -> vector<4x128xf32>
    %c1_127 = arith.constant 1 : index
    %c0_128 = arith.constant 0 : index
    %c0_129 = arith.constant 0 : index
    %254 = vector.load %arg8[%c1_127, %c0_128, %c0_129] : memref<2x1x128xf32, #tpu.memory_space<vmem>>, vector<1x1x128xf32>
    %255 = vector.shape_cast %254 : vector<1x1x128xf32> to vector<1x128xf32>
    %256 = vector.broadcast %255 : vector<1x128xf32> to vector<4x128xf32>
    %257 = arith.addf %253, %256 : vector<4x128xf32>
    %258 = arith.addf %257, %143 : vector<4x128xf32>
    %259 = arith.truncf %258 : vector<4x128xf32> to vector<4x128xbf16>
    %c1_130 = arith.constant 1 : index
    %c0_131 = arith.constant 0 : index
    %c0_132 = arith.constant 0 : index
    %260 = vector.load %arg9[%c1_130, %c0_131, %c0_132] : memref<2x128x128xbf16, #tpu.memory_space<vmem>>, vector<1x128x128xbf16>
    %261 = vector.shape_cast %260 : vector<1x128x128xbf16> to vector<128x128xbf16>
    %cst_133 = arith.constant dense<0.000000e+00> : vector<4x128xf32>
    %262 = tpu.matmul %259, %261, %cst_133 {dimension_numbers = #tpu.dot_dimension_numbers<[1], [0], [0], [1], [0, 0, 1, 1], [], []>} : vector<4x128xbf16>, vector<128x128xbf16>, vector<4x128xf32> -> vector<4x128xf32>
    %c1_134 = arith.constant 1 : index
    %c0_135 = arith.constant 0 : index
    %c0_136 = arith.constant 0 : index
    %263 = vector.load %arg10[%c1_134, %c0_135, %c0_136] : memref<2x1x128xf32, #tpu.memory_space<vmem>>, vector<1x1x128xf32>
    %264 = vector.shape_cast %263 : vector<1x1x128xf32> to vector<1x128xf32>
    %265 = vector.broadcast %264 : vector<1x128xf32> to vector<4x128xf32>
    %266 = arith.addf %262, %265 : vector<4x128xf32>
    %cst_137 = arith.constant 3.000000e+00 : f32
    %267 = vector.broadcast %cst_137 : f32 to vector<4x128xf32>
    %268 = arith.addf %266, %267 : vector<4x128xf32>
    %cst_138 = arith.constant 0.000000e+00 : f32
    %cst_139 = arith.constant 6.000000e+00 : f32
    %269 = vector.broadcast %cst_138 : f32 to vector<4x128xf32>
    %270 = arith.maximumf %269, %268 : vector<4x128xf32>
    %271 = vector.broadcast %cst_139 : f32 to vector<4x128xf32>
    %272 = arith.minimumf %271, %270 : vector<4x128xf32>
    %273 = arith.mulf %266, %272 : vector<4x128xf32>
    %cst_140 = arith.constant 0.166666672 : f32
    %274 = vector.broadcast %cst_140 : f32 to vector<4x128xf32>
    %275 = arith.mulf %273, %274 : vector<4x128xf32>
    %276 = arith.truncf %275 : vector<4x128xf32> to vector<4x128xbf16>
    %c1_141 = arith.constant 1 : index
    %c0_142 = arith.constant 0 : index
    %c0_143 = arith.constant 0 : index
    %277 = vector.load %arg11[%c1_141, %c0_142, %c0_143] : memref<2x128x128xbf16, #tpu.memory_space<vmem>>, vector<1x128x128xbf16>
    %278 = vector.shape_cast %277 : vector<1x128x128xbf16> to vector<128x128xbf16>
    %cst_144 = arith.constant dense<0.000000e+00> : vector<4x128xf32>
    %279 = tpu.matmul %276, %278, %cst_144 {dimension_numbers = #tpu.dot_dimension_numbers<[1], [0], [0], [1], [0, 0, 1, 1], [], []>} : vector<4x128xbf16>, vector<128x128xbf16>, vector<4x128xf32> -> vector<4x128xf32>
    %c1_145 = arith.constant 1 : index
    %c0_146 = arith.constant 0 : index
    %c0_147 = arith.constant 0 : index
    %280 = vector.load %arg12[%c1_145, %c0_146, %c0_147] : memref<2x1x128xf32, #tpu.memory_space<vmem>>, vector<1x1x128xf32>
    %281 = vector.shape_cast %280 : vector<1x1x128xf32> to vector<1x128xf32>
    %282 = vector.broadcast %281 : vector<1x128xf32> to vector<4x128xf32>
    %283 = arith.addf %279, %282 : vector<4x128xf32>
    %284 = arith.addf %283, %258 : vector<4x128xf32>
    %cst_148 = arith.constant dense<0.000000e+00> : vector<128xf32>
    %285 = vector.multi_reduction <add>, %284, %cst_148 [0] : vector<4x128xf32> to vector<128xf32>
    %286 = vector.shape_cast %285 : vector<128xf32> to vector<1x128xf32>
    %cst_149 = arith.constant 2.500000e-01 : f32
    %287 = vector.broadcast %cst_149 : f32 to vector<1x128xf32>
    %288 = arith.mulf %286, %287 : vector<1x128xf32>
    %289 = arith.truncf %288 : vector<1x128xf32> to vector<1x128xbf16>
    %c0_150 = arith.constant 0 : index
    %c0_151 = arith.constant 0 : index
    %290 = vector.load %arg13[%c0_150, %c0_151] : memref<128x128xbf16, #tpu.memory_space<vmem>>, vector<128x128xbf16>
    %cst_152 = arith.constant dense<0.000000e+00> : vector<1x128xf32>
    %291 = tpu.matmul %289, %290, %cst_152 {dimension_numbers = #tpu.dot_dimension_numbers<[1], [0], [0], [1], [0, 0, 1, 1], [], []>} : vector<1x128xbf16>, vector<128x128xbf16>, vector<1x128xf32> -> vector<1x128xf32>
    %c0_153 = arith.constant 0 : index
    %c0_154 = arith.constant 0 : index
    %292 = vector.load %arg14[%c0_153, %c0_154] : memref<1x128xf32, #tpu.memory_space<vmem>>, vector<1x128xf32>
    %293 = arith.addf %291, %292 : vector<1x128xf32>
    %c0_155 = arith.constant 0 : index
    %c0_156 = arith.constant 0 : index
    %c0_157 = arith.constant 0 : index
    %294 = vector.load %arg15[%c0_155, %c0_156, %c0_157] : memref<1x1x128xf32, #tpu.memory_space<vmem>>, vector<1x1x128xf32>
    %295 = vector.shape_cast %294 : vector<1x1x128xf32> to vector<1x128xf32>
    %296 = vector.shape_cast %293 : vector<1x128xf32> to vector<1x1x128xf32>
    tpu.vector_store %arg15[%c0_155, %c0_156, %c0_157], %296 {strides = array<i32>} : memref<1x1x128xf32, #tpu.memory_space<vmem>>, vector<1x1x128xf32>,
    return
  }
  func.func @transform_0(%arg0: i32) -> (i32, i32, i32) {
    %c0_i32 = arith.constant 0 : i32
    %c0_i32_0 = arith.constant 0 : i32
    %c0_i32_1 = arith.constant 0 : i32
    return %arg0, %c0_i32, %c0_i32_0 : i32, i32, i32
  }
  func.func @transform_1(%arg0: i32) -> (i32, i32, i32) {
    %c0_i32 = arith.constant 0 : i32
    %c0_i32_0 = arith.constant 0 : i32
    %c0_i32_1 = arith.constant 0 : i32
    %c0_i32_2 = arith.constant 0 : i32
    return %c0_i32, %c0_i32_0, %c0_i32_1 : i32, i32, i32
  }
  func.func @transform_2(%arg0: i32) -> (i32, i32, i32) {
    %c0_i32 = arith.constant 0 : i32
    %c0_i32_0 = arith.constant 0 : i32
    %c0_i32_1 = arith.constant 0 : i32
    %c0_i32_2 = arith.constant 0 : i32
    return %c0_i32, %c0_i32_0, %c0_i32_1 : i32, i32, i32
  }
  func.func @transform_3(%arg0: i32) -> (i32, i32, i32) {
    %c0_i32 = arith.constant 0 : i32
    %c0_i32_0 = arith.constant 0 : i32
    %c0_i32_1 = arith.constant 0 : i32
    %c0_i32_2 = arith.constant 0 : i32
    return %c0_i32, %c0_i32_0, %c0_i32_1 : i32, i32, i32
  }
  func.func @transform_4(%arg0: i32) -> (i32, i32, i32) {
    %c0_i32 = arith.constant 0 : i32
    %c0_i32_0 = arith.constant 0 : i32
    %c0_i32_1 = arith.constant 0 : i32
    %c0_i32_2 = arith.constant 0 : i32
    return %c0_i32, %c0_i32_0, %c0_i32_1 : i32, i32, i32
  }
  func.func @transform_5(%arg0: i32) -> (i32, i32, i32, i32) {
    %c0_i32 = arith.constant 0 : i32
    %c0_i32_0 = arith.constant 0 : i32
    %c0_i32_1 = arith.constant 0 : i32
    %c0_i32_2 = arith.constant 0 : i32
    %c0_i32_3 = arith.constant 0 : i32
    return %c0_i32, %c0_i32_0, %c0_i32_1, %c0_i32_2 : i32, i32, i32, i32
  }
  func.func @transform_6(%arg0: i32) -> (i32, i32, i32) {
    %c0_i32 = arith.constant 0 : i32
    %c0_i32_0 = arith.constant 0 : i32
    %c0_i32_1 = arith.constant 0 : i32
    %c0_i32_2 = arith.constant 0 : i32
    return %c0_i32, %c0_i32_0, %c0_i32_1 : i32, i32, i32
  }
  func.func @transform_7(%arg0: i32) -> (i32, i32, i32) {
    %c0_i32 = arith.constant 0 : i32
    %c0_i32_0 = arith.constant 0 : i32
    %c0_i32_1 = arith.constant 0 : i32
    %c0_i32_2 = arith.constant 0 : i32
    return %c0_i32, %c0_i32_0, %c0_i32_1 : i32, i32, i32
  }
  func.func @transform_8(%arg0: i32) -> (i32, i32, i32) {
    %c0_i32 = arith.constant 0 : i32
    %c0_i32_0 = arith.constant 0 : i32
    %c0_i32_1 = arith.constant 0 : i32
    %c0_i32_2 = arith.constant 0 : i32
    return %c0_i32, %c0_i32_0, %c0_i32_1 : i32, i32, i32
  }
  func.func @transform_9(%arg0: i32) -> (i32, i32, i32) {
    %c0_i32 = arith.constant 0 : i32
    %c0_i32_0 = arith.constant 0 : i32
    %c0_i32_1 = arith.constant 0 : i32
    %c0_i32_2 = arith.constant 0 : i32
    return %c0_i32, %c0_i32_0, %c0_i32_1 : i32, i32, i32
  }
  func.func @transform_10(%arg0: i32) -> (i32, i32, i32) {
    %c0_i32 = arith.constant 0 : i32
    %c0_i32_0 = arith.constant 0 : i32
    %c0_i32_1 = arith.constant 0 : i32
    %c0_i32_2 = arith.constant 0 : i32
    return %c0_i32, %c0_i32_0, %c0_i32_1 : i32, i32, i32
  }
  func.func @transform_11(%arg0: i32) -> (i32, i32, i32) {
    %c0_i32 = arith.constant 0 : i32
    %c0_i32_0 = arith.constant 0 : i32
    %c0_i32_1 = arith.constant 0 : i32
    %c0_i32_2 = arith.constant 0 : i32
    return %c0_i32, %c0_i32_0, %c0_i32_1 : i32, i32, i32
  }
  func.func @transform_12(%arg0: i32) -> (i32, i32) {
    %c0_i32 = arith.constant 0 : i32
    %c0_i32_0 = arith.constant 0 : i32
    %c0_i32_1 = arith.constant 0 : i32
    return %c0_i32, %c0_i32_0 : i32, i32
  }
  func.func @transform_13(%arg0: i32) -> (i32, i32) {
    %c0_i32 = arith.constant 0 : i32
    %c0_i32_0 = arith.constant 0 : i32
    %c0_i32_1 = arith.constant 0 : i32
    return %c0_i32, %c0_i32_0 : i32, i32
  }
  func.func @transform_14(%arg0: i32) -> (i32, i32, i32) {
    %c0_i32 = arith.constant 0 : i32
    %c0_i32_0 = arith.constant 0 : i32
    %c0_i32_1 = arith.constant 0 : i32
    return %arg0, %c0_i32, %c0_i32_0 : i32, i32, i32
  }
}

</mosaic_0001>

<bundles_post_ra>
// kernel: levit_forward.6
= control target key start
LH: loop header
LB: loop body
LE: loop exit
PB: predicated region body
PF: predicated region fallthrough
CT: control target
= control target key end

     0   :  { %18 = vsyncpa [#allocation3], 0  ;;  %s3264_s0 = inlined_call_operand.vmem [shape: bf16[2,64,128], index: 0, kind: input, shape index: {}]   ;;  %s3265_s1 = inlined_call_operand.vmem [shape: bf16[2,16,128], index: 1, kind: input, shape index: {}]   ;;  %s3266_s2 = inlined_call_operand.vmem [shape: bf16[1,128,128], index: 2, kind: input, shape index: {}]   ;;  %s3267_s3 = inlined_call_operand.hbm [shape: f32[1,1,128], index: 3, kind: input, shape index: {}]   ;;  %s3268_s4 = inlined_call_operand.vmem [shape: bf16[1,128,128], index: 4, kind: input, shape index: {}]   ;;  %s3269_s5 = inlined_call_operand.hbm [shape: f32[1,1,128], index: 5, kind: input, shape index: {}]   ;;  %s3270_s6 = inlined_call_operand.vmem [shape: f32[1,4,16,64], index: 6, kind: input, shape index: {}]   ;;  %s3271_s7 = inlined_call_operand.vmem [shape: bf16[1,64,128], index: 7, kind: input, shape index: {}]   ;;  %s3272_s8 = inlined_call_operand.hbm [shape: f32[1,1,128], index: 8, kind: input, shape index: {}]   ;;  %s3273_s9 = inlined_call_operand.vmem [shape: bf16[1,128,128], index: 9, kind: input, shape index: {}]   ;;  %s3274_s10 = inlined_call_operand.hbm [shape: f32[1,1,128], index: 10, kind: input, shape index: {}]   ;;  %s3275_s11 = inlined_call_operand.vmem [shape: bf16[1,128,128], index: 11, kind: input, shape index: {}]   ;;  %s3276_s12 = inlined_call_operand.hbm [shape: f32[1,1,128], index: 12, kind: input, shape index: {}]   ;;  %s3277_s13 = inlined_call_operand.vmem [shape: bf16[2,16,128], index: 13, kind: output, shape index: {}]  }
   0x1   :  { %19 = vsyncpa [#allocation5], 0 }
   0x2   :  { %20 = vsyncpa [#allocation8], 0  ;;  %s2724_s25 = smov 0  }
   0x3 LB: > { %3281 = sst [smem:[#allocation13_spill]] %s2638_s25  ;;  %s2640_s26 = smov [#allocation4]   ;;  %s2638_s25 = sphi %s2724_s25, %s26_s25  }
   0x4   : > { %s370_s27 = sshll.u32 %s2640_s26, 4  ;;  %s2730_s28 = sadd.s32 4294967295, %s2638_s25   ;;  %s2735_s27 = int_to_ptr.vmem [resolvable:$true] %s370_s27 }
   0x5   : > { %p1961_p0 = scmp.ge.s32.totalorder %s2638_s25, 1  ;;  %p340_p1 = scmp.lt.s32.totalorder %s2638_s25, 3 }
   0x6   : > { %p3279_p2 = scmp.eq.s32.totalorder %s2730_s28, 0  ;;  %s2641_s30 = smov [#allocation7]  }
   0x7   : > { %p2737_p3 = pnand %p1961_p0, %p340_p1  ;;  %s401_s14 = sshll.u32 %s2641_s30, 4  ;;  %s2743_s14 = int_to_ptr.vmem [resolvable:$true] %s401_s14 }
   0x8   : > { %s2642_s15 = smov [#allocation2]   ;;  %s2643_s18 = smov [#allocation6]  }
   0x9   : > { %s3282_s29 = scalar_select %p2737_p3, 1, 0 }
   0xa   : > { %p2351_p4 = pneg %p2737_p3  ;;  %s356_s16 = sshll.u32 %s2642_s15, 4  ;;  %s2751_s16 = int_to_ptr.vmem [resolvable:$true] %s356_s16 }
   0xb   : > { %s387_s19 = sshll.u32 %s2643_s18, 4  ;;  %s2480_s22 = scalar_lea.hbm %s3269_s5, 16  ;;  %s2753_s19 = int_to_ptr.vmem [resolvable:$true] %s387_s19 }
   0xc   : > { %p2747_p5 = pnand %p3279_p2, %p2351_p4  ;;  %p2481_p6 = scmp.ne.s32.totalorder %s3269_s5, %s2480_s22 }
   0xd   : > { %p2487_p10 = scmp.lt.u32.totalorder %s2480_s22, %s3269_s5 }
   0xe   : > { %p2763_p7 = pneg %p2747_p5 }
  0x10   : > { %p2483_p8 = pnand %p2763_p7, %p2481_p6 }
  0x12   : > { %p2484_p9 = pneg %p2483_p8 }
  0x14   : > { %p2489_p11 = pnand %p2487_p10, %p2484_p9 }
  0x16   : > { %2492 = shalt.err (!%p2489_p11)
}
  0x17   : > { %s2493_s18 = scalar_lea.vmem %s2735_s27, 16  ;;  %s2500_s20 = scalar_lea.vmem %s2735_s27, 32 }
  0x18   : > { %p2494_p12 = scmp.ne.s32.totalorder %s2735_s27, %s2493_s18  ;;  %p2501_p1 = scmp.lt.s32.totalorder %s2735_s27, %s2735_s27 }
  0x19   : > { %p2502_p4 = scmp.lt.s32.totalorder %s2500_s20, %s2493_s18 }
  0x1a   : > { %p2496_p13 = pnand %p2494_p12, %p2763_p7 }
  0x1b   : > { %p2503_p6 = por %p2502_p4, %p2501_p1 }
  0x1c   : > { %p2497_p0 = pneg %p2496_p13 }
  0x1e   : > { %p2504_p8 = pnand %p2503_p6, %p2497_p0 }
  0x20   : > { %2507 = shalt.err (!%p2504_p8)
}
  0x21   : > { %2357 = dma.hbm_to_vmem [thread:$0]  (!%p2747_p5), %s3269_s5, 16, %s2735_s27, [#allocation5]  }
  0x22   : > { %s2508_s30 = scalar_lea.hbm %s3274_s10, 16 }
  0x23   : > { %p2509_p9 = scmp.ne.s32.totalorder %s3274_s10, %s2508_s30  ;;  %p2515_p12 = scmp.lt.u32.totalorder %s2508_s30, %s3274_s10 }
  0x25   : > { %p2511_p10 = pnand %p2509_p9, %p2763_p7 }
  0x27   : > { %p2512_p11 = pneg %p2511_p10 }
  0x29   : > { %p2517_p13 = pnand %p2515_p12, %p2512_p11 }
  0x2b   : > { %2520 = shalt.err (!%p2517_p13)
}
  0x2c   : > { %s2521_s27 = scalar_lea.vmem %s2743_s14, 16  ;;  %s2528_s25 = scalar_lea.vmem %s2743_s14, 32 }
  0x2d   : > { %p2522_p0 = scmp.ne.s32.totalorder %s2743_s14, %s2521_s27  ;;  %p2529_p6 = scmp.lt.s32.totalorder %s2743_s14, %s2743_s14 }
  0x2e   : > { %p2530_p8 = scmp.lt.s32.totalorder %s2528_s25, %s2521_s27 }
  0x2f   : > { %p2524_p1 = pnand %p2522_p0, %p2763_p7 }
  0x30   : > { %p2531_p9 = por %p2530_p8, %p2529_p6 }
  0x31   : > { %p2525_p4 = pneg %p2524_p1 }
  0x33   : > { %p2532_p10 = pnand %p2531_p9, %p2525_p4 }
  0x35   : > { %2535 = shalt.err (!%p2532_p10)
}
  0x36   : > { %2363 = dma.hbm_to_vmem [thread:$0]  (!%p2747_p5), %s3274_s10, 16, %s2743_s14, [#allocation8]  }
  0x37   : > { %s2536_s30 = scalar_lea.hbm %s3267_s3, 16 }
  0x38   : > { %p2537_p11 = scmp.ne.s32.totalorder %s3267_s3, %s2536_s30  ;;  %p2543_p0 = scmp.lt.u32.totalorder %s2536_s30, %s3267_s3 }
  0x3a   : > { %p2539_p12 = pnand %p2537_p11, %p2763_p7 }
  0x3c   : > { %p2540_p13 = pneg %p2539_p12 }
  0x3e   : > { %p2545_p1 = pnand %p2543_p0, %p2540_p13 }
  0x40   : > { %2548 = shalt.err (!%p2545_p1)
}
  0x41   : > { %s2549_s14 = scalar_lea.vmem %s2751_s16, 16  ;;  %s2556_s25 = scalar_lea.vmem %s2751_s16, 32 }
  0x42   : > { %p2550_p4 = scmp.ne.s32.totalorder %s2751_s16, %s2549_s14  ;;  %p2557_p9 = scmp.lt.s32.totalorder %s2751_s16, %s2751_s16 }
  0x43   : > { %p2558_p10 = scmp.lt.s32.totalorder %s2556_s25, %s2549_s14 }
  0x44   : > { %p2552_p6 = pnand %p2550_p4, %p2763_p7 }
  0x45   : > { %p2559_p11 = por %p2558_p10, %p2557_p9 }
  0x46   : > { %p2553_p8 = pneg %p2552_p6 }
  0x48   : > { %p2560_p12 = pnand %p2559_p11, %p2553_p8 }
  0x4a   : > { %2563 = shalt.err (!%p2560_p12)
}
  0x4b   : > { %2354 = dma.hbm_to_vmem [thread:$0]  (!%p2747_p5), %s3267_s3, 16, %s2751_s16, [#allocation3]  }
  0x4c   : > { %s2564_s30 = scalar_lea.hbm %s3272_s8, 16 }
  0x4d   : > { %p2565_p13 = scmp.ne.s32.totalorder %s3272_s8, %s2564_s30  ;;  %p2571_p4 = scmp.lt.u32.totalorder %s2564_s30, %s3272_s8 }
  0x4f   : > { %p2567_p0 = pnand %p2565_p13, %p2763_p7 }
  0x51   : > { %p2568_p1 = pneg %p2567_p0 }
  0x53   : > { %p2573_p6 = pnand %p2571_p4, %p2568_p1 }
  0x55   : > { %2576 = shalt.err (!%p2573_p6)
}
  0x56   : > { %s2577_s16 = scalar_lea.vmem %s2753_s19, 16  ;;  %s2584_s14 = scalar_lea.vmem %s2753_s19, 32 }
  0x57   : > { %p2578_p8 = scmp.ne.s32.totalorder %s2753_s19, %s2577_s16  ;;  %p2585_p11 = scmp.lt.s32.totalorder %s2753_s19, %s2753_s19 }
  0x58   : > { %p2586_p12 = scmp.lt.s32.totalorder %s2584_s14, %s2577_s16 }
  0x59   : > { %p2580_p9 = pnand %p2578_p8, %p2763_p7 }
  0x5a   : > { %p2587_p13 = por %p2586_p12, %p2585_p11 }
  0x5b   : > { %p2581_p10 = pneg %p2580_p9 }
  0x5d   : > { %p2588_p0 = pnand %p2587_p13, %p2581_p10 }
  0x5f   : > { %2591 = shalt.err (!%p2588_p0)
}
  0x60   : > { %2360 = dma.hbm_to_vmem [thread:$0]  (!%p2747_p5), %s3272_s8, 16, %s2753_s19, [#allocation5]  }
  0x61   : > { %s2644_s22 = smov [#allocation9]   ;;  %s2592_s15 = scalar_lea.hbm %s3276_s12, 16 }
  0x62   : > { %s415_s23 = sshll.u32 %s2644_s22, 4  ;;  %p2593_p1 = scmp.ne.s32.totalorder %s3276_s12, %s2592_s15  ;;  %s416_s23 = int_to_ptr.vmem [resolvable:$true] %s415_s23 }
  0x63   : > { %p2599_p8 = scmp.lt.u32.totalorder %s2592_s15, %s3276_s12 }
  0x64   : > { %p2595_p4 = pnand %p2593_p1, %p2763_p7 }
  0x66   : > { %p2596_p6 = pneg %p2595_p4 }
  0x68   : > { %p2601_p9 = pnand %p2599_p8, %p2596_p6 }
  0x6a   : > { %2604 = shalt.err (!%p2601_p9)
}
  0x6b   : > { %s2605_s19 = scalar_lea.vmem %s416_s23, 16  ;;  %s2612_s14 = scalar_lea.vmem %s416_s23, 32 }
  0x6c   : > { %p2606_p10 = scmp.ne.s32.totalorder %s416_s23, %s2605_s19  ;;  %p2613_p13 = scmp.lt.s32.totalorder %s416_s23, %s416_s23 }
  0x6d   : > { %p2614_p0 = scmp.lt.s32.totalorder %s2612_s14, %s2605_s19 }
  0x6e   : > { %p2608_p11 = pnand %p2606_p10, %p2763_p7 }
  0x6f   : > { %p2615_p2 = por %p2614_p0, %p2613_p13 }
  0x70   : > { %p2609_p12 = pneg %p2608_p11 }
  0x72   : > { %p2616_p3 = pnand %p2615_p2, %p2609_p12 }
  0x74   : > { %2619 = shalt.err (!%p2616_p3)
}
  0x75   : > { %2366 = dma.hbm_to_vmem [thread:$0]  (!%p2747_p5), %s3276_s12, 16, %s416_s23, [#allocation8]  }
  0x76   : > { %p3285_p1 = scmp.ne.s32.totalorder %s3282_s29, 0 }
  0x77   : > { %p3286_p4 = scmp.eq.s32.totalorder (!%p3285_p1), %s2730_s28, 0 }
  0x78   : > { %444 = sbr.rel (%p3285_p1) target bundleno = 3713 (0xe81), region = 72 }
  0x7f   : > { %2625 = dma.done.wait (%p3286_p4), [#allocation3], 16   ;;  %p3287_p7 = pmov %p3286_p4 }
  0x80   : > { %p3288_p6 = pmov %p3286_p4 }
  0x81   : > { %2627 = vsyncadd (%p3287_p7), [#allocation3], 4294967280 }
  0x82   : > { %2629 = dma.done.wait (%p3288_p6), [#allocation5], 32   ;;  %p3289_p2 = pmov %p3286_p4 }
  0x84   : > { %2631 = vsyncadd (%p3289_p2), [#allocation5], 4294967264  ;;  %p3290_p3 = pmov %p3289_p2 }
  0x85   : > { %p3291_p5 = pmov %p3289_p2 }
  0x86   : > { %2633 = dma.done.wait (%p3290_p3), [#allocation8], 32  }
  0x87   : > { %2635 = vsyncadd (%p3291_p5), [#allocation8], 4294967264  ;;  %v2645_v0 = vmov 0.0   ;;  %vm2646_vm0 = vmmov 0   ;;  %p509_p8 = scmp.lt.s32.totalorder %s2730_s28, 1  ;;  %v2399_v1 = vld [vmem:[%s3268_s4] sm:$0xff]  }
  0x88   : > { %2139 = vmatprep.subr.bf16.mxu0 %v2645_v0  ;;  %2155 = vmatprep.mubr.msk.bf16.mxu0 %vm2646_vm0, %v2645_v0  ;;  %v2400_v2 = vld [vmem:[%s3268_s4 + $0x8] sm:$0xff]   ;;  %v2401_v3 = vld [vmem:[%s3268_s4 + $0x10] sm:$0xff]   ;;  %v2402_v4 = vld [vmem:[%s3268_s4 + $0x18] sm:$0xff]   ;;  %vm818_vm1 = vcmask 130048   ;;  %vm881_vm2 = vcmask 523264   ;;  %s2648_s21 = smov 112  }
  0x89   : > { %s3294_s28 = smov (!%p509_p8, %s2730_s28), 1  ;;  %2159 = vmatprep.subr.bf16.mxu1 %v2399_v1  ;;  %v2407_v5 = vld [vmem:[%s3266_s2] sm:$0xff]   ;;  %v2410_v7 = vld [vmem:[%s3266_s2 + $0x8] sm:$0xff]   ;;  %v2411_v9 = vld [vmem:[%s3266_s2 + $0x10] sm:$0xff]   ;;  %s2650_s24 = smov 96   ;;  %vm1448_vm3 = vcmask 261120  }
  0x8a   : > { %2160 = vmatpush3.bf16.msra.mxu1 %v2399_v1  ;;  %s2045_s23 = sshll.u32 %s3294_s28, 5  ;;  %2140 = vmatpush3.bf16.msra.mxu0 %v2407_v5  ;;  %v2403_v8 = vld [vmem:[%s3268_s4 + $0x20] sm:$0xff]   ;;  %v2404_v10 = vld [vmem:[%s3268_s4 + $0x28] sm:$0xff]   ;;  %s2046_s30 = sshll.u32 %s3294_s28, 3  ;;  %v2414_v11 = vld [vmem:[%s3266_s2 + $0x18] sm:$0xff]   ;;  %vm1451_vm4 = vcmask 392192  }
  0x8b   : > { %2161 = vmatprep.subr.bf16.mxu1 %v2400_v2  ;;  %s2909_s20 = scalar_lea.vmem %s3264_s0, %s2045_s23  ;;  %2141 = vmatprep.subr.bf16.mxu0 %v2645_v0  ;;  %v2405_v12 = vld [vmem:[%s3268_s4 + $0x30] sm:$0xff]   ;;  %s518_s25 = scalar_lea.vmem %s3265_s1, %s2046_s30  ;;  %v2415_v13 = vld [vmem:[%s3266_s2 + $0x20] sm:$0xff]   ;;  %v2406_v14 = vld [vmem:[%s3268_s4 + $0x38] sm:$0xff]  }
  0x8c   : > { %v2408_v6 = vld [vmem:[%s2909_s20] sm:$0xff]   ;;  %v2416_v15 = vld [vmem:[%s3266_s2 + $0x28] sm:$0xff]   ;;  %v2417_v17 = vld [vmem:[%s3266_s2 + $0x30] sm:$0xff]   ;;  %s2649_s23 = smov 48   ;;  %s2651_s16 = smov 32  }
  0x8d   : > { %2175 = vmatprep.mubr.bf16.mxu1 %v2408_v6  ;;  %v2409_v16 = vld [vmem:[%s2909_s20 + $0x8] sm:$0xff]   ;;  %v2412_v18 = vld [vmem:[%s2909_s20 + $0x10] sm:$0xff]   ;;  %v2418_v19 = vld [vmem:[%s3266_s2 + $0x38] sm:$0xff]   ;;  %s2652_s19 = smov 80   ;;  %s2653_s17 = smov 16  }
  0x8e   : > { %2162 = vmatpush3.bf16.msra.mxu1 %v2400_v2  ;;  %2142 = vmatpush3.bf16.msra.mxu0 %v2410_v7  ;;  %v2419_v20 = vld [vmem:[%s518_s25] sm:$0xff]   ;;  %v2413_v21 = vld [vmem:[%s2909_s20 + $0x18] sm:$0xff]   ;;  %s2647_s20 = smov 64   ;;  %v878_v60 = vld [vmem:[%s3270_s6 + $0x8] sm:$0xff] }
  0x8f   : > { %2163 = vmatprep.subr.bf16.mxu1 %v2401_v3  ;;  %2143 = vmatprep.subr.bf16.mxu0 %v2645_v0  ;;  %v1990_v23 = vld [vmem:[#allocation4] ss:$0 sm:$0xff]  ;;  %v1980_v32 = vld [vmem:[#allocation2] ss:$0 sm:$0xff] }
  0x90   : > { %v877_v56 = vld [vmem:[%s3270_s6] sm:$0xff] }
  0x92   : > { %2164 = vmatpush3.bf16.msra.mxu1 %v2401_v3  ;;  %2144 = vmatpush3.bf16.msra.mxu0 %v2411_v9 }
  0x93   : > { %2165 = vmatprep.subr.bf16.mxu1 %v2402_v4  ;;  %2145 = vmatprep.subr.bf16.mxu0 %v2645_v0 }
  0x96   : > { %2166 = vmatpush3.bf16.msra.mxu1 %v2402_v4  ;;  %2146 = vmatpush3.bf16.msra.mxu0 %v2414_v11 }
  0x97   : > { %2167 = vmatprep.subr.bf16.mxu1 %v2403_v8  ;;  %2147 = vmatprep.subr.bf16.mxu0 %v2645_v0 }
  0x9a   : > { %2168 = vmatpush3.bf16.msra.mxu1 %v2403_v8  ;;  %2148 = vmatpush3.bf16.msra.mxu0 %v2415_v13 }
  0x9b   : > { %2169 = vmatprep.subr.bf16.mxu1 %v2404_v10  ;;  %2149 = vmatprep.subr.bf16.mxu0 %v2645_v0 }
  0x9e   : > { %2170 = vmatpush3.bf16.msra.mxu1 %v2404_v10  ;;  %2150 = vmatpush3.bf16.msra.mxu0 %v2416_v15 }
  0x9f   : > { %2171 = vmatprep.subr.bf16.mxu1 %v2405_v12  ;;  %2151 = vmatprep.subr.bf16.mxu0 %v2645_v0 }
  0xa2   : > { %2172 = vmatpush3.bf16.msra.mxu1 %v2405_v12  ;;  %2152 = vmatpush3.bf16.msra.mxu0 %v2417_v17 }
  0xa3   : > { %2173 = vmatprep.subr.bf16.mxu1 %v2406_v14  ;;  %2153 = vmatprep.subr.bf16.mxu0 %v2645_v0 }
  0xa6   : > { %2174 = vmatpush3.bf16.msra.mxu1 %v2406_v14  ;;  %2154 = vmatpush3.bf16.msra.mxu0 %v2418_v19 }
  0xa7   : > { %2195 = vmatprep.subr.bf16.mxu1 %v2645_v0  ;;  %2183 = vmatprep.subr.bf16.mxu0 %v2645_v0 }
  0xa9   : > { %2176 = vmatmul.mubr.bf16.vlgmr.msra.gmra.mrb[0].mxu1 %v2409_v16  ;;  %2156 = vmatmul.mubr.bf16.vlgmr.msra.gmra.mrb[0].mxu0 %v2419_v20 }
  0xaa   : > { %2179 = vmatprep.mubr.bf16.mxu1 %v2412_v18  ;;  %2191 = vmatprep.mubr.msk.bf16.mxu0 %vm2646_vm0, %v2645_v0 }
  0xb1   : > { %2180 = vmatmul.mubr.bf16.gmra.mrb[4].mxu1 %v2413_v21 }
  0xb2   : > { %2203 = vmatprep.mubr.msk.bf16.mxu1 %vm2646_vm0, %v2645_v0 }
 0x17c   : > { %v2177_v22 = vpop.f32.mrb[0].mxu1  ;;  %v646_v34 = vpop.f32.mrb[0].mxu0 }
 0x17d   : > { %v782_v24 = vpop.f32.mrb[1].mxu1  ;;  %v791_v26 = vadd.f32 %v2177_v22, %v1990_v23  ;;  %v647_v37 = vadd.f32 %v1980_v32, %v646_v34  ;;  %v2157_v38 = vpop.f32.mrb[1].mxu0 }
 0x17e   : > { %v2178_v25 = vpop.f32.mrb[2].mxu1  ;;  %v783_v29 = vadd.f32 %v1990_v23, %v782_v24  ;;  %v649_v41 = vpop.f32.mrb[2].mxu0 }
 0x17f   : > { %v794_v27 = vadd.f32 %v2178_v25, %v1990_v23  ;;  %v785_v28 = vpop.f32.mrb[3].mxu1  ;;  %v650_v44 = vadd.f32 %v1980_v32, %v649_v41  ;;  %v2158_v45 = vpop.f32.mrb[3].mxu0  ;;  %v2006_v41 = vld [vmem:[%s3270_s6 + $0x10] sm:$0xff] }
 0x180   : > { %v786_v30 = vadd.f32 %v1990_v23, %v785_v28  ;;  %v2007_v45 = vld [vmem:[%s3270_s6 + $0x18] sm:$0xff] }
 0x181   : > { %v2973_v31 = vpack.c.bf16 %v794_v27, %v791_v26  ;;  %v2982_v49 = vpack.c.bf16 %v650_v44, %v647_v37 }
 0x182   : > { %v2975_v33 = vpack.c.bf16 %v786_v30, %v783_v29 }
 0x183   : > { %911 = vrot.lane.b32.xlu1 %v2973_v31, %s2647_s20  ;;  %v826_v52 = vsel %vm818_vm1, %v2973_v31, 0 }
 0x184   : > { %v2181_v35 = vpop.f32.mrb[4].mxu1  ;;  %v823_v36 = vsel %vm818_vm1, %v2975_v33, 0 }
 0x185   : > { %v807_v39 = vadd.f32 %v2181_v35, %v1990_v23  ;;  %2184 = vmatpush3.bf16.xpose.msra.mxu0 %v823_v36  ;;  %v798_v40 = vpop.f32.mrb[5].mxu1 }
 0x186   : > { %v799_v42 = vadd.f32 %v1990_v23, %v798_v40  ;;  %v2182_v43 = vpop.f32.mrb[6].mxu1  ;;  %2185 = vmatprep.subr.bf16.mxu0 %v2645_v0 }
 0x187   : > { %v810_v46 = vadd.f32 %v2182_v43, %v1990_v23  ;;  %v801_v47 = vpop.f32.mrb[7].mxu1 }
 0x188   : > { %v802_v48 = vadd.f32 %v1990_v23, %v801_v47 }
 0x189   : > { %v2984_v50 = vpack.c.bf16 %v810_v46, %v807_v39 }
 0x18a   : > { %v2986_v51 = vpack.c.bf16 %v802_v48, %v799_v42 }
 0x18b   : > { %v832_v54 = vsel %vm818_vm1, %v2984_v50, 0 }
 0x18c   : > { %913 = vrot.lane.b32.xlu1 %v2986_v51, %s2647_s20  ;;  %v829_v53 = vsel %vm818_vm1, %v2986_v51, 0 }
 0x18d   : > { %2186 = vmatpush3.bf16.xpose.msra.mxu0 %v826_v52 }
 0x18e   : > { %2187 = vmatprep.subr.bf16.mxu0 %v2645_v0 }
 0x190   : > { %915 = vrot.lane.b32.xlu1 %v2984_v50, %s2647_s20 }
 0x195   : > { %2188 = vmatpush3.bf16.xpose.msra.mxu0 %v829_v53 }
 0x196   : > { %2189 = vmatprep.subr.bf16.mxu0 %v2645_v0 }
 0x19d   : > { %2190 = vmatpush3.bf16.xpose.msra.mxu0 %v832_v54 }
 0x19e   : > { %2219 = vmatprep.subr.bf16.mxu0 %v2645_v0 }
 0x1a4   : > { %2192 = vmatmul.mubr.msk.bf16.vlgmr.msra.gmra.mrb[4].mxu0 %vm818_vm1, %v2982_v49 }
 0x1a5   : > { %2227 = vmatprep.mubr.msk.bf16.mxu0 %vm2646_vm0, %v2645_v0 }
 0x1f5   : > { %v912_v11 = vpop.permute.xlu1 %911 }
 0x1fe   : > { %v914_v12 = vpop.permute.xlu1 %913 }
 0x202   : > { %v916_v16 = vpop.permute.xlu1 %915 }
 0x277   : > { %v868_v55 = vpop.f32.mrb[4].mxu0 }
 0x278   : > { %v875_v57 = vmul.f32 0.25, %v868_v55  ;;  %v2193_v58 = vpop.f32.mrb[5].mxu0 }
 0x279   : > { %v871_v59 = vpop.f32.mrb[6].mxu0 }
 0x27a   : > { %v876_v61 = vmul.f32 0.25, %v871_v59  ;;  %v2194_v62 = vpop.f32.mrb[7].mxu0  ;;  %v879_v63 = vadd.f32 %v877_v56, %v875_v57 }
 0x27c   : > { %v882_v1 = vsel %vm881_vm2, %v879_v63, -inf  ;;  %v880_v2 = vadd.f32 %v878_v60, %v876_v61 }
 0x27d   : > { %883 = vmax.xlane.f32.xlu0 %v882_v1 }
 0x27e   : > { %v885_v3 = vsel %vm881_vm2, %v880_v2, -inf }
 0x281   : > { %886 = vmax.xlane.f32.xlu0 %v885_v3 }
 0x297   : > { %909 = vrot.lane.b32.xlu0 %v2975_v33, %s2647_s20 }
 0x29b   : > { %968 = vrot.lane.b32.xlu0 %v2975_v33, %s2648_s21 }
 0x29f   : > { %972 = vrot.lane.b32.xlu0 %v2986_v51, %s2648_s21 }
 0x2a3   : > { %966 = vrot.lane.b32.xlu0 %v2982_v49, %s2648_s21 }
 0x30a   : > { %v884_v4 = vpop.xlane.xlu0 %883 }
 0x30b   : > { %v888_v5 = vsub.f32 %v879_v63, %v884_v4 }
 0x30d   : > { %v890_v6 = vmul.f32 1.442695, %v888_v5 }
 0x30e   : > { %v887_v7 = vpop.xlane.xlu0 %886 }
 0x30f   : > { %2440 = vpow2.f32 %v890_v6  ;;  %v889_v8 = vsub.f32 %v880_v2, %v887_v7 }
 0x311   : > { %v892_v9 = vmul.f32 1.442695, %v889_v8 }
 0x312   : > { %v910_v10 = vpop.permute.xlu0 %909 }
 0x313   : > { %2442 = vpow2.f32 %v892_v9  ;;  %2196 = vmatpush3.bf16.msra.mxu1 %v910_v10 }
 0x314   : > { %2197 = vmatprep.subr.bf16.mxu1 %v2645_v0 }
 0x316   : > { %v969_v24 = vpop.permute.xlu0 %968 }
 0x317   : > { %2198 = vmatpush3.bf16.msra.mxu1 %v912_v11  ;;  %v980_v26 = vsel %vm818_vm1, %v969_v24, 0 }
 0x318   : > { %2199 = vmatprep.subr.bf16.mxu1 %v2645_v0 }
 0x319   : > { %v2441_v13 = vpop.eup %2440 }
 0x31a   : > { %v894_v14 = vsel %vm881_vm2, %v2441_v13, 0.0  ;;  %v973_v29 = vpop.permute.xlu0 %972 }
 0x31b   : > { %895 = vadd.xlane.f32.xlu1 %v894_v14  ;;  %2200 = vmatpush3.bf16.msra.mxu1 %v914_v12  ;;  %v986_v30 = vsel %vm818_vm1, %v973_v29, 0 }
 0x31c   : > { %2201 = vmatprep.subr.bf16.mxu1 %v2645_v0 }
 0x31d   : > { %v2443_v15 = vpop.eup %2442 }
 0x31e   : > { %v897_v17 = vsel %vm881_vm2, %v2443_v15, 0.0  ;;  %v967_v35 = vpop.permute.xlu0 %966 }
 0x31f   : > { %898 = vadd.xlane.f32.xlu1 %v897_v17  ;;  %2202 = vmatpush3.bf16.msra.mxu1 %v916_v16 }
 0x320   : > { %2207 = vmatprep.subr.bf16.mxu1 %v2645_v0 }
 0x330   : > { %970 = vrot.lane.b32.xlu1 %v2973_v31, %s2648_s21 }
 0x334   : > { %974 = vrot.lane.b32.xlu1 %v2984_v50, %s2648_s21  ;;  %s523_s21 = scalar_lea.vmem %s3277_s13, %s2046_s30 }
 0x3a8   : > { %v896_v18 = vpop.xlane.xlu1 %895 }
 0x3a9   : > { %2444 = vrcp.f32 %v896_v18 }
 0x3ac   : > { %v899_v19 = vpop.xlane.xlu1 %898 }
 0x3ad   : > { %2446 = vrcp.f32 %v899_v19 }
 0x3b0   : > { %v971_v27 = vpop.permute.xlu1 %970 }
 0x3b1   : > { %v983_v28 = vsel %vm818_vm1, %v971_v27, 0  ;;  %v2010_v27 = vld [vmem:[%s3270_s6 + $0x20] sm:$0xff] }
 0x3b3   : > { %v2445_v20 = vpop.eup %2444 }
 0x3b4   : > { %v902_v22 = vmul.f32 %v2445_v20, %v2441_v13  ;;  %v975_v32 = vpop.permute.xlu1 %974 }
 0x3b5   : > { %v989_v34 = vsel %vm818_vm1, %v975_v32, 0  ;;  %v2011_v32 = vld [vmem:[%s3270_s6 + $0x28] sm:$0xff] }
 0x3b7   : > { %v2447_v21 = vpop.eup %2446 }
 0x3b8   : > { %v903_v23 = vmul.f32 %v2447_v21, %v2443_v15 }
 0x3ba   : > { %v904_v25 = vpack.c.bf16 %v903_v23, %v902_v22 }
 0x3bc   : > { %2204 = vmatmul.mubr.msk.bf16.vlgmr.msra.gmra.mrb[8].mxu1 %vm881_vm2, %v904_v25 }
 0x3bd   : > { %2208 = vmatpush3.bf16.xpose.msra.mxu1 %v980_v26  ;;  %2215 = vmatprep.mubr.msk.bf16.mxu1 %vm2646_vm0, %v2645_v0 }
 0x3be   : > { %2209 = vmatprep.subr.bf16.mxu1 %v2645_v0 }
 0x3c5   : > { %2210 = vmatpush3.bf16.xpose.msra.mxu1 %v983_v28 }
 0x3c6   : > { %2211 = vmatprep.subr.bf16.mxu1 %v2645_v0 }
 0x3cd   : > { %2212 = vmatpush3.bf16.xpose.msra.mxu1 %v986_v30 }
 0x3ce   : > { %2213 = vmatprep.subr.bf16.mxu1 %v2645_v0 }
 0x3d5   : > { %2214 = vmatpush3.bf16.xpose.msra.mxu1 %v989_v34 }
 0x3d6   : > { %2243 = vmatprep.subr.bf16.mxu1 %v2645_v0 }
 0x3dc   : > { %2216 = vmatmul.mubr.msk.bf16.vlgmr.msra.gmra.mrb[12].mxu1 %vm818_vm1, %v967_v35 }
 0x3dd   : > { %2251 = vmatprep.mubr.msk.bf16.mxu1 %vm2646_vm0, %v2645_v0 }
 0x48f   : > { %v3045_v36 = vpop.f32.mrb[8].mxu1 }
 0x490   : > { %v2205_v37 = vpop.f32.mrb[9].mxu1 }
 0x491   : > { %v3047_v38 = vpop.f32.mrb[10].mxu1 }
 0x492   : > { %v2206_v39 = vpop.f32.mrb[11].mxu1 }
 0x4af   : > { %v1025_v40 = vpop.f32.mrb[12].mxu1 }
 0x4b0   : > { %v1032_v42 = vmul.f32 0.25, %v1025_v40  ;;  %v2217_v43 = vpop.f32.mrb[13].mxu1 }
 0x4b1   : > { %v1028_v44 = vpop.f32.mrb[14].mxu1 }
 0x4b2   : > { %v1033_v46 = vmul.f32 0.25, %v1028_v44  ;;  %v2218_v47 = vpop.f32.mrb[15].mxu1  ;;  %v1037_v48 = vadd.f32 %v2006_v41, %v1032_v42 }
 0x4b4   : > { %v1039_v52 = vsel %vm881_vm2, %v1037_v48, -inf  ;;  %v1038_v53 = vadd.f32 %v2007_v45, %v1033_v46 }
 0x4b5   : > { %1040 = vmax.xlane.f32.xlu1 %v1039_v52 }
 0x4b6   : > { %v1042_v54 = vsel %vm881_vm2, %v1038_v53, -inf }
 0x4b7   : > { %1043 = vmax.xlane.f32.xlu0 %v1042_v54 }
 0x4c6   : > { %1062 = vrot.lane.b32.xlu1 %v2975_v33, %s2649_s23 }
 0x4ca   : > { %1066 = vrot.lane.b32.xlu1 %v2986_v51, %s2649_s23 }
 0x4ce   : > { %1068 = vrot.lane.b32.xlu1 %v2984_v50, %s2649_s23 }
 0x4d2   : > { %1120 = vrot.lane.b32.xlu1 %v2975_v33, %s2650_s24 }
 0x4d6   : > { %1124 = vrot.lane.b32.xlu1 %v2986_v51, %s2650_s24 }
 0x4da   : > { %1118 = vrot.lane.b32.xlu1 %v2982_v49, %s2650_s24 }
 0x542   : > { %v1041_v55 = vpop.xlane.xlu1 %1040 }
 0x543   : > { %v1045_v56 = vsub.f32 %v1037_v48, %v1041_v55 }
 0x544   : > { %v1044_v57 = vpop.xlane.xlu0 %1043 }
 0x545   : > { %v1047_v58 = vmul.f32 1.442695, %v1045_v56  ;;  %v1046_v59 = vsub.f32 %v1038_v53, %v1044_v57 }
 0x546   : > { %v1063_v60 = vpop.permute.xlu1 %1062 }
 0x547   : > { %2448 = vpow2.f32 %v1047_v58  ;;  %v1049_v61 = vmul.f32 1.442695, %v1046_v59  ;;  %2220 = vmatpush3.bf16.msra.mxu0 %v1063_v60 }
 0x548   : > { %2221 = vmatprep.subr.bf16.mxu0 %v2645_v0 }
 0x549   : > { %2450 = vpow2.f32 %v1049_v61 }
 0x54a   : > { %v1067_v6 = vpop.permute.xlu1 %1066 }
 0x54e   : > { %v1069_v9 = vpop.permute.xlu1 %1068 }
 0x551   : > { %v2449_v62 = vpop.eup %2448 }
 0x552   : > { %v1051_v63 = vsel %vm881_vm2, %v2449_v62, 0.0  ;;  %v1121_v13 = vpop.permute.xlu1 %1120 }
 0x553   : > { %v2451_v1 = vpop.eup %2450  ;;  %1052 = vadd.xlane.f32.xlu0 %v1051_v63  ;;  %v1132_v14 = vsel %vm818_vm1, %v1121_v13, 0 }
 0x554   : > { %v1054_v2 = vsel %vm881_vm2, %v2451_v1, 0.0 }
 0x556   : > { %v1125_v17 = vpop.permute.xlu1 %1124 }
 0x557   : > { %1055 = vadd.xlane.f32.xlu0 %v1054_v2  ;;  %v1138_v18 = vsel %vm818_vm1, %v1125_v17, 0 }
 0x55a   : > { %v1119_v21 = vpop.permute.xlu1 %1118 }
 0x56d   : > { %1064 = vrot.lane.b32.xlu0 %v2973_v31, %s2649_s23 }
 0x571   : > { %1122 = vrot.lane.b32.xlu0 %v2973_v31, %s2650_s24 }
 0x575   : > { %1126 = vrot.lane.b32.xlu0 %v2984_v50, %s2650_s24 }
 0x5e0   : > { %v1053_v3 = vpop.xlane.xlu0 %1052 }
 0x5e1   : > { %2452 = vrcp.f32 %v1053_v3 }
 0x5e4   : > { %v1056_v4 = vpop.xlane.xlu0 %1055 }
 0x5e5   : > { %2454 = vrcp.f32 %v1056_v4 }
 0x5e8   : > { %v1065_v5 = vpop.permute.xlu0 %1064 }
 0x5e9   : > { %2222 = vmatpush3.bf16.msra.mxu0 %v1065_v5 }
 0x5ea   : > { %2223 = vmatprep.subr.bf16.mxu0 %v2645_v0 }
 0x5eb   : > { %v2453_v7 = vpop.eup %2452 }
 0x5ec   : > { %v1059_v10 = vmul.f32 %v2453_v7, %v2449_v62  ;;  %v1123_v15 = vpop.permute.xlu0 %1122 }
 0x5ed   : > { %2224 = vmatpush3.bf16.msra.mxu0 %v1067_v6  ;;  %v1135_v16 = vsel %vm818_vm1, %v1123_v15, 0 }
 0x5ee   : > { %2225 = vmatprep.subr.bf16.mxu0 %v2645_v0 }
 0x5ef   : > { %v2455_v8 = vpop.eup %2454 }
 0x5f0   : > { %v1060_v11 = vmul.f32 %v2455_v8, %v2451_v1  ;;  %v1127_v19 = vpop.permute.xlu0 %1126 }
 0x5f1   : > { %2226 = vmatpush3.bf16.msra.mxu0 %v1069_v9  ;;  %v1141_v20 = vsel %vm818_vm1, %v1127_v19, 0 }
 0x5f2   : > { %v1061_v12 = vpack.c.bf16 %v1060_v11, %v1059_v10  ;;  %2231 = vmatprep.subr.bf16.mxu0 %v2645_v0 }
 0x5f4   : > { %2228 = vmatmul.mubr.msk.bf16.vlgmr.msra.gmra.mrb[8].mxu0 %vm881_vm2, %v1061_v12 }
 0x5f5   : > { %2239 = vmatprep.mubr.msk.bf16.mxu0 %vm2646_vm0, %v2645_v0 }
 0x5fa   : > { %2232 = vmatpush3.bf16.xpose.msra.mxu0 %v1132_v14 }
 0x5fb   : > { %2233 = vmatprep.subr.bf16.mxu0 %v2645_v0 }
 0x602   : > { %2234 = vmatpush3.bf16.xpose.msra.mxu0 %v1135_v16  ;;  %v2014_v16 = vld [vmem:[%s3270_s6 + $0x30] sm:$0xff] }
 0x603   : > { %2235 = vmatprep.subr.bf16.mxu0 %v2645_v0 }
 0x60a   : > { %2236 = vmatpush3.bf16.xpose.msra.mxu0 %v1138_v18 }
 0x60b   : > { %2237 = vmatprep.subr.bf16.mxu0 %v2645_v0 }
 0x612   : > { %2238 = vmatpush3.bf16.xpose.msra.mxu0 %v1141_v20  ;;  %v2015_v20 = vld [vmem:[%s3270_s6 + $0x38] sm:$0xff] }
 0x613   : > { %2267 = vmatprep.subr.bf16.mxu0 %v2645_v0 }
 0x619   : > { %2240 = vmatmul.mubr.msk.bf16.vlgmr.msra.gmra.mrb[12].mxu0 %vm818_vm1, %v1119_v21 }
 0x61a   : > { %2275 = vmatprep.mubr.msk.bf16.mxu0 %vm2646_vm0, %v2645_v0 }
 0x6c7   : > { %v3090_v22 = vpop.f32.mrb[8].mxu0 }
 0x6c8   : > { %v2229_v23 = vpop.f32.mrb[9].mxu0 }
 0x6c9   : > { %v3092_v24 = vpop.f32.mrb[10].mxu0 }
 0x6ca   : > { %v2230_v25 = vpop.f32.mrb[11].mxu0 }
 0x6ec   : > { %v1177_v26 = vpop.f32.mrb[12].mxu0 }
 0x6ed   : > { %v1184_v28 = vmul.f32 0.25, %v1177_v26  ;;  %v2241_v29 = vpop.f32.mrb[13].mxu0 }
 0x6ee   : > { %v1180_v30 = vpop.f32.mrb[14].mxu0 }
 0x6ef   : > { %v1185_v34 = vmul.f32 0.25, %v1180_v30  ;;  %v2242_v35 = vpop.f32.mrb[15].mxu0  ;;  %v1189_v37 = vadd.f32 %v2010_v27, %v1184_v28 }
 0x6f1   : > { %v1191_v39 = vsel %vm881_vm2, %v1189_v37, -inf  ;;  %v1190_v40 = vadd.f32 %v2011_v32, %v1185_v34 }
 0x6f2   : > { %1192 = vmax.xlane.f32.xlu0 %v1191_v39 }
 0x6f3   : > { %v1194_v41 = vsel %vm881_vm2, %v1190_v40, -inf }
 0x6f4   : > { %1195 = vmax.xlane.f32.xlu1 %v1194_v41 }
 0x705   : > { %1216 = vrot.lane.b32.xlu1 %v2973_v31, %s2651_s16 }
 0x708   : > { %1214 = vrot.lane.b32.xlu0 %v2975_v33, %s2651_s16 }
 0x709   : > { %1218 = vrot.lane.b32.xlu1 %v2986_v51, %s2651_s16 }
 0x70d   : > { %1220 = vrot.lane.b32.xlu1 %v2984_v50, %s2651_s16 }
 0x711   : > { %1274 = vrot.lane.b32.xlu1 %v2973_v31, %s2652_s19 }
 0x715   : > { %1278 = vrot.lane.b32.xlu1 %v2984_v50, %s2652_s19 }
 0x77f   : > { %v1193_v42 = vpop.xlane.xlu0 %1192 }
 0x780   : > { %v1197_v43 = vsub.f32 %v1189_v37, %v1193_v42 }
 0x781   : > { %v1196_v44 = vpop.xlane.xlu1 %1195 }
 0x782   : > { %v1199_v45 = vmul.f32 1.442695, %v1197_v43  ;;  %v1198_v46 = vsub.f32 %v1190_v40, %v1196_v44 }
 0x783   : > { %v1215_v47 = vpop.permute.xlu0 %1214 }
 0x784   : > { %2456 = vpow2.f32 %v1199_v45  ;;  %v1201_v48 = vmul.f32 1.442695, %v1198_v46  ;;  %2244 = vmatpush3.bf16.msra.mxu1 %v1215_v47 }
 0x785   : > { %v1217_v52 = vpop.permute.xlu1 %1216  ;;  %2245 = vmatprep.subr.bf16.mxu1 %v2645_v0 }
 0x786   : > { %2458 = vpow2.f32 %v1201_v48 }
 0x788   : > { %2246 = vmatpush3.bf16.msra.mxu1 %v1217_v52 }
 0x789   : > { %v1219_v53 = vpop.permute.xlu1 %1218  ;;  %2247 = vmatprep.subr.bf16.mxu1 %v2645_v0 }
 0x78c   : > { %2248 = vmatpush3.bf16.msra.mxu1 %v1219_v53 }
 0x78d   : > { %2249 = vmatprep.subr.bf16.mxu1 %v2645_v0  ;;  %v1221_v55 = vpop.permute.xlu1 %1220 }
 0x78e   : > { %v2457_v54 = vpop.eup %2456 }
 0x78f   : > { %v1203_v56 = vsel %vm881_vm2, %v2457_v54, 0.0 }
 0x790   : > { %v2459_v57 = vpop.eup %2458  ;;  %1204 = vadd.xlane.f32.xlu0 %v1203_v56  ;;  %2250 = vmatpush3.bf16.msra.mxu1 %v1221_v55  ;;  %v2420_v55 = vld [vmem:[%s3271_s7] sm:$0xff]   ;;  %v2421_v56 = vld [vmem:[%s3271_s7 + $0x8] sm:$0xff]  }
 0x791   : > { %2255 = vmatprep.subr.bf16.mxu1 %v2645_v0  ;;  %v1206_v58 = vsel %vm881_vm2, %v2459_v57, 0.0 }
 0x794   : > { %1207 = vadd.xlane.f32.xlu0 %v1206_v58  ;;  %v2423_v58 = vld [vmem:[%s3271_s7 + $0x18] sm:$0xff]  }
 0x7aa   : > { %1272 = vrot.lane.b32.xlu0 %v2975_v33, %s2652_s19 }
 0x7ae   : > { %1276 = vrot.lane.b32.xlu0 %v2986_v51, %s2652_s19 }
 0x7b2   : > { %1270 = vrot.lane.b32.xlu0 %v2982_v49, %s2652_s19  ;;  %v1275_v49 = vpop.permute.xlu1 %1274 }
 0x7b3   : > { %v1287_v5 = vsel %vm818_vm1, %v1275_v49, 0 }
 0x7b6   : > { %v1279_v8 = vpop.permute.xlu1 %1278 }
 0x7b7   : > { %v1293_v9 = vsel %vm818_vm1, %v1279_v8, 0 }
 0x81d   : > { %v1205_v59 = vpop.xlane.xlu0 %1204 }
 0x81e   : > { %2460 = vrcp.f32 %v1205_v59  ;;  %v2424_v59 = vld [vmem:[%s3273_s9] sm:$0xff]  }
 0x821   : > { %v1208_v60 = vpop.xlane.xlu0 %1207 }
 0x822   : > { %2462 = vrcp.f32 %v1208_v60  ;;  %v2425_v60 = vld [vmem:[%s3273_s9 + $0x8] sm:$0xff]  }
 0x825   : > { %v1273_v2 = vpop.permute.xlu0 %1272 }
 0x826   : > { %v1284_v4 = vsel %vm818_vm1, %v1273_v2, 0 }
 0x828   : > { %v2461_v61 = vpop.eup %2460 }
 0x829   : > { %v1211_v63 = vmul.f32 %v2461_v61, %v2457_v54  ;;  %v1277_v6 = vpop.permute.xlu0 %1276  ;;  %v2426_v61 = vld [vmem:[%s3273_s9 + $0x10] sm:$0xff]  }
 0x82a   : > { %v1290_v7 = vsel %vm818_vm1, %v1277_v6, 0 }
 0x82c   : > { %v2463_v62 = vpop.eup %2462 }
 0x82d   : > { %v1212_v1 = vmul.f32 %v2463_v62, %v2459_v57  ;;  %v1271_v10 = vpop.permute.xlu0 %1270  ;;  %v2422_v57 = vld [vmem:[%s3271_s7 + $0x10] sm:$0xff]   ;;  %v2427_v62 = vld [vmem:[%s3273_s9 + $0x18] sm:$0xff]  }
 0x82f   : > { %v1213_v3 = vpack.c.bf16 %v1212_v1, %v1211_v63  ;;  %v2428_v63 = vld [vmem:[%s3273_s9 + $0x20] sm:$0xff]   ;;  %v2429_v1 = vld [vmem:[%s3273_s9 + $0x28] sm:$0xff]  }
 0x831   : > { %2252 = vmatmul.mubr.msk.bf16.vlgmr.msra.gmra.mrb[16].mxu1 %vm881_vm2, %v1213_v3 }
 0x832   : > { %2256 = vmatpush3.bf16.xpose.msra.mxu1 %v1284_v4  ;;  %2263 = vmatprep.mubr.msk.bf16.mxu1 %vm2646_vm0, %v2645_v0 }
 0x833   : > { %2257 = vmatprep.subr.bf16.mxu1 %v2645_v0 }
 0x83a   : > { %2258 = vmatpush3.bf16.xpose.msra.mxu1 %v1287_v5 }
 0x83b   : > { %2259 = vmatprep.subr.bf16.mxu1 %v2645_v0 }
 0x842   : > { %2260 = vmatpush3.bf16.xpose.msra.mxu1 %v1290_v7 }
 0x843   : > { %2261 = vmatprep.subr.bf16.mxu1 %v2645_v0 }
 0x84a   : > { %2262 = vmatpush3.bf16.xpose.msra.mxu1 %v1293_v9 }
 0x84b   : > { %2291 = vmatprep.subr.bf16.mxu1 %v2645_v0 }
 0x851   : > { %2264 = vmatmul.mubr.msk.bf16.vlgmr.msra.gmra.mrb[20].mxu1 %vm818_vm1, %v1271_v10 }
 0x852   : > { %2307 = vmatprep.mubr.msk.bf16.mxu1 %vm2646_vm0, %v2645_v0  ;;  %2292 = vmatpush3.bf16.msra.mxu1 %v2424_v59 }
 0x853   : > { %2293 = vmatprep.subr.bf16.mxu1 %v2645_v0 }
 0x856   : > { %2294 = vmatpush3.bf16.msra.mxu1 %v2425_v60 }
 0x857   : > { %2295 = vmatprep.subr.bf16.mxu1 %v2645_v0 }
 0x85a   : > { %2296 = vmatpush3.bf16.msra.mxu1 %v2426_v61 }
 0x85b   : > { %2297 = vmatprep.subr.bf16.mxu1 %v2645_v0 }
 0x85e   : > { %2298 = vmatpush3.bf16.msra.mxu1 %v2427_v62 }
 0x85f   : > { %2299 = vmatprep.subr.bf16.mxu1 %v2645_v0 }
 0x862   : > { %2300 = vmatpush3.bf16.msra.mxu1 %v2428_v63 }
 0x863   : > { %2301 = vmatprep.subr.bf16.mxu1 %v2645_v0 }
 0x866   : > { %2302 = vmatpush3.bf16.msra.mxu1 %v2429_v1 }
 0x867   : > { %2303 = vmatprep.subr.bf16.mxu1 %v2645_v0 }
 0x904   : > { %v1263_v11 = vpop.f32.mrb[16].mxu1 }
 0x905   : > { %v2253_v12 = vpop.f32.mrb[17].mxu1 }
 0x906   : > { %v1266_v13 = vpop.f32.mrb[18].mxu1 }
 0x907   : > { %v2254_v14 = vpop.f32.mrb[19].mxu1 }
 0x924   : > { %v1329_v15 = vpop.f32.mrb[20].mxu1 }
 0x925   : > { %v1336_v17 = vmul.f32 0.25, %v1329_v15  ;;  %v2265_v18 = vpop.f32.mrb[21].mxu1 }
 0x926   : > { %v1332_v19 = vpop.f32.mrb[22].mxu1 }
 0x927   : > { %v1337_v21 = vmul.f32 0.25, %v1332_v19  ;;  %v2266_v23 = vpop.f32.mrb[23].mxu1  ;;  %v1341_v25 = vadd.f32 %v2014_v16, %v1336_v17 }
 0x929   : > { %v1343_v26 = vsel %vm881_vm2, %v1341_v25, -inf  ;;  %v1342_v27 = vadd.f32 %v2015_v20, %v1337_v21 }
 0x92a   : > { %1344 = vmax.xlane.f32.xlu1 %v1343_v26 }
 0x92b   : > { %v1346_v28 = vsel %vm881_vm2, %v1342_v27, -inf }
 0x92c   : > { %1347 = vmax.xlane.f32.xlu0 %v1346_v28 }
 0x93b   : > { %1366 = vrot.lane.b32.xlu1 %v2975_v33, %s2653_s17 }
 0x93f   : > { %1370 = vrot.lane.b32.xlu1 %v2986_v51, %s2653_s17 }
 0x943   : > { %1372 = vrot.lane.b32.xlu1 %v2984_v50, %s2653_s17 }
 0x947   : > { %1424 = vrot.lane.b32.xlu1 %v3090_v22, %s2653_s17 }
 0x94b   : > { %1432 = vrot.lane.b32.xlu1 %v1263_v11, %s2651_s16 }
 0x9b7   : > { %v1345_v29 = vpop.xlane.xlu1 %1344 }
 0x9b8   : > { %v1349_v30 = vsub.f32 %v1341_v25, %v1345_v29 }
 0x9b9   : > { %v1348_v32 = vpop.xlane.xlu0 %1347 }
 0x9ba   : > { %v1351_v34 = vmul.f32 1.442695, %v1349_v30  ;;  %v1350_v35 = vsub.f32 %v1342_v27, %v1348_v32 }
 0x9bb   : > { %v1367_v37 = vpop.permute.xlu1 %1366 }
 0x9bc   : > { %2464 = vpow2.f32 %v1351_v34  ;;  %v1353_v39 = vmul.f32 1.442695, %v1350_v35  ;;  %2268 = vmatpush3.bf16.msra.mxu0 %v1367_v37 }
 0x9bd   : > { %2269 = vmatprep.subr.bf16.mxu0 %v2645_v0 }
 0x9be   : > { %2466 = vpow2.f32 %v1353_v39 }
 0x9bf   : > { %v1371_v43 = vpop.permute.xlu1 %1370 }
 0x9c3   : > { %v1373_v46 = vpop.permute.xlu1 %1372 }
 0x9c6   : > { %v2465_v33 = vpop.eup %2464 }
 0x9c7   : > { %v1355_v51 = vsel %vm881_vm2, %v2465_v33, 0.0  ;;  %v1425_v2 = vpop.permute.xlu1 %1424 }
 0x9c8   : > { %v2467_v50 = vpop.eup %2466  ;;  %1356 = vadd.xlane.f32.xlu0 %v1355_v51  ;;  %v1446_v5 = vsel %vm818_vm1, %v3045_v36, %v1425_v2 }
 0x9c9   : > { %v1358_v22 = vsel %vm881_vm2, %v2467_v50, 0.0 }
 0x9cb   : > { %v1433_v4 = vpop.permute.xlu1 %1432 }
 0x9cc   : > { %1359 = vadd.xlane.f32.xlu0 %v1358_v22  ;;  %v1449_v6 = vsel %vm1448_vm3, %v1446_v5, %v1433_v4  ;;  %v2430_v4 = vld [vmem:[%s3273_s9 + $0x30] sm:$0xff]   ;;  %v2432_v5 = vld [vmem:[%s3275_s11] sm:$0xff]  }
 0x9cd   : > { %2304 = vmatpush3.bf16.msra.mxu1 %v2430_v4 }
 0x9ce   : > { %2305 = vmatprep.subr.bf16.mxu1 %v2645_v0 }
 0x9e2   : > { %1368 = vrot.lane.b32.xlu0 %v2973_v31, %s2653_s17 }
 0x9e6   : > { %1426 = vrot.lane.b32.xlu0 %v3092_v24, %s2653_s17 }
 0x9ea   : > { %1434 = vrot.lane.b32.xlu0 %v1266_v13, %s2651_s16 }
 0xa55   : > { %v1357_v40 = vpop.xlane.xlu0 %1356 }
 0xa56   : > { %2468 = vrcp.f32 %v1357_v40 }
 0xa59   : > { %v1360_v41 = vpop.xlane.xlu0 %1359 }
 0xa5a   : > { %2470 = vrcp.f32 %v1360_v41 }
 0xa5d   : > { %v1369_v42 = vpop.permute.xlu0 %1368 }
 0xa5e   : > { %2270 = vmatpush3.bf16.msra.mxu0 %v1369_v42 }
 0xa5f   : > { %2271 = vmatprep.subr.bf16.mxu0 %v2645_v0 }
 0xa60   : > { %v2469_v44 = vpop.eup %2468 }
 0xa61   : > { %v1363_v31 = vmul.f32 %v2469_v44, %v2465_v33  ;;  %v1427_v3 = vpop.permute.xlu0 %1426 }
 0xa62   : > { %2272 = vmatpush3.bf16.msra.mxu0 %v1371_v43  ;;  %v1447_v8 = vsel %vm818_vm1, %v3047_v38, %v1427_v3 }
 0xa63   : > { %2273 = vmatprep.subr.bf16.mxu0 %v2645_v0 }
 0xa64   : > { %v2471_v45 = vpop.eup %2470 }
 0xa65   : > { %v1364_v47 = vmul.f32 %v2471_v45, %v2467_v50  ;;  %v1435_v49 = vpop.permute.xlu0 %1434 }
 0xa66   : > { %2274 = vmatpush3.bf16.msra.mxu0 %v1373_v46  ;;  %v1450_v10 = vsel %vm1448_vm3, %v1447_v8, %v1435_v49  ;;  %v2431_v49 = vld [vmem:[%s3273_s9 + $0x38] sm:$0xff]  }
 0xa67   : > { %v1365_v24 = vpack.c.bf16 %v1364_v47, %v1363_v31  ;;  %2279 = vmatprep.subr.bf16.mxu0 %v2645_v0  ;;  %2306 = vmatpush3.bf16.msra.mxu1 %v2431_v49  ;;  %v2435_v8 = vld [vmem:[%s3275_s11 + $0x18] sm:$0xff]  }
 0xa69   : > { %2276 = vmatmul.mubr.msk.bf16.vlgmr.msra.gmra.mrb[16].mxu0 %vm881_vm2, %v1365_v24 }
 0xa6a   : > { %2287 = vmatprep.mubr.msk.bf16.mxu0 %vm2646_vm0, %v2645_v0  ;;  %2280 = vmatpush3.bf16.msra.mxu0 %v2420_v55 }
 0xa6b   : > { %2281 = vmatprep.subr.bf16.mxu0 %v2645_v0 }
 0xa6e   : > { %2282 = vmatpush3.bf16.msra.mxu0 %v2421_v56 }
 0xa6f   : > { %2283 = vmatprep.subr.bf16.mxu0 %v2645_v0 }
 0xa72   : > { %2284 = vmatpush3.bf16.msra.mxu0 %v2422_v57 }
 0xa73   : > { %2285 = vmatprep.subr.bf16.mxu0 %v2645_v0 }
 0xa76   : > { %2286 = vmatpush3.bf16.msra.mxu0 %v2423_v58 }
 0xa77   : > { %2311 = vmatprep.subr.bf16.mxu0 %v2645_v0 }
 0xb3c   : > { %v1415_v48 = vpop.f32.mrb[16].mxu0 }
 0xb3d   : > { %1440 = vrot.lane.b32.xlu1 %v1415_v48, %s2649_s23  ;;  %v2277_v52 = vpop.f32.mrb[17].mxu0 }
 0xb3e   : > { %v1418_v53 = vpop.f32.mrb[18].mxu0 }
 0xb3f   : > { %1442 = vrot.lane.b32.xlu0 %v1418_v53, %s2649_s23  ;;  %v2278_v54 = vpop.f32.mrb[19].mxu0 }
 0xbaf   : > { %v1441_v7 = vpop.permute.xlu1 %1440 }
 0xbb0   : > { %v1452_v9 = vsel %vm1451_vm4, %v1449_v6, %v1441_v7  ;;  %v2433_v6 = vld [vmem:[%s3275_s11 + $0x8] sm:$0xff]   ;;  %v2434_v7 = vld [vmem:[%s3275_s11 + $0x10] sm:$0xff]  }
 0xbb1   : > { %v1456_v11 = vmul.f32 0.70710677, %v1452_v9  ;;  %v1443_v12 = vpop.permute.xlu0 %1442  ;;  %v1454_v61 = vmul.f32 0.5, %v1452_v9  ;;  %v2017_v9 = vld [vmem:[#allocation6] ss:$0 sm:$0xff] }
 0xbb2   : > { %v1453_v13 = vsel %vm1451_vm4, %v1450_v10, %v1443_v12 }
 0xbb3   : > { %vm1458_vm5 = vcmp.ge.f32.partialorder %v1456_v11, 0.0  ;;  %v1460_v14 = vsub.f32 0.0, %v1456_v11  ;;  %v1457_v15 = vmul.f32 0.70710677, %v1453_v13  ;;  %v1455_v62 = vmul.f32 0.5, %v1453_v13 }
 0xbb5   : > { %v1462_v16 = vsel %vm1458_vm5, %v1456_v11, %v1460_v14  ;;  %vm1459_vm6 = vcmp.ge.f32.partialorder %v1457_v15, 0.0  ;;  %v1461_v17 = vsub.f32 0.0, %v1457_v15 }
 0xbb6   : > { %v1464_v18 = vmul.f32 0.3275911, %v1462_v16  ;;  %v1490_v38 = vsub.f32 0.0, %v1462_v16 }
 0xbb7   : > { %v1463_v36 = vsel %vm1459_vm6, %v1457_v15, %v1461_v17  ;;  %v2436_v17 = vld [vmem:[%s3275_s11 + $0x20] sm:$0xff]  }
 0xbb8   : > { %v1466_v19 = vadd.f32 1.0, %v1464_v18  ;;  %v1465_v20 = vmul.f32 0.3275911, %v1463_v36  ;;  %v1491_v23 = vsub.f32 0.0, %v1463_v36  ;;  %v1492_v26 = vmul.f32 %v1490_v38, %v1462_v16  ;;  %v2437_v18 = vld [vmem:[%s3275_s11 + $0x28] sm:$0xff]  }
 0xbba   : > { %2472 = vrcp.f32 %v1466_v19  ;;  %v1467_v21 = vadd.f32 1.0, %v1465_v20  ;;  %v1493_v30 = vmul.f32 %v1491_v23, %v1463_v36  ;;  %v1494_v32 = vmul.f32 1.442695, %v1492_v26  ;;  %v2438_v36 = vld [vmem:[%s3275_s11 + $0x30] sm:$0xff]   ;;  %v2439_v19 = vld [vmem:[%s3275_s11 + $0x38] sm:$0xff]  }
 0xbbb   : > { %v2023_v20 = vld [vmem:[#allocation7] ss:$0 sm:$0xff] }
 0xbbc   : > { %2474 = vrcp.f32 %v1467_v21  ;;  %v1496_v33 = vmul.f32 1.442695, %v1493_v30 }
 0xbbd   : > { %2476 = vpow2.f32 %v1494_v32 }
 0xbbe   : > { %2478 = vpow2.f32 %v1496_v33 }
 0xbc4   : > { %v2473_v25 = vpop.eup %2472 }
 0xbc5   : > { %v1472_v27 = vmul.f32 1.0614054, %v2473_v25 }
 0xbc6   : > { %v2475_v28 = vpop.eup %2474 }
 0xbc7   : > { %v1474_v29 = vadd.f32 -1.4531521, %v1472_v27  ;;  %v1473_v34 = vmul.f32 1.0614054, %v2475_v28  ;;  %v2477_v31 = vpop.eup %2476 }
 0xbc8   : > { %v2479_v52 = vpop.eup %2478 }
 0xbc9   : > { %v1476_v35 = vmul.f32 %v2473_v25, %v1474_v29  ;;  %v1475_v37 = vadd.f32 -1.4531521, %v1473_v34 }
 0xbcb   : > { %v1478_v39 = vadd.f32 1.4214138, %v1476_v35  ;;  %v1477_v51 = vmul.f32 %v2475_v28, %v1475_v37 }
 0xbcd   : > { %v1480_v50 = vmul.f32 %v2473_v25, %v1478_v39  ;;  %v1479_v22 = vadd.f32 1.4214138, %v1477_v51 }
 0xbcf   : > { %v1482_v40 = vadd.f32 -0.28449672, %v1480_v50  ;;  %v1481_v41 = vmul.f32 %v2475_v28, %v1479_v22  ;;  %v2032_v50 = vld [vmem:[#allocation9] ss:$0 sm:$0xff] }
 0xbd1   : > { %v1484_v42 = vmul.f32 %v2473_v25, %v1482_v40  ;;  %v1483_v43 = vadd.f32 -0.28449672, %v1481_v41 }
 0xbd3   : > { %v1486_v44 = vadd.f32 0.2548296, %v1484_v42  ;;  %v1485_v45 = vmul.f32 %v2475_v28, %v1483_v43 }
 0xbd5   : > { %v1488_v46 = vmul.f32 %v2473_v25, %v1486_v44  ;;  %v1487_v47 = vadd.f32 0.2548296, %v1485_v45 }
 0xbd7   : > { %v1498_v24 = vmul.f32 %v2477_v31, %v1488_v46  ;;  %v1489_v48 = vmul.f32 %v2475_v28, %v1487_v47 }
 0xbd9   : > { %v1500_v53 = vsub.f32 1.0, %v1498_v24  ;;  %v1499_v54 = vmul.f32 %v2479_v52, %v1489_v48 }
 0xbdb   : > { %v1502_v55 = vsub.f32 0.0, %v1500_v53  ;;  %v1501_v56 = vsub.f32 1.0, %v1499_v54 }
 0xbdd   : > { %v1504_v57 = vsel %vm1458_vm5, %v1500_v53, %v1502_v55  ;;  %v1503_v58 = vsub.f32 0.0, %v1501_v56 }
 0xbde   : > { %v1506_v59 = vadd.f32 1.0, %v1504_v57 }
 0xbdf   : > { %v1505_v60 = vsel %vm1459_vm6, %v1501_v56, %v1503_v58 }
 0xbe0   : > { %v1507_v63 = vadd.f32 1.0, %v1505_v60  ;;  %v1508_v1 = vmul.f32 %v1506_v59, %v1454_v61 }
 0xbe2   : > { %v1509_v2 = vmul.f32 %v1507_v63, %v1455_v62 }
 0xbe4   : > { %v1510_v3 = vpack.c.bf16 %v1509_v2, %v1508_v1 }
 0xbe6   : > { %2288 = vmatmul.mubr.msk.bf16.vlgmr.msra.gmra.mrb[20].mxu0 %vm881_vm2, %v1510_v3 }
 0xbe7   : > { %2327 = vmatprep.mubr.msk.bf16.mxu0 %vm2646_vm0, %v2645_v0  ;;  %2312 = vmatpush3.bf16.msra.mxu0 %v2432_v5 }
 0xbe8   : > { %2313 = vmatprep.subr.bf16.mxu0 %v2645_v0 }
 0xbeb   : > { %2314 = vmatpush3.bf16.msra.mxu0 %v2433_v6 }
 0xbec   : > { %2315 = vmatprep.subr.bf16.mxu0 %v2645_v0 }
 0xbef   : > { %2316 = vmatpush3.bf16.msra.mxu0 %v2434_v7 }
 0xbf0   : > { %2317 = vmatprep.subr.bf16.mxu0 %v2645_v0 }
 0xbf3   : > { %2318 = vmatpush3.bf16.msra.mxu0 %v2435_v8 }
 0xbf4   : > { %2319 = vmatprep.subr.bf16.mxu0 %v2645_v0 }
 0xbf7   : > { %2320 = vmatpush3.bf16.msra.mxu0 %v2436_v17 }
 0xbf8   : > { %2321 = vmatprep.subr.bf16.mxu0 %v2645_v0 }
 0xbfb   : > { %2322 = vmatpush3.bf16.msra.mxu0 %v2437_v18 }
 0xbfc   : > { %2323 = vmatprep.subr.bf16.mxu0 %v2645_v0 }
 0xbff   : > { %2324 = vmatpush3.bf16.msra.mxu0 %v2438_v36 }
 0xc00   : > { %2325 = vmatprep.subr.bf16.mxu0 %v2645_v0 }
 0xc03   : > { %2326 = vmatpush3.bf16.msra.mxu0 %v2439_v19 }
 0xcb9   : > { %v1587_v10 = vpop.f32.mrb[20].mxu0 }
 0xcba   : > { %v2289_v11 = vpop.f32.mrb[21].mxu0  ;;  %v1588_v13 = vadd.f32 %v2017_v9, %v1587_v10 }
 0xcbb   : > { %v1590_v12 = vpop.f32.mrb[22].mxu0 }
 0xcbc   : > { %v1591_v14 = vadd.f32 %v2017_v9, %v1590_v12  ;;  %v2290_v15 = vpop.f32.mrb[23].mxu0 }
 0xcbe   : > { %v1594_v16 = vpack.c.bf16 %v1591_v14, %v1588_v13 }
 0xcc0   : > { %2308 = vmatmul.mubr.bf16.vlgmr.msra.gmra.mrb[24].mxu1 %v1594_v16 }
 0xd93   : > { %v1700_v21 = vpop.f32.mrb[24].mxu1 }
 0xd94   : > { %v1701_v38 = vadd.f32 %v2023_v20, %v1700_v21  ;;  %v2309_v23 = vpop.f32.mrb[25].mxu1 }
 0xd95   : > { %v1703_v25 = vpop.f32.mrb[26].mxu1 }
 0xd96   : > { %v1707_v26 = vadd.f32 3.0, %v1701_v38  ;;  %v1704_v27 = vadd.f32 %v2023_v20, %v1703_v25  ;;  %v2310_v28 = vpop.f32.mrb[27].mxu1 }
 0xd98   : > { %v1709_v29 = vmax.f32 %v1707_v26, 0.0  ;;  %v1708_v30 = vadd.f32 3.0, %v1704_v27 }
 0xd9a   : > { %v1711_v32 = vmin.f32 %v1709_v29, 6.0  ;;  %v1710_v34 = vmax.f32 %v1708_v30, 0.0 }
 0xd9c   : > { %v1713_v35 = vmul.f32 %v1711_v32, %v1701_v38  ;;  %v1712_v0 = vmin.f32 %v1710_v34, 6.0 }
 0xd9e   : > { %v1714_v37 = vmul.f32 %v1712_v0, %v1704_v27  ;;  %v1715_v39 = vmul.f32 0.16666667, %v1713_v35 }
 0xda0   : > { %v1716_v33 = vmul.f32 0.16666667, %v1714_v37 }
 0xda2   : > { %v1717_v51 = vpack.c.bf16 %v1716_v33, %v1715_v39 }
 0xda4   : > { %2328 = vmatmul.mubr.bf16.vlgmr.msra.gmra.mrb[24].mxu0 %v1717_v51 }
 0xe77   : > { %v1823_v22 = vpop.f32.mrb[24].mxu0 }
 0xe78   : > { %v1824_v40 = vadd.f32 %v2032_v50, %v1823_v22  ;;  %v2329_v41 = vpop.f32.mrb[25].mxu0 }
 0xe79   : > { %v1826_v42 = vpop.f32.mrb[26].mxu0 }
 0xe7a   : > { %v1827_v43 = vadd.f32 %v2032_v50, %v1826_v42  ;;  %v2330_v44 = vpop.f32.mrb[27].mxu0  ;;  %v1830_v45 = vadd.f32 %v1824_v40, %v1588_v13 }
 0xe7c   : > { %v1831_v46 = vadd.f32 %v1827_v43, %v1591_v14 }
 0xe7e   : > { %v2053_v31 = vpack.c.bf16 %v1831_v46, %v1830_v45 }
 0xe80   : > { %2054 = vst [vmem:[%s523_s21] sm:$0xff] %v2053_v31  }
 0xe81 PF: > { %s3292_s29 = sld [smem:[#allocation13_spill]] }
 0xe87   : > { %s26_s25 = sadd.s32 1, %s3292_s29  }
 0xe88   : > { %p23_p9 = scmp.ge.s32.totalorder %s26_s25, 4  }
 0xe8a   :  { %25 = sbr.rel (!%p23_p9) target bundleno = 3 (0x3), region = 129 }
 0xe91   :  { %1863 = vsyncpa [#allocation3], 1 }
 0xe92   :  { %1865 = vsyncpa [#allocation3 + $0x1], 1 }
 0xe93   :  { %1866 = vsyncpa [#allocation5], 1 }
 0xe94   :  { %1867 = vsyncpa [#allocation8], 1 }

// kernel: levit_forward.5
= control target key start
LH: loop header
LB: loop body
LE: loop exit
PB: predicated region body
PF: predicated region fallthrough
CT: control target
= control target key end

     0   :  { %s6590_s0 = inlined_call_operand.vmem [shape: bf16[2,64,128], index: 0, kind: input, shape index: {}]   ;;  %s6591_s1 = inlined_call_operand.vmem [shape: bf16[2,128,128], index: 1, kind: input, shape index: {}]   ;;  %s6592_s2 = inlined_call_operand.hbm [shape: f32[2,1,128], index: 2, kind: input, shape index: {}]   ;;  %s6593_s3 = inlined_call_operand.vmem [shape: bf16[2,128,128], index: 3, kind: input, shape index: {}]   ;;  %s6594_s4 = inlined_call_operand.hbm [shape: f32[2,1,128], index: 4, kind: input, shape index: {}]   ;;  %s6595_s5 = inlined_call_operand.vmem [shape: f32[2,2,64,64], index: 5, kind: input, shape index: {}]   ;;  %s6596_s6 = inlined_call_operand.vmem [shape: bf16[2,32,128], index: 6, kind: input, shape index: {}]   ;;  %s6597_s7 = inlined_call_operand.hbm [shape: f32[2,1,128], index: 7, kind: input, shape index: {}]   ;;  %s6598_s8 = inlined_call_operand.vmem [shape: bf16[2,128,128], index: 8, kind: input, shape index: {}]   ;;  %s6599_s9 = inlined_call_operand.hbm [shape: f32[2,1,128], index: 9, kind: input, shape index: {}]   ;;  %s6600_s10 = inlined_call_operand.vmem [shape: bf16[2,128,128], index: 10, kind: input, shape index: {}]   ;;  %s6601_s11 = inlined_call_operand.hbm [shape: f32[2,1,128], index: 11, kind: input, shape index: {}]   ;;  %s6602_s12 = inlined_call_operand.vmem [shape: bf16[2,64,128], index: 12, kind: output, shape index: {}]  }
   0x1   :  { %6606 = sst [smem:[#allocation14_spill]] %s6602_s12 }
   0x2   :  { %17 = vsyncpa [#allocation3], 0 }
   0x3   :  { %18 = vsyncpa [#allocation5], 0 }
   0x4   :  { %19 = vsyncpa [#allocation8], 0  ;;  %s5266_s21 = smov 0  }
   0x5 LB: > { %6607 = sst [smem:[#allocation13_spill]] %s5188_s21  ;;  %s5272_s22 = sadd.s32 4294967295, %s5188_s21   ;;  %s5188_s21 = sphi %s5266_s21, %s25_s21  }
   0x6   : > { %p3887_p0 = scmp.ge.s32.totalorder %s5188_s21, 1  ;;  %p313_p1 = scmp.lt.s32.totalorder %s5188_s21, 3 }
   0x7   : > { %p6604_p2 = scmp.eq.s32.totalorder %s5272_s22, 0  ;;  %s5190_s24 = smov [#allocation4]  }
   0x8   : > { %p5277_p3 = pnand %p3887_p0, %p313_p1  ;;  %s344_s25 = sshll.u32 %s5190_s24, 4  ;;  %s5281_s25 = int_to_ptr.vmem [resolvable:$true] %s344_s25 }
   0x9   : > { %s5191_s26 = smov [#allocation7]   ;;  %s5192_s29 = smov [#allocation2]  }
   0xa   : > { %s6608_s23 = scalar_select %p5277_p3, 1, 0 }
   0xb   : > { %p4713_p4 = pneg %p5277_p3  ;;  %s379_s27 = sshll.u32 %s5191_s26, 4  ;;  %s5285_s27 = int_to_ptr.vmem [resolvable:$true] %s379_s27 }
   0xc   : > { %s328_s30 = sshll.u32 %s5192_s29, 4  ;;  %s5193_s13 = smov [#allocation6]   ;;  %s5293_s30 = int_to_ptr.vmem [resolvable:$true] %s328_s30 }
   0xd   : > { %p5289_p5 = pnand %p6604_p2, %p4713_p4  ;;  %s5295_s14 = sshll.u32 %s5193_s13, 4  ;;  %s364_s14 = int_to_ptr.vmem [resolvable:$true] %s5295_s14 }
   0xe   : > { %s5030_s17 = scalar_lea.hbm %s6594_s4, 32 }
   0xf   : > { %p5031_p6 = scmp.ne.s32.totalorder %s6594_s4, %s5030_s17  ;;  %p5305_p7 = pneg %p5289_p5 }
  0x10   : > { %p5037_p10 = scmp.lt.u32.totalorder %s5030_s17, %s6594_s4 }
  0x11   : > { %p5033_p8 = pnand %p5305_p7, %p5031_p6 }
  0x13   : > { %p5034_p9 = pneg %p5033_p8 }
  0x15   : > { %p5039_p11 = pnand %p5037_p10, %p5034_p9 }
  0x17   : > { %5042 = shalt.err (!%p5039_p11)
}
  0x18   : > { %s5043_s29 = scalar_lea.vmem %s5281_s25, 32  ;;  %p5051_p1 = scmp.lt.s32.totalorder %s5281_s25, %s5281_s25 }
  0x19   : > { %p5044_p12 = scmp.ne.s32.totalorder %s5281_s25, %s5043_s29  ;;  %p5052_p4 = scmp.lt.s32.totalorder %s5043_s29, %s5043_s29 }
  0x1b   : > { %p5046_p13 = pnand %p5044_p12, %p5305_p7  ;;  %p5053_p6 = por %p5052_p4, %p5051_p1 }
  0x1d   : > { %p5047_p0 = pneg %p5046_p13 }
  0x1f   : > { %p5054_p8 = pnand %p5053_p6, %p5047_p0 }
  0x21   : > { %5057 = shalt.err (!%p5054_p8)
}
  0x22   : > { %s5194_s13 = smov 16   ;;  %s5195_s15 = smov 1  }
  0x23   : > { %4719 = dma.hbm_to_vmem [thread:$0]  (!%p5289_p5), %s6594_s4, 32, %s5281_s25, [#allocation5], %s5194_s13, %s5194_s13, %s5195_s15  }
  0x24   : > { %s5058_s24 = scalar_lea.hbm %s6599_s9, 32 }
  0x25   : > { %p5059_p9 = scmp.ne.s32.totalorder %s6599_s9, %s5058_s24  ;;  %p5065_p12 = scmp.lt.u32.totalorder %s5058_s24, %s6599_s9 }
  0x27   : > { %p5061_p10 = pnand %p5059_p9, %p5305_p7 }
  0x29   : > { %p5062_p11 = pneg %p5061_p10 }
  0x2b   : > { %p5067_p13 = pnand %p5065_p12, %p5062_p11 }
  0x2d   : > { %5070 = shalt.err (!%p5067_p13)
}
  0x2e   : > { %s5071_s25 = scalar_lea.vmem %s5285_s27, 32  ;;  %p5079_p6 = scmp.lt.s32.totalorder %s5285_s27, %s5285_s27 }
  0x2f   : > { %p5072_p0 = scmp.ne.s32.totalorder %s5285_s27, %s5071_s25  ;;  %p5080_p8 = scmp.lt.s32.totalorder %s5071_s25, %s5071_s25 }
  0x31   : > { %p5074_p1 = pnand %p5072_p0, %p5305_p7  ;;  %p5081_p9 = por %p5080_p8, %p5079_p6 }
  0x33   : > { %p5075_p4 = pneg %p5074_p1 }
  0x35   : > { %p5082_p10 = pnand %p5081_p9, %p5075_p4 }
  0x37   : > { %5085 = shalt.err (!%p5082_p10)
}
  0x38   : > { %4725 = dma.hbm_to_vmem [thread:$0]  (!%p5289_p5), %s6599_s9, 32, %s5285_s27, [#allocation8], %s5194_s13, %s5194_s13, %s5195_s15  }
  0x39   : > { %s5086_s18 = scalar_lea.hbm %s6592_s2, 32 }
  0x3a   : > { %p5087_p11 = scmp.ne.s32.totalorder %s6592_s2, %s5086_s18  ;;  %p5093_p0 = scmp.lt.u32.totalorder %s5086_s18, %s6592_s2 }
  0x3c   : > { %p5089_p12 = pnand %p5087_p11, %p5305_p7 }
  0x3e   : > { %p5090_p13 = pneg %p5089_p12 }
  0x40   : > { %p5095_p1 = pnand %p5093_p0, %p5090_p13 }
  0x42   : > { %5098 = shalt.err (!%p5095_p1)
}
  0x43   : > { %s5099_s27 = scalar_lea.vmem %s5293_s30, 32  ;;  %p5107_p9 = scmp.lt.s32.totalorder %s5293_s30, %s5293_s30 }
  0x44   : > { %p5100_p4 = scmp.ne.s32.totalorder %s5293_s30, %s5099_s27  ;;  %p5108_p10 = scmp.lt.s32.totalorder %s5099_s27, %s5099_s27 }
  0x46   : > { %p5102_p6 = pnand %p5100_p4, %p5305_p7  ;;  %p5109_p11 = por %p5108_p10, %p5107_p9 }
  0x48   : > { %p5103_p8 = pneg %p5102_p6 }
  0x4a   : > { %p5110_p12 = pnand %p5109_p11, %p5103_p8 }
  0x4c   : > { %5113 = shalt.err (!%p5110_p12)
}
  0x4d   : > { %4716 = dma.hbm_to_vmem [thread:$0]  (!%p5289_p5), %s6592_s2, 32, %s5293_s30, [#allocation3], %s5194_s13, %s5194_s13, %s5195_s15  }
  0x4e   : > { %s5114_s17 = scalar_lea.hbm %s6597_s7, 32 }
  0x4f   : > { %p5115_p13 = scmp.ne.s32.totalorder %s6597_s7, %s5114_s17  ;;  %p5121_p4 = scmp.lt.u32.totalorder %s5114_s17, %s6597_s7 }
  0x51   : > { %p5117_p0 = pnand %p5115_p13, %p5305_p7 }
  0x53   : > { %p5118_p1 = pneg %p5117_p0 }
  0x55   : > { %p5123_p6 = pnand %p5121_p4, %p5118_p1 }
  0x57   : > { %5126 = shalt.err (!%p5123_p6)
}
  0x58   : > { %s5127_s29 = scalar_lea.vmem %s364_s14, 32  ;;  %p5135_p11 = scmp.lt.s32.totalorder %s364_s14, %s364_s14 }
  0x59   : > { %p5128_p8 = scmp.ne.s32.totalorder %s364_s14, %s5127_s29  ;;  %p5136_p12 = scmp.lt.s32.totalorder %s5127_s29, %s5127_s29 }
  0x5b   : > { %p5130_p9 = pnand %p5128_p8, %p5305_p7  ;;  %p5137_p2 = por %p5136_p12, %p5135_p11 }
  0x5d   : > { %p5131_p10 = pneg %p5130_p9 }
  0x5f   : > { %p5138_p3 = pnand %p5137_p2, %p5131_p10 }
  0x61   : > { %5141 = shalt.err (!%p5138_p3)
}
  0x62   : > { %4722 = dma.hbm_to_vmem [thread:$0]  (!%p5289_p5), %s6597_s7, 32, %s364_s14, [#allocation5], %s5194_s13, %s5194_s13, %s5195_s15  }
  0x63   : > { %s5196_s25 = smov [#allocation9]   ;;  %s5142_s17 = scalar_lea.hbm %s6601_s11, 32 }
  0x64   : > { %s395_s12 = sshll.u32 %s5196_s25, 4  ;;  %p5143_p2 = scmp.ne.s32.totalorder %s6601_s11, %s5142_s17  ;;  %s396_s12 = int_to_ptr.vmem [resolvable:$true] %s395_s12 }
  0x65   : > { %p5149_p0 = scmp.lt.u32.totalorder %s5142_s17, %s6601_s11 }
  0x66   : > { %p5145_p3 = pnand %p5143_p2, %p5305_p7 }
  0x68   : > { %p5146_p13 = pneg %p5145_p3 }
  0x6a   : > { %p5151_p1 = pnand %p5149_p0, %p5146_p13 }
  0x6c   : > { %5154 = shalt.err (!%p5151_p1)
}
  0x6d   : > { %s5155_s14 = scalar_lea.vmem %s396_s12, 32  ;;  %p5163_p9 = scmp.lt.s32.totalorder %s396_s12, %s396_s12 }
  0x6e   : > { %p5156_p4 = scmp.ne.s32.totalorder %s396_s12, %s5155_s14  ;;  %p5164_p10 = scmp.lt.s32.totalorder %s5155_s14, %s5155_s14 }
  0x70   : > { %p5158_p6 = pnand %p5156_p4, %p5305_p7  ;;  %p5165_p11 = por %p5164_p10, %p5163_p9 }
  0x72   : > { %p5159_p8 = pneg %p5158_p6 }
  0x74   : > { %p5166_p12 = pnand %p5165_p11, %p5159_p8 }
  0x76   : > { %5169 = shalt.err (!%p5166_p12)
}
  0x77   : > { %4728 = dma.hbm_to_vmem [thread:$0]  (!%p5289_p5), %s6601_s11, 32, %s396_s12, [#allocation8], %s5194_s13, %s5194_s13, %s5195_s15  }
  0x78   : > { %p6611_p2 = scmp.ne.s32.totalorder %s6608_s23, 0 }
  0x79   : > { %p6612_p7 = scmp.eq.s32.totalorder (!%p6611_p2), %s5272_s22, 0 }
  0x7a   : > { %419 = sbr.rel (%p6611_p2) target bundleno = 5196 (0x144c), region = 68 }
  0x81   : > { %5175 = dma.done.wait (%p6612_p7), [#allocation3], 32   ;;  %p6613_p3 = pmov %p6612_p7 }
  0x83   : > { %5177 = vsyncadd (%p6613_p3), [#allocation3], 4294967264  ;;  %p6614_p13 = pmov %p6613_p3 }
  0x84   : > { %p6615_p0 = pmov %p6613_p3 }
  0x85   : > { %5179 = dma.done.wait (%p6614_p13), [#allocation5], 64  }
  0x86   : > { %5181 = vsyncadd (%p6615_p0), [#allocation5], 4294967232  ;;  %p6616_p1 = pmov %p6615_p0 }
  0x87   : > { %p6617_p5 = pmov %p6615_p0 }
  0x88   : > { %5183 = dma.done.wait (%p6616_p1), [#allocation8], 64  }
  0x89   : > { %5185 = vsyncadd (%p6617_p5), [#allocation8], 4294967232  ;;  %p477_p4 = scmp.lt.s32.totalorder %s5272_s22, 1  ;;  %v4758_v0 = vld [vmem:[%s6593_s3] sm:$0xff]   ;;  %v4759_v1 = vld [vmem:[%s6593_s3 + $0x8] sm:$0xff]   ;;  %vm808_vm0 = vcmask 130048  }
  0x8a   : > { %4357 = vmatprep.subr.bf16.mxu1 %v4758_v0  ;;  %v4760_v2 = vld [vmem:[%s6593_s3 + $0x10] sm:$0xff]   ;;  %v4765_v3 = vld [vmem:[%s6591_s1] sm:$0xff]   ;;  %v4761_v4 = vld [vmem:[%s6593_s3 + $0x18] sm:$0xff]   ;;  %vm922_vm1 = vcmask 523264   ;;  %s5197_s29 = smov 96   ;;  %s5198_s13 = smov 112  }
  0x8b   : > { %s6621_s22 = smov (!%p477_p4, %s5272_s22), 1  ;;  %4358 = vmatpush3.bf16.msra.mxu1 %v4758_v0  ;;  %4333 = vmatprep.subr.bf16.mxu0 %v4765_v3  ;;  %v4768_v6 = vld [vmem:[%s6591_s1 + $0x8] sm:$0xff]   ;;  %v4770_v7 = vld [vmem:[%s6591_s1 + $0x10] sm:$0xff]   ;;  %v4762_v8 = vld [vmem:[%s6593_s3 + $0x20] sm:$0xff]   ;;  %s5199_s12 = smov 80   ;;  %vm1714_vm10 = vcmask 261120  }
  0x8c   : > { %s4128_s15 = sshll.u32 %s6621_s22, 5  ;;  %4359 = vmatprep.subr.bf16.mxu1 %v4759_v1  ;;  %4334 = vmatpush3.bf16.msra.mxu0 %v4765_v3  ;;  %v4771_v9 = vld [vmem:[%s6591_s1 + $0x18] sm:$0xff]   ;;  %v4763_v10 = vld [vmem:[%s6593_s3 + $0x28] sm:$0xff]   ;;  %v4772_v11 = vld [vmem:[%s6591_s1 + $0x20] sm:$0xff]   ;;  %s5200_s21 = smov 16  }
  0x8d   : > { %s5457_s16 = scalar_lea.vmem %s6590_s0, %s4128_s15  ;;  %4335 = vmatprep.subr.bf16.mxu0 %v4768_v6  ;;  %v4764_v12 = vld [vmem:[%s6593_s3 + $0x30] sm:$0xff]   ;;  %v4775_v13 = vld [vmem:[%s6591_s1 + $0x28] sm:$0xff]   ;;  %v4766_v14 = vld [vmem:[%s6593_s3 + $0x38] sm:$0xff]   ;;  %s6618_s20 = sld [smem:[#allocation14_spill]] }
  0x8e   : > { %v488_v5 = vld [vmem:[%s5457_s16] sm:$0xff]   ;;  %v490_v15 = vld [vmem:[%s5457_s16 + $0x8] sm:$0xff]   ;;  %v4776_v16 = vld [vmem:[%s6591_s1 + $0x30] sm:$0xff]  }
  0x8f   : > { %4360 = vmatpush3.bf16.msra.mxu1 %v4759_v1  ;;  %4373 = vmatprep.mubr.bf16.mxu1 %v488_v5  ;;  %v492_v17 = vld [vmem:[%s5457_s16 + $0x10] sm:$0xff]   ;;  %v4777_v18 = vld [vmem:[%s6591_s1 + $0x38] sm:$0xff]   ;;  %v3917_v21 = vld [vmem:[#allocation4] ss:$0 sm:$0xff] }
  0x90   : > { %4361 = vmatprep.subr.bf16.mxu1 %v4760_v2  ;;  %4349 = vmatprep.mubr.bf16.mxu0 %v488_v5  ;;  %v494_v19 = vld [vmem:[%s5457_s16 + $0x18] sm:$0xff]   ;;  %v3904_v30 = vld [vmem:[#allocation2] ss:$0 sm:$0xff]  ;;  %v908_v3 = vld [vmem:[%s6595_s5 + $0x10] sm:$0xff] }
  0x91   : > { %4336 = vmatpush3.bf16.msra.mxu0 %v4768_v6  ;;  %v906_v6 = vld [vmem:[%s6595_s5] sm:$0xff] }
  0x92   : > { %4337 = vmatprep.subr.bf16.mxu0 %v4770_v7 }
  0x93   : > { %4362 = vmatpush3.bf16.msra.mxu1 %v4760_v2  ;;  %s486_s27 = scalar_lea.vmem %s6618_s20, %s4128_s15 }
  0x94   : > { %4363 = vmatprep.subr.bf16.mxu1 %v4761_v4 }
  0x95   : > { %4338 = vmatpush3.bf16.msra.mxu0 %v4770_v7 }
  0x96   : > { %4339 = vmatprep.subr.bf16.mxu0 %v4771_v9 }
  0x97   : > { %4364 = vmatpush3.bf16.msra.mxu1 %v4761_v4 }
  0x98   : > { %4365 = vmatprep.subr.bf16.mxu1 %v4762_v8 }
  0x99   : > { %4340 = vmatpush3.bf16.msra.mxu0 %v4771_v9  ;;  %v909_v9 = vld [vmem:[%s6595_s5 + $0x18] sm:$0xff] }
  0x9a   : > { %4341 = vmatprep.subr.bf16.mxu0 %v4772_v11 }
  0x9b   : > { %4366 = vmatpush3.bf16.msra.mxu1 %v4762_v8 }
  0x9c   : > { %4367 = vmatprep.subr.bf16.mxu1 %v4763_v10 }
  0x9d   : > { %4342 = vmatpush3.bf16.msra.mxu0 %v4772_v11 }
  0x9e   : > { %4343 = vmatprep.subr.bf16.mxu0 %v4775_v13 }
  0x9f   : > { %4368 = vmatpush3.bf16.msra.mxu1 %v4763_v10 }
  0xa0   : > { %4369 = vmatprep.subr.bf16.mxu1 %v4764_v12 }
  0xa1   : > { %4344 = vmatpush3.bf16.msra.mxu0 %v4775_v13  ;;  %v907_v13 = vld [vmem:[%s6595_s5 + $0x8] sm:$0xff] }
  0xa2   : > { %4345 = vmatprep.subr.bf16.mxu0 %v4776_v16 }
  0xa3   : > { %4370 = vmatpush3.bf16.msra.mxu1 %v4764_v12 }
  0xa4   : > { %4371 = vmatprep.subr.bf16.mxu1 %v4766_v14 }
  0xa5   : > { %4346 = vmatpush3.bf16.msra.mxu0 %v4776_v16 }
  0xa6   : > { %4347 = vmatprep.subr.bf16.mxu0 %v4777_v18 }
  0xa7   : > { %4372 = vmatpush3.bf16.msra.mxu1 %v4766_v14 }
  0xa9   : > { %4348 = vmatpush3.bf16.msra.mxu0 %v4777_v18 }
  0xaa   : > { %4374 = vmatmul.mubr.bf16.vlgmr.msra.gmra.mrb[0].mxu1 %v490_v15 }
  0xab   : > { %4377 = vmatprep.mubr.bf16.mxu1 %v492_v17 }
  0xac   : > { %4350 = vmatmul.mubr.bf16.vlgmr.msra.gmra.mrb[0].mxu0 %v490_v15 }
  0xad   : > { %4353 = vmatprep.mubr.bf16.mxu0 %v492_v17 }
  0xb2   : > { %4378 = vmatmul.mubr.bf16.gmra.mrb[4].mxu1 %v494_v19 }
  0xb4   : > { %4354 = vmatmul.mubr.bf16.gmra.mrb[4].mxu0 %v494_v19 }
 0x17d   : > { %v4375_v20 = vpop.f32.mrb[0].mxu1 }
 0x17e   : > { %v769_v22 = vpop.f32.mrb[1].mxu1  ;;  %v778_v24 = vadd.f32 %v4375_v20, %v3917_v21 }
 0x17f   : > { %v4376_v23 = vpop.f32.mrb[2].mxu1  ;;  %v770_v27 = vadd.f32 %v3917_v21, %v769_v22  ;;  %v4351_v32 = vpop.f32.mrb[0].mxu0 }
 0x180   : > { %v781_v25 = vadd.f32 %v4376_v23, %v3917_v21  ;;  %v772_v26 = vpop.f32.mrb[3].mxu1  ;;  %v642_v35 = vadd.f32 %v4351_v32, %v3904_v30  ;;  %v633_v36 = vpop.f32.mrb[1].mxu0 }
 0x181   : > { %v773_v28 = vadd.f32 %v3917_v21, %v772_v26  ;;  %v634_v39 = vadd.f32 %v3904_v30, %v633_v36  ;;  %v4352_v40 = vpop.f32.mrb[2].mxu0 }
 0x182   : > { %v5502_v29 = vpack.c.bf16 %v781_v25, %v778_v24  ;;  %v645_v43 = vadd.f32 %v4352_v40, %v3904_v30  ;;  %v636_v44 = vpop.f32.mrb[3].mxu0  ;;  %v910_v25 = vld [vmem:[%s6595_s5 + $0x20] sm:$0xff]  ;;  %v911_v40 = vld [vmem:[%s6595_s5 + $0x28] sm:$0xff] }
 0x183   : > { %v5504_v31 = vpack.c.bf16 %v773_v28, %v770_v27  ;;  %v637_v47 = vadd.f32 %v3904_v30, %v636_v44 }
 0x184   : > { %v5512_v49 = vpack.c.bf16 %v645_v43, %v642_v35  ;;  %v825_v54 = vsel %vm808_vm0, %v5502_v29, 0 }
 0x185   : > { %4677 = vmatprep.subr.msk.bf16.mxu0 %vm808_vm0, %v5504_v31  ;;  %v822_v33 = vsel %vm808_vm0, %v5504_v31, 0  ;;  %v4379_v34 = vpop.f32.mrb[4].mxu1  ;;  %v5516_v51 = vpack.c.bf16 %v637_v47, %v634_v39 }
 0x186   : > { %4382 = vmatpush3.bf16.xpose.msra.mxu0 %v822_v33  ;;  %v794_v37 = vadd.f32 %v4379_v34, %v3917_v21  ;;  %v785_v38 = vpop.f32.mrb[5].mxu1 }
 0x187   : > { %4678 = vmatprep.subr.msk.bf16.mxu0 %vm808_vm0, %v5502_v29  ;;  %v786_v41 = vadd.f32 %v3917_v21, %v785_v38  ;;  %v4380_v42 = vpop.f32.mrb[6].mxu1  ;;  %4389 = vmatprep.mubr.msk.bf16.mxu0 %vm808_vm0, %v5516_v51  ;;  %v4355_v53 = vpop.f32.mrb[4].mxu0 }
 0x188   : > { %v797_v45 = vadd.f32 %v4380_v42, %v3917_v21  ;;  %v788_v46 = vpop.f32.mrb[7].mxu1  ;;  %v658_v55 = vadd.f32 %v4355_v53, %v3904_v30  ;;  %v649_v56 = vpop.f32.mrb[5].mxu0 }
 0x189   : > { %v789_v48 = vadd.f32 %v3917_v21, %v788_v46  ;;  %v650_v57 = vadd.f32 %v3904_v30, %v649_v56  ;;  %v4356_v58 = vpop.f32.mrb[6].mxu0  ;;  %v912_v21 = vld [vmem:[%s6595_s5 + $0x30] sm:$0xff] }
 0x18a   : > { %v5514_v50 = vpack.c.bf16 %v797_v45, %v794_v37  ;;  %v661_v59 = vadd.f32 %v4356_v58, %v3904_v30  ;;  %v652_v60 = vpop.f32.mrb[7].mxu0  ;;  %v913_v37 = vld [vmem:[%s6595_s5 + $0x38] sm:$0xff] }
 0x18b   : > { %v5518_v52 = vpack.c.bf16 %v789_v48, %v786_v41  ;;  %v653_v61 = vadd.f32 %v3904_v30, %v652_v60 }
 0x18c   : > { %v5526_v62 = vpack.c.bf16 %v661_v59, %v658_v55  ;;  %v831_v1 = vsel %vm808_vm0, %v5514_v50, 0 }
 0x18d   : > { %v5528_v63 = vpack.c.bf16 %v653_v61, %v650_v57  ;;  %v828_v0 = vsel %vm808_vm0, %v5518_v52, 0 }
 0x18e   : > { %4384 = vmatpush3.bf16.xpose.msra.mxu0 %v825_v54 }
 0x18f   : > { %4679 = vmatprep.subr.msk.bf16.mxu0 %vm808_vm0, %v5518_v52 }
 0x196   : > { %4386 = vmatpush3.bf16.xpose.msra.mxu0 %v828_v0 }
 0x197   : > { %4680 = vmatprep.subr.msk.bf16.mxu0 %vm808_vm0, %v5514_v50 }
 0x19e   : > { %4388 = vmatpush3.bf16.xpose.msra.mxu0 %v831_v1 }
 0x1a5   : > { %4390 = vmatmul.mubr.msk.bf16.vlgmr.msra.gmra.mrb[8].mxu0 %vm808_vm0, %v5512_v49 }
 0x1a6   : > { %4393 = vmatprep.mubr.msk.bf16.mxu0 %vm808_vm0, %v5528_v63 }
 0x1ad   : > { %4394 = vmatmul.mubr.msk.bf16.gmra.mrb[12].mxu0 %vm808_vm0, %v5526_v62 }
 0x278   : > { %v4391_v2 = vpop.f32.mrb[8].mxu0 }
 0x279   : > { %v900_v4 = vmul.f32 0.25, %v4391_v2  ;;  %v867_v5 = vpop.f32.mrb[9].mxu0 }
 0x27a   : > { %v898_v7 = vmul.f32 0.25, %v867_v5  ;;  %v4392_v8 = vpop.f32.mrb[10].mxu0 }
 0x27b   : > { %v901_v10 = vmul.f32 0.25, %v4392_v8  ;;  %v870_v11 = vpop.f32.mrb[11].mxu0  ;;  %v916_v12 = vadd.f32 %v908_v3, %v900_v4 }
 0x27c   : > { %v899_v14 = vmul.f32 0.25, %v870_v11  ;;  %v914_v15 = vadd.f32 %v906_v6, %v898_v7 }
 0x27d   : > { %v929_v16 = vsel %vm922_vm1, %v916_v12, -inf  ;;  %v917_v17 = vadd.f32 %v909_v9, %v901_v10 }
 0x27e   : > { %930 = vmax.xlane.f32.xlu1 %v929_v16  ;;  %v923_v18 = vsel %vm922_vm1, %v914_v15, -inf  ;;  %v915_v19 = vadd.f32 %v907_v13, %v899_v14 }
 0x27f   : > { %924 = vmax.xlane.f32.xlu0 %v923_v18  ;;  %v932_v23 = vsel %vm922_vm1, %v917_v17, -inf }
 0x280   : > { %v4395_v20 = vpop.f32.mrb[12].mxu0  ;;  %v926_v26 = vsel %vm922_vm1, %v915_v19, -inf }
 0x281   : > { %v904_v22 = vmul.f32 0.25, %v4395_v20  ;;  %v883_v24 = vpop.f32.mrb[13].mxu0 }
 0x282   : > { %933 = vmax.xlane.f32.xlu1 %v932_v23  ;;  %v902_v27 = vmul.f32 0.25, %v883_v24  ;;  %v4396_v28 = vpop.f32.mrb[14].mxu0 }
 0x283   : > { %927 = vmax.xlane.f32.xlu0 %v926_v26  ;;  %v920_v30 = vadd.f32 %v912_v21, %v904_v22  ;;  %v886_v32 = vpop.f32.mrb[15].mxu0  ;;  %v905_v36 = vmul.f32 0.25, %v4396_v28 }
 0x284   : > { %v918_v33 = vadd.f32 %v910_v25, %v902_v27  ;;  %v903_v38 = vmul.f32 0.25, %v886_v32 }
 0x285   : > { %v941_v34 = vsel %vm922_vm1, %v920_v30, -inf  ;;  %v5575_v39 = vadd.f32 %v913_v37, %v905_v36 }
 0x286   : > { %v935_v35 = vsel %vm922_vm1, %v918_v33, -inf  ;;  %v5582_v42 = vadd.f32 %v911_v40, %v903_v38 }
 0x287   : > { %942 = vmax.xlane.f32.xlu0 %v941_v34  ;;  %v944_v41 = vsel %vm922_vm1, %v5575_v39, -inf }
 0x288   : > { %v938_v43 = vsel %vm922_vm1, %v5582_v42, -inf }
 0x28b   : > { %936 = vmax.xlane.f32.xlu0 %v935_v35 }
 0x293   : > { %1021 = vrot.lane.b32.xlu1 %v5502_v29, %s5197_s29 }
 0x297   : > { %1023 = vrot.lane.b32.xlu1 %v5518_v52, %s5197_s29 }
 0x2a1   : > { %1019 = vrot.lane.b32.xlu0 %v5504_v31, %s5197_s29 }
 0x2bb   : > { %945 = vmax.xlane.f32.xlu1 %v944_v41 }
 0x2bf   : > { %939 = vmax.xlane.f32.xlu1 %v938_v43 }
 0x2d0   : > { %1025 = vrot.lane.b32.xlu1 %v5514_v50, %s5197_s29 }
 0x30b   : > { %v931_v44 = vpop.xlane.xlu1 %930 }
 0x30c   : > { %v949_v45 = vsub.f32 %v916_v12, %v931_v44  ;;  %v925_v46 = vpop.xlane.xlu0 %924 }
 0x30d   : > { %v947_v47 = vsub.f32 %v914_v15, %v925_v46 }
 0x30e   : > { %v959_v48 = vmul.f32 1.442695, %v949_v45 }
 0x30f   : > { %v955_v53 = vmul.f32 1.442695, %v947_v47  ;;  %v934_v54 = vpop.xlane.xlu1 %933 }
 0x310   : > { %4834 = vpow2.f32 %v959_v48  ;;  %v950_v55 = vsub.f32 %v917_v17, %v934_v54  ;;  %v928_v56 = vpop.xlane.xlu0 %927 }
 0x311   : > { %v948_v57 = vsub.f32 %v915_v19, %v928_v56  ;;  %4836 = vpow2.f32 %v955_v53 }
 0x312   : > { %v961_v58 = vmul.f32 1.442695, %v950_v55 }
 0x313   : > { %v957_v59 = vmul.f32 1.442695, %v948_v57  ;;  %v1022_v7 = vpop.permute.xlu1 %1021 }
 0x314   : > { %4838 = vpow2.f32 %v961_v58  ;;  %v943_v60 = vpop.xlane.xlu0 %942 }
 0x315   : > { %v953_v61 = vsub.f32 %v920_v30, %v943_v60  ;;  %4840 = vpow2.f32 %v957_v59 }
 0x317   : > { %v967_v0 = vmul.f32 1.442695, %v953_v61  ;;  %v1024_v13 = vpop.permute.xlu1 %1023 }
 0x318   : > { %v937_v1 = vpop.xlane.xlu0 %936 }
 0x319   : > { %4842 = vpow2.f32 %v967_v0  ;;  %v951_v2 = vsub.f32 %v918_v33, %v937_v1 }
 0x31a   : > { %v5588_v3 = vpop.eup %4834 }
 0x31b   : > { %v963_v4 = vmul.f32 1.442695, %v951_v2  ;;  %v977_v5 = vsel %vm922_vm1, %v5588_v3, 0.0  ;;  %v5592_v6 = vpop.eup %4836 }
 0x31c   : > { %978 = vadd.xlane.f32.xlu0 %v977_v5  ;;  %v1020_v8 = vpop.permute.xlu0 %1019  ;;  %v971_v10 = vsel %vm922_vm1, %v5592_v6, 0.0 }
 0x31d   : > { %4844 = vpow2.f32 %v963_v4  ;;  %4397 = vmatprep.subr.bf16.mxu1 %v1020_v8 }
 0x31e   : > { %v4839_v9 = vpop.eup %4838  ;;  %4398 = vmatpush3.bf16.msra.mxu1 %v1020_v8 }
 0x31f   : > { %4399 = vmatprep.subr.bf16.mxu1 %v1022_v7  ;;  %v980_v11 = vsel %vm922_vm1, %v4839_v9, 0.0  ;;  %v4841_v12 = vpop.eup %4840 }
 0x320   : > { %972 = vadd.xlane.f32.xlu0 %v971_v10  ;;  %981 = vadd.xlane.f32.xlu1 %v980_v11  ;;  %v974_v15 = vsel %vm922_vm1, %v4841_v12, 0.0 }
 0x322   : > { %4400 = vmatpush3.bf16.msra.mxu1 %v1022_v7 }
 0x323   : > { %v5597_v14 = vpop.eup %4842  ;;  %4401 = vmatprep.subr.bf16.mxu1 %v1024_v13 }
 0x324   : > { %975 = vadd.xlane.f32.xlu1 %v974_v15  ;;  %v989_v16 = vsel %vm922_vm1, %v5597_v14, 0.0 }
 0x325   : > { %990 = vadd.xlane.f32.xlu0 %v989_v16 }
 0x326   : > { %4402 = vmatpush3.bf16.msra.mxu1 %v1024_v13 }
 0x327   : > { %v5602_v17 = vpop.eup %4844 }
 0x328   : > { %v983_v18 = vsel %vm922_vm1, %v5602_v17, 0.0 }
 0x329   : > { %984 = vadd.xlane.f32.xlu0 %v983_v18 }
 0x335   : > { %1122 = vrot.lane.b32.xlu1 %v5502_v29, %s5198_s13 }
 0x339   : > { %1124 = vrot.lane.b32.xlu1 %v5518_v52, %s5198_s13 }
 0x348   : > { %v946_v19 = vpop.xlane.xlu1 %945 }
 0x349   : > { %v954_v20 = vsub.f32 %v5575_v39, %v946_v19 }
 0x34b   : > { %v969_v21 = vmul.f32 1.442695, %v954_v20  ;;  %v3938_v20 = vld [vmem:[%s6595_s5 + $0x40] sm:$0xff] }
 0x34c   : > { %v940_v22 = vpop.xlane.xlu1 %939 }
 0x34d   : > { %4846 = vpow2.f32 %v969_v21  ;;  %v952_v23 = vsub.f32 %v5582_v42, %v940_v22 }
 0x34f   : > { %v965_v24 = vmul.f32 1.442695, %v952_v23 }
 0x350   : > { %v1026_v25 = vpop.permute.xlu1 %1025 }
 0x351   : > { %4848 = vpow2.f32 %v965_v24  ;;  %4403 = vmatprep.subr.bf16.mxu1 %v1026_v25 }
 0x352   : > { %4404 = vmatpush3.bf16.msra.mxu1 %v1026_v25  ;;  %v3939_v25 = vld [vmem:[%s6595_s5 + $0x48] sm:$0xff] }
 0x357   : > { %v4847_v26 = vpop.eup %4846 }
 0x358   : > { %v992_v27 = vsel %vm922_vm1, %v4847_v26, 0.0 }
 0x359   : > { %993 = vadd.xlane.f32.xlu0 %v992_v27 }
 0x35b   : > { %v4849_v28 = vpop.eup %4848 }
 0x35c   : > { %v986_v30 = vsel %vm922_vm1, %v4849_v28, 0.0 }
 0x35d   : > { %987 = vadd.xlane.f32.xlu1 %v986_v30 }
 0x36e   : > { %1126 = vrot.lane.b32.xlu1 %v5514_v50, %s5198_s13 }
 0x36f   : > { %1120 = vrot.lane.b32.xlu0 %v5504_v31, %s5198_s13 }
 0x372   : > { %1114 = vrot.lane.b32.xlu1 %v5512_v49, %s5198_s13 }
 0x373   : > { %1112 = vrot.lane.b32.xlu0 %v5516_v51, %s5198_s13 }
 0x376   : > { %1118 = vrot.lane.b32.xlu1 %v5526_v62, %s5198_s13 }
 0x377   : > { %1116 = vrot.lane.b32.xlu0 %v5528_v63, %s5198_s13 }
 0x3a9   : > { %v979_v32 = vpop.xlane.xlu0 %978 }
 0x3ad   : > { %v973_v33 = vpop.xlane.xlu0 %972  ;;  %v982_v34 = vpop.xlane.xlu1 %981 }
 0x3ae   : > { %4850 = vrcp.f32 %v982_v34 }
 0x3af   : > { %4852 = vrcp.f32 %v973_v33 }
 0x3b0   : > { %4854 = vrcp.f32 %v979_v32 }
 0x3b1   : > { %v976_v35 = vpop.xlane.xlu1 %975 }
 0x3b2   : > { %4856 = vrcp.f32 %v976_v35  ;;  %v991_v42 = vpop.xlane.xlu0 %990  ;;  %v3941_v35 = vld [vmem:[%s6595_s5 + $0x58] sm:$0xff] }
 0x3b5   : > { %v1123_v43 = vpop.permute.xlu1 %1122 }
 0x3b6   : > { %v985_v44 = vpop.xlane.xlu0 %984  ;;  %v1144_v56 = vsel %vm808_vm0, %v1123_v43, 0 }
 0x3b8   : > { %v4851_v36 = vpop.eup %4850 }
 0x3b9   : > { %v4853_v37 = vpop.eup %4852  ;;  %v1006_v39 = vmul.f32 %v4851_v36, %v4839_v9  ;;  %v1125_v45 = vpop.permute.xlu1 %1124 }
 0x3ba   : > { %v4855_v49 = vpop.eup %4854  ;;  %v1003_v51 = vmul.f32 %v4853_v37, %v5592_v6 }
 0x3bb   : > { %v1005_v62 = vmul.f32 %v4855_v49, %v5588_v3  ;;  %v1147_v3 = vsel %vm808_vm0, %v1125_v45, 0 }
 0x3bc   : > { %v4857_v38 = vpop.eup %4856 }
 0x3bd   : > { %v1004_v40 = vmul.f32 %v4857_v38, %v4841_v12  ;;  %v1012_v63 = vpack.c.bf16 %v1006_v39, %v1005_v62 }
 0x3bf   : > { %v1011_v41 = vpack.c.bf16 %v1004_v40, %v1003_v51 }
 0x3c1   : > { %4405 = vmatprep.mubr.msk.bf16.mxu1 %vm922_vm1, %v1011_v41  ;;  %v3943_v41 = vld [vmem:[%s6595_s5 + $0x68] sm:$0xff] }
 0x3c2   : > { %4406 = vmatmul.mubr.msk.bf16.vlgmr.msra.gmra.mrb[8].mxu1 %vm922_vm1, %v1012_v63  ;;  %v3942_v63 = vld [vmem:[%s6595_s5 + $0x60] sm:$0xff] }
 0x3e6   : > { %v994_v46 = vpop.xlane.xlu0 %993 }
 0x3e7   : > { %4858 = vrcp.f32 %v994_v46 }
 0x3e8   : > { %4860 = vrcp.f32 %v985_v44  ;;  %v3945_v44 = vld [vmem:[%s6595_s5 + $0x78] sm:$0xff] }
 0x3e9   : > { %4862 = vrcp.f32 %v991_v42 }
 0x3ea   : > { %v1121_v47 = vpop.permute.xlu0 %1120  ;;  %v988_v48 = vpop.xlane.xlu1 %987 }
 0x3eb   : > { %v1141_v53 = vsel %vm808_vm0, %v1121_v47, 0  ;;  %4864 = vrcp.f32 %v988_v48  ;;  %4681 = vmatprep.subr.msk.bf16.mxu1 %vm808_vm0, %v1121_v47 }
 0x3ec   : > { %4414 = vmatpush3.bf16.xpose.msra.mxu1 %v1141_v53  ;;  %v3944_v53 = vld [vmem:[%s6595_s5 + $0x70] sm:$0xff] }
 0x3ed   : > { %4682 = vmatprep.subr.msk.bf16.mxu1 %vm808_vm0, %v1123_v43 }
 0x3ee   : > { %v1113_v4 = vpop.permute.xlu0 %1112  ;;  %v1127_v5 = vpop.permute.xlu1 %1126 }
 0x3ef   : > { %v1150_v6 = vsel %vm808_vm0, %v1127_v5, 0 }
 0x3f1   : > { %v4859_v54 = vpop.eup %4858 }
 0x3f2   : > { %v4861_v55 = vpop.eup %4860  ;;  %v1010_v59 = vmul.f32 %v4859_v54, %v4847_v26  ;;  %v1115_v7 = vpop.permute.xlu1 %1114  ;;  %v3940_v26 = vld [vmem:[%s6595_s5 + $0x50] sm:$0xff] }
 0x3f3   : > { %v4863_v57 = vpop.eup %4862  ;;  %v1007_v60 = vmul.f32 %v4861_v55, %v5602_v17  ;;  %v1117_v8 = vpop.permute.xlu0 %1116 }
 0x3f4   : > { %4416 = vmatpush3.bf16.xpose.msra.mxu1 %v1144_v56  ;;  %v1009_v0 = vmul.f32 %v4863_v57, %v5597_v14 }
 0x3f5   : > { %v4865_v58 = vpop.eup %4864  ;;  %4683 = vmatprep.subr.msk.bf16.mxu1 %vm808_vm0, %v1125_v45 }
 0x3f6   : > { %v1008_v61 = vmul.f32 %v4865_v58, %v4849_v28  ;;  %v1014_v2 = vpack.c.bf16 %v1010_v59, %v1009_v0  ;;  %v1119_v9 = vpop.permute.xlu1 %1118 }
 0x3f8   : > { %v1013_v1 = vpack.c.bf16 %v1008_v61, %v1007_v60 }
 0x3fa   : > { %4409 = vmatprep.mubr.msk.bf16.mxu1 %vm922_vm1, %v1013_v1 }
 0x3fb   : > { %4410 = vmatmul.mubr.msk.bf16.gmra.mrb[12].mxu1 %vm922_vm1, %v1014_v2 }
 0x3fc   : > { %4418 = vmatpush3.bf16.xpose.msra.mxu1 %v1147_v3  ;;  %4421 = vmatprep.mubr.msk.bf16.mxu1 %vm808_vm0, %v1113_v4 }
 0x3fd   : > { %4684 = vmatprep.subr.msk.bf16.mxu1 %vm808_vm0, %v1127_v5 }
 0x404   : > { %4420 = vmatpush3.bf16.xpose.msra.mxu1 %v1150_v6 }
 0x40b   : > { %4422 = vmatmul.mubr.msk.bf16.vlgmr.msra.gmra.mrb[16].mxu1 %vm808_vm0, %v1115_v7 }
 0x40c   : > { %4425 = vmatprep.mubr.msk.bf16.mxu1 %vm808_vm0, %v1117_v8 }
 0x413   : > { %4426 = vmatmul.mubr.msk.bf16.gmra.mrb[20].mxu1 %vm808_vm0, %v1119_v9 }
 0x495   : > { %v5646_v10 = vpop.f32.mrb[8].mxu1 }
 0x496   : > { %v5648_v11 = vpop.f32.mrb[9].mxu1 }
 0x497   : > { %v5650_v12 = vpop.f32.mrb[10].mxu1 }
 0x498   : > { %v5652_v13 = vpop.f32.mrb[11].mxu1 }
 0x4ce   : > { %v5654_v14 = vpop.f32.mrb[12].mxu1 }
 0x4cf   : > { %v5656_v15 = vpop.f32.mrb[13].mxu1 }
 0x4d0   : > { %v5658_v16 = vpop.f32.mrb[14].mxu1 }
 0x4d1   : > { %v5660_v17 = vpop.f32.mrb[15].mxu1 }
 0x4de   : > { %v4423_v18 = vpop.f32.mrb[16].mxu1 }
 0x4df   : > { %v1186_v19 = vpop.f32.mrb[17].mxu1  ;;  %v1219_v21 = vmul.f32 0.25, %v4423_v18 }
 0x4e0   : > { %v1217_v22 = vmul.f32 0.25, %v1186_v19  ;;  %v4424_v23 = vpop.f32.mrb[18].mxu1 }
 0x4e1   : > { %v1189_v24 = vpop.f32.mrb[19].mxu1  ;;  %v1220_v30 = vmul.f32 0.25, %v4424_v23  ;;  %v1236_v34 = vadd.f32 %v3940_v26, %v1219_v21 }
 0x4e2   : > { %v1218_v27 = vmul.f32 0.25, %v1189_v24  ;;  %v1234_v28 = vadd.f32 %v3938_v20, %v1217_v22 }
 0x4e3   : > { %v1248_v51 = vsel %vm922_vm1, %v1236_v34, -inf  ;;  %v1237_v40 = vadd.f32 %v3941_v35, %v1220_v30 }
 0x4e4   : > { %v1242_v32 = vsel %vm922_vm1, %v1234_v28, -inf  ;;  %v1235_v33 = vadd.f32 %v3939_v25, %v1218_v27 }
 0x4e5   : > { %1243 = vmax.xlane.f32.xlu0 %v1242_v32  ;;  %v1251_v46 = vsel %vm922_vm1, %v1237_v40, -inf }
 0x4e6   : > { %v4427_v36 = vpop.f32.mrb[20].mxu1  ;;  %v1245_v37 = vsel %vm922_vm1, %v1235_v33, -inf }
 0x4e7   : > { %1246 = vmax.xlane.f32.xlu1 %v1245_v37  ;;  %v1202_v49 = vpop.f32.mrb[21].mxu1  ;;  %v1223_v45 = vmul.f32 0.25, %v4427_v36 }
 0x4e8   : > { %v1221_v38 = vmul.f32 0.25, %v1202_v49  ;;  %v4428_v39 = vpop.f32.mrb[22].mxu1 }
 0x4e9   : > { %1249 = vmax.xlane.f32.xlu0 %v1248_v51  ;;  %v1205_v62 = vpop.f32.mrb[23].mxu1  ;;  %v1224_v42 = vmul.f32 0.25, %v4428_v39  ;;  %v1240_v57 = vadd.f32 %v3944_v53, %v1223_v45 }
 0x4ea   : > { %v1222_v43 = vmul.f32 0.25, %v1205_v62  ;;  %v1238_v48 = vadd.f32 %v3942_v63, %v1221_v38 }
 0x4eb   : > { %v1241_v55 = vadd.f32 %v3945_v44, %v1224_v42  ;;  %v1260_v59 = vsel %vm922_vm1, %v1240_v57, -inf }
 0x4ec   : > { %v1239_v47 = vadd.f32 %v3943_v41, %v1222_v43  ;;  %v1254_v56 = vsel %vm922_vm1, %v1238_v48, -inf }
 0x4ed   : > { %1252 = vmax.xlane.f32.xlu0 %v1251_v46  ;;  %v1263_v58 = vsel %vm922_vm1, %v1241_v55, -inf }
 0x4ee   : > { %v1257_v54 = vsel %vm922_vm1, %v1239_v47, -inf }
 0x4ef   : > { %1258 = vmax.xlane.f32.xlu1 %v1257_v54 }
 0x4f1   : > { %1255 = vmax.xlane.f32.xlu0 %v1254_v56 }
 0x4f3   : > { %1264 = vmax.xlane.f32.xlu1 %v1263_v58 }
 0x4f5   : > { %1261 = vmax.xlane.f32.xlu0 %v1260_v59 }
 0x50b   : > { %1334 = vrot.lane.b32.xlu0 %v5504_v31, %s5199_s12 }
 0x572   : > { %v1244_v60 = vpop.xlane.xlu0 %1243 }
 0x573   : > { %v1266_v61 = vsub.f32 %v1234_v28, %v1244_v60 }
 0x574   : > { %v1247_v0 = vpop.xlane.xlu1 %1246 }
 0x575   : > { %v1274_v3 = vmul.f32 1.442695, %v1266_v61  ;;  %v1267_v4 = vsub.f32 %v1235_v33, %v1247_v0 }
 0x576   : > { %v1250_v1 = vpop.xlane.xlu0 %1249 }
 0x577   : > { %v1268_v2 = vsub.f32 %v1236_v34, %v1250_v1  ;;  %v1276_v9 = vmul.f32 1.442695, %v1267_v4 }
 0x579   : > { %v1278_v5 = vmul.f32 1.442695, %v1268_v2 }
 0x57a   : > { %v1253_v6 = vpop.xlane.xlu0 %1252 }
 0x57b   : > { %4866 = vpow2.f32 %v1278_v5  ;;  %v1269_v7 = vsub.f32 %v1237_v40, %v1253_v6 }
 0x57c   : > { %v1259_v8 = vpop.xlane.xlu1 %1258  ;;  %4868 = vpow2.f32 %v1274_v3 }
 0x57d   : > { %v1280_v18 = vmul.f32 1.442695, %v1269_v7  ;;  %v1271_v33 = vsub.f32 %v1239_v47, %v1259_v8 }
 0x57e   : > { %v1256_v19 = vpop.xlane.xlu0 %1255 }
 0x57f   : > { %4870 = vpow2.f32 %v1280_v18  ;;  %v1270_v20 = vsub.f32 %v1238_v48, %v1256_v19  ;;  %v1284_v49 = vmul.f32 1.442695, %v1271_v33  ;;  %v4780_v33 = vld [vmem:[%s6598_s8] sm:$0xff]  }
 0x580   : > { %4872 = vpow2.f32 %v1276_v9  ;;  %v1265_v31 = vpop.xlane.xlu1 %1264  ;;  %4457 = vmatprep.subr.bf16.mxu1 %v4780_v33 }
 0x581   : > { %v1282_v24 = vmul.f32 1.442695, %v1270_v20  ;;  %v1273_v25 = vsub.f32 %v1241_v55, %v1265_v31  ;;  %4458 = vmatpush3.bf16.msra.mxu1 %v4780_v33 }
 0x582   : > { %v1262_v21 = vpop.xlane.xlu0 %1261 }
 0x583   : > { %v1272_v22 = vsub.f32 %v1240_v57, %v1262_v21  ;;  %v1288_v34 = vmul.f32 1.442695, %v1273_v25 }
 0x585   : > { %v5696_v23 = vpop.eup %4866  ;;  %v1286_v26 = vmul.f32 1.442695, %v1272_v22 }
 0x586   : > { %v1335_v27 = vpop.permute.xlu0 %1334  ;;  %v1296_v28 = vsel %vm922_vm1, %v5696_v23, 0.0  ;;  %v4869_v30 = vpop.eup %4868 }
 0x587   : > { %4874 = vpow2.f32 %v1286_v26  ;;  %1297 = vadd.xlane.f32.xlu0 %v1296_v28  ;;  %4429 = vmatprep.subr.bf16.mxu0 %v1335_v27  ;;  %v1290_v35 = vsel %vm922_vm1, %v4869_v30, 0.0 }
 0x588   : > { %4430 = vmatpush3.bf16.msra.mxu0 %v1335_v27  ;;  %4876 = vpow2.f32 %v1282_v24 }
 0x589   : > { %v4871_v32 = vpop.eup %4870  ;;  %4878 = vpow2.f32 %v1288_v34  ;;  %v4781_v34 = vld [vmem:[%s6598_s8 + $0x8] sm:$0xff]  }
 0x58a   : > { %v1299_v36 = vsel %vm922_vm1, %v4871_v32, 0.0  ;;  %v4873_v37 = vpop.eup %4872  ;;  %4880 = vpow2.f32 %v1284_v49  ;;  %4459 = vmatprep.subr.bf16.mxu1 %v4781_v34  ;;  %v4785_v49 = vld [vmem:[%s6598_s8 + $0x28] sm:$0xff]  }
 0x58b   : > { %1291 = vadd.xlane.f32.xlu0 %v1290_v35  ;;  %1300 = vadd.xlane.f32.xlu1 %v1299_v36  ;;  %v1293_v38 = vsel %vm922_vm1, %v4873_v37, 0.0  ;;  %v4782_v35 = vld [vmem:[%s6598_s8 + $0x10] sm:$0xff]   ;;  %v4783_v36 = vld [vmem:[%s6598_s8 + $0x18] sm:$0xff]  }
 0x58c   : > { %4460 = vmatpush3.bf16.msra.mxu1 %v4781_v34 }
 0x58d   : > { %4461 = vmatprep.subr.bf16.mxu1 %v4782_v35 }
 0x58f   : > { %1294 = vadd.xlane.f32.xlu1 %v1293_v38 }
 0x590   : > { %4462 = vmatpush3.bf16.msra.mxu1 %v4782_v35 }
 0x591   : > { %v4875_v39 = vpop.eup %4874  ;;  %4463 = vmatprep.subr.bf16.mxu1 %v4783_v36 }
 0x592   : > { %v1308_v51 = vsel %vm922_vm1, %v4875_v39, 0.0  ;;  %v4877_v40 = vpop.eup %4876 }
 0x593   : > { %1309 = vadd.xlane.f32.xlu1 %v1308_v51  ;;  %v1302_v62 = vsel %vm922_vm1, %v4877_v40, 0.0  ;;  %v4879_v41 = vpop.eup %4878 }
 0x594   : > { %v1311_v63 = vsel %vm922_vm1, %v4879_v41, 0.0  ;;  %v4881_v42 = vpop.eup %4880  ;;  %4464 = vmatpush3.bf16.msra.mxu1 %v4783_v36 }
 0x595   : > { %v1305_v43 = vsel %vm922_vm1, %v4881_v42, 0.0 }
 0x597   : > { %1303 = vadd.xlane.f32.xlu1 %v1302_v62 }
 0x59b   : > { %1312 = vadd.xlane.f32.xlu1 %v1311_v63 }
 0x59f   : > { %1306 = vadd.xlane.f32.xlu1 %v1305_v43 }
 0x5a1   : > { %1338 = vrot.lane.b32.xlu0 %v5518_v52, %s5199_s12 }
 0x5a5   : > { %1340 = vrot.lane.b32.xlu0 %v5514_v50, %s5199_s12 }
 0x5b0   : > { %1336 = vrot.lane.b32.xlu1 %v5502_v29, %s5199_s12 }
 0x614   : > { %v1298_v44 = vpop.xlane.xlu0 %1297 }
 0x618   : > { %v1292_v45 = vpop.xlane.xlu0 %1291  ;;  %v1301_v46 = vpop.xlane.xlu1 %1300 }
 0x619   : > { %4882 = vrcp.f32 %v1292_v45 }
 0x61c   : > { %v1295_v47 = vpop.xlane.xlu1 %1294  ;;  %v1339_v50 = vpop.permute.xlu0 %1338 }
 0x61d   : > { %4884 = vrcp.f32 %v1295_v47 }
 0x61e   : > { %4886 = vrcp.f32 %v1301_v46 }
 0x61f   : > { %4888 = vrcp.f32 %v1298_v44 }
 0x620   : > { %v1310_v48 = vpop.xlane.xlu1 %1309  ;;  %v1341_v1 = vpop.permute.xlu0 %1340 }
 0x623   : > { %v4883_v54 = vpop.eup %4882 }
 0x624   : > { %v1304_v53 = vpop.xlane.xlu1 %1303  ;;  %v1322_v57 = vmul.f32 %v4883_v54, %v4869_v30  ;;  %v4778_v30 = vld [vmem:[%s6596_s6] sm:$0xff]  }
 0x625   : > { %4890 = vrcp.f32 %v1304_v53 }
 0x627   : > { %v4885_v55 = vpop.eup %4884 }
 0x628   : > { %v1313_v56 = vpop.xlane.xlu1 %1312  ;;  %v1323_v58 = vmul.f32 %v4885_v55, %v4873_v37  ;;  %v4887_v60 = vpop.eup %4886  ;;  %v4784_v37 = vld [vmem:[%s6598_s8 + $0x20] sm:$0xff]  }
 0x629   : > { %v4889_v61 = vpop.eup %4888  ;;  %v1325_v3 = vmul.f32 %v4887_v60, %v4871_v32  ;;  %v4779_v32 = vld [vmem:[%s6596_s6 + $0x8] sm:$0xff]   ;;  %4465 = vmatprep.subr.bf16.mxu1 %v4784_v37 }
 0x62a   : > { %v1330_v52 = vpack.c.bf16 %v1323_v58, %v1322_v57  ;;  %v1324_v5 = vmul.f32 %v4889_v61, %v5696_v23  ;;  %4466 = vmatpush3.bf16.msra.mxu1 %v4784_v37 }
 0x62b   : > { %4467 = vmatprep.subr.bf16.mxu1 %v4785_v49 }
 0x62c   : > { %4437 = vmatprep.mubr.msk.bf16.mxu0 %vm922_vm1, %v1330_v52  ;;  %v1307_v29 = vpop.xlane.xlu1 %1306  ;;  %v1331_v7 = vpack.c.bf16 %v1325_v3, %v1324_v5 }
 0x62d   : > { %4892 = vrcp.f32 %v1307_v29 }
 0x62e   : > { %4894 = vrcp.f32 %v1313_v56  ;;  %4468 = vmatpush3.bf16.msra.mxu1 %v4785_v49 }
 0x62f   : > { %4896 = vrcp.f32 %v1310_v48  ;;  %v4891_v0 = vpop.eup %4890 }
 0x630   : > { %v1337_v59 = vpop.permute.xlu1 %1336  ;;  %v1326_v6 = vmul.f32 %v4891_v0, %v4877_v40 }
 0x631   : > { %4431 = vmatprep.subr.bf16.mxu0 %v1337_v59 }
 0x632   : > { %4432 = vmatpush3.bf16.msra.mxu0 %v1337_v59 }
 0x633   : > { %4433 = vmatprep.subr.bf16.mxu0 %v1339_v50 }
 0x636   : > { %4434 = vmatpush3.bf16.msra.mxu0 %v1339_v50 }
 0x637   : > { %v4893_v2 = vpop.eup %4892  ;;  %4435 = vmatprep.subr.bf16.mxu0 %v1341_v1 }
 0x638   : > { %v1327_v4 = vmul.f32 %v4893_v2, %v4881_v42  ;;  %v4895_v8 = vpop.eup %4894 }
 0x639   : > { %v4897_v18 = vpop.eup %4896  ;;  %v1329_v19 = vmul.f32 %v4895_v8, %v4879_v41 }
 0x63a   : > { %4436 = vmatpush3.bf16.msra.mxu0 %v1341_v1  ;;  %v1332_v9 = vpack.c.bf16 %v1327_v4, %v1326_v6  ;;  %v1328_v20 = vmul.f32 %v4897_v18, %v4875_v39 }
 0x63b   : > { %4445 = vmatprep.subr.bf16.mxu0 %v4778_v30 }
 0x63c   : > { %v1333_v31 = vpack.c.bf16 %v1329_v19, %v1328_v20 }
 0x63d   : > { %4438 = vmatmul.mubr.msk.bf16.vlgmr.msra.gmra.mrb[16].mxu0 %vm922_vm1, %v1331_v7 }
 0x63e   : > { %4441 = vmatprep.mubr.msk.bf16.mxu0 %vm922_vm1, %v1332_v9  ;;  %4446 = vmatpush3.bf16.msra.mxu0 %v4778_v30 }
 0x63f   : > { %4447 = vmatprep.subr.bf16.mxu0 %v4779_v32 }
 0x642   : > { %4448 = vmatpush3.bf16.msra.mxu0 %v4779_v32 }
 0x645   : > { %4442 = vmatmul.mubr.msk.bf16.gmra.mrb[20].mxu0 %vm922_vm1, %v1333_v31 }
 0x710   : > { %v4439_v21 = vpop.f32.mrb[16].mxu0 }
 0x711   : > { %v1392_v22 = vpop.f32.mrb[17].mxu0 }
 0x712   : > { %1431 = vrot.lane.b32.xlu0 %v1392_v22, %s5200_s21  ;;  %v4440_v23 = vpop.f32.mrb[18].mxu0 }
 0x713   : > { %v1395_v24 = vpop.f32.mrb[19].mxu0 }
 0x714   : > { %1433 = vrot.lane.b32.xlu1 %v1395_v24, %s5200_s21 }
 0x716   : > { %1435 = vrot.lane.b32.xlu0 %v4439_v21, %s5200_s21 }
 0x718   : > { %1437 = vrot.lane.b32.xlu1 %v4440_v23, %s5200_s21  ;;  %v4443_v25 = vpop.f32.mrb[20].mxu0 }
 0x719   : > { %v1408_v26 = vpop.f32.mrb[21].mxu0 }
 0x71a   : > { %1439 = vrot.lane.b32.xlu0 %v1408_v26, %s5200_s21  ;;  %v4444_v27 = vpop.f32.mrb[22].mxu0 }
 0x71b   : > { %v1411_v28 = vpop.f32.mrb[23].mxu0 }
 0x71c   : > { %1441 = vrot.lane.b32.xlu1 %v1411_v28, %s5200_s21 }
 0x71e   : > { %1443 = vrot.lane.b32.xlu0 %v4443_v25, %s5200_s21 }
 0x720   : > { %1445 = vrot.lane.b32.xlu1 %v4444_v27, %s5200_s21 }
 0x784   : > { %v1432_v38 = vpop.permute.xlu0 %1431 }
 0x785   : > { %v1455_v39 = vsel %vm808_vm0, %v5648_v11, %v1432_v38 }
 0x786   : > { %v5752_v51 = vmul.f32 0.70710677, %v1455_v39  ;;  %v1434_v40 = vpop.permute.xlu1 %1433  ;;  %v5807_v20 = vmul.f32 0.5, %v1455_v39 }
 0x787   : > { %v1456_v62 = vsel %vm808_vm0, %v5652_v13, %v1434_v40 }
 0x788   : > { %vm1479_vm2 = vcmp.ge.f32.partialorder %v5752_v51, 0.0  ;;  %v1487_v41 = vsub.f32 0.0, %v5752_v51  ;;  %v5758_v63 = vmul.f32 0.70710677, %v1456_v62  ;;  %v1436_v42 = vpop.permute.xlu0 %1435  ;;  %v5816_v23 = vmul.f32 0.5, %v1456_v62 }
 0x789   : > { %v1457_v43 = vsel %vm808_vm0, %v5646_v10, %v1436_v42 }
 0x78a   : > { %v1495_v11 = vsel %vm1479_vm2, %v5752_v51, %v1487_v41  ;;  %vm1480_vm3 = vcmp.ge.f32.partialorder %v5758_v63, 0.0  ;;  %v1488_v44 = vsub.f32 0.0, %v5758_v63  ;;  %v1438_v45 = vpop.permute.xlu1 %1437  ;;  %v5767_v46 = vmul.f32 0.70710677, %v1457_v43 }
 0x78b   : > { %v1503_v13 = vmul.f32 0.3275911, %v1495_v11  ;;  %v5771_v47 = vsel %vm808_vm0, %v5650_v12, %v1438_v45  ;;  %v1607_v48 = vsub.f32 0.0, %v1495_v11  ;;  %v5818_v24 = vmul.f32 0.5, %v1457_v43 }
 0x78c   : > { %v1496_v10 = vsel %vm1480_vm3, %v5758_v63, %v1488_v44  ;;  %v5777_v53 = vmul.f32 0.70710677, %v5771_v47  ;;  %v1440_v56 = vpop.permute.xlu0 %1439  ;;  %vm1481_vm4 = vcmp.ge.f32.partialorder %v5767_v46, 0.0  ;;  %v1489_v57 = vsub.f32 0.0, %v5767_v46 }
 0x78d   : > { %v1511_v54 = vadd.f32 1.0, %v1503_v13  ;;  %v1504_v55 = vmul.f32 0.3275911, %v1496_v10  ;;  %v1615_v29 = vmul.f32 %v1607_v48, %v1495_v11  ;;  %v5791_v60 = vsel %vm808_vm0, %v5656_v15, %v1440_v56 }
 0x78e   : > { %vm1482_vm5 = vcmp.ge.f32.partialorder %v5777_v53, 0.0  ;;  %v1490_v12 = vsub.f32 0.0, %v5777_v53  ;;  %v1442_v58 = vpop.permute.xlu1 %1441  ;;  %v1497_v50 = vsel %vm1481_vm4, %v5767_v46, %v1489_v57  ;;  %v1608_v61 = vsub.f32 0.0, %v1496_v10 }
 0x78f   : > { %4898 = vrcp.f32 %v1511_v54  ;;  %v1512_v52 = vadd.f32 1.0, %v1504_v55  ;;  %v1505_v0 = vmul.f32 0.3275911, %v1497_v50  ;;  %v5795_v1 = vsel %vm808_vm0, %v5660_v17, %v1442_v58 }
 0x790   : > { %v1498_v59 = vsel %vm1482_vm5, %v5777_v53, %v1490_v12  ;;  %v5798_v4 = vmul.f32 0.70710677, %v5791_v60  ;;  %v1623_v5 = vmul.f32 1.442695, %v1615_v29  ;;  %v5801_v7 = vmul.f32 0.70710677, %v5795_v1  ;;  %v1444_v8 = vpop.permute.xlu0 %1443 }
 0x791   : > { %4900 = vrcp.f32 %v1512_v52  ;;  %v1506_v2 = vmul.f32 0.3275911, %v1498_v59  ;;  %v1513_v3 = vadd.f32 1.0, %v1505_v0  ;;  %v1616_v15 = vmul.f32 %v1608_v61, %v1496_v10 }
 0x792   : > { %vm1483_vm6 = vcmp.ge.f32.partialorder %v5798_v4, 0.0  ;;  %v1491_v9 = vsub.f32 0.0, %v5798_v4  ;;  %v1609_v17 = vsub.f32 0.0, %v1497_v50  ;;  %vm1484_vm7 = vcmp.ge.f32.partialorder %v5801_v7, 0.0  ;;  %v1446_v19 = vpop.permute.xlu1 %1445 }
 0x793   : > { %v1514_v6 = vadd.f32 1.0, %v1506_v2  ;;  %4902 = vrcp.f32 %v1513_v3  ;;  %v1492_v18 = vsub.f32 0.0, %v5801_v7  ;;  %v1610_v31 = vsub.f32 0.0, %v1498_v59 }
 0x794   : > { %v1499_v21 = vsel %vm1483_vm6, %v5798_v4, %v1491_v9  ;;  %v5814_v22 = vsel %vm808_vm0, %v5654_v14, %v1444_v8  ;;  %v5830_v14 = vsel %vm808_vm0, %v5658_v16, %v1446_v19  ;;  %v1625_v33 = vmul.f32 1.442695, %v1616_v15 }
 0x795   : > { %4904 = vrcp.f32 %v1514_v6  ;;  %v1507_v25 = vmul.f32 0.3275911, %v1499_v21  ;;  %v1500_v26 = vsel %vm1484_vm7, %v5801_v7, %v1492_v18  ;;  %v5826_v30 = vmul.f32 0.70710677, %v5814_v22 }
 0x796   : > { %4906 = vpow2.f32 %v1623_v5  ;;  %v1508_v28 = vmul.f32 0.3275911, %v1500_v26  ;;  %v1617_v34 = vmul.f32 %v1609_v17, %v1497_v50  ;;  %v1618_v36 = vmul.f32 %v1610_v31, %v1498_v59 }
 0x797   : > { %v1515_v35 = vadd.f32 1.0, %v1507_v25  ;;  %vm1485_vm8 = vcmp.ge.f32.partialorder %v5826_v30, 0.0  ;;  %v1493_v49 = vsub.f32 0.0, %v5826_v30  ;;  %v1611_v40 = vsub.f32 0.0, %v1499_v21 }
 0x798   : > { %v1516_v37 = vadd.f32 1.0, %v1508_v28  ;;  %v5838_v62 = vmul.f32 0.70710677, %v5830_v14  ;;  %v1612_v41 = vsub.f32 0.0, %v1500_v26  ;;  %v1627_v11 = vmul.f32 1.442695, %v1617_v34 }
 0x799   : > { %v5823_v27 = vpop.eup %4898  ;;  %4908 = vrcp.f32 %v1515_v35  ;;  %v1501_v42 = vsel %vm1485_vm8, %v5826_v30, %v1493_v49  ;;  %v1629_v48 = vmul.f32 1.442695, %v1618_v36  ;;  %v1619_v57 = vmul.f32 %v1611_v40, %v1499_v21  ;;  %v4786_v30 = vld [vmem:[%s6598_s8 + $0x30] sm:$0xff]  }
 0x79a   : > { %v1535_v32 = vmul.f32 1.0614054, %v5823_v27  ;;  %4910 = vrcp.f32 %v1516_v37  ;;  %v1509_v44 = vmul.f32 0.3275911, %v1501_v42  ;;  %vm1486_vm9 = vcmp.ge.f32.partialorder %v5838_v62, 0.0  ;;  %4469 = vmatprep.subr.bf16.mxu1 %v4786_v30 }
 0x79b   : > { %v5835_v38 = vpop.eup %4900  ;;  %4912 = vpow2.f32 %v1625_v33  ;;  %v1494_v10 = vsub.f32 0.0, %v5838_v62  ;;  %v1620_v29 = vmul.f32 %v1612_v41, %v1500_v26  ;;  %v1613_v0 = vsub.f32 0.0, %v1501_v42  ;;  %4470 = vmatpush3.bf16.msra.mxu1 %v4786_v30 }
 0x79c   : > { %v1543_v39 = vadd.f32 -1.4531521, %v1535_v32  ;;  %v1536_v16 = vmul.f32 1.0614054, %v5835_v38  ;;  %v1517_v12 = vadd.f32 1.0, %v1509_v44  ;;  %v5860_v9 = vmul.f32 0.5, %v5771_v47 }
 0x79d   : > { %v5845_v45 = vpop.eup %4902  ;;  %v1502_v50 = vsel %vm1486_vm9, %v5838_v62, %v1494_v10  ;;  %v1631_v19 = vmul.f32 1.442695, %v1619_v57  ;;  %v1633_v28 = vmul.f32 1.442695, %v1620_v29  ;;  %v1621_v32 = vmul.f32 %v1613_v0, %v1501_v42  ;;  %v4790_v62 = vld [vmem:[%s6600_s10 + $0x10] sm:$0xff]  }
 0x79e   : > { %v1551_v43 = vmul.f32 %v5823_v27, %v1543_v39  ;;  %v1544_v13 = vadd.f32 -1.4531521, %v1536_v16  ;;  %v1537_v56 = vmul.f32 1.0614054, %v5845_v45  ;;  %4914 = vrcp.f32 %v1517_v12 }
 0x79f   : > { %v5849_v54 = vpop.eup %4904  ;;  %4916 = vpow2.f32 %v1627_v11  ;;  %v1510_v6 = vmul.f32 0.3275911, %v1502_v50  ;;  %v1614_v40 = vsub.f32 0.0, %v1502_v50 }
 0x7a0   : > { %v1559_v55 = vadd.f32 1.4214138, %v1551_v43  ;;  %v1552_v58 = vmul.f32 %v5835_v38, %v1544_v13  ;;  %v1538_v52 = vmul.f32 1.0614054, %v5849_v54  ;;  %v1545_v61 = vadd.f32 -1.4531521, %v1537_v56  ;;  %v4907_v2 = vpop.eup %4906 }
 0x7a1   : > { %4918 = vpow2.f32 %v1629_v48  ;;  %v1518_v31 = vadd.f32 1.0, %v1510_v6  ;;  %v1635_v13 = vmul.f32 1.442695, %v1621_v32 }
 0x7a2   : > { %v1567_v59 = vmul.f32 %v5823_v27, %v1559_v55  ;;  %v1560_v3 = vadd.f32 1.4214138, %v1552_v58  ;;  %v1546_v5 = vadd.f32 -1.4531521, %v1538_v52  ;;  %v1553_v15 = vmul.f32 %v5845_v45, %v1545_v61 }
 0x7a3   : > { %v5864_v21 = vpop.eup %4908  ;;  %4920 = vrcp.f32 %v1518_v31  ;;  %v1622_v52 = vmul.f32 %v1614_v40, %v1502_v50 }
 0x7a4   : > { %v1575_v8 = vadd.f32 -0.28449672, %v1567_v59  ;;  %v1568_v17 = vmul.f32 %v5835_v38, %v1560_v3  ;;  %v1554_v18 = vmul.f32 %v5849_v54, %v1546_v5  ;;  %v1561_v26 = vadd.f32 1.4214138, %v1553_v15  ;;  %v5867_v33 = vpop.eup %4910 }
 0x7a5   : > { %v1539_v47 = vmul.f32 1.0614054, %v5864_v21  ;;  %v4913_v36 = vpop.eup %4912  ;;  %v1540_v39 = vmul.f32 1.0614054, %v5867_v33  ;;  %4922 = vpow2.f32 %v1631_v19  ;;  %v1637_v31 = vmul.f32 1.442695, %v1622_v52 }
 0x7a6   : > { %v1583_v25 = vmul.f32 %v5823_v27, %v1575_v8  ;;  %v1576_v34 = vadd.f32 -0.28449672, %v1568_v17  ;;  %v1562_v35 = vadd.f32 1.4214138, %v1554_v18  ;;  %v1569_v49 = vmul.f32 %v5845_v45, %v1561_v26 }
 0x7a7   : > { %v1547_v43 = vadd.f32 -1.4531521, %v1539_v47  ;;  %v1548_v44 = vadd.f32 -1.4531521, %v1540_v39  ;;  %4924 = vpow2.f32 %v1633_v28 }
 0x7a8   : > { %v1591_v37 = vadd.f32 0.2548296, %v1583_v25  ;;  %v1584_v16 = vmul.f32 %v5835_v38, %v1576_v34  ;;  %v1570_v41 = vmul.f32 %v5849_v54, %v1562_v35  ;;  %v1577_v11 = vadd.f32 -0.28449672, %v1569_v49  ;;  %v5876_v56 = vpop.eup %4914 }
 0x7a9   : > { %v1555_v55 = vmul.f32 %v5864_v21, %v1547_v43  ;;  %v1556_v58 = vmul.f32 %v5867_v33, %v1548_v44  ;;  %v4917_v29 = vpop.eup %4916  ;;  %v1541_v0 = vmul.f32 1.0614054, %v5876_v56  ;;  %4926 = vpow2.f32 %v1635_v13 }
 0x7aa   : > { %v1599_v42 = vmul.f32 %v5823_v27, %v1591_v37  ;;  %v1592_v48 = vadd.f32 0.2548296, %v1584_v16  ;;  %v1578_v10 = vadd.f32 -0.28449672, %v1570_v41  ;;  %v1585_v12 = vmul.f32 %v5845_v45, %v1577_v11 }
 0x7ab   : > { %v1563_v61 = vadd.f32 1.4214138, %v1555_v55  ;;  %v4919_v3 = vpop.eup %4918  ;;  %v1564_v8 = vadd.f32 1.4214138, %v1556_v58  ;;  %v1549_v18 = vadd.f32 -1.4531521, %v1541_v0  ;;  %4928 = vpow2.f32 %v1637_v31 }
 0x7ac   : > { %v1639_v57 = vmul.f32 %v4907_v2, %v1599_v42  ;;  %v1600_v59 = vmul.f32 %v5835_v38, %v1592_v48  ;;  %v1586_v27 = vmul.f32 %v5849_v54, %v1578_v10  ;;  %v1593_v6 = vadd.f32 0.2548296, %v1585_v12 }
 0x7ad   : > { %v1571_v17 = vmul.f32 %v5864_v21, %v1563_v61  ;;  %v1572_v38 = vmul.f32 %v5867_v33, %v1564_v8  ;;  %v5886_v25 = vpop.eup %4920  ;;  %v1557_v34 = vmul.f32 %v5876_v56, %v1549_v18 }
 0x7ae   : > { %v1647_v5 = vsub.f32 1.0, %v1639_v57  ;;  %v1640_v15 = vmul.f32 %v4913_v36, %v1600_v59  ;;  %v1594_v2 = vadd.f32 0.2548296, %v1586_v27  ;;  %v1601_v50 = vmul.f32 %v5845_v45, %v1593_v6 }
 0x7af   : > { %v1579_v32 = vadd.f32 -0.28449672, %v1571_v17  ;;  %v1580_v36 = vadd.f32 -0.28449672, %v1572_v38  ;;  %v1542_v37 = vmul.f32 1.0614054, %v5886_v25  ;;  %v4923_v45 = vpop.eup %4922 }
 0x7b0   : > { %v1655_v19 = vsub.f32 0.0, %v1647_v5  ;;  %v1648_v26 = vsub.f32 1.0, %v1640_v15  ;;  %v1602_v28 = vmul.f32 %v5849_v54, %v1594_v2  ;;  %v1641_v47 = vmul.f32 %v4917_v29, %v1601_v50 }
 0x7b1   : > { %v1587_v16 = vmul.f32 %v5864_v21, %v1579_v32  ;;  %v1588_v54 = vmul.f32 %v5867_v33, %v1580_v36  ;;  %v1565_v43 = vadd.f32 1.4214138, %v1557_v34  ;;  %v1550_v42 = vadd.f32 -1.4531521, %v1542_v37  ;;  %v4925_v11 = vpop.eup %4924 }
 0x7b2   : > { %v1663_v35 = vsel %vm1479_vm2, %v1647_v5, %v1655_v19  ;;  %v1656_v39 = vsub.f32 0.0, %v1648_v26  ;;  %v1642_v40 = vmul.f32 %v4919_v3, %v1602_v28  ;;  %v1649_v41 = vsub.f32 1.0, %v1641_v47 }
 0x7b3   : > { %v1671_v49 = vadd.f32 1.0, %v1663_v35  ;;  %v1595_v13 = vadd.f32 0.2548296, %v1587_v16  ;;  %v1596_v55 = vadd.f32 0.2548296, %v1588_v54  ;;  %v1573_v57 = vmul.f32 %v5876_v56, %v1565_v43  ;;  %v4927_v59 = vpop.eup %4926 }
 0x7b4   : > { %v1664_v51 = vsel %vm1480_vm3, %v1648_v26, %v1656_v39  ;;  %v1650_v44 = vsub.f32 1.0, %v1642_v40  ;;  %v1657_v10 = vsub.f32 0.0, %v1649_v41  ;;  %v1558_v29 = vmul.f32 %v5886_v25, %v1550_v42 }
 0x7b5   : > { %v1672_v48 = vadd.f32 1.0, %v1664_v51  ;;  %v1679_v12 = vmul.f32 %v1671_v49, %v5807_v20  ;;  %v1603_v52 = vmul.f32 %v5864_v21, %v1595_v13  ;;  %v1604_v61 = vmul.f32 %v5867_v33, %v1596_v55  ;;  %v4929_v28 = vpop.eup %4928  ;;  %v3950_v55 = vld [vmem:[#allocation6] ss:$0 sm:$0xff] }
 0x7b6   : > { %v1658_v58 = vsub.f32 0.0, %v1650_v44  ;;  %v1665_v63 = vsel %vm1481_vm4, %v1649_v41, %v1657_v10  ;;  %v1581_v0 = vadd.f32 -0.28449672, %v1573_v57  ;;  %v1566_v20 = vadd.f32 1.4214138, %v1558_v29  ;;  %v4791_v10 = vld [vmem:[%s6600_s10 + $0x18] sm:$0xff]  }
 0x7b7   : > { %v1680_v27 = vmul.f32 %v1672_v48, %v5816_v23  ;;  %v1673_v3 = vadd.f32 1.0, %v1665_v63  ;;  %v1643_v6 = vmul.f32 %v4923_v45, %v1603_v52  ;;  %v1644_v21 = vmul.f32 %v4925_v11, %v1604_v61  ;;  %v4787_v48 = vld [vmem:[%s6598_s8 + $0x38] sm:$0xff]   ;;  %v5026_v57 = vld [vmem:[%s5457_s16] sm:$0xff]   ;;  %v5027_v29 = vld [vmem:[%s5457_s16 + $0x8] sm:$0xff]  }
 0x7b8   : > { %v1666_v5 = vsel %vm1482_vm5, %v1650_v44, %v1658_v58  ;;  %v1589_v2 = vmul.f32 %v5876_v56, %v1581_v0  ;;  %v1574_v23 = vmul.f32 %v5886_v25, %v1566_v20  ;;  %v1467_v47 = vmul.f32 0.5, %v5791_v60  ;;  %4471 = vmatprep.subr.bf16.mxu1 %v4787_v48 }
 0x7b9   : > { %v1687_v8 = vpack.c.bf16 %v1680_v27, %v1679_v12  ;;  %v1674_v15 = vadd.f32 1.0, %v1666_v5  ;;  %v1651_v17 = vsub.f32 1.0, %v1643_v6  ;;  %v1681_v46 = vmul.f32 %v1673_v3, %v5818_v24  ;;  %4472 = vmatpush3.bf16.msra.mxu1 %v4787_v48 }
 0x7ba   : > { %v1652_v33 = vsub.f32 1.0, %v1644_v21  ;;  %v1597_v19 = vadd.f32 0.2548296, %v1589_v2  ;;  %v1582_v50 = vadd.f32 -0.28449672, %v1574_v23  ;;  %v1468_v36 = vmul.f32 0.5, %v5795_v1 }
 0x7bb   : > { %v1682_v18 = vmul.f32 %v1674_v15, %v5860_v9  ;;  %4449 = vmatprep.mubr.msk.bf16.mxu0 %vm1714_vm10, %v1687_v8  ;;  %v1659_v53 = vsub.f32 0.0, %v1651_v17  ;;  %v1469_v42 = vmul.f32 0.5, %v5814_v22  ;;  %v1470_v11 = vmul.f32 0.5, %v5830_v14  ;;  %v4788_v22 = vld [vmem:[%s6600_s10] sm:$0xff]   ;;  %v4789_v14 = vld [vmem:[%s6600_s10 + $0x8] sm:$0xff]  }
 0x7bc   : > { %v1660_v31 = vsub.f32 0.0, %v1652_v33  ;;  %v1605_v26 = vmul.f32 %v5876_v56, %v1597_v19  ;;  %v1590_v34 = vmul.f32 %v5886_v25, %v1582_v50  ;;  %4481 = vmatprep.subr.bf16.mxu0 %v4788_v22  ;;  %v496_v12 = vunpack.c.l.bf16 %v5026_v57 }
 0x7bd   : > { %v1688_v38 = vpack.c.bf16 %v1682_v18, %v1681_v46  ;;  %v1667_v32 = vsel %vm1483_vm6, %v1651_v17, %v1659_v53  ;;  %v497_v27 = vunpack.c.h.bf16 %v5026_v57  ;;  %v498_v0 = vunpack.c.l.bf16 %v5027_v29  ;;  %v5029_v53 = vld [vmem:[%s5457_s16 + $0x10] sm:$0xff]  }
 0x7be   : > { %v1675_v35 = vadd.f32 1.0, %v1667_v32  ;;  %v1668_v24 = vsel %vm1484_vm7, %v1652_v33, %v1660_v31  ;;  %v1645_v9 = vmul.f32 %v4927_v59, %v1605_v26  ;;  %v1598_v45 = vadd.f32 0.2548296, %v1590_v34  ;;  %v5028_v33 = vld [vmem:[%s5457_s16 + $0x18] sm:$0xff]  }
 0x7bf   : > { %4450 = vmatmul.mubr.msk.bf16.vlgmr.msra.gmra.mrb[24].mxu0 %vm1714_vm10, %v1688_v38  ;;  %v1676_v37 = vadd.f32 1.0, %v1668_v24  ;;  %v499_v59 = vunpack.c.h.bf16 %v5027_v29  ;;  %v503_v19 = vunpack.c.h.bf16 %v5028_v33  ;;  %v500_v50 = vunpack.c.l.bf16 %v5029_v53 }
 0x7c0   : > { %v1653_v56 = vsub.f32 1.0, %v1645_v9  ;;  %v1683_v49 = vmul.f32 %v1675_v35, %v1467_v47  ;;  %v1606_v4 = vmul.f32 %v5886_v25, %v1598_v45  ;;  %4482 = vmatpush3.bf16.msra.mxu0 %v4788_v22  ;;  %v501_v26 = vunpack.c.h.bf16 %v5029_v53 }
 0x7c1   : > { %v1684_v39 = vmul.f32 %v1676_v37, %v1468_v36  ;;  %4483 = vmatprep.subr.bf16.mxu0 %v4789_v14 }
 0x7c2   : > { %v1661_v40 = vsub.f32 0.0, %v1653_v56  ;;  %v1646_v41 = vmul.f32 %v4929_v28, %v1606_v4  ;;  %v502_v28 = vunpack.c.l.bf16 %v5028_v33  ;;  %v4794_v4 = vld [vmem:[%s6600_s10 + $0x30] sm:$0xff]   ;;  %v4799_v33 = vld [vmem:[%s6593_s3 + $0x48] sm:$0xff]  }
 0x7c3   : > { %v1689_v16 = vpack.c.bf16 %v1684_v39, %v1683_v49  ;;  %v4792_v49 = vld [vmem:[%s6600_s10 + $0x20] sm:$0xff]   ;;  %v4793_v39 = vld [vmem:[%s6600_s10 + $0x28] sm:$0xff]  }
 0x7c4   : > { %v1669_v7 = vsel %vm1485_vm8, %v1653_v56, %v1661_v40  ;;  %v1654_v54 = vsub.f32 1.0, %v1646_v41  ;;  %4484 = vmatpush3.bf16.msra.mxu0 %v4789_v14  ;;  %v4795_v40 = vld [vmem:[%s6600_s10 + $0x38] sm:$0xff]   ;;  %v4797_v41 = vld [vmem:[%s6593_s3 + $0x40] sm:$0xff]  }
 0x7c5   : > { %4453 = vmatprep.mubr.msk.bf16.mxu0 %vm1714_vm10, %v1689_v16  ;;  %v1677_v60 = vadd.f32 1.0, %v1669_v7  ;;  %4485 = vmatprep.subr.bf16.mxu0 %v4790_v62  ;;  %v4796_v16 = vld [vmem:[%s6591_s1 + $0x40] sm:$0xff]   ;;  %v4798_v7 = vld [vmem:[%s6591_s1 + $0x48] sm:$0xff]  }
 0x7c6   : > { %v1662_v43 = vsub.f32 0.0, %v1654_v54  ;;  %4505 = vmatprep.subr.bf16.mxu1 %v4796_v16 }
 0x7c7   : > { %v1685_v25 = vmul.f32 %v1677_v60, %v1469_v42  ;;  %v4804_v60 = vld [vmem:[%s6591_s1 + $0x60] sm:$0xff]  }
 0x7c8   : > { %v1670_v1 = vsel %vm1486_vm9, %v1654_v54, %v1662_v43  ;;  %4486 = vmatpush3.bf16.msra.mxu0 %v4790_v62  ;;  %v4800_v54 = vld [vmem:[%s6591_s1 + $0x50] sm:$0xff]   ;;  %v4802_v43 = vld [vmem:[%s6591_s1 + $0x58] sm:$0xff]   ;;  %v3957_v42 = vld [vmem:[#allocation7] ss:$0 sm:$0xff] }
 0x7c9   : > { %v1678_v51 = vadd.f32 1.0, %v1670_v1  ;;  %4487 = vmatprep.subr.bf16.mxu0 %v4791_v10  ;;  %v4806_v1 = vld [vmem:[%s6591_s1 + $0x68] sm:$0xff]  }
 0x7cb   : > { %v1686_v44 = vmul.f32 %v1678_v51, %v1470_v11 }
 0x7cc   : > { %4488 = vmatpush3.bf16.msra.mxu0 %v4791_v10 }
 0x7cd   : > { %v1690_v13 = vpack.c.bf16 %v1686_v44, %v1685_v25  ;;  %4489 = vmatprep.subr.bf16.mxu0 %v4792_v49 }
 0x7cf   : > { %4454 = vmatmul.mubr.msk.bf16.gmra.mrb[28].mxu0 %vm1714_vm10, %v1690_v13 }
 0x7d0   : > { %4490 = vmatpush3.bf16.msra.mxu0 %v4792_v49 }
 0x7d1   : > { %4491 = vmatprep.subr.bf16.mxu0 %v4793_v39 }
 0x7d4   : > { %4492 = vmatpush3.bf16.msra.mxu0 %v4793_v39 }
 0x7d5   : > { %4493 = vmatprep.subr.bf16.mxu0 %v4794_v4 }
 0x7d8   : > { %4494 = vmatpush3.bf16.msra.mxu0 %v4794_v4 }
 0x7d9   : > { %4495 = vmatprep.subr.bf16.mxu0 %v4795_v40 }
 0x7dc   : > { %4496 = vmatpush3.bf16.msra.mxu0 %v4795_v40 }
 0x7dd   : > { %4529 = vmatprep.subr.bf16.mxu0 %v4797_v41 }
 0x892   : > { %v4451_v58 = vpop.f32.mrb[24].mxu0 }
 0x893   : > { %v1761_v52 = vpop.f32.mrb[25].mxu0  ;;  %v1770_v3 = vadd.f32 %v4451_v58, %v3950_v55 }
 0x894   : > { %v1762_v63 = vadd.f32 %v3950_v55, %v1761_v52  ;;  %v4452_v61 = vpop.f32.mrb[26].mxu0 }
 0x895   : > { %v1773_v5 = vadd.f32 %v4452_v61, %v3950_v55  ;;  %v1764_v6 = vpop.f32.mrb[27].mxu0  ;;  %v5956_v2 = vadd.f32 %v1770_v3, %v498_v0 }
 0x896   : > { %v5950_v20 = vadd.f32 %v1762_v63, %v496_v12  ;;  %v1765_v8 = vadd.f32 %v3950_v55, %v1764_v6 }
 0x897   : > { %v5952_v15 = vadd.f32 %v1773_v5, %v499_v59 }
 0x898   : > { %v5954_v21 = vadd.f32 %v1765_v8, %v497_v27 }
 0x899   : > { %v1801_v23 = vpack.c.bf16 %v5952_v15, %v5956_v2 }
 0x89a   : > { %v1800_v17 = vpack.c.bf16 %v5954_v21, %v5950_v20 }
 0x89c   : > { %4473 = vmatprep.mubr.bf16.mxu1 %v1800_v17 }
 0x89d   : > { %4474 = vmatmul.mubr.bf16.vlgmr.msra.gmra.mrb[24].mxu1 %v1801_v23 }
 0x89e   : > { %4506 = vmatpush3.bf16.msra.mxu1 %v4796_v16  ;;  %v4803_v16 = vld [vmem:[%s6593_s3 + $0x58] sm:$0xff]  }
 0x89f   : > { %4507 = vmatprep.subr.bf16.mxu1 %v4798_v7 }
 0x8a2   : > { %v4455_v46 = vpop.f32.mrb[28].mxu0  ;;  %4508 = vmatpush3.bf16.msra.mxu1 %v4798_v7 }
 0x8a3   : > { %v1777_v18 = vpop.f32.mrb[29].mxu0  ;;  %v1786_v32 = vadd.f32 %v4455_v46, %v3950_v55  ;;  %4509 = vmatprep.subr.bf16.mxu1 %v4800_v54 }
 0x8a4   : > { %v1778_v38 = vadd.f32 %v3950_v55, %v1777_v18  ;;  %v4456_v31 = vpop.f32.mrb[30].mxu0 }
 0x8a5   : > { %v1789_v34 = vadd.f32 %v4456_v31, %v3950_v55  ;;  %v1780_v35 = vpop.f32.mrb[31].mxu0  ;;  %v5970_v37 = vadd.f32 %v1786_v32, %v502_v28 }
 0x8a6   : > { %v1781_v24 = vadd.f32 %v3950_v55, %v1780_v35  ;;  %v5966_v47 = vadd.f32 %v1778_v38, %v500_v50  ;;  %4510 = vmatpush3.bf16.msra.mxu1 %v4800_v54 }
 0x8a7   : > { %v5964_v9 = vadd.f32 %v1789_v34, %v503_v19  ;;  %4511 = vmatprep.subr.bf16.mxu1 %v4802_v43  ;;  %v4801_v34 = vld [vmem:[%s6593_s3 + $0x50] sm:$0xff]  }
 0x8a8   : > { %v5968_v36 = vadd.f32 %v1781_v24, %v501_v26 }
 0x8a9   : > { %v1803_v56 = vpack.c.bf16 %v5964_v9, %v5970_v37 }
 0x8aa   : > { %v1802_v45 = vpack.c.bf16 %v5968_v36, %v5966_v47  ;;  %4512 = vmatpush3.bf16.msra.mxu1 %v4802_v43 }
 0x8ab   : > { %4513 = vmatprep.subr.bf16.mxu1 %v4804_v60 }
 0x8ac   : > { %4477 = vmatprep.mubr.bf16.mxu1 %v1802_v45 }
 0x8ad   : > { %4478 = vmatmul.mubr.bf16.gmra.mrb[28].mxu1 %v1803_v56 }
 0x8ae   : > { %4514 = vmatpush3.bf16.msra.mxu1 %v4804_v60 }
 0x8af   : > { %4515 = vmatprep.subr.bf16.mxu1 %v4806_v1 }
 0x8b2   : > { %4516 = vmatpush3.bf16.msra.mxu1 %v4806_v1 }
 0x970   : > { %v4475_v11 = vpop.f32.mrb[24].mxu1 }
 0x971   : > { %v1918_v51 = vadd.f32 %v4475_v11, %v3957_v42  ;;  %v1909_v25 = vpop.f32.mrb[25].mxu1  ;;  %v4805_v11 = vld [vmem:[%s6593_s3 + $0x60] sm:$0xff]  }
 0x972   : > { %v1910_v44 = vadd.f32 %v3957_v42, %v1909_v25  ;;  %v4476_v13 = vpop.f32.mrb[26].mxu1 }
 0x973   : > { %v1942_v30 = vadd.f32 3.0, %v1918_v51  ;;  %v1921_v48 = vadd.f32 %v4476_v13, %v3957_v42  ;;  %v1912_v22 = vpop.f32.mrb[27].mxu1 }
 0x974   : > { %v1940_v14 = vadd.f32 3.0, %v1910_v44  ;;  %v1913_v62 = vadd.f32 %v3957_v42, %v1912_v22  ;;  %v4807_v22 = vld [vmem:[%s6593_s3 + $0x68] sm:$0xff]  }
 0x975   : > { %v1950_v10 = vmax.f32 %v1942_v30, 0.0  ;;  %v1943_v55 = vadd.f32 3.0, %v1921_v48 }
 0x976   : > { %v1948_v57 = vmax.f32 %v1940_v14, 0.0  ;;  %v1941_v12 = vadd.f32 3.0, %v1913_v62 }
 0x977   : > { %v1958_v58 = vmin.f32 %v1950_v10, 6.0  ;;  %v1951_v52 = vmax.f32 %v1943_v55, 0.0  ;;  %v4809_v10 = vld [vmem:[%s6593_s3 + $0x70] sm:$0xff]   ;;  %v4810_v55 = vld [vmem:[%s6591_s1 + $0x78] sm:$0xff]  }
 0x978   : > { %v1956_v29 = vmin.f32 %v1948_v57, 6.0  ;;  %v1949_v59 = vmax.f32 %v1941_v12, 0.0  ;;  %v4811_v57 = vld [vmem:[%s6593_s3 + $0x78] sm:$0xff]   ;;  %v3966_v12 = vld [vmem:[#allocation9] ss:$0 sm:$0xff] }
 0x979   : > { %v1966_v27 = vmul.f32 %v1958_v58, %v1918_v51  ;;  %v1959_v63 = vmin.f32 %v1951_v52, 6.0 }
 0x97a   : > { %v1964_v61 = vmul.f32 %v1956_v29, %v1910_v44  ;;  %v1957_v0 = vmin.f32 %v1949_v59, 6.0 }
 0x97b   : > { %v1967_v3 = vmul.f32 %v1959_v63, %v1921_v48  ;;  %v1974_v6 = vmul.f32 0.16666667, %v1966_v27 }
 0x97c   : > { %v1965_v5 = vmul.f32 %v1957_v0, %v1913_v62  ;;  %v1972_v17 = vmul.f32 0.16666667, %v1964_v61  ;;  %v4808_v62 = vld [vmem:[%s6591_s1 + $0x70] sm:$0xff]  }
 0x97d   : > { %v1975_v8 = vmul.f32 0.16666667, %v1967_v3  ;;  %4517 = vmatprep.subr.bf16.mxu1 %v4808_v62 }
 0x97e   : > { %v1973_v23 = vmul.f32 0.16666667, %v1965_v5  ;;  %4518 = vmatpush3.bf16.msra.mxu1 %v4808_v62 }
 0x97f   : > { %v1981_v46 = vpack.c.bf16 %v1975_v8, %v1974_v6  ;;  %4519 = vmatprep.subr.bf16.mxu1 %v4810_v55 }
 0x980   : > { %v1980_v18 = vpack.c.bf16 %v1973_v23, %v1972_v17  ;;  %v4479_v19 = vpop.f32.mrb[28].mxu1 }
 0x981   : > { %v1934_v53 = vadd.f32 %v4479_v19, %v3957_v42  ;;  %v1925_v50 = vpop.f32.mrb[29].mxu1 }
 0x982   : > { %4497 = vmatprep.mubr.bf16.mxu0 %v1980_v18  ;;  %v1926_v38 = vadd.f32 %v3957_v42, %v1925_v50  ;;  %v4480_v31 = vpop.f32.mrb[30].mxu1  ;;  %4520 = vmatpush3.bf16.msra.mxu1 %v4810_v55 }
 0x983   : > { %4498 = vmatmul.mubr.bf16.vlgmr.msra.gmra.mrb[32].mxu0 %v1981_v46  ;;  %v1946_v26 = vadd.f32 3.0, %v1934_v53  ;;  %v1937_v28 = vadd.f32 %v4480_v31, %v3957_v42  ;;  %v1928_v32 = vpop.f32.mrb[31].mxu1 }
 0x984   : > { %4530 = vmatpush3.bf16.msra.mxu0 %v4797_v41  ;;  %v1944_v35 = vadd.f32 3.0, %v1926_v38  ;;  %v1929_v24 = vadd.f32 %v3957_v42, %v1928_v32  ;;  %v3991_v32 = vld [vmem:[#allocation2 + $0x1] ss:$0 sm:$0xff] }
 0x985   : > { %4531 = vmatprep.subr.bf16.mxu0 %v4799_v33  ;;  %v1954_v45 = vmax.f32 %v1946_v26, 0.0  ;;  %v1947_v56 = vadd.f32 3.0, %v1937_v28 }
 0x986   : > { %v1952_v49 = vmax.f32 %v1944_v35, 0.0  ;;  %v1945_v39 = vadd.f32 3.0, %v1929_v24 }
 0x987   : > { %v1962_v4 = vmin.f32 %v1954_v45, 6.0  ;;  %v1955_v40 = vmax.f32 %v1947_v56, 0.0 }
 0x988   : > { %4532 = vmatpush3.bf16.msra.mxu0 %v4799_v33  ;;  %v1960_v41 = vmin.f32 %v1952_v49, 6.0  ;;  %v1953_v7 = vmax.f32 %v1945_v39, 0.0 }
 0x989   : > { %4533 = vmatprep.subr.bf16.mxu0 %v4801_v34  ;;  %v1970_v54 = vmul.f32 %v1962_v4, %v1934_v53  ;;  %v1963_v43 = vmin.f32 %v1955_v40, 6.0 }
 0x98a   : > { %v1968_v60 = vmul.f32 %v1960_v41, %v1926_v38  ;;  %v1961_v1 = vmin.f32 %v1953_v7, 6.0 }
 0x98b   : > { %v1971_v42 = vmul.f32 %v1963_v43, %v1937_v28  ;;  %v1978_v25 = vmul.f32 0.16666667, %v1970_v54 }
 0x98c   : > { %4534 = vmatpush3.bf16.msra.mxu0 %v4801_v34  ;;  %v1969_v51 = vmul.f32 %v1961_v1, %v1929_v24  ;;  %v1976_v13 = vmul.f32 0.16666667, %v1968_v60  ;;  %v4016_v34 = vld [vmem:[#allocation4 + $0x1] ss:$0 sm:$0xff] }
 0x98d   : > { %4535 = vmatprep.subr.bf16.mxu0 %v4803_v16  ;;  %v1979_v44 = vmul.f32 0.16666667, %v1971_v42 }
 0x98e   : > { %v1977_v30 = vmul.f32 0.16666667, %v1969_v51 }
 0x98f   : > { %v1983_v48 = vpack.c.bf16 %v1979_v44, %v1978_v25 }
 0x990   : > { %4536 = vmatpush3.bf16.msra.mxu0 %v4803_v16  ;;  %v1982_v14 = vpack.c.bf16 %v1977_v30, %v1976_v13 }
 0x991   : > { %4537 = vmatprep.subr.bf16.mxu0 %v4805_v11 }
 0x992   : > { %4501 = vmatprep.mubr.bf16.mxu0 %v1982_v14 }
 0x993   : > { %4502 = vmatmul.mubr.bf16.gmra.mrb[36].mxu0 %v1983_v48 }
 0x994   : > { %4538 = vmatpush3.bf16.msra.mxu0 %v4805_v11 }
 0x995   : > { %4539 = vmatprep.subr.bf16.mxu0 %v4807_v22 }
 0x998   : > { %4540 = vmatpush3.bf16.msra.mxu0 %v4807_v22 }
 0x999   : > { %4541 = vmatprep.subr.bf16.mxu0 %v4809_v10 }
 0x99c   : > { %4542 = vmatpush3.bf16.msra.mxu0 %v4809_v10 }
 0x99d   : > { %4543 = vmatprep.subr.bf16.mxu0 %v4811_v57 }
 0x9a0   : > { %4544 = vmatpush3.bf16.msra.mxu0 %v4811_v57 }
 0xa56   : > { %v4499_v58 = vpop.f32.mrb[32].mxu0 }
 0xa57   : > { %v2089_v52 = vpop.f32.mrb[33].mxu0  ;;  %v2098_v27 = vadd.f32 %v4499_v58, %v3966_v12 }
 0xa58   : > { %v2090_v29 = vadd.f32 %v3966_v12, %v2089_v52  ;;  %v4500_v59 = vpop.f32.mrb[34].mxu0 }
 0xa59   : > { %v2101_v63 = vadd.f32 %v4500_v59, %v3966_v12  ;;  %v2092_v61 = vpop.f32.mrb[35].mxu0  ;;  %v6046_v8 = vadd.f32 %v2098_v27, %v5956_v2 }
 0xa5a   : > { %v2093_v0 = vadd.f32 %v3966_v12, %v2092_v61  ;;  %v6040_v5 = vadd.f32 %v2090_v29, %v5950_v20 }
 0xa5b   : > { %v6037_v3 = vadd.f32 %v2101_v63, %v5952_v15 }
 0xa5c   : > { %v6043_v6 = vadd.f32 %v2093_v0, %v5954_v21 }
 0xa5d   : > { %v2129_v23 = vpack.c.bf16 %v6037_v3, %v6046_v8 }
 0xa5e   : > { %v2128_v17 = vpack.c.bf16 %v6043_v6, %v6040_v5 }
 0xa60   : > { %4521 = vmatprep.mubr.bf16.mxu1 %v2128_v17  ;;  %4545 = vmatprep.mubr.bf16.mxu0 %v2128_v17 }
 0xa61   : > { %4522 = vmatmul.mubr.bf16.vlgmr.msra.gmra.mrb[32].mxu1 %v2129_v23  ;;  %4546 = vmatmul.mubr.bf16.vlgmr.msra.gmra.mrb[40].mxu0 %v2129_v23 }
 0xa66   : > { %v4503_v15 = vpop.f32.mrb[36].mxu0 }
 0xa67   : > { %v2105_v46 = vpop.f32.mrb[37].mxu0  ;;  %v2114_v33 = vadd.f32 %v4503_v15, %v3966_v12 }
 0xa68   : > { %v2106_v20 = vadd.f32 %v3966_v12, %v2105_v46  ;;  %v4504_v18 = vpop.f32.mrb[38].mxu0  ;;  %v4031_v46 = vld [vmem:[%s6595_s5 + $0x90] sm:$0xff] }
 0xa69   : > { %v2117_v21 = vadd.f32 %v4504_v18, %v3966_v12  ;;  %v2108_v19 = vpop.f32.mrb[39].mxu0  ;;  %v6062_v31 = vadd.f32 %v2114_v33, %v5970_v37 }
 0xa6a   : > { %v2109_v53 = vadd.f32 %v3966_v12, %v2108_v19  ;;  %v6056_v50 = vadd.f32 %v2106_v20, %v5966_v47  ;;  %v4029_v19 = vld [vmem:[%s6595_s5 + $0x80] sm:$0xff] }
 0xa6b   : > { %v6053_v2 = vadd.f32 %v2117_v21, %v5964_v9 }
 0xa6c   : > { %v6059_v38 = vadd.f32 %v2109_v53, %v5968_v36 }
 0xa6d   : > { %v2131_v28 = vpack.c.bf16 %v6053_v2, %v6062_v31 }
 0xa6e   : > { %v2130_v26 = vpack.c.bf16 %v6059_v38, %v6056_v50 }
 0xa70   : > { %4525 = vmatprep.mubr.bf16.mxu1 %v2130_v26  ;;  %4549 = vmatprep.mubr.bf16.mxu0 %v2130_v26 }
 0xa71   : > { %4526 = vmatmul.mubr.bf16.gmra.mrb[36].mxu1 %v2131_v28  ;;  %4550 = vmatmul.mubr.bf16.gmra.mrb[44].mxu0 %v2131_v28  ;;  %v4030_v28 = vld [vmem:[%s6595_s5 + $0x88] sm:$0xff] }
 0xb34   : > { %v4523_v9 = vpop.f32.mrb[32].mxu1  ;;  %v4547_v47 = vpop.f32.mrb[40].mxu0 }
 0xb35   : > { %v2239_v35 = vpop.f32.mrb[33].mxu1  ;;  %v2377_v36 = vpop.f32.mrb[41].mxu0  ;;  %v2248_v37 = vadd.f32 %v4523_v9, %v3991_v32  ;;  %v2386_v56 = vadd.f32 %v4547_v47, %v4016_v34 }
 0xb36   : > { %v4524_v24 = vpop.f32.mrb[34].mxu1  ;;  %v4548_v45 = vpop.f32.mrb[42].mxu0  ;;  %v2240_v16 = vadd.f32 %v3991_v32, %v2239_v35  ;;  %v2378_v41 = vadd.f32 %v4016_v34, %v2377_v36  ;;  %v4032_v36 = vld [vmem:[%s6595_s5 + $0x98] sm:$0xff] }
 0xb37   : > { %v2251_v49 = vadd.f32 %v4524_v24, %v3991_v32  ;;  %v2389_v39 = vadd.f32 %v4548_v45, %v4016_v34  ;;  %v2242_v4 = vpop.f32.mrb[35].mxu1  ;;  %v2380_v40 = vpop.f32.mrb[43].mxu0 }
 0xb38   : > { %v2243_v7 = vadd.f32 %v3991_v32, %v2242_v4  ;;  %v2381_v54 = vadd.f32 %v4016_v34, %v2380_v40  ;;  %v4035_v40 = vld [vmem:[%s6595_s5 + $0xb0] sm:$0xff] }
 0xb39   : > { %v6068_v43 = vpack.c.bf16 %v2251_v49, %v2248_v37  ;;  %v6070_v60 = vpack.c.bf16 %v2389_v39, %v2386_v56 }
 0xb3a   : > { %v6072_v1 = vpack.c.bf16 %v2243_v7, %v2240_v16  ;;  %v6074_v42 = vpack.c.bf16 %v2381_v54, %v2378_v41 }
 0xb3b   : > { %v2432_v51 = vsel %vm808_vm0, %v6070_v60, 0 }
 0xb3c   : > { %4685 = vmatprep.subr.msk.bf16.mxu1 %vm808_vm0, %v6074_v42  ;;  %4561 = vmatprep.mubr.msk.bf16.mxu1 %vm808_vm0, %v6072_v1  ;;  %v2429_v11 = vsel %vm808_vm0, %v6074_v42, 0 }
 0xb3d   : > { %4554 = vmatpush3.bf16.xpose.msra.mxu1 %v2429_v11  ;;  %v4033_v11 = vld [vmem:[%s6595_s5 + $0xa0] sm:$0xff] }
 0xb3e   : > { %4686 = vmatprep.subr.msk.bf16.mxu1 %vm808_vm0, %v6070_v60 }
 0xb44   : > { %v4527_v25 = vpop.f32.mrb[36].mxu1  ;;  %v4551_v44 = vpop.f32.mrb[44].mxu0 }
 0xb45   : > { %4556 = vmatpush3.bf16.xpose.msra.mxu1 %v2432_v51  ;;  %v2255_v13 = vpop.f32.mrb[37].mxu1  ;;  %v2393_v30 = vpop.f32.mrb[45].mxu0  ;;  %v2264_v14 = vadd.f32 %v4527_v25, %v3991_v32  ;;  %v2402_v62 = vadd.f32 %v4551_v44, %v4016_v34 }
 0xb46   : > { %v4528_v48 = vpop.f32.mrb[38].mxu1  ;;  %v4552_v22 = vpop.f32.mrb[46].mxu0  ;;  %v2256_v58 = vadd.f32 %v3991_v32, %v2255_v13  ;;  %v2394_v52 = vadd.f32 %v4016_v34, %v2393_v30  ;;  %v4036_v30 = vld [vmem:[%s6595_s5 + $0xb8] sm:$0xff] }
 0xb47   : > { %v2267_v10 = vadd.f32 %v4528_v48, %v3991_v32  ;;  %v2405_v55 = vadd.f32 %v4552_v22, %v4016_v34  ;;  %v2258_v57 = vpop.f32.mrb[39].mxu1  ;;  %v2396_v12 = vpop.f32.mrb[47].mxu0 }
 0xb48   : > { %v2259_v29 = vadd.f32 %v3991_v32, %v2258_v57  ;;  %v2397_v59 = vadd.f32 %v4016_v34, %v2396_v12 }
 0xb49   : > { %v6086_v27 = vpack.c.bf16 %v2267_v10, %v2264_v14  ;;  %v6088_v63 = vpack.c.bf16 %v2405_v55, %v2402_v62  ;;  %v4034_v14 = vld [vmem:[%s6595_s5 + $0xa8] sm:$0xff] }
 0xb4a   : > { %v6090_v61 = vpack.c.bf16 %v2259_v29, %v2256_v58  ;;  %v6092_v0 = vpack.c.bf16 %v2397_v59, %v2394_v52 }
 0xb4b   : > { %v2438_v23 = vsel %vm808_vm0, %v6088_v63, 0 }
 0xb4c   : > { %4687 = vmatprep.subr.msk.bf16.mxu1 %vm808_vm0, %v6092_v0  ;;  %v2435_v17 = vsel %vm808_vm0, %v6092_v0, 0 }
 0xb4d   : > { %4558 = vmatpush3.bf16.xpose.msra.mxu1 %v2435_v17 }
 0xb4e   : > { %4688 = vmatprep.subr.msk.bf16.mxu1 %vm808_vm0, %v6088_v63 }
 0xb55   : > { %4560 = vmatpush3.bf16.xpose.msra.mxu1 %v2438_v23 }
 0xb5c   : > { %4562 = vmatmul.mubr.msk.bf16.vlgmr.msra.gmra.mrb[40].mxu1 %vm808_vm0, %v6068_v43 }
 0xb5d   : > { %4565 = vmatprep.mubr.msk.bf16.mxu1 %vm808_vm0, %v6090_v61 }
 0xb64   : > { %4566 = vmatmul.mubr.msk.bf16.gmra.mrb[44].mxu1 %vm808_vm0, %v6086_v27 }
 0xc2f   : > { %v4563_v15 = vpop.f32.mrb[40].mxu1 }
 0xc30   : > { %v2507_v20 = vmul.f32 0.25, %v4563_v15  ;;  %v2474_v18 = vpop.f32.mrb[41].mxu1 }
 0xc31   : > { %v2505_v33 = vmul.f32 0.25, %v2474_v18  ;;  %v4564_v21 = vpop.f32.mrb[42].mxu1 }
 0xc32   : > { %v2477_v53 = vpop.f32.mrb[43].mxu1  ;;  %v2524_v26 = vadd.f32 %v4031_v46, %v2507_v20  ;;  %v2508_v32 = vmul.f32 0.25, %v4564_v21 }
 0xc33   : > { %v2506_v9 = vmul.f32 0.25, %v2477_v53  ;;  %v2522_v34 = vadd.f32 %v4029_v19, %v2505_v33 }
 0xc34   : > { %v2536_v47 = vsel %vm922_vm1, %v2524_v26, -inf  ;;  %v2525_v39 = vadd.f32 %v4032_v36, %v2508_v32 }
 0xc35   : > { %2537 = vmax.xlane.f32.xlu0 %v2536_v47  ;;  %v2523_v35 = vadd.f32 %v4030_v28, %v2506_v9  ;;  %v2530_v49 = vsel %vm922_vm1, %v2522_v34, -inf }
 0xc36   : > { %v2539_v7 = vsel %vm922_vm1, %v2525_v39, -inf }
 0xc37   : > { %v4567_v24 = vpop.f32.mrb[44].mxu1  ;;  %v2533_v45 = vsel %vm922_vm1, %v2523_v35, -inf }
 0xc38   : > { %v2511_v37 = vmul.f32 0.25, %v4567_v24  ;;  %2534 = vmax.xlane.f32.xlu1 %v2533_v45  ;;  %v2490_v56 = vpop.f32.mrb[45].mxu1 }
 0xc39   : > { %2531 = vmax.xlane.f32.xlu0 %v2530_v49  ;;  %v4568_v4 = vpop.f32.mrb[46].mxu1  ;;  %v2509_v41 = vmul.f32 0.25, %v2490_v56 }
 0xc3a   : > { %v2493_v16 = vpop.f32.mrb[47].mxu1  ;;  %v2528_v54 = vadd.f32 %v4035_v40, %v2511_v37  ;;  %v2512_v13 = vmul.f32 0.25, %v4568_v4 }
 0xc3b   : > { %v2526_v25 = vadd.f32 %v4033_v11, %v2509_v41  ;;  %v2510_v48 = vmul.f32 0.25, %v2493_v16 }
 0xc3c   : > { %v2548_v51 = vsel %vm922_vm1, %v2528_v54, -inf  ;;  %v6141_v22 = vadd.f32 %v4036_v30, %v2512_v13 }
 0xc3d   : > { %2540 = vmax.xlane.f32.xlu0 %v2539_v7  ;;  %v2542_v44 = vsel %vm922_vm1, %v2526_v25, -inf  ;;  %v6148_v10 = vadd.f32 %v4034_v14, %v2510_v48 }
 0xc3e   : > { %v2551_v62 = vsel %vm922_vm1, %v6141_v22, -inf }
 0xc3f   : > { %v2545_v55 = vsel %vm922_vm1, %v6148_v10, -inf }
 0xc41   : > { %2549 = vmax.xlane.f32.xlu0 %v2548_v51 }
 0xc45   : > { %2543 = vmax.xlane.f32.xlu0 %v2542_v44 }
 0xc49   : > { %2628 = vrot.lane.b32.xlu1 %v6070_v60, %s5197_s29 }
 0xc4d   : > { %2630 = vrot.lane.b32.xlu1 %v6092_v0, %s5197_s29 }
 0xc5b   : > { %2626 = vrot.lane.b32.xlu0 %v6074_v42, %s5197_s29 }
 0xc71   : > { %2552 = vmax.xlane.f32.xlu1 %v2551_v62 }
 0xc75   : > { %2546 = vmax.xlane.f32.xlu1 %v2545_v55 }
 0xc86   : > { %2632 = vrot.lane.b32.xlu1 %v6088_v63, %s5197_s29 }
 0xcc2   : > { %v2538_v57 = vpop.xlane.xlu0 %2537 }
 0xcc3   : > { %v2556_v12 = vsub.f32 %v2524_v26, %v2538_v57 }
 0xcc5   : > { %v2566_v58 = vmul.f32 1.442695, %v2556_v12  ;;  %v2535_v52 = vpop.xlane.xlu1 %2534 }
 0xcc6   : > { %v2532_v29 = vpop.xlane.xlu0 %2531  ;;  %v2555_v17 = vsub.f32 %v2523_v35, %v2535_v52 }
 0xcc7   : > { %4930 = vpow2.f32 %v2566_v58  ;;  %v2554_v59 = vsub.f32 %v2522_v34, %v2532_v29 }
 0xcc8   : > { %v2564_v20 = vmul.f32 1.442695, %v2555_v17 }
 0xcc9   : > { %v2562_v23 = vmul.f32 1.442695, %v2554_v59  ;;  %v2629_v34 = vpop.permute.xlu1 %2628 }
 0xcca   : > { %v2541_v15 = vpop.xlane.xlu0 %2540 }
 0xccb   : > { %4932 = vpow2.f32 %v2562_v23  ;;  %v2557_v46 = vsub.f32 %v2525_v39, %v2541_v15 }
 0xccd   : > { %v2568_v18 = vmul.f32 1.442695, %v2557_v46  ;;  %v2631_v56 = vpop.permute.xlu1 %2630 }
 0xcce   : > { %v2550_v33 = vpop.xlane.xlu0 %2549 }
 0xccf   : > { %4934 = vpow2.f32 %v2568_v18  ;;  %v2560_v21 = vsub.f32 %v2528_v54, %v2550_v33 }
 0xcd0   : > { %4936 = vpow2.f32 %v2564_v20 }
 0xcd1   : > { %v6154_v19 = vpop.eup %4930  ;;  %v2574_v53 = vmul.f32 1.442695, %v2560_v21 }
 0xcd2   : > { %v2544_v26 = vpop.xlane.xlu0 %2543  ;;  %v2584_v28 = vsel %vm922_vm1, %v6154_v19, 0.0 }
 0xcd3   : > { %4938 = vpow2.f32 %v2574_v53  ;;  %v2558_v9 = vsub.f32 %v2526_v25, %v2544_v26  ;;  %2585 = vadd.xlane.f32.xlu0 %v2584_v28 }
 0xcd5   : > { %v6158_v32 = vpop.eup %4932  ;;  %v2570_v47 = vmul.f32 1.442695, %v2558_v9 }
 0xcd6   : > { %v2627_v35 = vpop.permute.xlu0 %2626  ;;  %v2578_v36 = vsel %vm922_vm1, %v6158_v32, 0.0 }
 0xcd7   : > { %4940 = vpow2.f32 %v2570_v47  ;;  %2579 = vadd.xlane.f32.xlu0 %v2578_v36  ;;  %4569 = vmatprep.subr.bf16.mxu0 %v2627_v35 }
 0xcd8   : > { %4570 = vmatpush3.bf16.msra.mxu0 %v2627_v35 }
 0xcd9   : > { %v4935_v24 = vpop.eup %4934  ;;  %4571 = vmatprep.subr.bf16.mxu0 %v2629_v34 }
 0xcda   : > { %v2587_v45 = vsel %vm922_vm1, %v4935_v24, 0.0  ;;  %v4937_v37 = vpop.eup %4936 }
 0xcdb   : > { %2588 = vadd.xlane.f32.xlu1 %v2587_v45  ;;  %v2581_v4 = vsel %vm922_vm1, %v4937_v37, 0.0 }
 0xcdc   : > { %4572 = vmatpush3.bf16.msra.mxu0 %v2629_v34 }
 0xcdd   : > { %v6163_v49 = vpop.eup %4938  ;;  %4573 = vmatprep.subr.bf16.mxu0 %v2631_v56 }
 0xcde   : > { %v2596_v39 = vsel %vm922_vm1, %v6163_v49, 0.0 }
 0xcdf   : > { %2597 = vadd.xlane.f32.xlu0 %v2596_v39  ;;  %2582 = vadd.xlane.f32.xlu1 %v2581_v4 }
 0xce0   : > { %4574 = vmatpush3.bf16.msra.mxu0 %v2631_v56 }
 0xce1   : > { %v6168_v40 = vpop.eup %4940 }
 0xce2   : > { %v2590_v16 = vsel %vm922_vm1, %v6168_v40, 0.0 }
 0xce3   : > { %2591 = vadd.xlane.f32.xlu0 %v2590_v16 }
 0xcf0   : > { %2729 = vrot.lane.b32.xlu1 %v6070_v60, %s5198_s13 }
 0xcf4   : > { %2731 = vrot.lane.b32.xlu1 %v6092_v0, %s5198_s13 }
 0xcfe   : > { %v2553_v41 = vpop.xlane.xlu1 %2552 }
 0xcff   : > { %v2561_v7 = vsub.f32 %v6141_v22, %v2553_v41 }
 0xd01   : > { %v2576_v54 = vmul.f32 1.442695, %v2561_v7 }
 0xd02   : > { %v2547_v11 = vpop.xlane.xlu1 %2546 }
 0xd03   : > { %4942 = vpow2.f32 %v2576_v54  ;;  %v2559_v51 = vsub.f32 %v6148_v10, %v2547_v11 }
 0xd05   : > { %v2572_v25 = vmul.f32 1.442695, %v2559_v51 }
 0xd06   : > { %v2633_v44 = vpop.permute.xlu1 %2632 }
 0xd07   : > { %4575 = vmatprep.subr.bf16.mxu0 %v2633_v44  ;;  %4944 = vpow2.f32 %v2572_v25 }
 0xd08   : > { %4576 = vmatpush3.bf16.msra.mxu0 %v2633_v44 }
 0xd0d   : > { %v4943_v13 = vpop.eup %4942 }
 0xd0e   : > { %v2599_v30 = vsel %vm922_vm1, %v4943_v13, 0.0 }
 0xd0f   : > { %2600 = vadd.xlane.f32.xlu0 %v2599_v30 }
 0xd11   : > { %v4945_v48 = vpop.eup %4944 }
 0xd12   : > { %v2593_v14 = vsel %vm922_vm1, %v4945_v48, 0.0 }
 0xd18   : > { %2594 = vadd.xlane.f32.xlu1 %v2593_v14 }
 0xd25   : > { %2727 = vrot.lane.b32.xlu0 %v6074_v42, %s5198_s13 }
 0xd29   : > { %2719 = vrot.lane.b32.xlu0 %v6072_v1, %s5198_s13  ;;  %2733 = vrot.lane.b32.xlu1 %v6088_v63, %s5198_s13 }
 0xd2d   : > { %2723 = vrot.lane.b32.xlu0 %v6090_v61, %s5198_s13  ;;  %2721 = vrot.lane.b32.xlu1 %v6068_v43, %s5198_s13 }
 0xd31   : > { %2725 = vrot.lane.b32.xlu1 %v6086_v27, %s5198_s13 }
 0xd60   : > { %v2586_v22 = vpop.xlane.xlu0 %2585 }
 0xd64   : > { %v2580_v10 = vpop.xlane.xlu0 %2579 }
 0xd68   : > { %v2589_v62 = vpop.xlane.xlu1 %2588 }
 0xd69   : > { %4946 = vrcp.f32 %v2589_v62 }
 0xd6a   : > { %4948 = vrcp.f32 %v2580_v10 }
 0xd6b   : > { %4950 = vrcp.f32 %v2586_v22 }
 0xd6c   : > { %v2583_v55 = vpop.xlane.xlu1 %2582  ;;  %v2598_v17 = vpop.xlane.xlu0 %2597 }
 0xd6d   : > { %4952 = vrcp.f32 %v2583_v55  ;;  %v4046_v55 = vld [vmem:[%s6595_s5 + $0xc8] sm:$0xff] }
 0xd70   : > { %v2592_v23 = vpop.xlane.xlu0 %2591  ;;  %v2730_v15 = vpop.permute.xlu1 %2729 }
 0xd73   : > { %v4947_v1 = vpop.eup %4946 }
 0xd74   : > { %v4949_v57 = vpop.eup %4948  ;;  %v2613_v52 = vmul.f32 %v4947_v1, %v4935_v24  ;;  %v2732_v18 = vpop.permute.xlu1 %2731  ;;  %v4047_v1 = vld [vmem:[%s6595_s5 + $0xd0] sm:$0xff] }
 0xd75   : > { %v4951_v12 = vpop.eup %4950  ;;  %v2610_v61 = vmul.f32 %v4949_v57, %v6158_v32  ;;  %v2754_v47 = vsel %vm808_vm0, %v2732_v18, 0 }
 0xd76   : > { %v2612_v43 = vmul.f32 %v4951_v12, %v6154_v19  ;;  %v2751_v19 = vsel %vm808_vm0, %v2730_v15, 0 }
 0xd77   : > { %v4953_v58 = vpop.eup %4952 }
 0xd78   : > { %v2611_v29 = vmul.f32 %v4953_v58, %v4937_v37  ;;  %v2619_v27 = vpack.c.bf16 %v2613_v52, %v2612_v43  ;;  %v4048_v43 = vld [vmem:[%s6595_s5 + $0xd8] sm:$0xff] }
 0xd7a   : > { %v2618_v59 = vpack.c.bf16 %v2611_v29, %v2610_v61 }
 0xd7c   : > { %4577 = vmatprep.mubr.msk.bf16.mxu0 %vm922_vm1, %v2618_v59 }
 0xd7d   : > { %4578 = vmatmul.mubr.msk.bf16.vlgmr.msra.gmra.mrb[48].mxu0 %vm922_vm1, %v2619_v27 }
 0xd9c   : > { %v2601_v46 = vpop.xlane.xlu0 %2600 }
 0xd9d   : > { %4954 = vrcp.f32 %v2601_v46 }
 0xd9e   : > { %4956 = vrcp.f32 %v2592_v23 }
 0xd9f   : > { %4958 = vrcp.f32 %v2598_v17 }
 0xda0   : > { %v2728_v20 = vpop.permute.xlu0 %2727 }
 0xda1   : > { %v2748_v33 = vsel %vm808_vm0, %v2728_v20, 0  ;;  %4689 = vmatprep.subr.msk.bf16.mxu0 %vm808_vm0, %v2728_v20 }
 0xda2   : > { %4586 = vmatpush3.bf16.xpose.msra.mxu0 %v2748_v33  ;;  %v4050_v33 = vld [vmem:[%s6595_s5 + $0xe8] sm:$0xff] }
 0xda3   : > { %4690 = vmatprep.subr.msk.bf16.mxu0 %vm808_vm0, %v2730_v15 }
 0xda4   : > { %v2720_v56 = vpop.permute.xlu0 %2719 }
 0xda5   : > { %v2595_v21 = vpop.xlane.xlu1 %2594 }
 0xda6   : > { %4960 = vrcp.f32 %v2595_v21  ;;  %v4049_v21 = vld [vmem:[%s6595_s5 + $0xe0] sm:$0xff] }
 0xda7   : > { %v4955_v53 = vpop.eup %4954 }
 0xda8   : > { %v4957_v26 = vpop.eup %4956  ;;  %v2617_v32 = vmul.f32 %v4955_v53, %v4943_v13 }
 0xda9   : > { %v4959_v28 = vpop.eup %4958  ;;  %v2614_v34 = vmul.f32 %v4957_v26, %v6168_v40  ;;  %v2734_v36 = vpop.permute.xlu1 %2733  ;;  %v4052_v26 = vld [vmem:[%s6595_s5 + $0xf8] sm:$0xff] }
 0xdaa   : > { %4588 = vmatpush3.bf16.xpose.msra.mxu0 %v2751_v19  ;;  %v2616_v24 = vmul.f32 %v4959_v28, %v6163_v49  ;;  %v2757_v39 = vsel %vm808_vm0, %v2734_v36, 0  ;;  %v2724_v40 = vpop.permute.xlu0 %2723 }
 0xdab   : > { %4691 = vmatprep.subr.msk.bf16.mxu0 %vm808_vm0, %v2732_v18 }
 0xdac   : > { %v2621_v37 = vpack.c.bf16 %v2617_v32, %v2616_v24 }
 0xdad   : > { %v2722_v4 = vpop.permute.xlu1 %2721 }
 0xdb0   : > { %v4961_v9 = vpop.eup %4960 }
 0xdb1   : > { %v2615_v35 = vmul.f32 %v4961_v9, %v4945_v48  ;;  %v2726_v49 = vpop.permute.xlu1 %2725  ;;  %v4045_v48 = vld [vmem:[%s6595_s5 + $0xc0] sm:$0xff] }
 0xdb2   : > { %4590 = vmatpush3.bf16.xpose.msra.mxu0 %v2754_v47 }
 0xdb3   : > { %4692 = vmatprep.subr.msk.bf16.mxu0 %vm808_vm0, %v2734_v36  ;;  %v2620_v45 = vpack.c.bf16 %v2615_v35, %v2614_v34  ;;  %v4051_v34 = vld [vmem:[%s6595_s5 + $0xf0] sm:$0xff] }
 0xdb5   : > { %4581 = vmatprep.mubr.msk.bf16.mxu0 %vm922_vm1, %v2620_v45 }
 0xdb6   : > { %4582 = vmatmul.mubr.msk.bf16.gmra.mrb[52].mxu0 %vm922_vm1, %v2621_v37 }
 0xdb7   : > { %4593 = vmatprep.mubr.msk.bf16.mxu0 %vm808_vm0, %v2720_v56 }
 0xdba   : > { %4592 = vmatpush3.bf16.xpose.msra.mxu0 %v2757_v39 }
 0xdc1   : > { %4594 = vmatmul.mubr.msk.bf16.vlgmr.msra.gmra.mrb[56].mxu0 %vm808_vm0, %v2722_v4 }
 0xdc2   : > { %4597 = vmatprep.mubr.msk.bf16.mxu0 %vm808_vm0, %v2724_v40 }
 0xdc9   : > { %4598 = vmatmul.mubr.msk.bf16.gmra.mrb[60].mxu0 %vm808_vm0, %v2726_v49 }
 0xe50   : > { %v6212_v16 = vpop.f32.mrb[48].mxu0 }
 0xe51   : > { %v6214_v41 = vpop.f32.mrb[49].mxu0 }
 0xe52   : > { %v6216_v7 = vpop.f32.mrb[50].mxu0 }
 0xe53   : > { %v6218_v54 = vpop.f32.mrb[51].mxu0 }
 0xe89   : > { %v6220_v11 = vpop.f32.mrb[52].mxu0 }
 0xe8a   : > { %v6222_v51 = vpop.f32.mrb[53].mxu0 }
 0xe8b   : > { %v6224_v25 = vpop.f32.mrb[54].mxu0 }
 0xe8c   : > { %v6226_v44 = vpop.f32.mrb[55].mxu0 }
 0xe94   : > { %v4595_v13 = vpop.f32.mrb[56].mxu0 }
 0xe95   : > { %v2793_v30 = vpop.f32.mrb[57].mxu0  ;;  %v2826_v14 = vmul.f32 0.25, %v4595_v13 }
 0xe96   : > { %v2824_v22 = vmul.f32 0.25, %v2793_v30  ;;  %v4596_v62 = vpop.f32.mrb[58].mxu0 }
 0xe97   : > { %v2796_v10 = vpop.f32.mrb[59].mxu0  ;;  %v2827_v58 = vmul.f32 0.25, %v4596_v62  ;;  %v2843_v29 = vadd.f32 %v4047_v1, %v2826_v14 }
 0xe98   : > { %v2825_v57 = vmul.f32 0.25, %v2796_v10  ;;  %v2841_v12 = vadd.f32 %v4045_v48, %v2824_v22 }
 0xe99   : > { %v2855_v46 = vsel %vm922_vm1, %v2843_v29, -inf  ;;  %v2844_v20 = vadd.f32 %v4048_v43, %v2827_v58 }
 0xe9a   : > { %v2849_v52 = vsel %vm922_vm1, %v2841_v12, -inf  ;;  %v2842_v61 = vadd.f32 %v4046_v55, %v2825_v57 }
 0xe9b   : > { %2850 = vmax.xlane.f32.xlu0 %v2849_v52  ;;  %v2858_v9 = vsel %vm922_vm1, %v2844_v20, -inf }
 0xe9c   : > { %v4599_v59 = vpop.f32.mrb[60].mxu0  ;;  %v2852_v27 = vsel %vm922_vm1, %v2842_v61, -inf }
 0xe9d   : > { %2853 = vmax.xlane.f32.xlu1 %v2852_v27  ;;  %v2809_v17 = vpop.f32.mrb[61].mxu0  ;;  %v2830_v28 = vmul.f32 0.25, %v4599_v59 }
 0xe9e   : > { %v2828_v23 = vmul.f32 0.25, %v2809_v17  ;;  %v4600_v15 = vpop.f32.mrb[62].mxu0 }
 0xe9f   : > { %2856 = vmax.xlane.f32.xlu0 %v2855_v46  ;;  %v2812_v18 = vpop.f32.mrb[63].mxu0  ;;  %v2831_v19 = vmul.f32 0.25, %v4600_v15  ;;  %v2847_v45 = vadd.f32 %v4051_v34, %v2830_v28 }
 0xea0   : > { %v2829_v53 = vmul.f32 0.25, %v2812_v18  ;;  %v2845_v47 = vadd.f32 %v4049_v21, %v2828_v23 }
 0xea1   : > { %v2848_v36 = vadd.f32 %v4052_v26, %v2831_v19  ;;  %v2867_v56 = vsel %vm922_vm1, %v2847_v45, -inf }
 0xea2   : > { %v6253_v32 = vadd.f32 %v4050_v33, %v2829_v53  ;;  %v2861_v24 = vsel %vm922_vm1, %v2845_v47, -inf }
 0xea3   : > { %2859 = vmax.xlane.f32.xlu0 %v2858_v9  ;;  %v2870_v37 = vsel %vm922_vm1, %v2848_v36, -inf }
 0xea4   : > { %v2864_v35 = vsel %vm922_vm1, %v6253_v32, -inf }
 0xea5   : > { %2865 = vmax.xlane.f32.xlu1 %v2864_v35 }
 0xea7   : > { %2862 = vmax.xlane.f32.xlu0 %v2861_v24 }
 0xea9   : > { %2871 = vmax.xlane.f32.xlu1 %v2870_v37 }
 0xeab   : > { %2868 = vmax.xlane.f32.xlu0 %v2867_v56 }
 0xf28   : > { %v2851_v39 = vpop.xlane.xlu0 %2850 }
 0xf29   : > { %v2873_v4 = vsub.f32 %v2841_v12, %v2851_v39 }
 0xf2a   : > { %v2854_v40 = vpop.xlane.xlu1 %2853 }
 0xf2b   : > { %v2881_v30 = vmul.f32 1.442695, %v2873_v4  ;;  %v2874_v48 = vsub.f32 %v2842_v61, %v2854_v40 }
 0xf2c   : > { %v2857_v49 = vpop.xlane.xlu0 %2856 }
 0xf2d   : > { %v2875_v13 = vsub.f32 %v2843_v29, %v2857_v49  ;;  %v2883_v10 = vmul.f32 1.442695, %v2874_v48 }
 0xf2f   : > { %v2885_v14 = vmul.f32 1.442695, %v2875_v13 }
 0xf30   : > { %v2860_v22 = vpop.xlane.xlu0 %2859 }
 0xf31   : > { %4962 = vpow2.f32 %v2885_v14  ;;  %v2876_v62 = vsub.f32 %v2844_v20, %v2860_v22 }
 0xf32   : > { %4964 = vpow2.f32 %v2881_v30  ;;  %v2866_v19 = vpop.xlane.xlu1 %2865 }
 0xf33   : > { %v2887_v55 = vmul.f32 1.442695, %v2876_v62  ;;  %v2878_v28 = vsub.f32 %v6253_v32, %v2866_v19 }
 0xf34   : > { %v2863_v1 = vpop.xlane.xlu0 %2862 }
 0xf35   : > { %4966 = vpow2.f32 %v2887_v55  ;;  %v2877_v57 = vsub.f32 %v2845_v47, %v2863_v1  ;;  %v2891_v47 = vmul.f32 1.442695, %v2878_v28  ;;  %v4813_v28 = vld [vmem:[%s6596_s6 + $0x18] sm:$0xff]  }
 0xf36   : > { %4968 = vpow2.f32 %v2883_v10  ;;  %v2872_v53 = vpop.xlane.xlu1 %2871 }
 0xf37   : > { %v2889_v12 = vmul.f32 1.442695, %v2877_v57  ;;  %v2880_v26 = vsub.f32 %v2848_v36, %v2872_v53 }
 0xf38   : > { %v2869_v58 = vpop.xlane.xlu0 %2868 }
 0xf39   : > { %v2879_v52 = vsub.f32 %v2847_v45, %v2869_v58  ;;  %v2895_v9 = vmul.f32 1.442695, %v2880_v26  ;;  %v4812_v26 = vld [vmem:[%s6596_s6 + $0x10] sm:$0xff]  }
 0xf3b   : > { %v6263_v43 = vpop.eup %4962  ;;  %v2893_v59 = vmul.f32 1.442695, %v2879_v52 }
 0xf3c   : > { %v2903_v61 = vsel %vm922_vm1, %v6263_v43, 0.0  ;;  %v4965_v29 = vpop.eup %4964 }
 0xf3d   : > { %4970 = vpow2.f32 %v2893_v59  ;;  %2904 = vadd.xlane.f32.xlu0 %v2903_v61  ;;  %v2897_v17 = vsel %vm922_vm1, %v4965_v29, 0.0 }
 0xf3e   : > { %4972 = vpow2.f32 %v2889_v12 }
 0xf3f   : > { %v6267_v27 = vpop.eup %4966  ;;  %4974 = vpow2.f32 %v2895_v9  ;;  %v4814_v9 = vld [vmem:[%s6598_s8 + $0x40] sm:$0xff]  }
 0xf40   : > { %v2906_v23 = vsel %vm922_vm1, %v6267_v27, 0.0  ;;  %v4969_v15 = vpop.eup %4968  ;;  %4976 = vpow2.f32 %v2891_v47  ;;  %v4815_v47 = vld [vmem:[%s6598_s8 + $0x48] sm:$0xff]   ;;  %4629 = vmatprep.subr.bf16.mxu0 %v4814_v9 }
 0xf41   : > { %2898 = vadd.xlane.f32.xlu0 %v2897_v17  ;;  %2907 = vadd.xlane.f32.xlu1 %v2906_v23  ;;  %v2900_v46 = vsel %vm922_vm1, %v4969_v15, 0.0 }
 0xf42   : > { %4630 = vmatpush3.bf16.msra.mxu0 %v4814_v9 }
 0xf43   : > { %4631 = vmatprep.subr.bf16.mxu0 %v4815_v47 }
 0xf45   : > { %2901 = vadd.xlane.f32.xlu1 %v2900_v46 }
 0xf46   : > { %4632 = vmatpush3.bf16.msra.mxu0 %v4815_v47 }
 0xf47   : > { %v6273_v20 = vpop.eup %4970 }
 0xf48   : > { %v2915_v18 = vsel %vm922_vm1, %v6273_v20, 0.0  ;;  %v6277_v33 = vpop.eup %4972 }
 0xf49   : > { %2916 = vadd.xlane.f32.xlu0 %v2915_v18  ;;  %v2909_v21 = vsel %vm922_vm1, %v6277_v33, 0.0  ;;  %v4975_v34 = vpop.eup %4974 }
 0xf4a   : > { %v2918_v35 = vsel %vm922_vm1, %v4975_v34, 0.0  ;;  %v4977_v24 = vpop.eup %4976 }
 0xf4d   : > { %2910 = vadd.xlane.f32.xlu0 %v2909_v21 }
 0xf56   : > { %2943 = vrot.lane.b32.xlu1 %v6070_v60, %s5199_s12  ;;  %v2912_v60 = vsel %vm922_vm1, %v4977_v24, 0.0 }
 0xf5a   : > { %2945 = vrot.lane.b32.xlu1 %v6092_v0, %s5199_s12 }
 0xf63   : > { %2941 = vrot.lane.b32.xlu0 %v6074_v42, %s5199_s12 }
 0xf7e   : > { %2919 = vadd.xlane.f32.xlu1 %v2918_v35  ;;  %v4817_v35 = vld [vmem:[%s6598_s8 + $0x58] sm:$0xff]  }
 0xf82   : > { %2913 = vadd.xlane.f32.xlu1 %v2912_v60  ;;  %v4819_v60 = vld [vmem:[%s6598_s8 + $0x68] sm:$0xff]  }
 0xf93   : > { %2947 = vrot.lane.b32.xlu1 %v6088_v63, %s5199_s12 }
 0xfca   : > { %v2905_v42 = vpop.xlane.xlu0 %2904 }
 0xfce   : > { %v2899_v0 = vpop.xlane.xlu0 %2898  ;;  %v2908_v36 = vpop.xlane.xlu1 %2907 }
 0xfcf   : > { %4978 = vrcp.f32 %v2899_v0 }
 0xfd2   : > { %v2902_v32 = vpop.xlane.xlu1 %2901 }
 0xfd3   : > { %4980 = vrcp.f32 %v2902_v32 }
 0xfd4   : > { %4982 = vrcp.f32 %v2908_v36 }
 0xfd5   : > { %4984 = vrcp.f32 %v2905_v42 }
 0xfd6   : > { %v2917_v45 = vpop.xlane.xlu0 %2916  ;;  %v2944_v4 = vpop.permute.xlu1 %2943 }
 0xfd9   : > { %v4979_v56 = vpop.eup %4978 }
 0xfda   : > { %v2911_v37 = vpop.xlane.xlu0 %2910  ;;  %v2929_v49 = vmul.f32 %v4979_v56, %v4965_v29  ;;  %v2946_v63 = vpop.permute.xlu1 %2945 }
 0xfdd   : > { %v4981_v39 = vpop.eup %4980 }
 0xfde   : > { %v2942_v40 = vpop.permute.xlu0 %2941  ;;  %v2930_v13 = vmul.f32 %v4981_v39, %v4969_v15  ;;  %v4983_v14 = vpop.eup %4982 }
 0xfdf   : > { %4601 = vmatprep.subr.bf16.mxu1 %v2942_v40  ;;  %v4985_v62 = vpop.eup %4984  ;;  %v2932_v10 = vmul.f32 %v4983_v14, %v6267_v27 }
 0xfe0   : > { %4602 = vmatpush3.bf16.msra.mxu1 %v2942_v40  ;;  %v2937_v30 = vpack.c.bf16 %v2930_v13, %v2929_v49  ;;  %v2931_v1 = vmul.f32 %v4985_v62, %v6263_v43 }
 0xfe1   : > { %4603 = vmatprep.subr.bf16.mxu1 %v2944_v4 }
 0xfe2   : > { %4609 = vmatprep.mubr.msk.bf16.mxu1 %vm922_vm1, %v2937_v30  ;;  %v2938_v57 = vpack.c.bf16 %v2932_v10, %v2931_v1 }
 0xfe4   : > { %4604 = vmatpush3.bf16.msra.mxu1 %v2944_v4 }
 0xfe5   : > { %4605 = vmatprep.subr.bf16.mxu1 %v2946_v63 }
 0xfe8   : > { %4606 = vmatpush3.bf16.msra.mxu1 %v2946_v63 }
0x100b   : > { %v2920_v48 = vpop.xlane.xlu1 %2919 }
0x100c   : > { %4986 = vrcp.f32 %v2920_v48 }
0x100d   : > { %4988 = vrcp.f32 %v2911_v37 }
0x100e   : > { %4990 = vrcp.f32 %v2917_v45 }
0x100f   : > { %v2914_v22 = vpop.xlane.xlu1 %2913 }
0x1010   : > { %4992 = vrcp.f32 %v2914_v22 }
0x1013   : > { %v2948_v55 = vpop.permute.xlu1 %2947 }
0x1014   : > { %4607 = vmatprep.subr.bf16.mxu1 %v2948_v55 }
0x1015   : > { %4608 = vmatpush3.bf16.msra.mxu1 %v2948_v55 }
0x1016   : > { %v4987_v58 = vpop.eup %4986  ;;  %4617 = vmatprep.subr.bf16.mxu1 %v4812_v26 }
0x1017   : > { %v4989_v52 = vpop.eup %4988  ;;  %v2936_v61 = vmul.f32 %v4987_v58, %v4975_v34  ;;  %v4816_v34 = vld [vmem:[%s6598_s8 + $0x50] sm:$0xff]  }
0x1018   : > { %4610 = vmatmul.mubr.msk.bf16.vlgmr.msra.gmra.mrb[48].mxu1 %vm922_vm1, %v2938_v57  ;;  %v4991_v12 = vpop.eup %4990  ;;  %v2933_v29 = vmul.f32 %v4989_v52, %v6277_v33  ;;  %4633 = vmatprep.subr.bf16.mxu0 %v4816_v34 }
0x1019   : > { %v2935_v23 = vmul.f32 %v4991_v12, %v6273_v20  ;;  %4618 = vmatpush3.bf16.msra.mxu1 %v4812_v26  ;;  %4634 = vmatpush3.bf16.msra.mxu0 %v4816_v34 }
0x101a   : > { %v4993_v59 = vpop.eup %4992  ;;  %4619 = vmatprep.subr.bf16.mxu1 %v4813_v28  ;;  %4635 = vmatprep.subr.bf16.mxu0 %v4817_v35 }
0x101b   : > { %v2934_v17 = vmul.f32 %v4993_v59, %v4977_v24  ;;  %v2940_v27 = vpack.c.bf16 %v2936_v61, %v2935_v23  ;;  %v4818_v24 = vld [vmem:[%s6598_s8 + $0x60] sm:$0xff]  }
0x101d   : > { %v2939_v15 = vpack.c.bf16 %v2934_v17, %v2933_v29  ;;  %4620 = vmatpush3.bf16.msra.mxu1 %v4813_v28  ;;  %4636 = vmatpush3.bf16.msra.mxu0 %v4817_v35 }
0x101e   : > { %4637 = vmatprep.subr.bf16.mxu0 %v4818_v24 }
0x101f   : > { %4613 = vmatprep.mubr.msk.bf16.mxu1 %vm922_vm1, %v2939_v15 }
0x1020   : > { %4614 = vmatmul.mubr.msk.bf16.gmra.mrb[52].mxu1 %vm922_vm1, %v2940_v27 }
0x1021   : > { %4638 = vmatpush3.bf16.msra.mxu0 %v4818_v24 }
0x1022   : > { %4639 = vmatprep.subr.bf16.mxu0 %v4819_v60 }
0x1025   : > { %4640 = vmatpush3.bf16.msra.mxu0 %v4819_v60 }
0x10eb   : > { %v4611_v43 = vpop.f32.mrb[48].mxu1 }
0x10ec   : > { %v2999_v46 = vpop.f32.mrb[49].mxu1 }
0x10ed   : > { %3038 = vrot.lane.b32.xlu0 %v2999_v46, %s5200_s21  ;;  %v4612_v18 = vpop.f32.mrb[50].mxu1 }
0x10ee   : > { %v3002_v21 = vpop.f32.mrb[51].mxu1 }
0x10ef   : > { %3040 = vrot.lane.b32.xlu1 %v3002_v21, %s5200_s21 }
0x10f1   : > { %3042 = vrot.lane.b32.xlu0 %v4611_v43, %s5200_s21 }
0x10f3   : > { %3044 = vrot.lane.b32.xlu1 %v4612_v18, %s5200_s21  ;;  %v4615_v33 = vpop.f32.mrb[52].mxu1 }
0x10f4   : > { %v3015_v20 = vpop.f32.mrb[53].mxu1 }
0x10f5   : > { %3046 = vrot.lane.b32.xlu0 %v3015_v20, %s5200_s21  ;;  %v4616_v19 = vpop.f32.mrb[54].mxu1 }
0x10f6   : > { %v3018_v53 = vpop.f32.mrb[55].mxu1 }
0x10f7   : > { %3048 = vrot.lane.b32.xlu1 %v3018_v53, %s5200_s21 }
0x10f9   : > { %3050 = vrot.lane.b32.xlu0 %v4615_v33, %s5200_s21 }
0x10fb   : > { %3052 = vrot.lane.b32.xlu1 %v4616_v19, %s5200_s21 }
0x115f   : > { %v3039_v42 = vpop.permute.xlu0 %3038 }
0x1160   : > { %v3062_v0 = vsel %vm808_vm0, %v6214_v41, %v3039_v42 }
0x1161   : > { %v6334_v36 = vmul.f32 0.70710677, %v3062_v0  ;;  %v3041_v32 = vpop.permute.xlu1 %3040  ;;  %v6389_v19 = vmul.f32 0.5, %v3062_v0 }
0x1162   : > { %v3063_v45 = vsel %vm808_vm0, %v6218_v54, %v3041_v32 }
0x1163   : > { %vm3086_vm11 = vcmp.ge.f32.partialorder %v6334_v36, 0.0  ;;  %v3094_v37 = vsub.f32 0.0, %v6334_v36  ;;  %v6340_v56 = vmul.f32 0.70710677, %v3063_v45  ;;  %v3043_v39 = vpop.permute.xlu0 %3042  ;;  %v6398_v9 = vmul.f32 0.5, %v3063_v45 }
0x1164   : > { %v3064_v4 = vsel %vm808_vm0, %v6212_v16, %v3043_v39 }
0x1165   : > { %v3102_v41 = vsel %vm3086_vm11, %v6334_v36, %v3094_v37  ;;  %vm3087_vm12 = vcmp.ge.f32.partialorder %v6340_v56, 0.0  ;;  %v3095_v40 = vsub.f32 0.0, %v6340_v56  ;;  %v3045_v49 = vpop.permute.xlu1 %3044  ;;  %v6349_v13 = vmul.f32 0.70710677, %v3064_v4 }
0x1166   : > { %v3110_v54 = vmul.f32 0.3275911, %v3102_v41  ;;  %v6353_v30 = vsel %vm808_vm0, %v6216_v7, %v3045_v49  ;;  %v3214_v63 = vsub.f32 0.0, %v3102_v41  ;;  %v6400_v47 = vmul.f32 0.5, %v3064_v4 }
0x1167   : > { %v3103_v16 = vsel %vm3087_vm12, %v6340_v56, %v3095_v40  ;;  %v6359_v48 = vmul.f32 0.70710677, %v6353_v30  ;;  %v3047_v62 = vpop.permute.xlu0 %3046  ;;  %vm3088_vm13 = vcmp.ge.f32.partialorder %v6349_v13, 0.0  ;;  %v3096_v10 = vsub.f32 0.0, %v6349_v13 }
0x1168   : > { %v3118_v14 = vadd.f32 1.0, %v3110_v54  ;;  %v3111_v22 = vmul.f32 0.3275911, %v3103_v16  ;;  %v3222_v57 = vmul.f32 %v3214_v63, %v3102_v41  ;;  %v6373_v12 = vsel %vm808_vm0, %v6222_v51, %v3047_v62 }
0x1169   : > { %vm3089_vm14 = vcmp.ge.f32.partialorder %v6359_v48, 0.0  ;;  %v3097_v7 = vsub.f32 0.0, %v6359_v48  ;;  %v3049_v55 = vpop.permute.xlu1 %3048  ;;  %v3104_v58 = vsel %vm3088_vm13, %v6349_v13, %v3096_v10  ;;  %v3215_v59 = vsub.f32 0.0, %v3103_v16 }
0x116a   : > { %4994 = vrcp.f32 %v3118_v14  ;;  %v3119_v1 = vadd.f32 1.0, %v3111_v22  ;;  %v3112_v61 = vmul.f32 0.3275911, %v3104_v58  ;;  %v6377_v29 = vsel %vm808_vm0, %v6226_v44, %v3049_v55 }
0x116b   : > { %v3105_v52 = vsel %vm3089_vm14, %v6359_v48, %v3097_v7  ;;  %v6380_v15 = vmul.f32 0.70710677, %v6373_v12  ;;  %v3230_v27 = vmul.f32 1.442695, %v3222_v57  ;;  %v6383_v46 = vmul.f32 0.70710677, %v6377_v29  ;;  %v3051_v18 = vpop.permute.xlu0 %3050 }
0x116c   : > { %4996 = vrcp.f32 %v3119_v1  ;;  %v3113_v17 = vmul.f32 0.3275911, %v3105_v52  ;;  %v3120_v23 = vadd.f32 1.0, %v3112_v61  ;;  %v3223_v51 = vmul.f32 %v3215_v59, %v3103_v16 }
0x116d   : > { %vm3090_vm15 = vcmp.ge.f32.partialorder %v6380_v15, 0.0  ;;  %v3098_v21 = vsub.f32 0.0, %v6380_v15  ;;  %v3216_v44 = vsub.f32 0.0, %v3104_v58  ;;  %vm3091_vm1 = vcmp.ge.f32.partialorder %v6383_v46, 0.0  ;;  %v3053_v20 = vpop.permute.xlu1 %3052 }
0x116e   : > { %v3121_v43 = vadd.f32 1.0, %v3113_v17  ;;  %4998 = vrcp.f32 %v3120_v23  ;;  %v3099_v33 = vsub.f32 0.0, %v6383_v46  ;;  %v3217_v53 = vsub.f32 0.0, %v3105_v52 }
0x116f   : > { %v3106_v26 = vsel %vm3090_vm15, %v6380_v15, %v3098_v21  ;;  %v6396_v28 = vsel %vm808_vm0, %v6220_v11, %v3051_v18  ;;  %v6412_v11 = vsel %vm808_vm0, %v6224_v25, %v3053_v20  ;;  %v3232_v32 = vmul.f32 1.442695, %v3223_v51 }
0x1170   : > { %5000 = vrcp.f32 %v3121_v43  ;;  %v3114_v34 = vmul.f32 0.3275911, %v3106_v26  ;;  %v3107_v35 = vsel %vm3091_vm1, %v6383_v46, %v3099_v33  ;;  %v6408_v42 = vmul.f32 0.70710677, %v6396_v28 }
0x1171   : > { %5002 = vpow2.f32 %v3230_v27  ;;  %v3115_v60 = vmul.f32 0.3275911, %v3107_v35  ;;  %v3224_v45 = vmul.f32 %v3216_v44, %v3104_v58  ;;  %v3225_v39 = vmul.f32 %v3217_v53, %v3105_v52 }
0x1172   : > { %v3122_v37 = vadd.f32 1.0, %v3114_v34  ;;  %vm3092_vm2 = vcmp.ge.f32.partialorder %v6408_v42, 0.0  ;;  %v3100_v41 = vsub.f32 0.0, %v6408_v42  ;;  %v3218_v54 = vsub.f32 0.0, %v3106_v26 }
0x1173   : > { %v3123_v4 = vadd.f32 1.0, %v3115_v60  ;;  %v6420_v63 = vmul.f32 0.70710677, %v6412_v11  ;;  %v3219_v16 = vsub.f32 0.0, %v3107_v35  ;;  %v3234_v62 = vmul.f32 1.442695, %v3224_v45 }
0x1174   : > { %v6405_v24 = vpop.eup %4994  ;;  %5004 = vrcp.f32 %v3122_v37  ;;  %v3108_v14 = vsel %vm3092_vm2, %v6408_v42, %v3100_v41  ;;  %v3236_v1 = vmul.f32 1.442695, %v3225_v39  ;;  %v3226_v61 = vmul.f32 %v3218_v54, %v3106_v26  ;;  %v4820_v42 = vld [vmem:[%s6598_s8 + $0x70] sm:$0xff]  }
0x1175   : > { %v3142_v0 = vmul.f32 1.0614054, %v6405_v24  ;;  %5006 = vrcp.f32 %v3123_v4  ;;  %v3116_v10 = vmul.f32 0.3275911, %v3108_v14  ;;  %vm3093_vm0 = vcmp.ge.f32.partialorder %v6420_v63, 0.0  ;;  %4641 = vmatprep.subr.bf16.mxu0 %v4820_v42 }
0x1176   : > { %v6417_v40 = vpop.eup %4996  ;;  %5008 = vpow2.f32 %v3232_v32  ;;  %v3101_v57 = vsub.f32 0.0, %v6420_v63  ;;  %v3227_v43 = vmul.f32 %v3219_v16, %v3107_v35  ;;  %v3220_v44 = vsub.f32 0.0, %v3108_v14  ;;  %4642 = vmatpush3.bf16.msra.mxu0 %v4820_v42 }
0x1177   : > { %v3150_v49 = vadd.f32 -1.4531521, %v3142_v0  ;;  %v3143_v25 = vmul.f32 1.0614054, %v6417_v40  ;;  %v3124_v17 = vadd.f32 1.0, %v3116_v10  ;;  %v6442_v0 = vmul.f32 0.5, %v6353_v30 }
0x1178   : > { %v6427_v7 = vpop.eup %4998  ;;  %v3109_v18 = vsel %vm3093_vm0, %v6420_v63, %v3101_v57  ;;  %v3238_v45 = vmul.f32 1.442695, %v3226_v61  ;;  %v3228_v54 = vmul.f32 %v3220_v44, %v3108_v14  ;;  %v4824_v63 = vld [vmem:[%s6600_s10 + $0x50] sm:$0xff]  }
0x1179   : > { %v3158_v22 = vmul.f32 %v6405_v24, %v3150_v49  ;;  %v3151_v55 = vadd.f32 -1.4531521, %v3143_v25  ;;  %v3144_v59 = vmul.f32 1.0614054, %v6427_v7  ;;  %5010 = vrcp.f32 %v3124_v17 }
0x117a   : > { %v6431_v58 = vpop.eup %5000  ;;  %5012 = vpow2.f32 %v3234_v62  ;;  %v3117_v26 = vmul.f32 0.3275911, %v3109_v18  ;;  %v3240_v49 = vmul.f32 1.442695, %v3227_v43  ;;  %v3221_v57 = vsub.f32 0.0, %v3109_v18 }
0x117b   : > { %v3166_v52 = vadd.f32 1.4214138, %v3158_v22  ;;  %v3159_v23 = vmul.f32 %v6417_v40, %v3151_v55  ;;  %v3145_v27 = vmul.f32 1.0614054, %v6431_v58  ;;  %v3152_v21 = vadd.f32 -1.4531521, %v3144_v59  ;;  %v5003_v33 = vpop.eup %5002 }
0x117c   : > { %5014 = vpow2.f32 %v3236_v1  ;;  %v3125_v37 = vadd.f32 1.0, %v3117_v26 }
0x117d   : > { %v3174_v51 = vmul.f32 %v6405_v24, %v3166_v52  ;;  %v3167_v20 = vadd.f32 1.4214138, %v3159_v23  ;;  %v3153_v53 = vadd.f32 -1.4531521, %v3145_v27  ;;  %v3160_v60 = vmul.f32 %v6427_v7, %v3152_v21 }
0x117e   : > { %v6446_v39 = vpop.eup %5004  ;;  %5016 = vrcp.f32 %v3125_v37  ;;  %v3242_v27 = vmul.f32 1.442695, %v3228_v54 }
0x117f   : > { %v3182_v34 = vadd.f32 -0.28449672, %v3174_v51  ;;  %v3175_v35 = vmul.f32 %v6417_v40, %v3167_v20  ;;  %v3161_v32 = vmul.f32 %v6431_v58, %v3153_v53  ;;  %v3168_v41 = vadd.f32 1.4214138, %v3160_v60  ;;  %v6449_v25 = vpop.eup %5006 }
0x1180   : > { %v3146_v30 = vmul.f32 1.0614054, %v6446_v39  ;;  %v5009_v62 = vpop.eup %5008  ;;  %v3147_v1 = vmul.f32 1.0614054, %v6449_v25  ;;  %5018 = vpow2.f32 %v3238_v45 }
0x1181   : > { %v3190_v4 = vmul.f32 %v6405_v24, %v3182_v34  ;;  %v3183_v16 = vadd.f32 -0.28449672, %v3175_v35  ;;  %v3169_v22 = vadd.f32 1.4214138, %v3161_v32  ;;  %v3176_v55 = vmul.f32 %v6427_v7, %v3168_v41 }
0x1182   : > { %v3154_v61 = vadd.f32 -1.4531521, %v3146_v30  ;;  %v3155_v23 = vadd.f32 -1.4531521, %v3147_v1  ;;  %5020 = vpow2.f32 %v3240_v49  ;;  %v3229_v34 = vmul.f32 %v3221_v57, %v3109_v18 }
0x1183   : > { %v3198_v10 = vadd.f32 0.2548296, %v3190_v4  ;;  %v3191_v52 = vmul.f32 %v6417_v40, %v3183_v16  ;;  %v3177_v59 = vmul.f32 %v6431_v58, %v3169_v22  ;;  %v3184_v17 = vadd.f32 -0.28449672, %v3176_v55  ;;  %v6458_v44 = vpop.eup %5010 }
0x1184   : > { %v3162_v21 = vmul.f32 %v6446_v39, %v3154_v61  ;;  %v3163_v26 = vmul.f32 %v6449_v25, %v3155_v23  ;;  %v5013_v60 = vpop.eup %5012  ;;  %v3148_v45 = vmul.f32 1.0614054, %v6458_v44  ;;  %5022 = vpow2.f32 %v3242_v27 }
0x1185   : > { %v3206_v14 = vmul.f32 %v6405_v24, %v3198_v10  ;;  %v3199_v43 = vadd.f32 0.2548296, %v3191_v52  ;;  %v3185_v51 = vadd.f32 -0.28449672, %v3177_v59  ;;  %v3192_v53 = vmul.f32 %v6427_v7, %v3184_v17 }
0x1186   : > { %v3170_v32 = vadd.f32 1.4214138, %v3162_v21  ;;  %v5015_v37 = vpop.eup %5014  ;;  %v3171_v49 = vadd.f32 1.4214138, %v3163_v26  ;;  %v3156_v22 = vadd.f32 -1.4531521, %v3148_v45 }
0x1187   : > { %v3246_v20 = vmul.f32 %v5003_v33, %v3206_v14  ;;  %v3207_v35 = vmul.f32 %v6417_v40, %v3199_v43  ;;  %v3193_v24 = vmul.f32 %v6431_v58, %v3185_v51  ;;  %v3200_v41 = vadd.f32 0.2548296, %v3192_v53 }
0x1188   : > { %v3178_v16 = vmul.f32 %v6446_v39, %v3170_v32  ;;  %v3179_v40 = vmul.f32 %v6449_v25, %v3171_v49  ;;  %v3244_v10 = vmul.f32 1.442695, %v3229_v34  ;;  %v6468_v55 = vpop.eup %5016  ;;  %v3164_v59 = vmul.f32 %v6458_v44, %v3156_v22 }
0x1189   : > { %v3254_v4 = vsub.f32 1.0, %v3246_v20  ;;  %v3247_v54 = vmul.f32 %v5009_v62, %v3207_v35  ;;  %v3201_v33 = vadd.f32 0.2548296, %v3193_v24  ;;  %v3208_v18 = vmul.f32 %v6427_v7, %v3200_v41 }
0x118a   : > { %v3186_v52 = vadd.f32 -0.28449672, %v3178_v16  ;;  %v3187_v14 = vadd.f32 -0.28449672, %v3179_v40  ;;  %v3149_v17 = vmul.f32 1.0614054, %v6468_v55  ;;  %v5019_v23 = vpop.eup %5018  ;;  %5024 = vpow2.f32 %v3244_v10 }
0x118b   : > { %v3262_v30 = vsub.f32 0.0, %v3254_v4  ;;  %v3255_v1 = vsub.f32 1.0, %v3247_v54  ;;  %v3209_v57 = vmul.f32 %v6431_v58, %v3201_v33  ;;  %v3248_v61 = vmul.f32 %v5013_v60, %v3208_v18 }
0x118c   : > { %v3194_v51 = vmul.f32 %v6446_v39, %v3186_v52  ;;  %v3195_v20 = vmul.f32 %v6449_v25, %v3187_v14  ;;  %v3172_v58 = vadd.f32 1.4214138, %v3164_v59  ;;  %v3157_v53 = vadd.f32 -1.4531521, %v3149_v17  ;;  %v5021_v26 = vpop.eup %5020 }
0x118d   : > { %v3270_v62 = vsel %vm3086_vm11, %v3254_v4, %v3262_v30  ;;  %v3263_v27 = vsub.f32 0.0, %v3255_v1  ;;  %v3249_v43 = vmul.f32 %v5015_v37, %v3209_v57  ;;  %v3256_v21 = vsub.f32 1.0, %v3248_v61 }
0x118e   : > { %v3278_v7 = vadd.f32 1.0, %v3270_v62  ;;  %v3202_v60 = vadd.f32 0.2548296, %v3194_v51  ;;  %v3203_v32 = vadd.f32 0.2548296, %v3195_v20  ;;  %v3180_v45 = vmul.f32 %v6458_v44, %v3172_v58  ;;  %v5023_v54 = vpop.eup %5022 }
0x118f   : > { %v3271_v36 = vsel %vm3087_vm12, %v3255_v1, %v3263_v27  ;;  %v3257_v34 = vsub.f32 1.0, %v3249_v43  ;;  %v3264_v24 = vsub.f32 0.0, %v3256_v21  ;;  %v3165_v49 = vmul.f32 %v6468_v55, %v3157_v53 }
0x1190   : > { %v3279_v35 = vadd.f32 1.0, %v3271_v36  ;;  %v3286_v37 = vmul.f32 %v3278_v7, %v6389_v19  ;;  %v3210_v41 = vmul.f32 %v6446_v39, %v3202_v60  ;;  %v3211_v16 = vmul.f32 %v6449_v25, %v3203_v32 }
0x1191   : > { %v3265_v4 = vsub.f32 0.0, %v3257_v34  ;;  %v3272_v56 = vsel %vm3088_vm13, %v3256_v21, %v3264_v24  ;;  %v3188_v22 = vadd.f32 -0.28449672, %v3180_v45  ;;  %v3173_v19 = vadd.f32 1.4214138, %v3165_v49 }
0x1192   : > { %v3287_v33 = vmul.f32 %v3279_v35, %v6398_v9  ;;  %v3280_v30 = vadd.f32 1.0, %v3272_v56  ;;  %v3250_v40 = vmul.f32 %v5019_v23, %v3210_v41  ;;  %v3251_v39 = vmul.f32 %v5021_v26, %v3211_v16  ;;  %v4061_v56 = vld [vmem:[#allocation6 + $0x1] ss:$0 sm:$0xff] }
0x1193   : > { %v3273_v18 = vsel %vm3089_vm14, %v3257_v34, %v3265_v4  ;;  %v3196_v57 = vmul.f32 %v6458_v44, %v3188_v22  ;;  %v3181_v9 = vmul.f32 %v6468_v55, %v3173_v19  ;;  %v3074_v21 = vmul.f32 0.5, %v6373_v12 }
0x1194   : > { %v3294_v10 = vpack.c.bf16 %v3287_v33, %v3286_v37  ;;  %v3281_v1 = vadd.f32 1.0, %v3273_v18  ;;  %v3258_v52 = vsub.f32 1.0, %v3250_v40  ;;  %v3288_v13 = vmul.f32 %v3280_v30, %v6400_v47  ;;  %v5025_v7 = vpop.eup %5024  ;;  %v4825_v33 = vld [vmem:[%s6600_s10 + $0x58] sm:$0xff]  }
0x1195   : > { %v3259_v25 = vsub.f32 1.0, %v3251_v39  ;;  %v3204_v62 = vadd.f32 0.2548296, %v3196_v57  ;;  %v3189_v61 = vadd.f32 -0.28449672, %v3181_v9  ;;  %v3075_v20 = vmul.f32 0.5, %v6377_v29 }
0x1196   : > { %v3289_v59 = vmul.f32 %v3281_v1, %v6442_v0  ;;  %4621 = vmatprep.mubr.msk.bf16.mxu1 %vm1714_vm10, %v3294_v10  ;;  %v3266_v48 = vsub.f32 0.0, %v3258_v52  ;;  %v3076_v45 = vmul.f32 0.5, %v6396_v28  ;;  %v3077_v37 = vmul.f32 0.5, %v6412_v11  ;;  %v4822_v28 = vld [vmem:[%s6600_s10 + $0x40] sm:$0xff]   ;;  %v4823_v11 = vld [vmem:[%s6600_s10 + $0x48] sm:$0xff]  }
0x1197   : > { %v3267_v17 = vsub.f32 0.0, %v3259_v25  ;;  %v3212_v23 = vmul.f32 %v6458_v44, %v3204_v62  ;;  %v3197_v43 = vmul.f32 %v6468_v55, %v3189_v61  ;;  %4653 = vmatprep.subr.bf16.mxu1 %v4822_v28 }
0x1198   : > { %v3295_v14 = vpack.c.bf16 %v3289_v59, %v3288_v13  ;;  %v3274_v27 = vsel %vm3090_vm15, %v3258_v52, %v3266_v48 }
0x1199   : > { %v3282_v51 = vadd.f32 1.0, %v3274_v27  ;;  %v3275_v47 = vsel %vm3091_vm1, %v3259_v25, %v3267_v17  ;;  %v3252_v0 = vmul.f32 %v5023_v54, %v3212_v23  ;;  %v3205_v53 = vadd.f32 0.2548296, %v3197_v43  ;;  %v4821_v54 = vld [vmem:[%s6598_s8 + $0x78] sm:$0xff]  }
0x119a   : > { %4622 = vmatmul.mubr.msk.bf16.vlgmr.msra.gmra.mrb[56].mxu1 %vm1714_vm10, %v3295_v14  ;;  %v3283_v58 = vadd.f32 1.0, %v3275_v47  ;;  %4643 = vmatprep.subr.bf16.mxu0 %v4821_v54 }
0x119b   : > { %v3260_v44 = vsub.f32 1.0, %v3252_v0  ;;  %v3290_v26 = vmul.f32 %v3282_v51, %v3074_v21  ;;  %v3213_v15 = vmul.f32 %v6468_v55, %v3205_v53  ;;  %4644 = vmatpush3.bf16.msra.mxu0 %v4821_v54  ;;  %4654 = vmatpush3.bf16.msra.mxu1 %v4822_v28  ;;  %v4084_v51 = vld [vmem:[#allocation7 + $0x1] ss:$0 sm:$0xff] }
0x119c   : > { %v3291_v36 = vmul.f32 %v3283_v58, %v3075_v20  ;;  %4655 = vmatprep.subr.bf16.mxu1 %v4823_v11 }
0x119d   : > { %v3268_v34 = vsub.f32 0.0, %v3260_v44  ;;  %v3253_v35 = vmul.f32 %v5025_v7, %v3213_v15 }
0x119e   : > { %v3296_v60 = vpack.c.bf16 %v3291_v36, %v3290_v26 }
0x119f   : > { %v3276_v46 = vsel %vm3092_vm2, %v3260_v44, %v3268_v34  ;;  %v3261_v24 = vsub.f32 1.0, %v3253_v35  ;;  %4656 = vmatpush3.bf16.msra.mxu1 %v4823_v11 }
0x11a0   : > { %4625 = vmatprep.mubr.msk.bf16.mxu1 %vm1714_vm10, %v3296_v60  ;;  %v3284_v12 = vadd.f32 1.0, %v3276_v46  ;;  %4657 = vmatprep.subr.bf16.mxu1 %v4824_v63 }
0x11a1   : > { %v3269_v32 = vsub.f32 0.0, %v3261_v24 }
0x11a2   : > { %v3292_v55 = vmul.f32 %v3284_v12, %v3076_v45 }
0x11a3   : > { %v3277_v29 = vsel %vm3093_vm0, %v3261_v24, %v3269_v32  ;;  %4658 = vmatpush3.bf16.msra.mxu1 %v4824_v63 }
0x11a4   : > { %v3285_v4 = vadd.f32 1.0, %v3277_v29  ;;  %4659 = vmatprep.subr.bf16.mxu1 %v4825_v33 }
0x11a6   : > { %v3293_v41 = vmul.f32 %v3285_v4, %v3077_v37 }
0x11a7   : > { %4660 = vmatpush3.bf16.msra.mxu1 %v4825_v33 }
0x11a8   : > { %v3297_v49 = vpack.c.bf16 %v3293_v41, %v3292_v55 }
0x11aa   : > { %4626 = vmatmul.mubr.msk.bf16.gmra.mrb[60].mxu1 %vm1714_vm10, %v3297_v49 }
0x126d   : > { %v4623_v16 = vpop.f32.mrb[56].mxu1 }
0x126e   : > { %v3369_v22 = vpop.f32.mrb[57].mxu1  ;;  %v3378_v40 = vadd.f32 %v4623_v16, %v4061_v56 }
0x126f   : > { %v3370_v30 = vadd.f32 %v4061_v56, %v3369_v22  ;;  %v4624_v18 = vpop.f32.mrb[58].mxu1 }
0x1270   : > { %v3381_v19 = vadd.f32 %v4624_v18, %v4061_v56  ;;  %v3372_v10 = vpop.f32.mrb[59].mxu1  ;;  %v6540_v9 = vadd.f32 %v3378_v40, %v6046_v8 }
0x1271   : > { %v3373_v1 = vadd.f32 %v4061_v56, %v3372_v10  ;;  %v6534_v57 = vadd.f32 %v3370_v30, %v6040_v5 }
0x1272   : > { %v6531_v39 = vadd.f32 %v3381_v19, %v6037_v3 }
0x1273   : > { %v6537_v52 = vadd.f32 %v3373_v1, %v6043_v6 }
0x1274   : > { %v3409_v59 = vpack.c.bf16 %v6531_v39, %v6540_v9 }
0x1275   : > { %v3408_v13 = vpack.c.bf16 %v6537_v52, %v6534_v57 }
0x1277   : > { %4645 = vmatprep.mubr.bf16.mxu0 %v3408_v13 }
0x1278   : > { %4646 = vmatmul.mubr.bf16.vlgmr.msra.gmra.mrb[64].mxu0 %v3409_v59 }
0x127d   : > { %v4627_v25 = vpop.f32.mrb[60].mxu1 }
0x127e   : > { %v3385_v3 = vpop.f32.mrb[61].mxu1  ;;  %v3394_v5 = vadd.f32 %v4627_v25, %v4061_v56 }
0x127f   : > { %v3386_v62 = vadd.f32 %v4061_v56, %v3385_v3  ;;  %v4628_v48 = vpop.f32.mrb[62].mxu1 }
0x1280   : > { %v3397_v61 = vadd.f32 %v4628_v48, %v4061_v56  ;;  %v3388_v14 = vpop.f32.mrb[63].mxu1  ;;  %v6556_v7 = vadd.f32 %v3394_v5, %v6062_v31  ;;  %v4829_v31 = vld [vmem:[%s6600_s10 + $0x78] sm:$0xff]  }
0x1281   : > { %v3389_v6 = vadd.f32 %v4061_v56, %v3388_v14  ;;  %v6550_v8 = vadd.f32 %v3386_v62, %v6056_v50  ;;  %v4827_v50 = vld [vmem:[%s6600_s10 + $0x68] sm:$0xff]  }
0x1282   : > { %v6547_v17 = vadd.f32 %v3397_v61, %v6053_v2  ;;  %v4826_v2 = vld [vmem:[%s6600_s10 + $0x60] sm:$0xff]  }
0x1283   : > { %v6553_v23 = vadd.f32 %v3389_v6, %v6059_v38  ;;  %4661 = vmatprep.subr.bf16.mxu1 %v4826_v2  ;;  %v4828_v38 = vld [vmem:[%s6600_s10 + $0x70] sm:$0xff]  }
0x1284   : > { %v3411_v43 = vpack.c.bf16 %v6547_v17, %v6556_v7  ;;  %4662 = vmatpush3.bf16.msra.mxu1 %v4826_v2 }
0x1285   : > { %v3410_v27 = vpack.c.bf16 %v6553_v23, %v6550_v8  ;;  %4663 = vmatprep.subr.bf16.mxu1 %v4827_v50 }
0x1287   : > { %4649 = vmatprep.mubr.bf16.mxu0 %v3410_v27 }
0x1288   : > { %4650 = vmatmul.mubr.bf16.gmra.mrb[68].mxu0 %v3411_v43  ;;  %4664 = vmatpush3.bf16.msra.mxu1 %v4827_v50 }
0x1289   : > { %4665 = vmatprep.subr.bf16.mxu1 %v4828_v38 }
0x128c   : > { %4666 = vmatpush3.bf16.msra.mxu1 %v4828_v38 }
0x128d   : > { %4667 = vmatprep.subr.bf16.mxu1 %v4829_v31 }
0x1290   : > { %4668 = vmatpush3.bf16.msra.mxu1 %v4829_v31 }
0x134b   : > { %v4647_v47 = vpop.f32.mrb[64].mxu0 }
0x134c   : > { %v3528_v0 = vadd.f32 %v4647_v47, %v4084_v51  ;;  %v3519_v21 = vpop.f32.mrb[65].mxu0 }
0x134d   : > { %v3520_v20 = vadd.f32 %v4084_v51, %v3519_v21  ;;  %v4648_v58 = vpop.f32.mrb[66].mxu0 }
0x134e   : > { %v3552_v53 = vadd.f32 3.0, %v3528_v0  ;;  %v3531_v44 = vadd.f32 %v4648_v58, %v4084_v51  ;;  %v3522_v26 = vpop.f32.mrb[67].mxu0  ;;  %v4109_v58 = vld [vmem:[#allocation9 + $0x1] ss:$0 sm:$0xff] }
0x134f   : > { %v3550_v36 = vadd.f32 3.0, %v3520_v20  ;;  %v3523_v15 = vadd.f32 %v4084_v51, %v3522_v26 }
0x1350   : > { %v3560_v34 = vmax.f32 %v3552_v53, 0.0  ;;  %v3553_v60 = vadd.f32 3.0, %v3531_v44 }
0x1351   : > { %v3558_v35 = vmax.f32 %v3550_v36, 0.0  ;;  %v3551_v46 = vadd.f32 3.0, %v3523_v15 }
0x1352   : > { %v3568_v24 = vmin.f32 %v3560_v34, 6.0  ;;  %v3561_v32 = vmax.f32 %v3553_v60, 0.0 }
0x1353   : > { %v3566_v12 = vmin.f32 %v3558_v35, 6.0  ;;  %v3559_v29 = vmax.f32 %v3551_v46, 0.0 }
0x1354   : > { %v3576_v45 = vmul.f32 %v3568_v24, %v3528_v0  ;;  %v3569_v37 = vmin.f32 %v3561_v32, 6.0 }
0x1355   : > { %v3574_v4 = vmul.f32 %v3566_v12, %v3520_v20  ;;  %v3567_v55 = vmin.f32 %v3559_v29, 6.0 }
0x1356   : > { %v3577_v41 = vmul.f32 %v3569_v37, %v3531_v44  ;;  %v3584_v42 = vmul.f32 0.16666667, %v3576_v45 }
0x1357   : > { %v3575_v49 = vmul.f32 %v3567_v55, %v3523_v15  ;;  %v3582_v28 = vmul.f32 0.16666667, %v3574_v4 }
0x1358   : > { %v3585_v54 = vmul.f32 0.16666667, %v3577_v41 }
0x1359   : > { %v3583_v11 = vmul.f32 0.16666667, %v3575_v49 }
0x135a   : > { %v3591_v63 = vpack.c.bf16 %v3585_v54, %v3584_v42 }
0x135b   : > { %v3590_v33 = vpack.c.bf16 %v3583_v11, %v3582_v28  ;;  %v4651_v56 = vpop.f32.mrb[68].mxu0 }
0x135c   : > { %v3544_v16 = vadd.f32 %v4651_v56, %v4084_v51  ;;  %v3535_v22 = vpop.f32.mrb[69].mxu0 }
0x135d   : > { %4669 = vmatprep.mubr.bf16.mxu1 %v3590_v33  ;;  %v3536_v30 = vadd.f32 %v4084_v51, %v3535_v22  ;;  %v4652_v18 = vpop.f32.mrb[70].mxu0 }
0x135e   : > { %4670 = vmatmul.mubr.bf16.vlgmr.msra.gmra.mrb[64].mxu1 %v3591_v63  ;;  %v3556_v40 = vadd.f32 3.0, %v3544_v16  ;;  %v3547_v19 = vadd.f32 %v4652_v18, %v4084_v51  ;;  %v3538_v10 = vpop.f32.mrb[71].mxu0 }
0x135f   : > { %v3554_v1 = vadd.f32 3.0, %v3536_v30  ;;  %v3539_v13 = vadd.f32 %v4084_v51, %v3538_v10 }
0x1360   : > { %v3564_v59 = vmax.f32 %v3556_v40, 0.0  ;;  %v3557_v25 = vadd.f32 3.0, %v3547_v19 }
0x1361   : > { %v3562_v3 = vmax.f32 %v3554_v1, 0.0  ;;  %v3555_v62 = vadd.f32 3.0, %v3539_v13 }
0x1362   : > { %v3572_v48 = vmin.f32 %v3564_v59, 6.0  ;;  %v3565_v5 = vmax.f32 %v3557_v25, 0.0 }
0x1363   : > { %v3570_v61 = vmin.f32 %v3562_v3, 6.0  ;;  %v3563_v14 = vmax.f32 %v3555_v62, 0.0 }
0x1364   : > { %v3580_v6 = vmul.f32 %v3572_v48, %v3544_v16  ;;  %v3573_v27 = vmin.f32 %v3565_v5, 6.0 }
0x1365   : > { %v3578_v43 = vmul.f32 %v3570_v61, %v3536_v30  ;;  %v3571_v2 = vmin.f32 %v3563_v14, 6.0 }
0x1366   : > { %v3581_v50 = vmul.f32 %v3573_v27, %v3547_v19  ;;  %v3588_v31 = vmul.f32 0.16666667, %v3580_v6 }
0x1367   : > { %v3579_v38 = vmul.f32 %v3571_v2, %v3539_v13  ;;  %v3586_v0 = vmul.f32 0.16666667, %v3578_v43 }
0x1368   : > { %v3589_v47 = vmul.f32 0.16666667, %v3581_v50 }
0x1369   : > { %v3587_v21 = vmul.f32 0.16666667, %v3579_v38 }
0x136a   : > { %v3593_v20 = vpack.c.bf16 %v3589_v47, %v3588_v31 }
0x136b   : > { %v3592_v51 = vpack.c.bf16 %v3587_v21, %v3586_v0 }
0x136d   : > { %4673 = vmatprep.mubr.bf16.mxu1 %v3592_v51 }
0x136e   : > { %4674 = vmatmul.mubr.bf16.gmra.mrb[68].mxu1 %v3593_v20 }
0x1431   : > { %v4671_v53 = vpop.f32.mrb[64].mxu1 }
0x1432   : > { %v3710_v44 = vadd.f32 %v4671_v53, %v4109_v58  ;;  %v3701_v26 = vpop.f32.mrb[65].mxu1 }
0x1433   : > { %v3702_v36 = vadd.f32 %v4109_v58, %v3701_v26  ;;  %v4672_v15 = vpop.f32.mrb[66].mxu1 }
0x1434   : > { %v3713_v34 = vadd.f32 %v4672_v15, %v4109_v58  ;;  %v3704_v60 = vpop.f32.mrb[67].mxu1  ;;  %v3734_v46 = vadd.f32 %v3710_v44, %v6540_v9 }
0x1435   : > { %v3705_v35 = vadd.f32 %v4109_v58, %v3704_v60  ;;  %v3732_v32 = vadd.f32 %v3702_v36, %v6534_v57 }
0x1436   : > { %v3735_v24 = vadd.f32 %v3713_v34, %v6531_v39 }
0x1437   : > { %v3733_v12 = vadd.f32 %v3705_v35, %v6537_v52 }
0x1438   : > { %v4146_v29 = vpack.c.bf16 %v3735_v24, %v3734_v46 }
0x1439   : > { %v4141_v45 = vpack.c.bf16 %v3733_v12, %v3732_v32 }
0x143a   : > { %4158 = vst [vmem:[%s486_s27 + $0x8] sm:$0xff] %v4146_v29  }
0x143b   : > { %4142 = vst [vmem:[%s486_s27] sm:$0xff] %v4141_v45  }
0x1441   : > { %v4675_v37 = vpop.f32.mrb[68].mxu1 }
0x1442   : > { %v3726_v4 = vadd.f32 %v4675_v37, %v4109_v58  ;;  %v3717_v55 = vpop.f32.mrb[69].mxu1 }
0x1443   : > { %v3718_v41 = vadd.f32 %v4109_v58, %v3717_v55  ;;  %v4676_v9 = vpop.f32.mrb[70].mxu1 }
0x1444   : > { %v3729_v49 = vadd.f32 %v4676_v9, %v4109_v58  ;;  %v3720_v39 = vpop.f32.mrb[71].mxu1  ;;  %v3738_v57 = vadd.f32 %v3726_v4, %v6556_v7 }
0x1445   : > { %v3721_v42 = vadd.f32 %v4109_v58, %v3720_v39  ;;  %v3736_v28 = vadd.f32 %v3718_v41, %v6550_v8 }
0x1446   : > { %v3739_v54 = vadd.f32 %v3729_v49, %v6547_v17 }
0x1447   : > { %v3737_v52 = vadd.f32 %v3721_v42, %v6553_v23 }
0x1448   : > { %v4156_v11 = vpack.c.bf16 %v3739_v54, %v3738_v57 }
0x1449   : > { %v4151_v63 = vpack.c.bf16 %v3737_v52, %v3736_v28 }
0x144a   : > { %4160 = vst [vmem:[%s486_s27 + $0x18] sm:$0xff] %v4156_v11  }
0x144b   : > { %4159 = vst [vmem:[%s486_s27 + $0x10] sm:$0xff] %v4151_v63  }
0x144c PF: > { %s6619_s22 = sld [smem:[#allocation13_spill]] }
0x1452   : > { %s25_s21 = sadd.s32 1, %s6619_s22  }
0x1453   : > { %p22_p6 = scmp.ge.s32.totalorder %s25_s21, 4  }
0x1455   :  { %24 = sbr.rel (!%p22_p6) target bundleno = 5 (0x5), region = 132 }
0x145c   :  { %3801 = vsyncpa [#allocation3], 1 }
0x145d   :  { %3803 = vsyncpa [#allocation3 + $0x1], 1 }
0x145e   :  { %3804 = vsyncpa [#allocation5], 1 }
0x145f   :  { %3805 = vsyncpa [#allocation8], 1 }

// kernel: levit_forward.7
= control target key start
LH: loop header
LB: loop body
LE: loop exit
PB: predicated region body
PF: predicated region fallthrough
CT: control target
= control target key end

     0   :  { %17 = vsyncpa [#allocation3], 0  ;;  %s3005_s21 = smov 0   ;;  %s3520_s0 = inlined_call_operand.vmem [shape: bf16[2,16,128], index: 0, kind: input, shape index: {}]   ;;  %s3521_s1 = inlined_call_operand.vmem [shape: bf16[2,128,128], index: 1, kind: input, shape index: {}]   ;;  %s3522_s2 = inlined_call_operand.hbm [shape: f32[2,1,128], index: 2, kind: input, shape index: {}]   ;;  %s3523_s3 = inlined_call_operand.vmem [shape: bf16[2,128,128], index: 3, kind: input, shape index: {}]   ;;  %s3524_s4 = inlined_call_operand.vmem [shape: f32[2,1,128], index: 4, kind: input, shape index: {}]   ;;  %s3525_s5 = inlined_call_operand.vmem [shape: f32[2,2,16,16], index: 5, kind: input, shape index: {}]   ;;  %s3526_s6 = inlined_call_operand.vmem [shape: bf16[2,32,128], index: 6, kind: input, shape index: {}]   ;;  %s3527_s7 = inlined_call_operand.vmem [shape: f32[2,1,128], index: 7, kind: input, shape index: {}]   ;;  %s3528_s8 = inlined_call_operand.vmem [shape: bf16[2,128,128], index: 8, kind: input, shape index: {}]   ;;  %s3529_s9 = inlined_call_operand.vmem [shape: f32[2,1,128], index: 9, kind: input, shape index: {}]   ;;  %s3530_s10 = inlined_call_operand.vmem [shape: bf16[2,128,128], index: 10, kind: input, shape index: {}]   ;;  %s3531_s11 = inlined_call_operand.vmem [shape: f32[2,1,128], index: 11, kind: input, shape index: {}]   ;;  %s3532_s12 = inlined_call_operand.vmem [shape: bf16[2,16,128], index: 12, kind: output, shape index: {}]  }
   0x1 LB: > { %s3011_s22 = sadd.s32 4294967295, %s2929_s21   ;;  %p2239_p0 = scmp.ge.s32.totalorder %s2929_s21, 1  ;;  %s2929_s21 = sphi %s3005_s21, %s23_s21  }
   0x2   : > { %p311_p1 = scmp.lt.s32.totalorder %s2929_s21, 3  ;;  %s2931_s23 = smov [#allocation2]  }
   0x3   : > { %s326_s24 = sshll.u32 %s2931_s23, 4  ;;  %p3533_p3 = scmp.eq.s32.totalorder %s3011_s22, 0  ;;  %s327_s24 = int_to_ptr.vmem [resolvable:$true] %s326_s24 }
   0x4   : > { %p3015_p2 = pnand %p2239_p0, %p311_p1  ;;  %s2891_s29 = scalar_lea.hbm %s3522_s2, 32 }
   0x5   : > { %p2892_p6 = scmp.ne.s32.totalorder %s3522_s2, %s2891_s29  ;;  %p2898_p10 = scmp.lt.u32.totalorder %s2891_s29, %s3522_s2 }
   0x6   : > { %s3535_s25 = scalar_select %p3015_p2, 1, 0 }
   0x7   : > { %p2750_p4 = pneg %p3015_p2 }
   0x9   : > { %p3024_p5 = pnand %p3533_p3, %p2750_p4 }
   0xb   : > { %p2893_p7 = pneg %p3024_p5 }
   0xd   : > { %p2894_p8 = pnand %p2893_p7, %p2892_p6 }
   0xf   : > { %p2895_p9 = pneg %p2894_p8 }
  0x11   : > { %p2900_p11 = pnand %p2898_p10, %p2895_p9 }
  0x13   : > { %2903 = shalt.err (!%p2900_p11)
}
  0x14   : > { %s2904_s16 = scalar_lea.vmem %s327_s24, 32  ;;  %p2912_p1 = scmp.lt.s32.totalorder %s327_s24, %s327_s24 }
  0x15   : > { %p2905_p12 = scmp.ne.s32.totalorder %s327_s24, %s2904_s16  ;;  %p2913_p4 = scmp.lt.s32.totalorder %s2904_s16, %s2904_s16 }
  0x17   : > { %p2907_p13 = pnand %p2905_p12, %p2893_p7  ;;  %p2914_p3 = por %p2913_p4, %p2912_p1 }
  0x19   : > { %p2908_p0 = pneg %p2907_p13 }
  0x1b   : > { %p2915_p2 = pnand %p2914_p3, %p2908_p0 }
  0x1d   : > { %2918 = shalt.err (!%p2915_p2)
}
  0x1e   : > { %s2932_s17 = smov 16   ;;  %s2933_s18 = smov 1  }
  0x1f   : > { %2753 = dma.hbm_to_vmem [thread:$0]  (!%p3024_p5), %s3522_s2, 32, %s327_s24, [#allocation3], %s2932_s17, %s2932_s17, %s2933_s18  }
  0x20   : > { %p3537_p6 = scmp.ne.s32.totalorder %s3535_s25, 0 }
  0x21   : > { %p3538_p8 = scmp.eq.s32.totalorder (!%p3537_p6), %s3011_s22, 0 }
  0x22   : > { %377 = sbr.rel (%p3537_p6) target bundleno = 3933 (0xf5d), region = 68 }
  0x29   : > { %2924 = dma.done.wait (%p3538_p8), [#allocation3], 32   ;;  %p3539_p7 = pmov %p3538_p8 }
  0x2a   : > { %v2934_v0 = vmov 0.0   ;;  %vm2935_vm0 = vmmov 0   ;;  %v2773_v1 = vld [vmem:[%s3523_s3] sm:$0xff]   ;;  %v2774_v2 = vld [vmem:[%s3523_s3 + $0x8] sm:$0xff]   ;;  %v2776_v5 = vld [vmem:[%s3523_s3 + $0x10] sm:$0xff]   ;;  %p419_p2 = scmp.lt.s32.totalorder %s3011_s22, 1 }
  0x2b   : > { %2926 = vsyncadd (%p3539_p7), [#allocation3], 4294967264  ;;  %2542 = vmatprep.subr.bf16.mxu1 %v2934_v0  ;;  %2522 = vmatprep.subr.bf16.mxu0 %v2934_v0  ;;  %v2775_v3 = vld [vmem:[%s3521_s1] sm:$0xff]   ;;  %v2777_v4 = vld [vmem:[%s3521_s1 + $0x8] sm:$0xff]   ;;  %vm666_vm1 = vcmask 130048   ;;  %s2936_s30 = smov 112  }
  0x2c   : > { %2558 = vmatprep.mubr.msk.bf16.mxu1 %vm2935_vm0, %v2934_v0  ;;  %2538 = vmatprep.mubr.msk.bf16.mxu0 %vm2935_vm0, %v2934_v0  ;;  %v2779_v6 = vld [vmem:[%s3521_s1 + $0x10] sm:$0xff]   ;;  %v2778_v7 = vld [vmem:[%s3523_s3 + $0x18] sm:$0xff]   ;;  %s3541_s22 = smov (!%p419_p2, %s3011_s22), 1  ;;  %v2780_v9 = vld [vmem:[%s3523_s3 + $0x20] sm:$0xff]   ;;  %s2937_s23 = smov 80   ;;  %vm1010_vm4 = vcmask 261120  }
  0x2d   : > { %2543 = vmatpush3.bf16.msra.mxu1 %v2773_v1  ;;  %2523 = vmatpush3.bf16.msra.mxu0 %v2775_v3  ;;  %v2781_v8 = vld [vmem:[%s3521_s1 + $0x18] sm:$0xff]   ;;  %v2782_v10 = vld [vmem:[%s3523_s3 + $0x28] sm:$0xff]   ;;  %v2783_v11 = vld [vmem:[%s3521_s1 + $0x20] sm:$0xff]   ;;  %s2419_s29 = sshll.u32 %s3541_s22, 3  ;;  %s2938_s24 = smov 96  }
  0x2e   : > { %2544 = vmatprep.subr.bf16.mxu1 %v2934_v0  ;;  %2524 = vmatprep.subr.bf16.mxu0 %v2934_v0  ;;  %v2785_v12 = vld [vmem:[%s3521_s1 + $0x28] sm:$0xff]   ;;  %v2784_v13 = vld [vmem:[%s3523_s3 + $0x30] sm:$0xff]   ;;  %s423_s18 = scalar_lea.vmem %s3520_s0, %s2419_s29  ;;  %v2786_v15 = vld [vmem:[%s3523_s3 + $0x38] sm:$0xff]   ;;  %s2939_s25 = smov 16  }
  0x2f   : > { %v2787_v14 = vld [vmem:[%s3521_s1 + $0x30] sm:$0xff]   ;;  %v3122_v16 = vld [vmem:[%s423_s18] sm:$0xff]   ;;  %v2789_v17 = vld [vmem:[%s3521_s1 + $0x38] sm:$0xff]   ;;  %s428_s15 = scalar_lea.vmem %s3532_s12, %s2419_s29 }
  0x30   : > { %v2258_v18 = vld [vmem:[%s3524_s4] ss:$0 sm:$0xff]  ;;  %v717_v43 = vld [vmem:[%s3525_s5 + $0x8] sm:$0xff]  ;;  %v2270_v51 = vld [vmem:[%s3525_s5 + $0x10] sm:$0xff] }
  0x31   : > { %2545 = vmatpush3.bf16.msra.mxu1 %v2774_v2  ;;  %2525 = vmatpush3.bf16.msra.mxu0 %v2777_v4  ;;  %v2248_v20 = vld [vmem:[#allocation2] ss:$0 sm:$0xff]  ;;  %v2271_v55 = vld [vmem:[%s3525_s5 + $0x18] sm:$0xff] }
  0x32   : > { %2546 = vmatprep.subr.bf16.mxu1 %v2934_v0  ;;  %2526 = vmatprep.subr.bf16.mxu0 %v2934_v0  ;;  %v716_v39 = vld [vmem:[%s3525_s5] sm:$0xff] }
  0x35   : > { %2547 = vmatpush3.bf16.msra.mxu1 %v2776_v5  ;;  %2527 = vmatpush3.bf16.msra.mxu0 %v2779_v6 }
  0x36   : > { %2548 = vmatprep.subr.bf16.mxu1 %v2934_v0  ;;  %2528 = vmatprep.subr.bf16.mxu0 %v2934_v0 }
  0x39   : > { %2549 = vmatpush3.bf16.msra.mxu1 %v2778_v7  ;;  %2529 = vmatpush3.bf16.msra.mxu0 %v2781_v8 }
  0x3a   : > { %2550 = vmatprep.subr.bf16.mxu1 %v2934_v0  ;;  %2530 = vmatprep.subr.bf16.mxu0 %v2934_v0 }
  0x3d   : > { %2551 = vmatpush3.bf16.msra.mxu1 %v2780_v9  ;;  %2531 = vmatpush3.bf16.msra.mxu0 %v2783_v11 }
  0x3e   : > { %2552 = vmatprep.subr.bf16.mxu1 %v2934_v0  ;;  %2532 = vmatprep.subr.bf16.mxu0 %v2934_v0 }
  0x41   : > { %2553 = vmatpush3.bf16.msra.mxu1 %v2782_v10  ;;  %2533 = vmatpush3.bf16.msra.mxu0 %v2785_v12 }
  0x42   : > { %2554 = vmatprep.subr.bf16.mxu1 %v2934_v0  ;;  %2534 = vmatprep.subr.bf16.mxu0 %v2934_v0 }
  0x45   : > { %2555 = vmatpush3.bf16.msra.mxu1 %v2784_v13  ;;  %2535 = vmatpush3.bf16.msra.mxu0 %v2787_v14 }
  0x46   : > { %2556 = vmatprep.subr.bf16.mxu1 %v2934_v0  ;;  %2536 = vmatprep.subr.bf16.mxu0 %v2934_v0 }
  0x49   : > { %2557 = vmatpush3.bf16.msra.mxu1 %v2786_v15  ;;  %2537 = vmatpush3.bf16.msra.mxu0 %v2789_v17 }
  0x4a   : > { %2568 = vmatprep.subr.bf16.mxu1 %v2934_v0  ;;  %2562 = vmatprep.subr.bf16.mxu0 %v2934_v0 }
  0x4c   : > { %2559 = vmatmul.mubr.bf16.vlgmr.msra.gmra.mrb[0].mxu1 %v3122_v16  ;;  %2539 = vmatmul.mubr.bf16.vlgmr.msra.gmra.mrb[0].mxu0 %v3122_v16 }
  0x4d   : > { %2570 = vmatprep.mubr.msk.bf16.mxu1 %vm2935_vm0, %v2934_v0  ;;  %2564 = vmatprep.mubr.msk.bf16.mxu0 %vm2935_vm0, %v2934_v0 }
 0x11f   : > { %v657_v19 = vpop.f32.mrb[0].mxu1  ;;  %v545_v23 = vpop.f32.mrb[0].mxu0 }
 0x120   : > { %v2560_v21 = vpop.f32.mrb[1].mxu1  ;;  %v658_v24 = vadd.f32 %v2258_v18, %v657_v19  ;;  %v546_v27 = vadd.f32 %v2248_v20, %v545_v23  ;;  %v2540_v28 = vpop.f32.mrb[1].mxu0 }
 0x121   : > { %v660_v22 = vpop.f32.mrb[2].mxu1  ;;  %v548_v29 = vpop.f32.mrb[2].mxu0 }
 0x122   : > { %v661_v25 = vadd.f32 %v2258_v18, %v660_v22  ;;  %v2561_v26 = vpop.f32.mrb[3].mxu1  ;;  %v549_v31 = vadd.f32 %v2248_v20, %v548_v29  ;;  %v2541_v32 = vpop.f32.mrb[3].mxu0 }
 0x124   : > { %v3141_v30 = vpack.c.bf16 %v661_v25, %v658_v24  ;;  %v665_v33 = vpack.c.bf16 %v549_v31, %v546_v27 }
 0x126   : > { %794 = vrot.lane.b32.xlu0 %v3141_v30, %s2936_s30  ;;  %v671_v34 = vsel %vm666_vm1, %v3141_v30, 0 }
 0x127   : > { %2563 = vmatpush3.bf16.xpose.msra.mxu0 %v671_v34 }
 0x128   : > { %2574 = vmatprep.subr.bf16.mxu0 %v2934_v0 }
 0x12a   : > { %792 = vrot.lane.b32.xlu0 %v665_v33, %s2936_s30 }
 0x12e   : > { %2565 = vmatmul.mubr.msk.bf16.vlgmr.msra.gmra.mrb[4].mxu0 %vm666_vm1, %v665_v33 }
 0x12f   : > { %2576 = vmatprep.mubr.msk.bf16.mxu0 %vm2935_vm0, %v2934_v0 }
 0x198   : > { %v795_v35 = vpop.permute.xlu0 %794 }
 0x199   : > { %v800_v36 = vsel %vm666_vm1, %v795_v35, 0 }
 0x19a   : > { %2575 = vmatpush3.bf16.xpose.msra.mxu0 %v800_v36 }
 0x19b   : > { %2586 = vmatprep.subr.bf16.mxu0 %v2934_v0 }
 0x19c   : > { %v793_v37 = vpop.permute.xlu0 %792 }
 0x1a1   : > { %2577 = vmatmul.mubr.msk.bf16.vlgmr.msra.gmra.mrb[8].mxu0 %vm666_vm1, %v793_v37 }
 0x1a2   : > { %2590 = vmatprep.mubr.msk.bf16.mxu0 %vm2935_vm0, %v2934_v0 }
 0x201   : > { %v707_v38 = vpop.f32.mrb[4].mxu0 }
 0x202   : > { %v714_v40 = vmul.f32 0.25, %v707_v38  ;;  %v2566_v41 = vpop.f32.mrb[5].mxu0 }
 0x203   : > { %v710_v42 = vpop.f32.mrb[6].mxu0 }
 0x204   : > { %v715_v44 = vmul.f32 0.25, %v710_v42  ;;  %v2567_v45 = vpop.f32.mrb[7].mxu0  ;;  %v718_v46 = vadd.f32 %v716_v39, %v714_v40 }
 0x205   : > { %v2791_v45 = vld [vmem:[%s3526_s6 + $0x8] sm:$0xff]  }
 0x206   : > { %v720_v47 = vsel %vm666_vm1, %v718_v46, -inf  ;;  %v719_v48 = vadd.f32 %v717_v43, %v715_v44  ;;  %v2790_v44 = vld [vmem:[%s3526_s6] sm:$0xff]  }
 0x207   : > { %721 = vmax.xlane.f32.xlu1 %v720_v47  ;;  %2587 = vmatpush3.bf16.msra.mxu0 %v2790_v44  ;;  %v2793_v47 = vld [vmem:[%s3528_s8 + $0x8] sm:$0xff]  }
 0x208   : > { %v723_v49 = vsel %vm666_vm1, %v719_v48, -inf  ;;  %2588 = vmatprep.subr.bf16.mxu0 %v2934_v0 }
 0x20b   : > { %724 = vmax.xlane.f32.xlu1 %v723_v49  ;;  %2589 = vmatpush3.bf16.msra.mxu0 %v2791_v45  ;;  %v2795_v49 = vld [vmem:[%s3528_s8 + $0x18] sm:$0xff]  }
 0x20c   : > { %2614 = vmatprep.subr.bf16.mxu0 %v2934_v0 }
 0x274   : > { %v836_v50 = vpop.f32.mrb[8].mxu0 }
 0x275   : > { %v843_v52 = vmul.f32 0.25, %v836_v50  ;;  %v2578_v53 = vpop.f32.mrb[9].mxu0  ;;  %v2796_v50 = vld [vmem:[%s3528_s8 + $0x20] sm:$0xff]  }
 0x276   : > { %v839_v54 = vpop.f32.mrb[10].mxu0 }
 0x277   : > { %v844_v56 = vmul.f32 0.25, %v839_v54  ;;  %v2579_v57 = vpop.f32.mrb[11].mxu0  ;;  %v848_v58 = vadd.f32 %v2270_v51, %v843_v52  ;;  %v2797_v51 = vld [vmem:[%s3528_s8 + $0x28] sm:$0xff]  }
 0x279   : > { %v850_v59 = vsel %vm666_vm1, %v848_v58, -inf  ;;  %v849_v60 = vadd.f32 %v2271_v55, %v844_v56 }
 0x27a   : > { %851 = vmax.xlane.f32.xlu0 %v850_v59 }
 0x27b   : > { %v853_v61 = vsel %vm666_vm1, %v849_v60, -inf }
 0x27c   : > { %854 = vmax.xlane.f32.xlu1 %v853_v61 }
 0x290   : > { %873 = vrot.lane.b32.xlu0 %v3141_v30, %s2937_s23 }
 0x294   : > { %v722_v62 = vpop.xlane.xlu1 %721 }
 0x295   : > { %v726_v63 = vsub.f32 %v718_v46, %v722_v62  ;;  %v2792_v46 = vld [vmem:[%s3528_s8] sm:$0xff]  }
 0x297   : > { %v728_v1 = vmul.f32 1.442695, %v726_v63 }
 0x298   : > { %v725_v2 = vpop.xlane.xlu1 %724 }
 0x299   : > { %2843 = vpow2.f32 %v728_v1  ;;  %v727_v3 = vsub.f32 %v719_v48, %v725_v2  ;;  %v2794_v48 = vld [vmem:[%s3528_s8 + $0x10] sm:$0xff]  }
 0x29b   : > { %v730_v4 = vmul.f32 1.442695, %v727_v3 }
 0x29d   : > { %2845 = vpow2.f32 %v730_v4 }
 0x2a3   : > { %v2844_v5 = vpop.eup %2843 }
 0x2a4   : > { %v732_v6 = vsel %vm666_vm1, %v2844_v5, 0.0 }
 0x2a5   : > { %733 = vadd.xlane.f32.xlu1 %v732_v6 }
 0x2a7   : > { %v2846_v7 = vpop.eup %2845 }
 0x2a8   : > { %v735_v8 = vsel %vm666_vm1, %v2846_v7, 0.0 }
 0x2a9   : > { %736 = vadd.xlane.f32.xlu1 %v735_v8 }
 0x307   : > { %v852_v9 = vpop.xlane.xlu0 %851 }
 0x308   : > { %v856_v10 = vsub.f32 %v848_v58, %v852_v9 }
 0x309   : > { %v855_v11 = vpop.xlane.xlu1 %854 }
 0x30a   : > { %v858_v12 = vmul.f32 1.442695, %v856_v10  ;;  %v857_v13 = vsub.f32 %v849_v60, %v855_v11 }
 0x30b   : > { %v874_v31 = vpop.permute.xlu0 %873 }
 0x30c   : > { %2847 = vpow2.f32 %v858_v12  ;;  %v860_v14 = vmul.f32 1.442695, %v857_v13 }
 0x30e   : > { %2849 = vpow2.f32 %v860_v14 }
 0x316   : > { %v2848_v15 = vpop.eup %2847 }
 0x317   : > { %v862_v17 = vsel %vm666_vm1, %v2848_v15, 0.0 }
 0x318   : > { %v2850_v18 = vpop.eup %2849  ;;  %863 = vadd.xlane.f32.xlu1 %v862_v17 }
 0x319   : > { %v865_v19 = vsel %vm666_vm1, %v2850_v18, 0.0 }
 0x31c   : > { %866 = vadd.xlane.f32.xlu1 %v865_v19 }
 0x32d   : > { %744 = vrot.lane.b32.xlu1 %v3141_v30, %s2938_s24 }
 0x332   : > { %v734_v20 = vpop.xlane.xlu1 %733 }
 0x336   : > { %v737_v21 = vpop.xlane.xlu1 %736 }
 0x337   : > { %2851 = vrcp.f32 %v737_v21 }
 0x338   : > { %2853 = vrcp.f32 %v734_v20 }
 0x341   : > { %v2852_v23 = vpop.eup %2851 }
 0x342   : > { %v2854_v25 = vpop.eup %2853  ;;  %v741_v26 = vmul.f32 %v2852_v23, %v2846_v7 }
 0x343   : > { %v740_v27 = vmul.f32 %v2854_v25, %v2844_v5 }
 0x345   : > { %v742_v29 = vpack.c.bf16 %v741_v26, %v740_v27 }
 0x3a5   : > { %v864_v22 = vpop.xlane.xlu1 %863 }
 0x3a6   : > { %2855 = vrcp.f32 %v864_v22 }
 0x3a9   : > { %v867_v24 = vpop.xlane.xlu1 %866 }
 0x3aa   : > { %2857 = vrcp.f32 %v867_v24 }
 0x3ad   : > { %v745_v28 = vpop.permute.xlu1 %744 }
 0x3ae   : > { %2569 = vmatpush3.bf16.msra.mxu1 %v745_v28 }
 0x3af   : > { %2580 = vmatprep.subr.bf16.mxu1 %v2934_v0 }
 0x3b0   : > { %v2856_v30 = vpop.eup %2855 }
 0x3b1   : > { %2571 = vmatmul.mubr.msk.bf16.vlgmr.msra.gmra.mrb[4].mxu1 %vm666_vm1, %v742_v29  ;;  %v870_v33 = vmul.f32 %v2856_v30, %v2848_v15 }
 0x3b2   : > { %2581 = vmatpush3.bf16.msra.mxu1 %v874_v31  ;;  %2582 = vmatprep.mubr.msk.bf16.mxu1 %vm2935_vm0, %v2934_v0 }
 0x3b3   : > { %2594 = vmatprep.subr.bf16.mxu1 %v2934_v0 }
 0x3b4   : > { %v2858_v32 = vpop.eup %2857 }
 0x3b5   : > { %v871_v34 = vmul.f32 %v2858_v32, %v2850_v18 }
 0x3b7   : > { %v872_v35 = vpack.c.bf16 %v871_v34, %v870_v33 }
 0x3b9   : > { %2583 = vmatmul.mubr.msk.bf16.vlgmr.msra.gmra.mrb[8].mxu1 %vm666_vm1, %v872_v35 }
 0x3ba   : > { %2610 = vmatprep.mubr.msk.bf16.mxu1 %vm2935_vm0, %v2934_v0  ;;  %2595 = vmatpush3.bf16.msra.mxu1 %v2792_v46 }
 0x3bb   : > { %2596 = vmatprep.subr.bf16.mxu1 %v2934_v0 }
 0x3be   : > { %2597 = vmatpush3.bf16.msra.mxu1 %v2793_v47  ;;  %v2798_v47 = vld [vmem:[%s3528_s8 + $0x30] sm:$0xff]  }
 0x3bf   : > { %2598 = vmatprep.subr.bf16.mxu1 %v2934_v0 }
 0x3c2   : > { %2599 = vmatpush3.bf16.msra.mxu1 %v2794_v48  ;;  %v2799_v48 = vld [vmem:[%s3528_s8 + $0x38] sm:$0xff]  }
 0x3c3   : > { %2600 = vmatprep.subr.bf16.mxu1 %v2934_v0 }
 0x3c6   : > { %2601 = vmatpush3.bf16.msra.mxu1 %v2795_v49  ;;  %v2800_v49 = vld [vmem:[%s3530_s10] sm:$0xff]  }
 0x3c7   : > { %2602 = vmatprep.subr.bf16.mxu1 %v2934_v0 }
 0x3ca   : > { %2603 = vmatpush3.bf16.msra.mxu1 %v2796_v50  ;;  %v2801_v50 = vld [vmem:[%s3530_s10 + $0x8] sm:$0xff]  }
 0x3cb   : > { %2604 = vmatprep.subr.bf16.mxu1 %v2934_v0 }
 0x3ce   : > { %2605 = vmatpush3.bf16.msra.mxu1 %v2797_v51  ;;  %v2802_v51 = vld [vmem:[%s3530_s10 + $0x10] sm:$0xff]  }
 0x3cf   : > { %2606 = vmatprep.subr.bf16.mxu1 %v2934_v0 }
 0x3d2   : > { %2607 = vmatpush3.bf16.msra.mxu1 %v2798_v47 }
 0x3d3   : > { %2608 = vmatprep.subr.bf16.mxu1 %v2934_v0 }
 0x3d6   : > { %2609 = vmatpush3.bf16.msra.mxu1 %v2799_v48 }
 0x3d7   : > { %2634 = vmatprep.subr.bf16.mxu1 %v2934_v0 }
 0x484   : > { %v784_v36 = vpop.f32.mrb[4].mxu1 }
 0x485   : > { %v2572_v37 = vpop.f32.mrb[5].mxu1 }
 0x486   : > { %v787_v38 = vpop.f32.mrb[6].mxu1 }
 0x487   : > { %v2573_v39 = vpop.f32.mrb[7].mxu1 }
 0x48c   : > { %v913_v40 = vpop.f32.mrb[8].mxu1 }
 0x48d   : > { %922 = vrot.lane.b32.xlu1 %v913_v40, %s2939_s25  ;;  %v2584_v41 = vpop.f32.mrb[9].mxu1 }
 0x48e   : > { %v916_v42 = vpop.f32.mrb[10].mxu1 }
 0x48f   : > { %v2585_v43 = vpop.f32.mrb[11].mxu1 }
 0x491   : > { %924 = vrot.lane.b32.xlu1 %v916_v42, %s2939_s25 }
 0x4ff   : > { %v923_v52 = vpop.permute.xlu1 %922 }
 0x500   : > { %v928_v53 = vsel %vm666_vm1, %v784_v36, %v923_v52  ;;  %v2803_v52 = vld [vmem:[%s3530_s10 + $0x18] sm:$0xff]  }
 0x501   : > { %v932_v54 = vmul.f32 0.70710677, %v928_v53  ;;  %v930_v41 = vmul.f32 0.5, %v928_v53  ;;  %v2273_v53 = vld [vmem:[%s3527_s7] ss:$0 sm:$0xff] }
 0x503   : > { %vm934_vm2 = vcmp.ge.f32.partialorder %v932_v54, 0.0  ;;  %v936_v55 = vsub.f32 0.0, %v932_v54  ;;  %v925_v56 = vpop.permute.xlu1 %924 }
 0x504   : > { %v929_v57 = vsel %vm666_vm1, %v787_v38, %v925_v56 }
 0x505   : > { %v938_v58 = vsel %vm934_vm2, %v932_v54, %v936_v55  ;;  %v933_v59 = vmul.f32 0.70710677, %v929_v57  ;;  %v931_v42 = vmul.f32 0.5, %v929_v57  ;;  %v432_v55 = vunpack.c.l.bf16 %v3122_v16 }
 0x506   : > { %v940_v60 = vmul.f32 0.3275911, %v938_v58  ;;  %v966_v3 = vsub.f32 0.0, %v938_v58 }
 0x507   : > { %vm935_vm3 = vcmp.ge.f32.partialorder %v933_v59, 0.0  ;;  %v937_v61 = vsub.f32 0.0, %v933_v59 }
 0x508   : > { %v942_v62 = vadd.f32 1.0, %v940_v60  ;;  %v968_v5 = vmul.f32 %v966_v3, %v938_v58  ;;  %v433_v58 = vunpack.c.h.bf16 %v3122_v16  ;;  %v2805_v16 = vld [vmem:[%s3530_s10 + $0x28] sm:$0xff]   ;;  %v2806_v3 = vld [vmem:[%s3530_s10 + $0x30] sm:$0xff]  }
 0x509   : > { %v939_v63 = vsel %vm935_vm3, %v933_v59, %v937_v61 }
 0x50a   : > { %2859 = vrcp.f32 %v942_v62  ;;  %v941_v1 = vmul.f32 0.3275911, %v939_v63  ;;  %v967_v6 = vsub.f32 0.0, %v939_v63  ;;  %v970_v10 = vmul.f32 1.442695, %v968_v5  ;;  %v2808_v5 = vld [vmem:[%s3521_s1 + $0x40] sm:$0xff]  }
 0x50c   : > { %v943_v2 = vadd.f32 1.0, %v941_v1  ;;  %v969_v11 = vmul.f32 %v967_v6, %v939_v63  ;;  %v2810_v6 = vld [vmem:[%s3521_s1 + $0x48] sm:$0xff]  }
 0x50e   : > { %2861 = vrcp.f32 %v943_v2  ;;  %v972_v17 = vmul.f32 1.442695, %v969_v11  ;;  %v2804_v2 = vld [vmem:[%s3530_s10 + $0x20] sm:$0xff]  }
 0x50f   : > { %2863 = vpow2.f32 %v970_v10  ;;  %v2818_v10 = vld [vmem:[%s3521_s1 + $0x68] sm:$0xff]   ;;  %v2277_v11 = vld [vmem:[%s3529_s9] ss:$0 sm:$0xff] }
 0x510   : > { %2865 = vpow2.f32 %v972_v17 }
 0x514   : > { %v2860_v4 = vpop.eup %2859 }
 0x515   : > { %v948_v7 = vmul.f32 1.0614054, %v2860_v4 }
 0x517   : > { %v950_v8 = vadd.f32 -1.4531521, %v948_v7  ;;  %v2812_v7 = vld [vmem:[%s3521_s1 + $0x50] sm:$0xff]  }
 0x518   : > { %v2862_v9 = vpop.eup %2861 }
 0x519   : > { %v952_v12 = vmul.f32 %v2860_v4, %v950_v8  ;;  %v949_v13 = vmul.f32 1.0614054, %v2862_v9  ;;  %v2864_v28 = vpop.eup %2863  ;;  %v2814_v8 = vld [vmem:[%s3521_s1 + $0x58] sm:$0xff]  }
 0x51a   : > { %v2866_v33 = vpop.eup %2865 }
 0x51b   : > { %v954_v14 = vadd.f32 1.4214138, %v952_v12  ;;  %v951_v15 = vadd.f32 -1.4531521, %v949_v13 }
 0x51d   : > { %v956_v18 = vmul.f32 %v2860_v4, %v954_v14  ;;  %v953_v19 = vmul.f32 %v2862_v9, %v951_v15 }
 0x51f   : > { %v958_v20 = vadd.f32 -0.28449672, %v956_v18  ;;  %v955_v21 = vadd.f32 1.4214138, %v953_v19 }
 0x521   : > { %v960_v22 = vmul.f32 %v2860_v4, %v958_v20  ;;  %v957_v23 = vmul.f32 %v2862_v9, %v955_v21 }
 0x523   : > { %v962_v24 = vadd.f32 0.2548296, %v960_v22  ;;  %v959_v25 = vadd.f32 -0.28449672, %v957_v23 }
 0x525   : > { %v964_v26 = vmul.f32 %v2860_v4, %v962_v24  ;;  %v961_v27 = vmul.f32 %v2862_v9, %v959_v25  ;;  %v2807_v4 = vld [vmem:[%s3530_s10 + $0x38] sm:$0xff]  }
 0x527   : > { %v974_v29 = vmul.f32 %v2864_v28, %v964_v26  ;;  %v963_v31 = vadd.f32 0.2548296, %v961_v27 }
 0x529   : > { %v976_v30 = vsub.f32 1.0, %v974_v29  ;;  %v965_v32 = vmul.f32 %v2862_v9, %v963_v31  ;;  %v2816_v9 = vld [vmem:[%s3521_s1 + $0x60] sm:$0xff]  }
 0x52a   : > { %v2809_v29 = vld [vmem:[%s3523_s3 + $0x40] sm:$0xff]  }
 0x52b   : > { %v978_v34 = vsub.f32 0.0, %v976_v30  ;;  %v975_v35 = vmul.f32 %v2866_v33, %v965_v32  ;;  %v2813_v32 = vld [vmem:[%s3523_s3 + $0x50] sm:$0xff]   ;;  %v2815_v33 = vld [vmem:[%s3523_s3 + $0x58] sm:$0xff]  }
 0x52d   : > { %v980_v36 = vsel %vm934_vm2, %v976_v30, %v978_v34  ;;  %v977_v37 = vsub.f32 1.0, %v975_v35  ;;  %v2811_v30 = vld [vmem:[%s3523_s3 + $0x48] sm:$0xff]   ;;  %v2817_v34 = vld [vmem:[%s3523_s3 + $0x60] sm:$0xff]  }
 0x52e   : > { %v982_v39 = vadd.f32 1.0, %v980_v36  ;;  %v2819_v35 = vld [vmem:[%s3523_s3 + $0x68] sm:$0xff]   ;;  %v2820_v36 = vld [vmem:[%s3521_s1 + $0x70] sm:$0xff]  }
 0x52f   : > { %v979_v38 = vsub.f32 0.0, %v977_v37 }
 0x530   : > { %v984_v44 = vmul.f32 %v982_v39, %v930_v41  ;;  %v2823_v39 = vld [vmem:[%s3523_s3 + $0x78] sm:$0xff]  }
 0x531   : > { %v981_v40 = vsel %vm935_vm3, %v977_v37, %v979_v38  ;;  %v2821_v37 = vld [vmem:[%s3523_s3 + $0x70] sm:$0xff]   ;;  %v2822_v38 = vld [vmem:[%s3521_s1 + $0x78] sm:$0xff]  }
 0x532   : > { %v983_v43 = vadd.f32 1.0, %v981_v40  ;;  %v2286_v40 = vld [vmem:[%s3531_s11] ss:$0 sm:$0xff] }
 0x534   : > { %v985_v45 = vmul.f32 %v983_v43, %v931_v42 }
 0x536   : > { %v986_v46 = vpack.c.bf16 %v985_v45, %v984_v44 }
 0x538   : > { %2591 = vmatmul.mubr.msk.bf16.vlgmr.msra.gmra.mrb[12].mxu0 %vm1010_vm4, %v986_v46 }
 0x539   : > { %2630 = vmatprep.mubr.msk.bf16.mxu0 %vm2935_vm0, %v2934_v0  ;;  %2615 = vmatpush3.bf16.msra.mxu0 %v2800_v49 }
 0x53a   : > { %2616 = vmatprep.subr.bf16.mxu0 %v2934_v0 }
 0x53d   : > { %2617 = vmatpush3.bf16.msra.mxu0 %v2801_v50  ;;  %v2311_v50 = vld [vmem:[#allocation2 + $0x1] ss:$0 sm:$0xff] }
 0x53e   : > { %2618 = vmatprep.subr.bf16.mxu0 %v2934_v0 }
 0x541   : > { %2619 = vmatpush3.bf16.msra.mxu0 %v2802_v51 }
 0x542   : > { %2620 = vmatprep.subr.bf16.mxu0 %v2934_v0 }
 0x545   : > { %2621 = vmatpush3.bf16.msra.mxu0 %v2803_v52  ;;  %v2337_v52 = vld [vmem:[%s3524_s4 + $0x1] ss:$0 sm:$0xff] }
 0x546   : > { %2622 = vmatprep.subr.bf16.mxu0 %v2934_v0 }
 0x549   : > { %2623 = vmatpush3.bf16.msra.mxu0 %v2804_v2 }
 0x54a   : > { %2624 = vmatprep.subr.bf16.mxu0 %v2934_v0 }
 0x54d   : > { %2625 = vmatpush3.bf16.msra.mxu0 %v2805_v16 }
 0x54e   : > { %2626 = vmatprep.subr.bf16.mxu0 %v2934_v0 }
 0x551   : > { %2627 = vmatpush3.bf16.msra.mxu0 %v2806_v3 }
 0x552   : > { %2628 = vmatprep.subr.bf16.mxu0 %v2934_v0 }
 0x555   : > { %2629 = vmatpush3.bf16.msra.mxu0 %v2807_v4 }
 0x556   : > { %2654 = vmatprep.subr.bf16.mxu0 %v2934_v0 }
 0x60b   : > { %v1048_v54 = vpop.f32.mrb[12].mxu0 }
 0x60c   : > { %v1049_v56 = vadd.f32 %v2273_v53, %v1048_v54  ;;  %v2592_v57 = vpop.f32.mrb[13].mxu0 }
 0x60d   : > { %v1051_v59 = vpop.f32.mrb[14].mxu0 }
 0x60e   : > { %v1052_v60 = vadd.f32 %v2273_v53, %v1051_v59  ;;  %v2593_v61 = vpop.f32.mrb[15].mxu0  ;;  %v3261_v62 = vadd.f32 %v1049_v56, %v432_v55 }
 0x610   : > { %v3263_v63 = vadd.f32 %v1052_v60, %v433_v58 }
 0x612   : > { %v1057_v1 = vpack.c.bf16 %v3263_v63, %v3261_v62 }
 0x614   : > { %2611 = vmatmul.mubr.bf16.vlgmr.msra.gmra.mrb[12].mxu1 %v1057_v1 }
 0x615   : > { %2650 = vmatprep.mubr.msk.bf16.mxu1 %vm2935_vm0, %v2934_v0  ;;  %2635 = vmatpush3.bf16.msra.mxu1 %v2808_v5 }
 0x616   : > { %2636 = vmatprep.subr.bf16.mxu1 %v2934_v0 }
 0x619   : > { %2637 = vmatpush3.bf16.msra.mxu1 %v2810_v6 }
 0x61a   : > { %2638 = vmatprep.subr.bf16.mxu1 %v2934_v0 }
 0x61d   : > { %2639 = vmatpush3.bf16.msra.mxu1 %v2812_v7  ;;  %v2347_v7 = vld [vmem:[%s3525_s5 + $0x20] sm:$0xff] }
 0x61e   : > { %2640 = vmatprep.subr.bf16.mxu1 %v2934_v0 }
 0x621   : > { %2641 = vmatpush3.bf16.msra.mxu1 %v2814_v8 }
 0x622   : > { %2642 = vmatprep.subr.bf16.mxu1 %v2934_v0 }
 0x625   : > { %2643 = vmatpush3.bf16.msra.mxu1 %v2816_v9 }
 0x626   : > { %2644 = vmatprep.subr.bf16.mxu1 %v2934_v0 }
 0x629   : > { %2645 = vmatpush3.bf16.msra.mxu1 %v2818_v10 }
 0x62a   : > { %2646 = vmatprep.subr.bf16.mxu1 %v2934_v0 }
 0x62d   : > { %2647 = vmatpush3.bf16.msra.mxu1 %v2820_v36 }
 0x62e   : > { %2648 = vmatprep.subr.bf16.mxu1 %v2934_v0 }
 0x631   : > { %2649 = vmatpush3.bf16.msra.mxu1 %v2822_v38 }
 0x632   : > { %2674 = vmatprep.subr.bf16.mxu1 %v2934_v0 }
 0x6e7   : > { %v1163_v12 = vpop.f32.mrb[12].mxu1 }
 0x6e8   : > { %v1164_v13 = vadd.f32 %v2277_v11, %v1163_v12  ;;  %v2612_v14 = vpop.f32.mrb[13].mxu1 }
 0x6e9   : > { %v1166_v15 = vpop.f32.mrb[14].mxu1 }
 0x6ea   : > { %v1170_v17 = vadd.f32 3.0, %v1164_v13  ;;  %v1167_v18 = vadd.f32 %v2277_v11, %v1166_v15  ;;  %v2613_v19 = vpop.f32.mrb[15].mxu1  ;;  %v2348_v11 = vld [vmem:[%s3525_s5 + $0x28] sm:$0xff] }
 0x6ec   : > { %v1172_v20 = vmax.f32 %v1170_v17, 0.0  ;;  %v1171_v21 = vadd.f32 3.0, %v1167_v18 }
 0x6ee   : > { %v1174_v22 = vmin.f32 %v1172_v20, 6.0  ;;  %v1173_v23 = vmax.f32 %v1171_v21, 0.0  ;;  %v2351_v20 = vld [vmem:[%s3525_s5 + $0x30] sm:$0xff] }
 0x6f0   : > { %v1176_v24 = vmul.f32 %v1174_v22, %v1164_v13  ;;  %v1175_v25 = vmin.f32 %v1173_v23, 6.0 }
 0x6f2   : > { %v1177_v26 = vmul.f32 %v1175_v25, %v1167_v18  ;;  %v1178_v27 = vmul.f32 0.16666667, %v1176_v24  ;;  %v2352_v24 = vld [vmem:[%s3525_s5 + $0x38] sm:$0xff] }
 0x6f4   : > { %v1179_v28 = vmul.f32 0.16666667, %v1177_v26 }
 0x6f6   : > { %v1180_v31 = vpack.c.bf16 %v1179_v28, %v1178_v27 }
 0x6f8   : > { %2631 = vmatmul.mubr.bf16.vlgmr.msra.gmra.mrb[16].mxu0 %v1180_v31 }
 0x6f9   : > { %2655 = vmatpush3.bf16.msra.mxu0 %v2809_v29  ;;  %2670 = vmatprep.mubr.msk.bf16.mxu0 %vm2935_vm0, %v2934_v0 }
 0x6fa   : > { %2656 = vmatprep.subr.bf16.mxu0 %v2934_v0 }
 0x6fd   : > { %2657 = vmatpush3.bf16.msra.mxu0 %v2811_v30 }
 0x6fe   : > { %2658 = vmatprep.subr.bf16.mxu0 %v2934_v0 }
 0x701   : > { %2659 = vmatpush3.bf16.msra.mxu0 %v2813_v32 }
 0x702   : > { %2660 = vmatprep.subr.bf16.mxu0 %v2934_v0 }
 0x705   : > { %2661 = vmatpush3.bf16.msra.mxu0 %v2815_v33 }
 0x706   : > { %2662 = vmatprep.subr.bf16.mxu0 %v2934_v0 }
 0x709   : > { %2663 = vmatpush3.bf16.msra.mxu0 %v2817_v34 }
 0x70a   : > { %2664 = vmatprep.subr.bf16.mxu0 %v2934_v0 }
 0x70d   : > { %2665 = vmatpush3.bf16.msra.mxu0 %v2819_v35 }
 0x70e   : > { %2666 = vmatprep.subr.bf16.mxu0 %v2934_v0 }
 0x711   : > { %2667 = vmatpush3.bf16.msra.mxu0 %v2821_v37 }
 0x712   : > { %2668 = vmatprep.subr.bf16.mxu0 %v2934_v0 }
 0x715   : > { %2669 = vmatpush3.bf16.msra.mxu0 %v2823_v39 }
 0x716   : > { %2680 = vmatprep.subr.bf16.mxu0 %v2934_v0 }
 0x7cb   : > { %v1286_v41 = vpop.f32.mrb[16].mxu0 }
 0x7cc   : > { %v1287_v42 = vadd.f32 %v2286_v40, %v1286_v41  ;;  %v2632_v43 = vpop.f32.mrb[17].mxu0 }
 0x7cd   : > { %v1289_v44 = vpop.f32.mrb[18].mxu0 }
 0x7ce   : > { %v1290_v45 = vadd.f32 %v2286_v40, %v1289_v44  ;;  %v2633_v46 = vpop.f32.mrb[19].mxu0  ;;  %v3358_v47 = vadd.f32 %v1287_v42, %v3261_v62 }
 0x7d0   : > { %v3361_v48 = vadd.f32 %v1290_v45, %v3263_v63 }
 0x7d2   : > { %v1295_v49 = vpack.c.bf16 %v3361_v48, %v3358_v47 }
 0x7d4   : > { %2651 = vmatmul.mubr.bf16.vlgmr.msra.gmra.mrb[16].mxu1 %v1295_v49  ;;  %2671 = vmatmul.mubr.bf16.vlgmr.msra.gmra.mrb[20].mxu0 %v1295_v49 }
 0x7d5   : > { %2676 = vmatprep.mubr.msk.bf16.mxu1 %vm2935_vm0, %v2934_v0  ;;  %2682 = vmatprep.mubr.msk.bf16.mxu0 %vm2935_vm0, %v2934_v0 }
 0x8a7   : > { %v1403_v51 = vpop.f32.mrb[16].mxu1  ;;  %v1517_v53 = vpop.f32.mrb[20].mxu0 }
 0x8a8   : > { %v2652_v54 = vpop.f32.mrb[17].mxu1  ;;  %v2672_v55 = vpop.f32.mrb[21].mxu0  ;;  %v1404_v58 = vadd.f32 %v2311_v50, %v1403_v51  ;;  %v1518_v59 = vadd.f32 %v2337_v52, %v1517_v53 }
 0x8a9   : > { %v1406_v56 = vpop.f32.mrb[18].mxu1  ;;  %v1520_v57 = vpop.f32.mrb[22].mxu0 }
 0x8aa   : > { %v1407_v60 = vadd.f32 %v2311_v50, %v1406_v56  ;;  %v1521_v61 = vadd.f32 %v2337_v52, %v1520_v57  ;;  %v2653_v62 = vpop.f32.mrb[19].mxu1  ;;  %v2673_v63 = vpop.f32.mrb[23].mxu0 }
 0x8ac   : > { %v1525_v1 = vpack.c.bf16 %v1407_v60, %v1404_v58  ;;  %v3372_v2 = vpack.c.bf16 %v1521_v61, %v1518_v59 }
 0x8ae   : > { %1654 = vrot.lane.b32.xlu1 %v3372_v2, %s2936_s30  ;;  %v1530_v16 = vsel %vm666_vm1, %v3372_v2, 0 }
 0x8af   : > { %2675 = vmatpush3.bf16.xpose.msra.mxu1 %v1530_v16 }
 0x8b0   : > { %2686 = vmatprep.subr.bf16.mxu1 %v2934_v0 }
 0x8b2   : > { %1652 = vrot.lane.b32.xlu1 %v1525_v1, %s2936_s30 }
 0x8b6   : > { %2677 = vmatmul.mubr.msk.bf16.vlgmr.msra.gmra.mrb[20].mxu1 %vm666_vm1, %v1525_v1 }
 0x8b7   : > { %2688 = vmatprep.mubr.msk.bf16.mxu1 %vm2935_vm0, %v2934_v0 }
 0x920   : > { %v1655_v3 = vpop.permute.xlu1 %1654 }
 0x921   : > { %v1660_v4 = vsel %vm666_vm1, %v1655_v3, 0 }
 0x922   : > { %2687 = vmatpush3.bf16.xpose.msra.mxu1 %v1660_v4 }
 0x923   : > { %2698 = vmatprep.subr.bf16.mxu1 %v2934_v0 }
 0x924   : > { %v1653_v5 = vpop.permute.xlu1 %1652 }
 0x929   : > { %2689 = vmatmul.mubr.msk.bf16.vlgmr.msra.gmra.mrb[24].mxu1 %vm666_vm1, %v1653_v5 }
 0x92a   : > { %2702 = vmatprep.mubr.msk.bf16.mxu1 %vm2935_vm0, %v2934_v0 }
 0x989   : > { %v1566_v6 = vpop.f32.mrb[20].mxu1 }
 0x98a   : > { %v1573_v8 = vmul.f32 0.25, %v1566_v6  ;;  %v2678_v9 = vpop.f32.mrb[21].mxu1 }
 0x98b   : > { %v1569_v10 = vpop.f32.mrb[22].mxu1 }
 0x98c   : > { %v1574_v12 = vmul.f32 0.25, %v1569_v10  ;;  %v2679_v13 = vpop.f32.mrb[23].mxu1  ;;  %v1578_v14 = vadd.f32 %v2347_v7, %v1573_v8 }
 0x98d   : > { %v2824_v13 = vld [vmem:[%s3526_s6 + $0x10] sm:$0xff]  }
 0x98e   : > { %v1580_v15 = vsel %vm666_vm1, %v1578_v14, -inf  ;;  %v1579_v17 = vadd.f32 %v2348_v11, %v1574_v12  ;;  %2699 = vmatpush3.bf16.msra.mxu1 %v2824_v13 }
 0x98f   : > { %1581 = vmax.xlane.f32.xlu0 %v1580_v15  ;;  %2700 = vmatprep.subr.bf16.mxu1 %v2934_v0  ;;  %v2826_v15 = vld [vmem:[%s3528_s8 + $0x40] sm:$0xff]  }
 0x990   : > { %v1583_v18 = vsel %vm666_vm1, %v1579_v17, -inf }
 0x991   : > { %1584 = vmax.xlane.f32.xlu1 %v1583_v18  ;;  %v2828_v18 = vld [vmem:[%s3528_s8 + $0x50] sm:$0xff]  }
 0x9fc   : > { %v1696_v19 = vpop.f32.mrb[24].mxu1 }
 0x9fd   : > { %v1703_v21 = vmul.f32 0.25, %v1696_v19  ;;  %v2690_v22 = vpop.f32.mrb[25].mxu1  ;;  %v2829_v19 = vld [vmem:[%s3528_s8 + $0x58] sm:$0xff]  }
 0x9fe   : > { %v1699_v23 = vpop.f32.mrb[26].mxu1 }
 0x9ff   : > { %v1704_v25 = vmul.f32 0.25, %v1699_v23  ;;  %v2691_v26 = vpop.f32.mrb[27].mxu1  ;;  %v1708_v27 = vadd.f32 %v2351_v20, %v1703_v21  ;;  %v2830_v20 = vld [vmem:[%s3528_s8 + $0x60] sm:$0xff]   ;;  %v2831_v21 = vld [vmem:[%s3528_s8 + $0x68] sm:$0xff]  }
 0xa01   : > { %v1710_v28 = vsel %vm666_vm1, %v1708_v27, -inf  ;;  %v1709_v29 = vadd.f32 %v2352_v24, %v1704_v25 }
 0xa02   : > { %1711 = vmax.xlane.f32.xlu0 %v1710_v28 }
 0xa03   : > { %v1713_v31 = vsel %vm666_vm1, %v1709_v29, -inf }
 0xa06   : > { %1714 = vmax.xlane.f32.xlu0 %v1713_v31 }
 0xa1c   : > { %v1582_v30 = vpop.xlane.xlu0 %1581 }
 0xa1d   : > { %v1586_v32 = vsub.f32 %v1578_v14, %v1582_v30  ;;  %v2825_v14 = vld [vmem:[%s3526_s6 + $0x18] sm:$0xff]  }
 0xa1e   : > { %v1585_v33 = vpop.xlane.xlu1 %1584  ;;  %2701 = vmatpush3.bf16.msra.mxu1 %v2825_v14 }
 0xa1f   : > { %v1588_v34 = vmul.f32 1.442695, %v1586_v32  ;;  %v1587_v35 = vsub.f32 %v1579_v17, %v1585_v33  ;;  %2726 = vmatprep.subr.bf16.mxu1 %v2934_v0  ;;  %v2827_v17 = vld [vmem:[%s3528_s8 + $0x48] sm:$0xff]  }
 0xa21   : > { %2867 = vpow2.f32 %v1588_v34  ;;  %v1590_v36 = vmul.f32 1.442695, %v1587_v35 }
 0xa23   : > { %2869 = vpow2.f32 %v1590_v36 }
 0xa2b   : > { %v2868_v37 = vpop.eup %2867 }
 0xa2c   : > { %v1592_v38 = vsel %vm666_vm1, %v2868_v37, 0.0 }
 0xa2d   : > { %v2870_v39 = vpop.eup %2869  ;;  %1593 = vadd.xlane.f32.xlu1 %v1592_v38 }
 0xa2e   : > { %v1595_v40 = vsel %vm666_vm1, %v2870_v39, 0.0 }
 0xa2f   : > { %1596 = vadd.xlane.f32.xlu0 %v1595_v40 }
 0xa8f   : > { %v1712_v41 = vpop.xlane.xlu0 %1711 }
 0xa90   : > { %v1716_v42 = vsub.f32 %v1708_v27, %v1712_v41 }
 0xa92   : > { %v1718_v43 = vmul.f32 1.442695, %v1716_v42 }
 0xa93   : > { %v1715_v44 = vpop.xlane.xlu0 %1714 }
 0xa94   : > { %2871 = vpow2.f32 %v1718_v43  ;;  %v1717_v45 = vsub.f32 %v1709_v29, %v1715_v44 }
 0xa96   : > { %v1720_v46 = vmul.f32 1.442695, %v1717_v45 }
 0xa98   : > { %2873 = vpow2.f32 %v1720_v46 }
 0xa9e   : > { %v2872_v49 = vpop.eup %2871 }
 0xa9f   : > { %v1722_v50 = vsel %vm666_vm1, %v2872_v49, 0.0 }
 0xaa0   : > { %1723 = vadd.xlane.f32.xlu1 %v1722_v50 }
 0xaa2   : > { %v2874_v51 = vpop.eup %2873 }
 0xaa3   : > { %v1725_v52 = vsel %vm666_vm1, %v2874_v51, 0.0 }
 0xaa4   : > { %1726 = vadd.xlane.f32.xlu0 %v1725_v52 }
 0xab1   : > { %1604 = vrot.lane.b32.xlu1 %v3372_v2, %s2938_s24 }
 0xaba   : > { %1733 = vrot.lane.b32.xlu0 %v3372_v2, %s2937_s23  ;;  %v1594_v54 = vpop.xlane.xlu1 %1593 }
 0xabc   : > { %v1597_v53 = vpop.xlane.xlu0 %1596 }
 0xabd   : > { %2875 = vrcp.f32 %v1597_v53 }
 0xabe   : > { %2877 = vrcp.f32 %v1594_v54 }
 0xac7   : > { %v2876_v55 = vpop.eup %2875 }
 0xac8   : > { %v2878_v57 = vpop.eup %2877  ;;  %v1601_v58 = vmul.f32 %v2876_v55, %v2870_v39 }
 0xac9   : > { %v1600_v59 = vmul.f32 %v2878_v57, %v2868_v37 }
 0xacb   : > { %v1602_v62 = vpack.c.bf16 %v1601_v58, %v1600_v59 }
 0xb2d   : > { %v1724_v56 = vpop.xlane.xlu1 %1723 }
 0xb2e   : > { %2879 = vrcp.f32 %v1724_v56 }
 0xb31   : > { %v1605_v60 = vpop.permute.xlu1 %1604  ;;  %v1727_v61 = vpop.xlane.xlu0 %1726 }
 0xb32   : > { %2881 = vrcp.f32 %v1727_v61  ;;  %2681 = vmatpush3.bf16.msra.mxu0 %v1605_v60 }
 0xb33   : > { %2692 = vmatprep.subr.bf16.mxu0 %v2934_v0 }
 0xb35   : > { %2683 = vmatmul.mubr.msk.bf16.vlgmr.msra.gmra.mrb[24].mxu0 %vm666_vm1, %v1602_v62  ;;  %v1734_v63 = vpop.permute.xlu0 %1733 }
 0xb36   : > { %2693 = vmatpush3.bf16.msra.mxu0 %v1734_v63  ;;  %2694 = vmatprep.mubr.msk.bf16.mxu0 %vm2935_vm0, %v2934_v0 }
 0xb37   : > { %2706 = vmatprep.subr.bf16.mxu0 %v2934_v0 }
 0xb38   : > { %v2880_v1 = vpop.eup %2879 }
 0xb39   : > { %v1730_v16 = vmul.f32 %v2880_v1, %v2872_v49 }
 0xb3c   : > { %v2882_v2 = vpop.eup %2881 }
 0xb3d   : > { %v1731_v3 = vmul.f32 %v2882_v2, %v2874_v51 }
 0xb3f   : > { %v1732_v4 = vpack.c.bf16 %v1731_v3, %v1730_v16 }
 0xb41   : > { %2695 = vmatmul.mubr.msk.bf16.vlgmr.msra.gmra.mrb[28].mxu0 %vm666_vm1, %v1732_v4 }
 0xb42   : > { %2722 = vmatprep.mubr.msk.bf16.mxu0 %vm2935_vm0, %v2934_v0  ;;  %2707 = vmatpush3.bf16.msra.mxu0 %v2826_v15 }
 0xb43   : > { %2708 = vmatprep.subr.bf16.mxu0 %v2934_v0 }
 0xb46   : > { %2709 = vmatpush3.bf16.msra.mxu0 %v2827_v17 }
 0xb47   : > { %2710 = vmatprep.subr.bf16.mxu0 %v2934_v0 }
 0xb4a   : > { %2711 = vmatpush3.bf16.msra.mxu0 %v2828_v18  ;;  %v2832_v18 = vld [vmem:[%s3528_s8 + $0x70] sm:$0xff]  }
 0xb4b   : > { %2712 = vmatprep.subr.bf16.mxu0 %v2934_v0 }
 0xb4e   : > { %2713 = vmatpush3.bf16.msra.mxu0 %v2829_v19  ;;  %v2833_v19 = vld [vmem:[%s3528_s8 + $0x78] sm:$0xff]  }
 0xb4f   : > { %2714 = vmatprep.subr.bf16.mxu0 %v2934_v0 }
 0xb52   : > { %2715 = vmatpush3.bf16.msra.mxu0 %v2830_v20  ;;  %v2834_v20 = vld [vmem:[%s3530_s10 + $0x40] sm:$0xff]  }
 0xb53   : > { %2716 = vmatprep.subr.bf16.mxu0 %v2934_v0 }
 0xb56   : > { %2717 = vmatpush3.bf16.msra.mxu0 %v2831_v21  ;;  %v2835_v21 = vld [vmem:[%s3530_s10 + $0x48] sm:$0xff]  }
 0xb57   : > { %2718 = vmatprep.subr.bf16.mxu0 %v2934_v0 }
 0xb5a   : > { %2719 = vmatpush3.bf16.msra.mxu0 %v2832_v18 }
 0xb5b   : > { %2720 = vmatprep.subr.bf16.mxu0 %v2934_v0 }
 0xb5e   : > { %2721 = vmatpush3.bf16.msra.mxu0 %v2833_v19 }
 0xc08   : > { %v1644_v5 = vpop.f32.mrb[24].mxu0 }
 0xc09   : > { %v2684_v6 = vpop.f32.mrb[25].mxu0 }
 0xc0a   : > { %v1647_v7 = vpop.f32.mrb[26].mxu0 }
 0xc0b   : > { %v2685_v8 = vpop.f32.mrb[27].mxu0 }
 0xc14   : > { %v1773_v9 = vpop.f32.mrb[28].mxu0 }
 0xc15   : > { %1782 = vrot.lane.b32.xlu1 %v1773_v9, %s2939_s25  ;;  %v2696_v10 = vpop.f32.mrb[29].mxu0 }
 0xc16   : > { %v1776_v11 = vpop.f32.mrb[30].mxu0 }
 0xc17   : > { %v2697_v12 = vpop.f32.mrb[31].mxu0 }
 0xc19   : > { %1784 = vrot.lane.b32.xlu1 %v1776_v11, %s2939_s25 }
 0xc87   : > { %v1783_v22 = vpop.permute.xlu1 %1782 }
 0xc88   : > { %v1788_v23 = vsel %vm666_vm1, %v1644_v5, %v1783_v22  ;;  %v2836_v22 = vld [vmem:[%s3530_s10 + $0x50] sm:$0xff]  }
 0xc89   : > { %v1792_v24 = vmul.f32 0.70710677, %v1788_v23  ;;  %v1790_v11 = vmul.f32 0.5, %v1788_v23  ;;  %v2837_v23 = vld [vmem:[%s3530_s10 + $0x58] sm:$0xff]  }
 0xc8b   : > { %vm1794_vm5 = vcmp.ge.f32.partialorder %v1792_v24, 0.0  ;;  %v1796_v25 = vsub.f32 0.0, %v1792_v24  ;;  %v1785_v26 = vpop.permute.xlu1 %1784 }
 0xc8c   : > { %v1789_v27 = vsel %vm666_vm1, %v1647_v7, %v1785_v26 }
 0xc8d   : > { %v1798_v28 = vsel %vm1794_vm5, %v1792_v24, %v1796_v25  ;;  %v1793_v29 = vmul.f32 0.70710677, %v1789_v27  ;;  %v1791_v12 = vmul.f32 0.5, %v1789_v27  ;;  %v2359_v24 = vld [vmem:[%s3527_s7 + $0x1] ss:$0 sm:$0xff] }
 0xc8e   : > { %v1800_v31 = vmul.f32 0.3275911, %v1798_v28  ;;  %v1826_v36 = vsub.f32 0.0, %v1798_v28 }
 0xc8f   : > { %vm1795_vm6 = vcmp.ge.f32.partialorder %v1793_v29, 0.0  ;;  %v1797_v30 = vsub.f32 0.0, %v1793_v29 }
 0xc90   : > { %v1802_v32 = vadd.f32 1.0, %v1800_v31  ;;  %v1828_v38 = vmul.f32 %v1826_v36, %v1798_v28  ;;  %v2380_v36 = vld [vmem:[%s3529_s9 + $0x1] ss:$0 sm:$0xff] }
 0xc91   : > { %v1799_v33 = vsel %vm1795_vm6, %v1793_v29, %v1797_v30 }
 0xc92   : > { %2883 = vrcp.f32 %v1802_v32  ;;  %v1801_v34 = vmul.f32 0.3275911, %v1799_v33  ;;  %v1827_v39 = vsub.f32 0.0, %v1799_v33  ;;  %v1830_v43 = vmul.f32 1.442695, %v1828_v38 }
 0xc94   : > { %v1803_v35 = vadd.f32 1.0, %v1801_v34  ;;  %v1829_v44 = vmul.f32 %v1827_v39, %v1799_v33  ;;  %v2838_v34 = vld [vmem:[%s3530_s10 + $0x60] sm:$0xff]  }
 0xc96   : > { %2885 = vrcp.f32 %v1803_v35  ;;  %v1832_v51 = vmul.f32 1.442695, %v1829_v44  ;;  %v2839_v35 = vld [vmem:[%s3530_s10 + $0x68] sm:$0xff]  }
 0xc97   : > { %2887 = vpow2.f32 %v1830_v43 }
 0xc98   : > { %2889 = vpow2.f32 %v1832_v51 }
 0xc9c   : > { %v2884_v37 = vpop.eup %2883 }
 0xc9d   : > { %v1808_v40 = vmul.f32 1.0614054, %v2884_v37 }
 0xc9f   : > { %v1810_v41 = vadd.f32 -1.4531521, %v1808_v40 }
 0xca0   : > { %v2886_v42 = vpop.eup %2885 }
 0xca1   : > { %v1812_v45 = vmul.f32 %v2884_v37, %v1810_v41  ;;  %v1809_v46 = vmul.f32 1.0614054, %v2886_v42  ;;  %v2888_v62 = vpop.eup %2887 }
 0xca2   : > { %v2890_v3 = vpop.eup %2889 }
 0xca3   : > { %v1814_v49 = vadd.f32 1.4214138, %v1812_v45  ;;  %v1811_v50 = vadd.f32 -1.4531521, %v1809_v46 }
 0xca5   : > { %v1816_v52 = vmul.f32 %v2884_v37, %v1814_v49  ;;  %v1813_v53 = vmul.f32 %v2886_v42, %v1811_v50 }
 0xca7   : > { %v1818_v54 = vadd.f32 -0.28449672, %v1816_v52  ;;  %v1815_v55 = vadd.f32 1.4214138, %v1813_v53 }
 0xca9   : > { %v1820_v56 = vmul.f32 %v2884_v37, %v1818_v54  ;;  %v1817_v57 = vmul.f32 %v2886_v42, %v1815_v55  ;;  %v2406_v55 = vld [vmem:[%s3531_s11 + $0x1] ss:$0 sm:$0xff] }
 0xcab   : > { %v1822_v58 = vadd.f32 0.2548296, %v1820_v56  ;;  %v1819_v59 = vadd.f32 -0.28449672, %v1817_v57 }
 0xcad   : > { %v1824_v60 = vmul.f32 %v2884_v37, %v1822_v58  ;;  %v1821_v61 = vmul.f32 %v2886_v42, %v1819_v59 }
 0xcaf   : > { %v1834_v63 = vmul.f32 %v2888_v62, %v1824_v60  ;;  %v1823_v1 = vadd.f32 0.2548296, %v1821_v61 }
 0xcb1   : > { %v1836_v2 = vsub.f32 1.0, %v1834_v63  ;;  %v1825_v16 = vmul.f32 %v2886_v42, %v1823_v1 }
 0xcb3   : > { %v1838_v4 = vsub.f32 0.0, %v1836_v2  ;;  %v1835_v5 = vmul.f32 %v2890_v3, %v1825_v16 }
 0xcb5   : > { %v1840_v6 = vsel %vm1794_vm5, %v1836_v2, %v1838_v4  ;;  %v1837_v7 = vsub.f32 1.0, %v1835_v5 }
 0xcb6   : > { %v1842_v9 = vadd.f32 1.0, %v1840_v6 }
 0xcb7   : > { %v1839_v8 = vsub.f32 0.0, %v1837_v7 }
 0xcb8   : > { %v1844_v14 = vmul.f32 %v1842_v9, %v1790_v11 }
 0xcb9   : > { %v1841_v10 = vsel %vm1795_vm6, %v1837_v7, %v1839_v8 }
 0xcba   : > { %v1843_v13 = vadd.f32 1.0, %v1841_v10 }
 0xcbc   : > { %v1845_v15 = vmul.f32 %v1843_v13, %v1791_v12 }
 0xcbe   : > { %v1846_v17 = vpack.c.bf16 %v1845_v15, %v1844_v14 }
 0xcc0   : > { %2703 = vmatmul.mubr.msk.bf16.vlgmr.msra.gmra.mrb[28].mxu1 %vm1010_vm4, %v1846_v17 }
 0xcc1   : > { %2742 = vmatprep.mubr.msk.bf16.mxu1 %vm2935_vm0, %v2934_v0  ;;  %2727 = vmatpush3.bf16.msra.mxu1 %v2834_v20 }
 0xcc2   : > { %2728 = vmatprep.subr.bf16.mxu1 %v2934_v0 }
 0xcc5   : > { %2729 = vmatpush3.bf16.msra.mxu1 %v2835_v21 }
 0xcc6   : > { %2730 = vmatprep.subr.bf16.mxu1 %v2934_v0 }
 0xcc9   : > { %2731 = vmatpush3.bf16.msra.mxu1 %v2836_v22 }
 0xcca   : > { %2732 = vmatprep.subr.bf16.mxu1 %v2934_v0 }
 0xccd   : > { %2733 = vmatpush3.bf16.msra.mxu1 %v2837_v23 }
 0xcce   : > { %2734 = vmatprep.subr.bf16.mxu1 %v2934_v0 }
 0xcd1   : > { %2735 = vmatpush3.bf16.msra.mxu1 %v2838_v34 }
 0xcd2   : > { %2736 = vmatprep.subr.bf16.mxu1 %v2934_v0 }
 0xcd5   : > { %2737 = vmatpush3.bf16.msra.mxu1 %v2839_v35 }
 0xcd6   : > { %2738 = vmatprep.subr.bf16.mxu1 %v2934_v0 }
 0xd93   : > { %v1909_v25 = vpop.f32.mrb[28].mxu1 }
 0xd94   : > { %v1910_v26 = vadd.f32 %v2359_v24, %v1909_v25  ;;  %v2704_v27 = vpop.f32.mrb[29].mxu1 }
 0xd95   : > { %v1912_v28 = vpop.f32.mrb[30].mxu1 }
 0xd96   : > { %v1913_v29 = vadd.f32 %v2359_v24, %v1912_v28  ;;  %v2705_v31 = vpop.f32.mrb[31].mxu1  ;;  %v1916_v30 = vadd.f32 %v1910_v26, %v3358_v47  ;;  %v2840_v47 = vld [vmem:[%s3530_s10 + $0x70] sm:$0xff]  }
 0xd97   : > { %2739 = vmatpush3.bf16.msra.mxu1 %v2840_v47 }
 0xd98   : > { %v1917_v32 = vadd.f32 %v1913_v29, %v3361_v48  ;;  %2740 = vmatprep.subr.bf16.mxu1 %v2934_v0  ;;  %v2841_v48 = vld [vmem:[%s3530_s10 + $0x78] sm:$0xff]  }
 0xd9a   : > { %v1918_v33 = vpack.c.bf16 %v1917_v32, %v1916_v30 }
 0xd9b   : > { %2741 = vmatpush3.bf16.msra.mxu1 %v2841_v48 }
 0xd9c   : > { %2723 = vmatmul.mubr.bf16.vlgmr.msra.gmra.mrb[32].mxu0 %v1918_v33 }
 0xe6f   : > { %v2026_v37 = vpop.f32.mrb[32].mxu0 }
 0xe70   : > { %v2027_v38 = vadd.f32 %v2380_v36, %v2026_v37  ;;  %v2724_v39 = vpop.f32.mrb[33].mxu0 }
 0xe71   : > { %v2029_v40 = vpop.f32.mrb[34].mxu0 }
 0xe72   : > { %v2033_v41 = vadd.f32 3.0, %v2027_v38  ;;  %v2030_v42 = vadd.f32 %v2380_v36, %v2029_v40  ;;  %v2725_v43 = vpop.f32.mrb[35].mxu0 }
 0xe74   : > { %v2035_v44 = vmax.f32 %v2033_v41, 0.0  ;;  %v2034_v45 = vadd.f32 3.0, %v2030_v42 }
 0xe76   : > { %v2037_v46 = vmin.f32 %v2035_v44, 6.0  ;;  %v2036_v0 = vmax.f32 %v2034_v45, 0.0 }
 0xe78   : > { %v2039_v49 = vmul.f32 %v2037_v46, %v2027_v38  ;;  %v2038_v50 = vmin.f32 %v2036_v0, 6.0 }
 0xe7a   : > { %v2040_v51 = vmul.f32 %v2038_v50, %v2030_v42  ;;  %v2041_v52 = vmul.f32 0.16666667, %v2039_v49 }
 0xe7c   : > { %v2042_v53 = vmul.f32 0.16666667, %v2040_v51 }
 0xe7e   : > { %v2043_v54 = vpack.c.bf16 %v2042_v53, %v2041_v52 }
 0xe80   : > { %2743 = vmatmul.mubr.bf16.vlgmr.msra.gmra.mrb[32].mxu1 %v2043_v54 }
 0xf53   : > { %v2151_v56 = vpop.f32.mrb[32].mxu1 }
 0xf54   : > { %v2152_v57 = vadd.f32 %v2406_v55, %v2151_v56  ;;  %v2744_v58 = vpop.f32.mrb[33].mxu1 }
 0xf55   : > { %v2154_v59 = vpop.f32.mrb[34].mxu1 }
 0xf56   : > { %v2155_v60 = vadd.f32 %v2406_v55, %v2154_v59  ;;  %v2745_v61 = vpop.f32.mrb[35].mxu1  ;;  %v2158_v62 = vadd.f32 %v2152_v57, %v1916_v30 }
 0xf58   : > { %v2159_v63 = vadd.f32 %v2155_v60, %v1917_v32 }
 0xf5a   : > { %v2426_v1 = vpack.c.bf16 %v2159_v63, %v2158_v62 }
 0xf5c   : > { %2427 = vst [vmem:[%s428_s15] sm:$0xff] %v2426_v1  }
 0xf5d PF: > { %s23_s21 = sadd.s32 1, %s2929_s21  }
 0xf5e   : > { %p20_p3 = scmp.ge.s32.totalorder %s23_s21, 4  }
 0xf60   :  { %22 = sbr.rel (!%p20_p3) target bundleno = 1 (0x1), region = 116 }
 0xf67   :  { %2191 = vsyncpa [#allocation3], 1 }
 0xf68   :  { %2193 = vsyncpa [#allocation3 + $0x1], 1 }

// kernel: levit_forward.8
= control target key start
LH: loop header
LB: loop body
LE: loop exit
PB: predicated region body
PF: predicated region fallthrough
CT: control target
= control target key end

     0   :  { %18 = vsyncpa [#allocation3], 0  ;;  %s2735_s0 = inlined_call_operand.vmem [shape: bf16[2,16,128], index: 0, kind: input, shape index: {}]   ;;  %s2736_s1 = inlined_call_operand.vmem [shape: bf16[2,4,128], index: 1, kind: input, shape index: {}]   ;;  %s2737_s2 = inlined_call_operand.vmem [shape: bf16[1,128,128], index: 2, kind: input, shape index: {}]   ;;  %s2738_s3 = inlined_call_operand.hbm [shape: f32[1,1,128], index: 3, kind: input, shape index: {}]   ;;  %s2739_s4 = inlined_call_operand.vmem [shape: bf16[1,128,128], index: 4, kind: input, shape index: {}]   ;;  %s2740_s5 = inlined_call_operand.hbm [shape: f32[1,1,128], index: 5, kind: input, shape index: {}]   ;;  %s2741_s6 = inlined_call_operand.vmem [shape: f32[1,4,4,16], index: 6, kind: input, shape index: {}]   ;;  %s2742_s7 = inlined_call_operand.vmem [shape: bf16[1,64,128], index: 7, kind: input, shape index: {}]   ;;  %s2743_s8 = inlined_call_operand.hbm [shape: f32[1,1,128], index: 8, kind: input, shape index: {}]   ;;  %s2744_s9 = inlined_call_operand.vmem [shape: bf16[1,128,128], index: 9, kind: input, shape index: {}]   ;;  %s2745_s10 = inlined_call_operand.hbm [shape: f32[1,1,128], index: 10, kind: input, shape index: {}]   ;;  %s2746_s11 = inlined_call_operand.vmem [shape: bf16[1,128,128], index: 11, kind: input, shape index: {}]   ;;  %s2747_s12 = inlined_call_operand.hbm [shape: f32[1,1,128], index: 12, kind: input, shape index: {}]   ;;  %s2748_s13 = inlined_call_operand.vmem [shape: bf16[2,4,128], index: 13, kind: output, shape index: {}]  }
   0x1   :  { %19 = vsyncpa [#allocation5], 0 }
   0x2   :  { %20 = vsyncpa [#allocation8], 0  ;;  %s2319_s25 = smov 0  }
   0x3 LB: > { %2752 = sst [smem:[#allocation13_spill]] %s2233_s25  ;;  %s2235_s26 = smov [#allocation4]   ;;  %s2233_s25 = sphi %s2319_s25, %s26_s25  }
   0x4   : > { %s370_s27 = sshll.u32 %s2235_s26, 4  ;;  %s2325_s28 = sadd.s32 4294967295, %s2233_s25   ;;  %s2330_s27 = int_to_ptr.vmem [resolvable:$true] %s370_s27 }
   0x5   : > { %p1679_p0 = scmp.ge.s32.totalorder %s2233_s25, 1  ;;  %p340_p1 = scmp.lt.s32.totalorder %s2233_s25, 3 }
   0x6   : > { %p2750_p2 = scmp.eq.s32.totalorder %s2325_s28, 0  ;;  %s2236_s30 = smov [#allocation7]  }
   0x7   : > { %p2332_p3 = pnand %p1679_p0, %p340_p1  ;;  %s401_s14 = sshll.u32 %s2236_s30, 4  ;;  %s2338_s14 = int_to_ptr.vmem [resolvable:$true] %s401_s14 }
   0x8   : > { %s2237_s15 = smov [#allocation2]   ;;  %s2238_s18 = smov [#allocation6]  }
   0x9   : > { %s2753_s29 = scalar_select %p2332_p3, 1, 0 }
   0xa   : > { %p1970_p4 = pneg %p2332_p3  ;;  %s356_s16 = sshll.u32 %s2237_s15, 4  ;;  %s2346_s16 = int_to_ptr.vmem [resolvable:$true] %s356_s16 }
   0xb   : > { %s387_s19 = sshll.u32 %s2238_s18, 4  ;;  %s2075_s22 = scalar_lea.hbm %s2740_s5, 16  ;;  %s2348_s19 = int_to_ptr.vmem [resolvable:$true] %s387_s19 }
   0xc   : > { %p2342_p5 = pnand %p2750_p2, %p1970_p4  ;;  %p2076_p6 = scmp.ne.s32.totalorder %s2740_s5, %s2075_s22 }
   0xd   : > { %p2082_p10 = scmp.lt.u32.totalorder %s2075_s22, %s2740_s5 }
   0xe   : > { %p2358_p7 = pneg %p2342_p5 }
  0x10   : > { %p2078_p8 = pnand %p2358_p7, %p2076_p6 }
  0x12   : > { %p2079_p9 = pneg %p2078_p8 }
  0x14   : > { %p2084_p11 = pnand %p2082_p10, %p2079_p9 }
  0x16   : > { %2087 = shalt.err (!%p2084_p11)
}
  0x17   : > { %s2088_s18 = scalar_lea.vmem %s2330_s27, 16  ;;  %s2095_s20 = scalar_lea.vmem %s2330_s27, 32 }
  0x18   : > { %p2089_p12 = scmp.ne.s32.totalorder %s2330_s27, %s2088_s18  ;;  %p2096_p1 = scmp.lt.s32.totalorder %s2330_s27, %s2330_s27 }
  0x19   : > { %p2097_p4 = scmp.lt.s32.totalorder %s2095_s20, %s2088_s18 }
  0x1a   : > { %p2091_p13 = pnand %p2089_p12, %p2358_p7 }
  0x1b   : > { %p2098_p6 = por %p2097_p4, %p2096_p1 }
  0x1c   : > { %p2092_p0 = pneg %p2091_p13 }
  0x1e   : > { %p2099_p8 = pnand %p2098_p6, %p2092_p0 }
  0x20   : > { %2102 = shalt.err (!%p2099_p8)
}
  0x21   : > { %1976 = dma.hbm_to_vmem [thread:$0]  (!%p2342_p5), %s2740_s5, 16, %s2330_s27, [#allocation5]  }
  0x22   : > { %s2103_s30 = scalar_lea.hbm %s2745_s10, 16 }
  0x23   : > { %p2104_p9 = scmp.ne.s32.totalorder %s2745_s10, %s2103_s30  ;;  %p2110_p12 = scmp.lt.u32.totalorder %s2103_s30, %s2745_s10 }
  0x25   : > { %p2106_p10 = pnand %p2104_p9, %p2358_p7 }
  0x27   : > { %p2107_p11 = pneg %p2106_p10 }
  0x29   : > { %p2112_p13 = pnand %p2110_p12, %p2107_p11 }
  0x2b   : > { %2115 = shalt.err (!%p2112_p13)
}
  0x2c   : > { %s2116_s27 = scalar_lea.vmem %s2338_s14, 16  ;;  %s2123_s25 = scalar_lea.vmem %s2338_s14, 32 }
  0x2d   : > { %p2117_p0 = scmp.ne.s32.totalorder %s2338_s14, %s2116_s27  ;;  %p2124_p6 = scmp.lt.s32.totalorder %s2338_s14, %s2338_s14 }
  0x2e   : > { %p2125_p8 = scmp.lt.s32.totalorder %s2123_s25, %s2116_s27 }
  0x2f   : > { %p2119_p1 = pnand %p2117_p0, %p2358_p7 }
  0x30   : > { %p2126_p9 = por %p2125_p8, %p2124_p6 }
  0x31   : > { %p2120_p4 = pneg %p2119_p1 }
  0x33   : > { %p2127_p10 = pnand %p2126_p9, %p2120_p4 }
  0x35   : > { %2130 = shalt.err (!%p2127_p10)
}
  0x36   : > { %1982 = dma.hbm_to_vmem [thread:$0]  (!%p2342_p5), %s2745_s10, 16, %s2338_s14, [#allocation8]  }
  0x37   : > { %s2131_s30 = scalar_lea.hbm %s2738_s3, 16 }
  0x38   : > { %p2132_p11 = scmp.ne.s32.totalorder %s2738_s3, %s2131_s30  ;;  %p2138_p0 = scmp.lt.u32.totalorder %s2131_s30, %s2738_s3 }
  0x3a   : > { %p2134_p12 = pnand %p2132_p11, %p2358_p7 }
  0x3c   : > { %p2135_p13 = pneg %p2134_p12 }
  0x3e   : > { %p2140_p1 = pnand %p2138_p0, %p2135_p13 }
  0x40   : > { %2143 = shalt.err (!%p2140_p1)
}
  0x41   : > { %s2144_s14 = scalar_lea.vmem %s2346_s16, 16  ;;  %s2151_s25 = scalar_lea.vmem %s2346_s16, 32 }
  0x42   : > { %p2145_p4 = scmp.ne.s32.totalorder %s2346_s16, %s2144_s14  ;;  %p2152_p9 = scmp.lt.s32.totalorder %s2346_s16, %s2346_s16 }
  0x43   : > { %p2153_p10 = scmp.lt.s32.totalorder %s2151_s25, %s2144_s14 }
  0x44   : > { %p2147_p6 = pnand %p2145_p4, %p2358_p7 }
  0x45   : > { %p2154_p11 = por %p2153_p10, %p2152_p9 }
  0x46   : > { %p2148_p8 = pneg %p2147_p6 }
  0x48   : > { %p2155_p12 = pnand %p2154_p11, %p2148_p8 }
  0x4a   : > { %2158 = shalt.err (!%p2155_p12)
}
  0x4b   : > { %1973 = dma.hbm_to_vmem [thread:$0]  (!%p2342_p5), %s2738_s3, 16, %s2346_s16, [#allocation3]  }
  0x4c   : > { %s2159_s30 = scalar_lea.hbm %s2743_s8, 16 }
  0x4d   : > { %p2160_p13 = scmp.ne.s32.totalorder %s2743_s8, %s2159_s30  ;;  %p2166_p4 = scmp.lt.u32.totalorder %s2159_s30, %s2743_s8 }
  0x4f   : > { %p2162_p0 = pnand %p2160_p13, %p2358_p7 }
  0x51   : > { %p2163_p1 = pneg %p2162_p0 }
  0x53   : > { %p2168_p6 = pnand %p2166_p4, %p2163_p1 }
  0x55   : > { %2171 = shalt.err (!%p2168_p6)
}
  0x56   : > { %s2172_s16 = scalar_lea.vmem %s2348_s19, 16  ;;  %s2179_s14 = scalar_lea.vmem %s2348_s19, 32 }
  0x57   : > { %p2173_p8 = scmp.ne.s32.totalorder %s2348_s19, %s2172_s16  ;;  %p2180_p11 = scmp.lt.s32.totalorder %s2348_s19, %s2348_s19 }
  0x58   : > { %p2181_p12 = scmp.lt.s32.totalorder %s2179_s14, %s2172_s16 }
  0x59   : > { %p2175_p9 = pnand %p2173_p8, %p2358_p7 }
  0x5a   : > { %p2182_p13 = por %p2181_p12, %p2180_p11 }
  0x5b   : > { %p2176_p10 = pneg %p2175_p9 }
  0x5d   : > { %p2183_p0 = pnand %p2182_p13, %p2176_p10 }
  0x5f   : > { %2186 = shalt.err (!%p2183_p0)
}
  0x60   : > { %1979 = dma.hbm_to_vmem [thread:$0]  (!%p2342_p5), %s2743_s8, 16, %s2348_s19, [#allocation5]  }
  0x61   : > { %s2239_s22 = smov [#allocation9]   ;;  %s2187_s15 = scalar_lea.hbm %s2747_s12, 16 }
  0x62   : > { %s415_s23 = sshll.u32 %s2239_s22, 4  ;;  %p2188_p1 = scmp.ne.s32.totalorder %s2747_s12, %s2187_s15  ;;  %s416_s23 = int_to_ptr.vmem [resolvable:$true] %s415_s23 }
  0x63   : > { %p2194_p8 = scmp.lt.u32.totalorder %s2187_s15, %s2747_s12 }
  0x64   : > { %p2190_p4 = pnand %p2188_p1, %p2358_p7 }
  0x66   : > { %p2191_p6 = pneg %p2190_p4 }
  0x68   : > { %p2196_p9 = pnand %p2194_p8, %p2191_p6 }
  0x6a   : > { %2199 = shalt.err (!%p2196_p9)
}
  0x6b   : > { %s2200_s19 = scalar_lea.vmem %s416_s23, 16  ;;  %s2207_s14 = scalar_lea.vmem %s416_s23, 32 }
  0x6c   : > { %p2201_p10 = scmp.ne.s32.totalorder %s416_s23, %s2200_s19  ;;  %p2208_p13 = scmp.lt.s32.totalorder %s416_s23, %s416_s23 }
  0x6d   : > { %p2209_p0 = scmp.lt.s32.totalorder %s2207_s14, %s2200_s19 }
  0x6e   : > { %p2203_p11 = pnand %p2201_p10, %p2358_p7 }
  0x6f   : > { %p2210_p2 = por %p2209_p0, %p2208_p13 }
  0x70   : > { %p2204_p12 = pneg %p2203_p11 }
  0x72   : > { %p2211_p3 = pnand %p2210_p2, %p2204_p12 }
  0x74   : > { %2214 = shalt.err (!%p2211_p3)
}
  0x75   : > { %1985 = dma.hbm_to_vmem [thread:$0]  (!%p2342_p5), %s2747_s12, 16, %s416_s23, [#allocation8]  }
  0x76   : > { %p2756_p1 = scmp.ne.s32.totalorder %s2753_s29, 0 }
  0x77   : > { %p2757_p4 = scmp.eq.s32.totalorder (!%p2756_p1), %s2325_s28, 0 }
  0x78   : > { %443 = sbr.rel (%p2756_p1) target bundleno = 2106 (0x83a), region = 72 }
  0x7f   : > { %2220 = dma.done.wait (%p2757_p4), [#allocation3], 16   ;;  %p2758_p7 = pmov %p2757_p4 }
  0x80   : > { %p2759_p6 = pmov %p2757_p4 }
  0x81   : > { %2222 = vsyncadd (%p2758_p7), [#allocation3], 4294967280 }
  0x82   : > { %2224 = dma.done.wait (%p2759_p6), [#allocation5], 32   ;;  %p2760_p2 = pmov %p2757_p4 }
  0x84   : > { %2226 = vsyncadd (%p2760_p2), [#allocation5], 4294967264  ;;  %p2761_p3 = pmov %p2760_p2 }
  0x85   : > { %p2762_p5 = pmov %p2760_p2 }
  0x86   : > { %2228 = dma.done.wait (%p2761_p3), [#allocation8], 32  }
  0x87   : > { %2230 = vsyncadd (%p2762_p5), [#allocation8], 4294967264  ;;  %v2240_v0 = vmov 0.0   ;;  %vm2241_vm0 = vmmov 0   ;;  %v2018_v1 = vld [vmem:[%s2739_s4] sm:$0xff]   ;;  %v2019_v2 = vld [vmem:[%s2739_s4 + $0x8] sm:$0xff]  }
  0x88   : > { %1830 = vmatprep.subr.bf16.mxu1 %v2240_v0  ;;  %1810 = vmatprep.subr.bf16.mxu0 %v2240_v0  ;;  %v2020_v3 = vld [vmem:[%s2737_s2] sm:$0xff]   ;;  %p506_p8 = scmp.lt.s32.totalorder %s2325_s28, 1  ;;  %v2022_v4 = vld [vmem:[%s2737_s2 + $0x8] sm:$0xff]   ;;  %v2021_v5 = vld [vmem:[%s2739_s4 + $0x10] sm:$0xff]   ;;  %vm754_vm1 = vcmask 130048   ;;  %s2243_s20 = smov 112  }
  0x89   : > { %1846 = vmatprep.mubr.msk.bf16.mxu1 %vm2241_vm0, %v2240_v0  ;;  %1826 = vmatprep.mubr.msk.bf16.mxu0 %vm2241_vm0, %v2240_v0  ;;  %v2024_v6 = vld [vmem:[%s2737_s2 + $0x10] sm:$0xff]   ;;  %v2023_v7 = vld [vmem:[%s2739_s4 + $0x18] sm:$0xff]   ;;  %v2025_v9 = vld [vmem:[%s2739_s4 + $0x20] sm:$0xff]   ;;  %s2244_s16 = smov 80   ;;  %vm804_vm2 = vcmask 125952   ;;  %s2245_s23 = smov 64  }
  0x8a   : > { %1831 = vmatpush3.bf16.msra.mxu1 %v2018_v1  ;;  %1811 = vmatpush3.bf16.msra.mxu0 %v2020_v3  ;;  %s2765_s28 = smov (!%p506_p8, %s2325_s28), 1  ;;  %v2026_v8 = vld [vmem:[%s2737_s2 + $0x18] sm:$0xff]   ;;  %v2028_v10 = vld [vmem:[%s2737_s2 + $0x20] sm:$0xff]   ;;  %v2027_v11 = vld [vmem:[%s2739_s4 + $0x28] sm:$0xff]   ;;  %s2246_s30 = smov 32   ;;  %vm1214_vm3 = vcmask 261120  }
  0x8b   : > { %1832 = vmatprep.subr.bf16.mxu1 %v2240_v0  ;;  %1812 = vmatprep.subr.bf16.mxu0 %v2240_v0  ;;  %s1752_s25 = sshll.u32 %s2765_s28, 3  ;;  %s1694_s27 = sshll.u32 %s2765_s28, 1  ;;  %v2030_v12 = vld [vmem:[%s2737_s2 + $0x28] sm:$0xff]   ;;  %v2029_v13 = vld [vmem:[%s2739_s4 + $0x30] sm:$0xff]   ;;  %v2031_v15 = vld [vmem:[%s2739_s4 + $0x38] sm:$0xff]   ;;  %vm1216_vm4 = vcmask 392192  }
  0x8c   : > { %s510_s24 = scalar_lea.vmem %s2735_s0, %s1752_s25  ;;  %v2032_v14 = vld [vmem:[%s2737_s2 + $0x30] sm:$0xff]   ;;  %v2034_v16 = vld [vmem:[%s2737_s2 + $0x38] sm:$0xff]   ;;  %s514_s18 = scalar_lea.vmem %s2736_s1, %s1694_s27  ;;  %v1705_v19 = vld [vmem:[#allocation4] ss:$0 sm:$0xff]  ;;  %vm1286_vm6 = vcmask 523264  }
  0x8d   : > { %v2033_v17 = vld [vmem:[%s510_s24] sm:$0xff]   ;;  %s2242_s24 = smov 96   ;;  %v1721_v61 = vld [vmem:[%s2741_s6 + $0x8] sm:$0xf]  ;;  %s2247_s15 = smov 16  }
  0x8e   : > { %1833 = vmatpush3.bf16.msra.mxu1 %v2019_v2  ;;  %1813 = vmatpush3.bf16.msra.mxu0 %v2022_v4  ;;  %v522_v18 = vld [vmem:[%s514_s18] sm:$0x3]  ;;  %v1718_v53 = vld [vmem:[%s2741_s6 + $0x4] sm:$0xf]  ;;  %s2248_s18 = smov 48  }
  0x8f   : > { %1834 = vmatprep.subr.bf16.mxu1 %v2240_v0  ;;  %1814 = vmatprep.subr.bf16.mxu0 %v2240_v0  ;;  %v1696_v21 = vld [vmem:[#allocation2] ss:$0 sm:$0xff] }
  0x90   : > { %v802_v45 = vld [vmem:[%s2741_s6] sm:$0xf] }
  0x92   : > { %1835 = vmatpush3.bf16.msra.mxu1 %v2021_v5  ;;  %1815 = vmatpush3.bf16.msra.mxu0 %v2024_v6  ;;  %v1724_v6 = vld [vmem:[%s2741_s6 + $0xc] sm:$0xf] }
  0x93   : > { %1836 = vmatprep.subr.bf16.mxu1 %v2240_v0  ;;  %1816 = vmatprep.subr.bf16.mxu0 %v2240_v0 }
  0x96   : > { %1837 = vmatpush3.bf16.msra.mxu1 %v2023_v7  ;;  %1817 = vmatpush3.bf16.msra.mxu0 %v2026_v8 }
  0x97   : > { %1838 = vmatprep.subr.bf16.mxu1 %v2240_v0  ;;  %1818 = vmatprep.subr.bf16.mxu0 %v2240_v0 }
  0x9a   : > { %1839 = vmatpush3.bf16.msra.mxu1 %v2025_v9  ;;  %1819 = vmatpush3.bf16.msra.mxu0 %v2028_v10 }
  0x9b   : > { %1840 = vmatprep.subr.bf16.mxu1 %v2240_v0  ;;  %1820 = vmatprep.subr.bf16.mxu0 %v2240_v0 }
  0x9e   : > { %1841 = vmatpush3.bf16.msra.mxu1 %v2027_v11  ;;  %1821 = vmatpush3.bf16.msra.mxu0 %v2030_v12 }
  0x9f   : > { %1842 = vmatprep.subr.bf16.mxu1 %v2240_v0  ;;  %1822 = vmatprep.subr.bf16.mxu0 %v2240_v0 }
  0xa2   : > { %1843 = vmatpush3.bf16.msra.mxu1 %v2029_v13  ;;  %1823 = vmatpush3.bf16.msra.mxu0 %v2032_v14 }
  0xa3   : > { %1844 = vmatprep.subr.bf16.mxu1 %v2240_v0  ;;  %1824 = vmatprep.subr.bf16.mxu0 %v2240_v0 }
  0xa6   : > { %1845 = vmatpush3.bf16.msra.mxu1 %v2031_v15  ;;  %1825 = vmatpush3.bf16.msra.mxu0 %v2034_v16 }
  0xa7   : > { %1850 = vmatprep.subr.bf16.mxu1 %v2240_v0  ;;  %1862 = vmatprep.subr.bf16.mxu0 %v2240_v0 }
  0xa9   : > { %1847 = vmatmul.mubr.bf16.vlgmr.msra.gmra.mrb[0].mxu1 %v2033_v17  ;;  %1827 = vmatmul.mubr.bf16.vlgmr.msra.gmra.mrb[0].mxu0 %v522_v18 }
  0xaa   : > { %1852 = vmatprep.mubr.msk.bf16.mxu1 %vm2241_vm0, %v2240_v0  ;;  %1864 = vmatprep.mubr.msk.bf16.mxu0 %vm2241_vm0, %v2240_v0 }
 0x17c   : > { %v745_v20 = vpop.f32.mrb[0].mxu1  ;;  %v628_v24 = vpop.f32.mrb[0].mxu0 }
 0x17d   : > { %v1848_v22 = vpop.f32.mrb[1].mxu1  ;;  %v746_v25 = vadd.f32 %v1705_v19, %v745_v20  ;;  %v629_v28 = vadd.f32 %v1696_v21, %v628_v24  ;;  %v1828_v29 = vpop.f32.mrb[1].mxu0 }
 0x17e   : > { %v748_v23 = vpop.f32.mrb[2].mxu1  ;;  %v631_v30 = vpop.f32.mrb[2].mxu0 }
 0x17f   : > { %v749_v26 = vadd.f32 %v1705_v19, %v748_v23  ;;  %v1849_v27 = vpop.f32.mrb[3].mxu1  ;;  %v1829_v32 = vpop.f32.mrb[3].mxu0  ;;  %v753_v33 = vpack.c.bf16 %v629_v28, %v629_v28 }
 0x181   : > { %v2572_v31 = vpack.c.bf16 %v749_v26, %v746_v25 }
 0x183   : > { %979 = vrot.lane.b32.xlu1 %v2572_v31, %s2242_s24  ;;  %867 = vrot.lane.b32.xlu0 %v2572_v31, %s2243_s20  ;;  %v759_v34 = vsel %vm754_vm1, %v2572_v31, 0 }
 0x184   : > { %1851 = vmatpush3.bf16.xpose.msra.mxu1 %v759_v34 }
 0x185   : > { %1856 = vmatprep.subr.bf16.mxu1 %v2240_v0 }
 0x187   : > { %977 = vrot.lane.b32.xlu1 %v753_v33, %s2242_s24  ;;  %865 = vrot.lane.b32.xlu0 %v753_v33, %s2243_s20 }
 0x18b   : > { %1089 = vrot.lane.b32.xlu1 %v753_v33, %s2244_s16  ;;  %1091 = vrot.lane.b32.xlu0 %v2572_v31, %s2244_s16 }
 0x18c   : > { %1853 = vmatmul.mubr.msk.bf16.vlgmr.msra.gmra.mrb[4].mxu1 %vm754_vm1, %v753_v33 }
 0x18d   : > { %1858 = vmatprep.mubr.msk.bf16.mxu1 %vm2241_vm0, %v2240_v0 }
 0x1f5   : > { %v868_v35 = vpop.permute.xlu0 %867  ;;  %v980_v37 = vpop.permute.xlu1 %979 }
 0x1f6   : > { %v873_v36 = vsel %vm754_vm1, %v868_v35, 0  ;;  %v985_v39 = vsel %vm754_vm1, %v980_v37, 0 }
 0x1f7   : > { %1863 = vmatpush3.bf16.xpose.msra.mxu0 %v873_v36 }
 0x1f8   : > { %1874 = vmatprep.subr.bf16.mxu0 %v2240_v0 }
 0x1f9   : > { %v866_v38 = vpop.permute.xlu0 %865  ;;  %v978_v41 = vpop.permute.xlu1 %977 }
 0x1fd   : > { %v1092_v40 = vpop.permute.xlu0 %1091  ;;  %v1090_v43 = vpop.permute.xlu1 %1089 }
 0x1fe   : > { %1865 = vmatmul.mubr.msk.bf16.vlgmr.msra.gmra.mrb[4].mxu0 %vm754_vm1, %v866_v38  ;;  %v1097_v42 = vsel %vm754_vm1, %v1092_v40, 0 }
 0x1ff   : > { %1875 = vmatpush3.bf16.xpose.msra.mxu0 %v985_v39  ;;  %1876 = vmatprep.mubr.msk.bf16.mxu0 %vm2241_vm0, %v2240_v0 }
 0x200   : > { %1886 = vmatprep.subr.bf16.mxu0 %v2240_v0 }
 0x206   : > { %1877 = vmatmul.mubr.msk.bf16.vlgmr.msra.gmra.mrb[8].mxu0 %vm754_vm1, %v978_v41 }
 0x207   : > { %1887 = vmatpush3.bf16.xpose.msra.mxu0 %v1097_v42  ;;  %1888 = vmatprep.mubr.msk.bf16.mxu0 %vm2241_vm0, %v2240_v0 }
 0x208   : > { %1898 = vmatprep.subr.bf16.mxu0 %v2240_v0 }
 0x20e   : > { %1889 = vmatmul.mubr.msk.bf16.vlgmr.msra.gmra.mrb[12].mxu0 %vm754_vm1, %v1090_v43 }
 0x20f   : > { %1906 = vmatprep.mubr.msk.bf16.mxu0 %vm2241_vm0, %v2240_v0 }
 0x25f   : > { %v795_v44 = vpop.f32.mrb[4].mxu1 }
 0x260   : > { %v801_v46 = vmul.f32 0.25, %v795_v44  ;;  %v1854_v47 = vpop.f32.mrb[5].mxu1 }
 0x261   : > { %v798_v48 = vpop.f32.mrb[6].mxu1 }
 0x262   : > { %v1855_v49 = vpop.f32.mrb[7].mxu1  ;;  %v803_v50 = vadd.f32 %v802_v45, %v801_v46 }
 0x264   : > { %v805_v51 = vsel %vm804_vm2, %v803_v50, -inf }
 0x265   : > { %806 = vmax.xlane.f32.xlu0 %v805_v51 }
 0x2d1   : > { %v909_v52 = vpop.f32.mrb[4].mxu0 }
 0x2d2   : > { %v915_v54 = vmul.f32 0.25, %v909_v52  ;;  %v1866_v55 = vpop.f32.mrb[5].mxu0 }
 0x2d3   : > { %v912_v56 = vpop.f32.mrb[6].mxu0 }
 0x2d4   : > { %v1867_v57 = vpop.f32.mrb[7].mxu0  ;;  %v918_v58 = vadd.f32 %v1718_v53, %v915_v54 }
 0x2d6   : > { %v919_v59 = vsel %vm804_vm2, %v918_v58, -inf }
 0x2d7   : > { %920 = vmax.xlane.f32.xlu1 %v919_v59 }
 0x2d9   : > { %v1021_v60 = vpop.f32.mrb[8].mxu0 }
 0x2da   : > { %v1027_v62 = vmul.f32 0.25, %v1021_v60  ;;  %v1878_v63 = vpop.f32.mrb[9].mxu0 }
 0x2db   : > { %v1024_v1 = vpop.f32.mrb[10].mxu0 }
 0x2dc   : > { %v1879_v2 = vpop.f32.mrb[11].mxu0  ;;  %v1030_v3 = vadd.f32 %v1721_v61, %v1027_v62 }
 0x2de   : > { %v1031_v4 = vsel %vm804_vm2, %v1030_v3, -inf }
 0x2df   : > { %1032 = vmax.xlane.f32.xlu0 %v1031_v4 }
 0x2e1   : > { %v1133_v5 = vpop.f32.mrb[12].mxu0 }
 0x2e2   : > { %v1139_v7 = vmul.f32 0.25, %v1133_v5  ;;  %v1890_v8 = vpop.f32.mrb[13].mxu0 }
 0x2e3   : > { %v1136_v9 = vpop.f32.mrb[14].mxu0  ;;  %v2037_v8 = vld [vmem:[%s2742_s7 + $0x10] sm:$0xff]  }
 0x2e4   : > { %v1891_v10 = vpop.f32.mrb[15].mxu0  ;;  %v1142_v11 = vadd.f32 %v1724_v6, %v1139_v7  ;;  %v2035_v6 = vld [vmem:[%s2742_s7] sm:$0xff]   ;;  %v2036_v7 = vld [vmem:[%s2742_s7 + $0x8] sm:$0xff]   ;;  %v2038_v9 = vld [vmem:[%s2742_s7 + $0x18] sm:$0xff]  }
 0x2e5   : > { %1899 = vmatpush3.bf16.msra.mxu0 %v2035_v6  ;;  %v2039_v10 = vld [vmem:[%s2744_s9] sm:$0xff]  }
 0x2e6   : > { %v1143_v12 = vsel %vm804_vm2, %v1142_v11, -inf  ;;  %1900 = vmatprep.subr.bf16.mxu0 %v2240_v0 }
 0x2e7   : > { %1144 = vmax.xlane.f32.xlu0 %v1143_v12  ;;  %v2041_v12 = vld [vmem:[%s2744_s9 + $0x10] sm:$0xff]  }
 0x2e9   : > { %1901 = vmatpush3.bf16.msra.mxu0 %v2036_v7 }
 0x2ea   : > { %1902 = vmatprep.subr.bf16.mxu0 %v2240_v0 }
 0x2ed   : > { %1903 = vmatpush3.bf16.msra.mxu0 %v2037_v8 }
 0x2ee   : > { %1904 = vmatprep.subr.bf16.mxu0 %v2240_v0 }
 0x2f1   : > { %1905 = vmatpush3.bf16.msra.mxu0 %v2038_v9 }
 0x2f2   : > { %v807_v13 = vpop.xlane.xlu0 %806  ;;  %1930 = vmatprep.subr.bf16.mxu0 %v2240_v0 }
 0x2f3   : > { %v808_v14 = vsub.f32 %v803_v50, %v807_v13  ;;  %v2042_v13 = vld [vmem:[%s2744_s9 + $0x18] sm:$0xff]  }
 0x2f5   : > { %v809_v15 = vmul.f32 1.442695, %v808_v14  ;;  %v2043_v14 = vld [vmem:[%s2744_s9 + $0x20] sm:$0xff]  }
 0x2f7   : > { %2055 = vpow2.f32 %v809_v15  ;;  %v2044_v15 = vld [vmem:[%s2744_s9 + $0x28] sm:$0xff]  }
 0x301   : > { %v2056_v16 = vpop.eup %2055 }
 0x302   : > { %v811_v17 = vsel %vm804_vm2, %v2056_v16, 0.0 }
 0x303   : > { %812 = vadd.xlane.f32.xlu1 %v811_v17 }
 0x314   : > { %818 = vrot.lane.b32.xlu1 %v2572_v31, %s2245_s23 }
 0x364   : > { %v921_v18 = vpop.xlane.xlu1 %920 }
 0x365   : > { %v922_v19 = vsub.f32 %v918_v58, %v921_v18 }
 0x367   : > { %v923_v20 = vmul.f32 1.442695, %v922_v19 }
 0x369   : > { %2057 = vpow2.f32 %v923_v20 }
 0x36c   : > { %v1033_v21 = vpop.xlane.xlu0 %1032 }
 0x36d   : > { %v1034_v22 = vsub.f32 %v1030_v3, %v1033_v21 }
 0x36f   : > { %v1035_v23 = vmul.f32 1.442695, %v1034_v22 }
 0x371   : > { %2059 = vpow2.f32 %v1035_v23 }
 0x373   : > { %v2058_v24 = vpop.eup %2057 }
 0x374   : > { %v1145_v25 = vpop.xlane.xlu0 %1144  ;;  %v925_v26 = vsel %vm804_vm2, %v2058_v24, 0.0 }
 0x375   : > { %v1146_v27 = vsub.f32 %v1142_v11, %v1145_v25  ;;  %926 = vadd.xlane.f32.xlu0 %v925_v26  ;;  %v2040_v11 = vld [vmem:[%s2744_s9 + $0x8] sm:$0xff]  }
 0x377   : > { %v1147_v28 = vmul.f32 1.442695, %v1146_v27 }
 0x379   : > { %2061 = vpow2.f32 %v1147_v28 }
 0x37b   : > { %v2060_v29 = vpop.eup %2059 }
 0x37c   : > { %v1037_v30 = vsel %vm804_vm2, %v2060_v29, 0.0 }
 0x37d   : > { %1038 = vadd.xlane.f32.xlu1 %v1037_v30 }
 0x383   : > { %v2062_v32 = vpop.eup %2061 }
 0x384   : > { %v1149_v33 = vsel %vm804_vm2, %v2062_v32, 0.0 }
 0x385   : > { %1150 = vadd.xlane.f32.xlu0 %v1149_v33 }
 0x38e   : > { %1043 = vrot.lane.b32.xlu1 %v2572_v31, %s2246_s30 }
 0x390   : > { %v813_v34 = vpop.xlane.xlu1 %812 }
 0x391   : > { %2063 = vrcp.f32 %v813_v34 }
 0x392   : > { %1155 = vrot.lane.b32.xlu1 %v2572_v31, %s2247_s15 }
 0x394   : > { %v819_v35 = vpop.permute.xlu1 %818 }
 0x395   : > { %1857 = vmatpush3.bf16.msra.mxu1 %v819_v35 }
 0x396   : > { %1868 = vmatprep.subr.bf16.mxu1 %v2240_v0 }
 0x39b   : > { %v2064_v36 = vpop.eup %2063  ;;  %931 = vrot.lane.b32.xlu0 %v2572_v31, %s2248_s18 }
 0x39c   : > { %v815_v37 = vmul.f32 %v2064_v36, %v2056_v16  ;;  %v2045_v16 = vld [vmem:[%s2744_s9 + $0x30] sm:$0xff]  }
 0x39e   : > { %v816_v38 = vpack.c.bf16 %v815_v37, %v815_v37 }
 0x3a0   : > { %1859 = vmatmul.mubr.msk.bf16.vlgmr.msra.gmra.mrb[8].mxu1 %vm754_vm1, %v816_v38 }
 0x3a1   : > { %1870 = vmatprep.mubr.msk.bf16.mxu1 %vm2241_vm0, %v2240_v0 }
 0x402   : > { %v927_v39 = vpop.xlane.xlu0 %926 }
 0x403   : > { %2065 = vrcp.f32 %v927_v39 }
 0x40a   : > { %v1039_v40 = vpop.xlane.xlu1 %1038 }
 0x40b   : > { %2067 = vrcp.f32 %v1039_v40 }
 0x40d   : > { %v2066_v41 = vpop.eup %2065 }
 0x40e   : > { %v929_v43 = vmul.f32 %v2066_v41, %v2058_v24  ;;  %v1044_v46 = vpop.permute.xlu1 %1043 }
 0x410   : > { %v930_v45 = vpack.c.bf16 %v929_v43, %v929_v43 }
 0x412   : > { %v1151_v42 = vpop.xlane.xlu0 %1150  ;;  %v1156_v50 = vpop.permute.xlu1 %1155 }
 0x413   : > { %2069 = vrcp.f32 %v1151_v42 }
 0x415   : > { %v2068_v31 = vpop.eup %2067 }
 0x416   : > { %v932_v44 = vpop.permute.xlu0 %931  ;;  %v1041_v47 = vmul.f32 %v2068_v31, %v2060_v29 }
 0x417   : > { %1869 = vmatpush3.bf16.msra.mxu1 %v932_v44 }
 0x418   : > { %1880 = vmatprep.subr.bf16.mxu1 %v2240_v0  ;;  %v1042_v48 = vpack.c.bf16 %v1041_v47, %v1041_v47 }
 0x41a   : > { %1871 = vmatmul.mubr.msk.bf16.vlgmr.msra.gmra.mrb[12].mxu1 %vm754_vm1, %v930_v45 }
 0x41b   : > { %1881 = vmatpush3.bf16.msra.mxu1 %v1044_v46  ;;  %1882 = vmatprep.mubr.msk.bf16.mxu1 %vm2241_vm0, %v2240_v0 }
 0x41c   : > { %1892 = vmatprep.subr.bf16.mxu1 %v2240_v0 }
 0x41d   : > { %v2070_v49 = vpop.eup %2069 }
 0x41e   : > { %v1153_v51 = vmul.f32 %v2070_v49, %v2062_v32 }
 0x420   : > { %v1154_v52 = vpack.c.bf16 %v1153_v51, %v1153_v51  ;;  %v2047_v51 = vld [vmem:[%s2746_s11] sm:$0xff]  }
 0x422   : > { %1883 = vmatmul.mubr.msk.bf16.vlgmr.msra.gmra.mrb[16].mxu1 %vm754_vm1, %v1042_v48 }
 0x423   : > { %1893 = vmatpush3.bf16.msra.mxu1 %v1156_v50  ;;  %1894 = vmatprep.mubr.msk.bf16.mxu1 %vm2241_vm0, %v2240_v0  ;;  %v2046_v50 = vld [vmem:[%s2744_s9 + $0x38] sm:$0xff]  }
 0x424   : > { %1910 = vmatprep.subr.bf16.mxu1 %v2240_v0 }
 0x42a   : > { %1895 = vmatmul.mubr.msk.bf16.vlgmr.msra.gmra.mrb[20].mxu1 %vm754_vm1, %v1154_v52  ;;  %v2048_v52 = vld [vmem:[%s2746_s11 + $0x8] sm:$0xff]  }
 0x42b   : > { %1926 = vmatprep.mubr.msk.bf16.mxu1 %vm2241_vm0, %v2240_v0  ;;  %1911 = vmatpush3.bf16.msra.mxu1 %v2039_v10 }
 0x42c   : > { %1912 = vmatprep.subr.bf16.mxu1 %v2240_v0 }
 0x42f   : > { %1913 = vmatpush3.bf16.msra.mxu1 %v2040_v11 }
 0x430   : > { %1914 = vmatprep.subr.bf16.mxu1 %v2240_v0 }
 0x433   : > { %1915 = vmatpush3.bf16.msra.mxu1 %v2041_v12 }
 0x434   : > { %1916 = vmatprep.subr.bf16.mxu1 %v2240_v0 }
 0x437   : > { %1917 = vmatpush3.bf16.msra.mxu1 %v2042_v13 }
 0x438   : > { %1918 = vmatprep.subr.bf16.mxu1 %v2240_v0 }
 0x43b   : > { %1919 = vmatpush3.bf16.msra.mxu1 %v2043_v14 }
 0x43c   : > { %1920 = vmatprep.subr.bf16.mxu1 %v2240_v0 }
 0x43f   : > { %1921 = vmatpush3.bf16.msra.mxu1 %v2044_v15 }
 0x440   : > { %1922 = vmatprep.subr.bf16.mxu1 %v2240_v0 }
 0x443   : > { %1923 = vmatpush3.bf16.msra.mxu1 %v2045_v16 }
 0x444   : > { %1924 = vmatprep.subr.bf16.mxu1 %v2240_v0 }
 0x447   : > { %1925 = vmatpush3.bf16.msra.mxu1 %v2046_v50 }
 0x473   : > { %v858_v53 = vpop.f32.mrb[8].mxu1 }
 0x474   : > { %v1860_v54 = vpop.f32.mrb[9].mxu1 }
 0x475   : > { %v861_v55 = vpop.f32.mrb[10].mxu1  ;;  %v2050_v54 = vld [vmem:[%s2746_s11 + $0x18] sm:$0xff]  }
 0x476   : > { %v1861_v56 = vpop.f32.mrb[11].mxu1  ;;  %v1726_v55 = vld [vmem:[#allocation6] ss:$0 sm:$0xff] }
 0x4ed   : > { %v971_v57 = vpop.f32.mrb[12].mxu1 }
 0x4ee   : > { %1202 = vrot.lane.b32.xlu0 %v971_v57, %s2247_s15  ;;  %v1872_v58 = vpop.f32.mrb[13].mxu1 }
 0x4ef   : > { %v974_v59 = vpop.f32.mrb[14].mxu1 }
 0x4f0   : > { %v1873_v60 = vpop.f32.mrb[15].mxu1 }
 0x4f5   : > { %v1083_v61 = vpop.f32.mrb[16].mxu1 }
 0x4f6   : > { %1206 = vrot.lane.b32.xlu1 %v1083_v61, %s2246_s30  ;;  %v1884_v62 = vpop.f32.mrb[17].mxu1  ;;  %s518_s30 = scalar_lea.vmem %s2748_s13, %s1694_s27 }
 0x4f7   : > { %v1086_v63 = vpop.f32.mrb[18].mxu1  ;;  %v2051_v62 = vld [vmem:[%s2746_s11 + $0x20] sm:$0xff]  }
 0x4f8   : > { %v1885_v1 = vpop.f32.mrb[19].mxu1  ;;  %v2052_v63 = vld [vmem:[%s2746_s11 + $0x28] sm:$0xff]  }
 0x4f9   : > { %v2053_v1 = vld [vmem:[%s2746_s11 + $0x30] sm:$0xff]  }
 0x4fd   : > { %v1195_v2 = vpop.f32.mrb[20].mxu1 }
 0x4fe   : > { %1210 = vrot.lane.b32.xlu0 %v1195_v2, %s2248_s18  ;;  %v1896_v3 = vpop.f32.mrb[21].mxu1  ;;  %v2054_v2 = vld [vmem:[%s2746_s11 + $0x38] sm:$0xff]  }
 0x4ff   : > { %v1198_v4 = vpop.f32.mrb[22].mxu1  ;;  %v1732_v3 = vld [vmem:[#allocation7] ss:$0 sm:$0xff] }
 0x500   : > { %v1897_v5 = vpop.f32.mrb[23].mxu1 }
 0x560   : > { %v1203_v17 = vpop.permute.xlu0 %1202 }
 0x561   : > { %v1213_v19 = vsel %vm754_vm1, %v858_v53, %v1203_v17  ;;  %v2049_v53 = vld [vmem:[%s2746_s11 + $0x10] sm:$0xff]  }
 0x568   : > { %v1207_v18 = vpop.permute.xlu1 %1206 }
 0x569   : > { %v1215_v20 = vsel %vm1214_vm3, %v1213_v19, %v1207_v18 }
 0x570   : > { %v1211_v21 = vpop.permute.xlu0 %1210 }
 0x571   : > { %v1217_v22 = vsel %vm1216_vm4, %v1215_v20, %v1211_v21 }
 0x572   : > { %v1219_v23 = vmul.f32 0.70710677, %v1217_v22  ;;  %v1218_v46 = vmul.f32 0.5, %v1217_v22 }
 0x574   : > { %vm1220_vm5 = vcmp.ge.f32.partialorder %v1219_v23, 0.0  ;;  %v1221_v24 = vsub.f32 0.0, %v1219_v23 }
 0x576   : > { %v1222_v25 = vsel %vm1220_vm5, %v1219_v23, %v1221_v24 }
 0x577   : > { %v1223_v26 = vmul.f32 0.3275911, %v1222_v25  ;;  %v1236_v28 = vsub.f32 0.0, %v1222_v25 }
 0x579   : > { %v1224_v27 = vadd.f32 1.0, %v1223_v26  ;;  %v1237_v30 = vmul.f32 %v1236_v28, %v1222_v25 }
 0x57b   : > { %2071 = vrcp.f32 %v1224_v27  ;;  %v1238_v34 = vmul.f32 1.442695, %v1237_v30 }
 0x57d   : > { %2073 = vpow2.f32 %v1238_v34 }
 0x585   : > { %v2072_v29 = vpop.eup %2071 }
 0x586   : > { %v1227_v32 = vmul.f32 1.0614054, %v2072_v29 }
 0x587   : > { %v2074_v42 = vpop.eup %2073 }
 0x588   : > { %v1228_v33 = vadd.f32 -1.4531521, %v1227_v32 }
 0x58a   : > { %v1229_v35 = vmul.f32 %v2072_v29, %v1228_v33 }
 0x58c   : > { %v1230_v36 = vadd.f32 1.4214138, %v1229_v35 }
 0x58e   : > { %v1231_v37 = vmul.f32 %v2072_v29, %v1230_v36 }
 0x590   : > { %v1232_v38 = vadd.f32 -0.28449672, %v1231_v37 }
 0x592   : > { %v1233_v39 = vmul.f32 %v2072_v29, %v1232_v38 }
 0x594   : > { %v1234_v40 = vadd.f32 0.2548296, %v1233_v39 }
 0x596   : > { %v1235_v41 = vmul.f32 %v2072_v29, %v1234_v40 }
 0x598   : > { %v1240_v43 = vmul.f32 %v2074_v42, %v1235_v41 }
 0x59a   : > { %v1241_v44 = vsub.f32 1.0, %v1240_v43 }
 0x59c   : > { %v1242_v45 = vsub.f32 0.0, %v1241_v44 }
 0x59e   : > { %v1243_v31 = vsel %vm1220_vm5, %v1241_v44, %v1242_v45 }
 0x59f   : > { %v1244_v47 = vadd.f32 1.0, %v1243_v31 }
 0x5a1   : > { %v1245_v48 = vmul.f32 %v1244_v47, %v1218_v46 }
 0x5a3   : > { %v1246_v49 = vpack.c.bf16 %v1245_v48, %v1245_v48 }
 0x5a5   : > { %1907 = vmatmul.mubr.msk.bf16.vlgmr.msra.gmra.mrb[16].mxu0 %vm1286_vm6, %v1246_v49 }
 0x5a6   : > { %1946 = vmatprep.mubr.msk.bf16.mxu0 %vm2241_vm0, %v2240_v0  ;;  %1931 = vmatpush3.bf16.msra.mxu0 %v2047_v51 }
 0x5a7   : > { %1932 = vmatprep.subr.bf16.mxu0 %v2240_v0 }
 0x5aa   : > { %1933 = vmatpush3.bf16.msra.mxu0 %v2048_v52 }
 0x5ab   : > { %1934 = vmatprep.subr.bf16.mxu0 %v2240_v0 }
 0x5ae   : > { %1935 = vmatpush3.bf16.msra.mxu0 %v2049_v53 }
 0x5af   : > { %1936 = vmatprep.subr.bf16.mxu0 %v2240_v0 }
 0x5b2   : > { %1937 = vmatpush3.bf16.msra.mxu0 %v2050_v54 }
 0x5b3   : > { %1938 = vmatprep.subr.bf16.mxu0 %v2240_v0 }
 0x5b6   : > { %1939 = vmatpush3.bf16.msra.mxu0 %v2051_v62 }
 0x5b7   : > { %1940 = vmatprep.subr.bf16.mxu0 %v2240_v0 }
 0x5ba   : > { %1941 = vmatpush3.bf16.msra.mxu0 %v2052_v63 }
 0x5bb   : > { %1942 = vmatprep.subr.bf16.mxu0 %v2240_v0 }
 0x5be   : > { %1943 = vmatpush3.bf16.msra.mxu0 %v2053_v1 }
 0x5bf   : > { %1944 = vmatprep.subr.bf16.mxu0 %v2240_v0  ;;  %v1741_v0 = vld [vmem:[#allocation9] ss:$0 sm:$0xff] }
 0x5c2   : > { %1945 = vmatpush3.bf16.msra.mxu0 %v2054_v2 }
 0x678   : > { %v1324_v56 = vpop.f32.mrb[16].mxu0 }
 0x679   : > { %v1325_v57 = vadd.f32 %v1726_v55, %v1324_v56  ;;  %v1908_v58 = vpop.f32.mrb[17].mxu0 }
 0x67a   : > { %v1327_v59 = vpop.f32.mrb[18].mxu0 }
 0x67b   : > { %v1330_v60 = vpack.c.bf16 %v1325_v57, %v1325_v57  ;;  %v1909_v61 = vpop.f32.mrb[19].mxu0 }
 0x67d   : > { %1927 = vmatmul.mubr.bf16.vlgmr.msra.gmra.mrb[24].mxu1 %v1330_v60 }
 0x750   : > { %v1436_v4 = vpop.f32.mrb[24].mxu1 }
 0x751   : > { %v1437_v5 = vadd.f32 %v1732_v3, %v1436_v4  ;;  %v1928_v6 = vpop.f32.mrb[25].mxu1 }
 0x752   : > { %v1439_v7 = vpop.f32.mrb[26].mxu1 }
 0x753   : > { %v1442_v8 = vadd.f32 3.0, %v1437_v5  ;;  %v1929_v9 = vpop.f32.mrb[27].mxu1 }
 0x755   : > { %v1443_v10 = vmax.f32 %v1442_v8, 0.0 }
 0x757   : > { %v1444_v11 = vmin.f32 %v1443_v10, 6.0 }
 0x759   : > { %v1445_v12 = vmul.f32 %v1444_v11, %v1437_v5 }
 0x75b   : > { %v1446_v13 = vmul.f32 0.16666667, %v1445_v12 }
 0x75d   : > { %v1447_v14 = vpack.c.bf16 %v1446_v13, %v1446_v13 }
 0x75f   : > { %1947 = vmatmul.mubr.bf16.vlgmr.msra.gmra.mrb[20].mxu0 %v1447_v14 }
 0x832   : > { %v1553_v15 = vpop.f32.mrb[20].mxu0 }
 0x833   : > { %v1554_v16 = vadd.f32 %v1741_v0, %v1553_v15  ;;  %v1948_v17 = vpop.f32.mrb[21].mxu0 }
 0x834   : > { %v1556_v18 = vpop.f32.mrb[22].mxu0 }
 0x835   : > { %v1559_v19 = vadd.f32 %v1554_v16, %v1325_v57  ;;  %v1949_v20 = vpop.f32.mrb[23].mxu0 }
 0x837   : > { %v1560_v21 = vpack.c.bf16 %v1559_v19, %v1559_v19 }
 0x839   : > { %1561 = vst [vmem:[%s518_s30] sm:$0x3] %v1560_v21 }
 0x83a PF: > { %s2763_s15 = sld [smem:[#allocation13_spill]] }
 0x840   : > { %s26_s25 = sadd.s32 1, %s2763_s15  }
 0x841   : > { %p23_p9 = scmp.ge.s32.totalorder %s26_s25, 4  }
 0x843   :  { %25 = sbr.rel (!%p23_p9) target bundleno = 3 (0x3), region = 129 }
 0x84a   :  { %1581 = vsyncpa [#allocation3], 1 }
 0x84b   :  { %1583 = vsyncpa [#allocation3 + $0x1], 1 }
 0x84c   :  { %1584 = vsyncpa [#allocation5], 1 }
 0x84d   :  { %1585 = vsyncpa [#allocation8], 1 }

// kernel: levit_forward.9
= control target key start
LH: loop header
LB: loop body
LE: loop exit
PB: predicated region body
PF: predicated region fallthrough
CT: control target
= control target key end

     0   :  { %19 = vsyncpa [#allocation3], 0  ;;  %s3005_s29 = smov 0   ;;  %s3523_s0 = inlined_call_operand.vmem [shape: bf16[2,4,128], index: 0, kind: input, shape index: {}]   ;;  %s3524_s1 = inlined_call_operand.vmem [shape: bf16[2,128,128], index: 1, kind: input, shape index: {}]   ;;  %s3525_s2 = inlined_call_operand.vmem [shape: f32[2,1,128], index: 2, kind: input, shape index: {}]   ;;  %s3526_s3 = inlined_call_operand.vmem [shape: bf16[2,128,128], index: 3, kind: input, shape index: {}]   ;;  %s3527_s4 = inlined_call_operand.vmem [shape: f32[2,1,128], index: 4, kind: input, shape index: {}]   ;;  %s3528_s5 = inlined_call_operand.vmem [shape: f32[2,2,4,4], index: 5, kind: input, shape index: {}]   ;;  %s3529_s6 = inlined_call_operand.vmem [shape: bf16[2,32,128], index: 6, kind: input, shape index: {}]   ;;  %s3530_s7 = inlined_call_operand.vmem [shape: f32[2,1,128], index: 7, kind: input, shape index: {}]   ;;  %s3531_s8 = inlined_call_operand.vmem [shape: bf16[2,128,128], index: 8, kind: input, shape index: {}]   ;;  %s3532_s9 = inlined_call_operand.vmem [shape: f32[2,1,128], index: 9, kind: input, shape index: {}]   ;;  %s3533_s10 = inlined_call_operand.vmem [shape: bf16[2,128,128], index: 10, kind: input, shape index: {}]   ;;  %s3534_s11 = inlined_call_operand.vmem [shape: f32[2,1,128], index: 11, kind: input, shape index: {}]   ;;  %s3535_s12 = inlined_call_operand.vmem [shape: bf16[128,128], index: 12, kind: input, shape index: {}]   ;;  %s3536_s13 = inlined_call_operand.hbm [shape: f32[1,128], index: 13, kind: input, shape index: {}]   ;;  %s3537_s14 = inlined_call_operand.vmem [shape: f32[2,1,128], index: 14, kind: output, shape index: {}]  }
   0x1 LB: > { %s3011_s30 = sadd.s32 4294967295, %s2921_s29   ;;  %p2231_p0 = scmp.ge.s32.totalorder %s2921_s29, 1  ;;  %s2921_s29 = sphi %s3005_s29, %s25_s29  }
   0x2   : > { %p355_p1 = scmp.lt.s32.totalorder %s2921_s29, 3  ;;  %p3538_p3 = scmp.eq.s32.totalorder %s3011_s30, 0 }
   0x3   : > { %s2923_s16 = smov [#allocation2]   ;;  %s2883_s21 = scalar_lea.hbm %s3536_s13, 16 }
   0x4   : > { %p3015_p2 = pnand %p2231_p0, %p355_p1  ;;  %s404_s17 = sshll.u32 %s2923_s16, 4  ;;  %s405_s17 = int_to_ptr.vmem [resolvable:$true] %s404_s17 }
   0x5   : > { %p2884_p6 = scmp.ne.s32.totalorder %s3536_s13, %s2883_s21  ;;  %p2890_p10 = scmp.lt.u32.totalorder %s2883_s21, %s3536_s13 }
   0x6   : > { %s3540_s15 = scalar_select %p3015_p2, 1, 0 }
   0x7   : > { %p2762_p4 = pneg %p3015_p2 }
   0x9   : > { %p3024_p5 = pnand %p3538_p3, %p2762_p4 }
   0xb   : > { %p2885_p7 = pneg %p3024_p5 }
   0xd   : > { %p2886_p8 = pnand %p2885_p7, %p2884_p6 }
   0xf   : > { %p2887_p9 = pneg %p2886_p8 }
  0x11   : > { %p2892_p11 = pnand %p2890_p10, %p2887_p9 }
  0x13   : > { %2895 = shalt.err (!%p2892_p11)
}
  0x14   : > { %s2896_s26 = scalar_lea.vmem %s405_s17, 16  ;;  %s2903_s27 = scalar_lea.vmem %s405_s17, 32 }
  0x15   : > { %p2897_p12 = scmp.ne.s32.totalorder %s405_s17, %s2896_s26  ;;  %p2904_p1 = scmp.lt.s32.totalorder %s405_s17, %s405_s17 }
  0x16   : > { %p2905_p4 = scmp.lt.s32.totalorder %s2903_s27, %s2896_s26 }
  0x17   : > { %p2899_p13 = pnand %p2897_p12, %p2885_p7 }
  0x18   : > { %p2906_p3 = por %p2905_p4, %p2904_p1 }
  0x19   : > { %p2900_p0 = pneg %p2899_p13 }
  0x1b   : > { %p2907_p2 = pnand %p2906_p3, %p2900_p0 }
  0x1d   : > { %2910 = shalt.err (!%p2907_p2)
}
  0x1e   : > { %2765 = dma.hbm_to_vmem [thread:$0]  (!%p3024_p5), %s3536_s13, 16, %s405_s17, [#allocation3]  }
  0x1f   : > { %p3542_p6 = scmp.ne.s32.totalorder %s3540_s15, 0 }
  0x20   : > { %p3543_p8 = scmp.eq.s32.totalorder (!%p3542_p6), %s3011_s30, 0 }
  0x21   : > { %424 = sbr.rel (%p3542_p6) target bundleno = 4555 (0x11cb), region = 76 }
  0x28   : > { %2916 = dma.done.wait (%p3543_p8), [#allocation3], 16   ;;  %p3544_p7 = pmov %p3543_p8 }
  0x29   : > { %v2924_v0 = vmov 0.0   ;;  %vm2925_vm0 = vmmov 0   ;;  %v2783_v1 = vld [vmem:[%s3526_s3] sm:$0xff]   ;;  %v2784_v2 = vld [vmem:[%s3526_s3 + $0x8] sm:$0xff]   ;;  %v2786_v5 = vld [vmem:[%s3526_s3 + $0x10] sm:$0xff]   ;;  %p467_p2 = scmp.lt.s32.totalorder %s3011_s30, 1 }
  0x2a   : > { %2918 = vsyncadd (%p3544_p7), [#allocation3], 4294967280  ;;  %2534 = vmatprep.subr.bf16.mxu1 %v2924_v0  ;;  %2514 = vmatprep.subr.bf16.mxu0 %v2924_v0  ;;  %v2785_v3 = vld [vmem:[%s3524_s1] sm:$0xff]   ;;  %v2787_v4 = vld [vmem:[%s3524_s1 + $0x8] sm:$0xff]   ;;  %vm701_vm1 = vcmask 130048   ;;  %s2926_s28 = smov 96  }
  0x2b   : > { %2550 = vmatprep.mubr.msk.bf16.mxu1 %vm2925_vm0, %v2924_v0  ;;  %2530 = vmatprep.mubr.msk.bf16.mxu0 %vm2925_vm0, %v2924_v0  ;;  %v2789_v6 = vld [vmem:[%s3524_s1 + $0x10] sm:$0xff]   ;;  %v2788_v7 = vld [vmem:[%s3526_s3 + $0x18] sm:$0xff]   ;;  %s3546_s30 = smov (!%p467_p2, %s3011_s30), 1  ;;  %v2790_v9 = vld [vmem:[%s3526_s3 + $0x20] sm:$0xff]   ;;  %s2927_s16 = smov 112   ;;  %vm771_vm2 = vcmask 1041408  }
  0x2c   : > { %2535 = vmatpush3.bf16.msra.mxu1 %v2783_v1  ;;  %2515 = vmatpush3.bf16.msra.mxu0 %v2785_v3  ;;  %v2791_v8 = vld [vmem:[%s3524_s1 + $0x18] sm:$0xff]   ;;  %v2792_v10 = vld [vmem:[%s3526_s3 + $0x28] sm:$0xff]   ;;  %v2793_v11 = vld [vmem:[%s3524_s1 + $0x20] sm:$0xff]   ;;  %s2236_s24 = sshll.u32 %s3546_s30, 1  ;;  %vm751_vm3 = vcmask 27648   ;;  %vm767_vm4 = vcmask 31744   ;;  %s473_s25 = scalar_lea.vmem %s3537_s14, %s3546_s30 }
  0x2d   : > { %2536 = vmatprep.subr.bf16.mxu1 %v2924_v0  ;;  %2516 = vmatprep.subr.bf16.mxu0 %v2924_v0  ;;  %v2795_v12 = vld [vmem:[%s3524_s1 + $0x28] sm:$0xff]   ;;  %v2794_v13 = vld [vmem:[%s3526_s3 + $0x30] sm:$0xff]   ;;  %v2796_v15 = vld [vmem:[%s3526_s3 + $0x38] sm:$0xff]   ;;  %s470_s21 = scalar_lea.vmem %s3523_s0, %s2236_s24  ;;  %s2928_s20 = smov 80   ;;  %vm987_vm6 = vcmask 261120   ;;  %vm2054_vm8 = vcmask 1043456  }
  0x2e   : > { %v2797_v14 = vld [vmem:[%s3524_s1 + $0x30] sm:$0xff]   ;;  %v2798_v16 = vld [vmem:[%s3524_s1 + $0x38] sm:$0xff]   ;;  %v3125_v17 = vld [vmem:[%s470_s21] sm:$0x3]  ;;  %s2929_s21 = smov 16  }
  0x2f   : > { %v2246_v18 = vld [vmem:[%s3527_s4] ss:$0 sm:$0xff]  ;;  %v2258_v60 = vld [vmem:[%s3528_s5 + $0x4] sm:$0xf] }
  0x30   : > { %2537 = vmatpush3.bf16.msra.mxu1 %v2784_v2  ;;  %2517 = vmatpush3.bf16.msra.mxu0 %v2787_v4  ;;  %v2237_v23 = vld [vmem:[%s3525_s2] ss:$0 sm:$0xff] }
  0x31   : > { %2538 = vmatprep.subr.bf16.mxu1 %v2924_v0  ;;  %2518 = vmatprep.subr.bf16.mxu0 %v2924_v0  ;;  %v749_v36 = vld [vmem:[%s3528_s5] sm:$0xf] }
  0x34   : > { %2539 = vmatpush3.bf16.msra.mxu1 %v2786_v5  ;;  %2519 = vmatpush3.bf16.msra.mxu0 %v2789_v6 }
  0x35   : > { %2540 = vmatprep.subr.bf16.mxu1 %v2924_v0  ;;  %2520 = vmatprep.subr.bf16.mxu0 %v2924_v0 }
  0x38   : > { %2541 = vmatpush3.bf16.msra.mxu1 %v2788_v7  ;;  %2521 = vmatpush3.bf16.msra.mxu0 %v2791_v8 }
  0x39   : > { %2542 = vmatprep.subr.bf16.mxu1 %v2924_v0  ;;  %2522 = vmatprep.subr.bf16.mxu0 %v2924_v0 }
  0x3c   : > { %2543 = vmatpush3.bf16.msra.mxu1 %v2790_v9  ;;  %2523 = vmatpush3.bf16.msra.mxu0 %v2793_v11 }
  0x3d   : > { %2544 = vmatprep.subr.bf16.mxu1 %v2924_v0  ;;  %2524 = vmatprep.subr.bf16.mxu0 %v2924_v0 }
  0x40   : > { %2545 = vmatpush3.bf16.msra.mxu1 %v2792_v10  ;;  %2525 = vmatpush3.bf16.msra.mxu0 %v2795_v12 }
  0x41   : > { %2546 = vmatprep.subr.bf16.mxu1 %v2924_v0  ;;  %2526 = vmatprep.subr.bf16.mxu0 %v2924_v0 }
  0x44   : > { %2547 = vmatpush3.bf16.msra.mxu1 %v2794_v13  ;;  %2527 = vmatpush3.bf16.msra.mxu0 %v2797_v14 }
  0x45   : > { %2548 = vmatprep.subr.bf16.mxu1 %v2924_v0  ;;  %2528 = vmatprep.subr.bf16.mxu0 %v2924_v0 }
  0x48   : > { %2549 = vmatpush3.bf16.msra.mxu1 %v2796_v15  ;;  %2529 = vmatpush3.bf16.msra.mxu0 %v2798_v16 }
  0x49   : > { %2554 = vmatprep.subr.bf16.mxu1 %v2924_v0  ;;  %2578 = vmatprep.subr.bf16.mxu0 %v2924_v0 }
  0x4b   : > { %2551 = vmatmul.mubr.bf16.vlgmr.msra.gmra.mrb[0].mxu1 %v3125_v17  ;;  %2531 = vmatmul.mubr.bf16.vlgmr.msra.gmra.mrb[0].mxu0 %v3125_v17 }
  0x4c   : > { %2556 = vmatprep.mubr.msk.bf16.mxu1 %vm2925_vm0, %v2924_v0  ;;  %2582 = vmatprep.mubr.msk.bf16.mxu0 %vm2925_vm0, %v2924_v0 }
 0x11e   : > { %v693_v19 = vpop.f32.mrb[0].mxu1  ;;  %v582_v24 = vpop.f32.mrb[0].mxu0 }
 0x11f   : > { %v694_v20 = vadd.f32 %v2246_v18, %v693_v19  ;;  %v2552_v21 = vpop.f32.mrb[1].mxu1  ;;  %v2532_v27 = vpop.f32.mrb[1].mxu0  ;;  %v583_v29 = vadd.f32 %v2237_v23, %v582_v24  ;;  %v2802_v23 = vld [vmem:[%s3531_s8 + $0x8] sm:$0xff]   ;;  %v2803_v24 = vld [vmem:[%s3531_s8 + $0x10] sm:$0xff]  }
 0x120   : > { %v696_v22 = vpop.f32.mrb[2].mxu1  ;;  %v585_v28 = vpop.f32.mrb[2].mxu0  ;;  %v2800_v21 = vld [vmem:[%s3529_s6 + $0x8] sm:$0xff]  }
 0x121   : > { %v3142_v25 = vpack.c.bf16 %v694_v20, %v694_v20  ;;  %v2553_v26 = vpop.f32.mrb[3].mxu1  ;;  %v2533_v31 = vpop.f32.mrb[3].mxu0  ;;  %v700_v32 = vpack.c.bf16 %v583_v29, %v583_v29  ;;  %v2799_v20 = vld [vmem:[%s3529_s6] sm:$0xff]   ;;  %v2806_v27 = vld [vmem:[%s3531_s8 + $0x28] sm:$0xff]  }
 0x122   : > { %2579 = vmatpush3.bf16.msra.mxu0 %v2799_v20  ;;  %v2801_v22 = vld [vmem:[%s3531_s8] sm:$0xff]  }
 0x123   : > { %765 = vrot.lane.b32.xlu1 %v3142_v25, %s2926_s28  ;;  %v706_v30 = vsel %vm701_vm1, %v3142_v25, 0  ;;  %2580 = vmatprep.subr.bf16.mxu0 %v2924_v0  ;;  %v2805_v26 = vld [vmem:[%s3531_s8 + $0x20] sm:$0xff]  }
 0x124   : > { %2555 = vmatpush3.bf16.xpose.msra.mxu1 %v706_v30 }
 0x125   : > { %2560 = vmatprep.subr.bf16.mxu1 %v2924_v0 }
 0x126   : > { %2581 = vmatpush3.bf16.msra.mxu0 %v2800_v21 }
 0x127   : > { %818 = vrot.lane.b32.xlu1 %v3142_v25, %s2927_s16  ;;  %2606 = vmatprep.subr.bf16.mxu0 %v2924_v0 }
 0x12b   : > { %2557 = vmatmul.mubr.msk.bf16.vlgmr.msra.gmra.mrb[4].mxu1 %vm701_vm1, %v700_v32 }
 0x12c   : > { %2562 = vmatprep.mubr.msk.bf16.mxu1 %vm2925_vm0, %v2924_v0 }
 0x195   : > { %v766_v33 = vpop.permute.xlu1 %765 }
 0x196   : > { %v773_v34 = vsel %vm771_vm2, %v766_v33, 0 }
 0x197   : > { %2561 = vmatpush3.bf16.msra.mxu1 %v773_v34 }
 0x198   : > { %2566 = vmatprep.subr.bf16.mxu1 %v2924_v0 }
 0x199   : > { %v819_v51 = vpop.permute.xlu1 %818 }
 0x19a   : > { %v824_v53 = vsel %vm701_vm1, %v819_v51, 0 }
 0x1fe   : > { %v742_v35 = vpop.f32.mrb[4].mxu1 }
 0x1ff   : > { %v748_v37 = vmul.f32 0.25, %v742_v35  ;;  %v2558_v38 = vpop.f32.mrb[5].mxu1 }
 0x200   : > { %v745_v39 = vpop.f32.mrb[6].mxu1 }
 0x201   : > { %v2559_v40 = vpop.f32.mrb[7].mxu1  ;;  %v750_v41 = vadd.f32 %v749_v36, %v748_v37 }
 0x203   : > { %v752_v42 = vsel %vm751_vm3, %v750_v41, -inf }
 0x204   : > { %753 = vmax.xlane.f32.xlu0 %v752_v42 }
 0x291   : > { %v754_v43 = vpop.xlane.xlu0 %753 }
 0x292   : > { %v755_v44 = vsub.f32 %v750_v41, %v754_v43 }
 0x294   : > { %v756_v45 = vmul.f32 1.442695, %v755_v44 }
 0x296   : > { %2859 = vpow2.f32 %v756_v45 }
 0x2a0   : > { %v2860_v46 = vpop.eup %2859 }
 0x2a1   : > { %v758_v47 = vsel %vm751_vm3, %v2860_v46, 0.0 }
 0x2a2   : > { %759 = vadd.xlane.f32.xlu0 %v758_v47 }
 0x2b8   : > { %816 = vrot.lane.b32.xlu0 %v700_v32, %s2927_s16 }
 0x32f   : > { %v760_v48 = vpop.xlane.xlu0 %759 }
 0x330   : > { %2861 = vrcp.f32 %v760_v48 }
 0x333   : > { %v817_v54 = vpop.permute.xlu0 %816 }
 0x33a   : > { %v2862_v49 = vpop.eup %2861 }
 0x33b   : > { %v762_v50 = vmul.f32 %v2862_v49, %v2860_v46 }
 0x33d   : > { %v763_v52 = vpack.c.bf16 %v762_v50, %v762_v50 }
 0x33f   : > { %2563 = vmatmul.mubr.msk.bf16.vlgmr.msra.gmra.mrb[8].mxu1 %vm767_vm4, %v763_v52 }
 0x340   : > { %2567 = vmatpush3.bf16.xpose.msra.mxu1 %v824_v53  ;;  %2568 = vmatprep.mubr.msk.bf16.mxu1 %vm2925_vm0, %v2924_v0 }
 0x341   : > { %2572 = vmatprep.subr.bf16.mxu1 %v2924_v0 }
 0x347   : > { %2569 = vmatmul.mubr.msk.bf16.vlgmr.msra.gmra.mrb[12].mxu1 %vm701_vm1, %v817_v54 }
 0x348   : > { %2574 = vmatprep.mubr.msk.bf16.mxu1 %vm2925_vm0, %v2924_v0 }
 0x412   : > { %v3170_v55 = vpop.f32.mrb[8].mxu1 }
 0x413   : > { %v2564_v56 = vpop.f32.mrb[9].mxu1 }
 0x414   : > { %v812_v57 = vpop.f32.mrb[10].mxu1 }
 0x415   : > { %v2565_v58 = vpop.f32.mrb[11].mxu1  ;;  %v2807_v57 = vld [vmem:[%s3531_s8 + $0x30] sm:$0xff]  }
 0x416   : > { %v2808_v58 = vld [vmem:[%s3531_s8 + $0x38] sm:$0xff]  }
 0x41a   : > { %v860_v59 = vpop.f32.mrb[12].mxu1 }
 0x41b   : > { %v866_v61 = vmul.f32 0.25, %v860_v59  ;;  %v2570_v62 = vpop.f32.mrb[13].mxu1  ;;  %v2809_v59 = vld [vmem:[%s3533_s10] sm:$0xff]  }
 0x41c   : > { %v863_v63 = vpop.f32.mrb[14].mxu1  ;;  %v2812_v62 = vld [vmem:[%s3533_s10 + $0x18] sm:$0xff]  }
 0x41d   : > { %v2571_v1 = vpop.f32.mrb[15].mxu1  ;;  %v869_v2 = vadd.f32 %v2258_v60, %v866_v61  ;;  %v2810_v60 = vld [vmem:[%s3533_s10 + $0x8] sm:$0xff]   ;;  %v2811_v61 = vld [vmem:[%s3533_s10 + $0x10] sm:$0xff]   ;;  %v2260_v63 = vld [vmem:[%s3530_s7] ss:$0 sm:$0xff] }
 0x41e   : > { %v476_v1 = vunpack.c.l.bf16 %v3125_v17  ;;  %v2814_v17 = vld [vmem:[%s3533_s10 + $0x28] sm:$0xff]  }
 0x41f   : > { %v870_v3 = vsel %vm751_vm3, %v869_v2, -inf }
 0x420   : > { %871 = vmax.xlane.f32.xlu1 %v870_v3 }
 0x431   : > { %882 = vrot.lane.b32.xlu1 %v3142_v25, %s2928_s20  ;;  %v2804_v25 = vld [vmem:[%s3531_s8 + $0x18] sm:$0xff]  }
 0x4ad   : > { %v872_v4 = vpop.xlane.xlu1 %871 }
 0x4ae   : > { %v873_v5 = vsub.f32 %v869_v2, %v872_v4 }
 0x4b0   : > { %v874_v6 = vmul.f32 1.442695, %v873_v5 }
 0x4b1   : > { %v883_v7 = vpop.permute.xlu1 %882 }
 0x4b2   : > { %2863 = vpow2.f32 %v874_v6  ;;  %v888_v8 = vsel %vm771_vm2, %v883_v7, 0 }
 0x4b3   : > { %2573 = vmatpush3.bf16.msra.mxu1 %v888_v8 }
 0x4b4   : > { %2586 = vmatprep.subr.bf16.mxu1 %v2924_v0 }
 0x4bc   : > { %v2864_v9 = vpop.eup %2863 }
 0x4bd   : > { %v876_v10 = vsel %vm751_vm3, %v2864_v9, 0.0 }
 0x4be   : > { %877 = vadd.xlane.f32.xlu0 %v876_v10  ;;  %v2815_v10 = vld [vmem:[%s3533_s10 + $0x30] sm:$0xff]  }
 0x54b   : > { %v878_v11 = vpop.xlane.xlu0 %877 }
 0x54c   : > { %2865 = vrcp.f32 %v878_v11  ;;  %v2816_v11 = vld [vmem:[%s3533_s10 + $0x38] sm:$0xff]  }
 0x556   : > { %v2866_v12 = vpop.eup %2865 }
 0x557   : > { %v880_v13 = vmul.f32 %v2866_v12, %v2864_v9  ;;  %v2813_v9 = vld [vmem:[%s3533_s10 + $0x20] sm:$0xff]  }
 0x558   : > { %v2817_v12 = vld [vmem:[%s3524_s1 + $0x40] sm:$0xff]  }
 0x559   : > { %v881_v14 = vpack.c.bf16 %v880_v13, %v880_v13  ;;  %v2819_v13 = vld [vmem:[%s3524_s1 + $0x48] sm:$0xff]  }
 0x55b   : > { %2575 = vmatmul.mubr.msk.bf16.vlgmr.msra.gmra.mrb[16].mxu1 %vm767_vm4, %v881_v14  ;;  %v2821_v14 = vld [vmem:[%s3524_s1 + $0x50] sm:$0xff]  }
 0x55c   : > { %2602 = vmatprep.mubr.msk.bf16.mxu1 %vm2925_vm0, %v2924_v0  ;;  %2587 = vmatpush3.bf16.msra.mxu1 %v2801_v22 }
 0x55d   : > { %2588 = vmatprep.subr.bf16.mxu1 %v2924_v0 }
 0x560   : > { %2589 = vmatpush3.bf16.msra.mxu1 %v2802_v23 }
 0x561   : > { %2590 = vmatprep.subr.bf16.mxu1 %v2924_v0 }
 0x564   : > { %2591 = vmatpush3.bf16.msra.mxu1 %v2803_v24 }
 0x565   : > { %2592 = vmatprep.subr.bf16.mxu1 %v2924_v0 }
 0x568   : > { %2593 = vmatpush3.bf16.msra.mxu1 %v2804_v25 }
 0x569   : > { %2594 = vmatprep.subr.bf16.mxu1 %v2924_v0 }
 0x56c   : > { %2595 = vmatpush3.bf16.msra.mxu1 %v2805_v26 }
 0x56d   : > { %2596 = vmatprep.subr.bf16.mxu1 %v2924_v0 }
 0x570   : > { %2597 = vmatpush3.bf16.msra.mxu1 %v2806_v27 }
 0x571   : > { %2598 = vmatprep.subr.bf16.mxu1 %v2924_v0 }
 0x574   : > { %2599 = vmatpush3.bf16.msra.mxu1 %v2807_v57 }
 0x575   : > { %2600 = vmatprep.subr.bf16.mxu1 %v2924_v0 }
 0x578   : > { %2601 = vmatpush3.bf16.msra.mxu1 %v2808_v58 }
 0x579   : > { %2626 = vmatprep.subr.bf16.mxu1 %v2924_v0 }
 0x62e   : > { %v924_v15 = vpop.f32.mrb[16].mxu1 }
 0x62f   : > { %931 = vrot.lane.b32.xlu0 %v924_v15, %s2929_s21  ;;  %v2576_v16 = vpop.f32.mrb[17].mxu1  ;;  %v2823_v15 = vld [vmem:[%s3524_s1 + $0x58] sm:$0xff]  }
 0x630   : > { %v927_v18 = vpop.f32.mrb[18].mxu1  ;;  %v2825_v16 = vld [vmem:[%s3524_s1 + $0x60] sm:$0xff]  }
 0x631   : > { %v2577_v19 = vpop.f32.mrb[19].mxu1  ;;  %v2827_v18 = vld [vmem:[%s3524_s1 + $0x68] sm:$0xff]  }
 0x632   : > { %v2264_v19 = vld [vmem:[%s3532_s9] ss:$0 sm:$0xff] }
 0x6a1   : > { %v932_v28 = vpop.permute.xlu0 %931 }
 0x6a2   : > { %v934_v29 = vsel %vm701_vm1, %v3170_v55, %v932_v28 }
 0x6a3   : > { %v936_v30 = vmul.f32 0.70710677, %v934_v29  ;;  %v935_v53 = vmul.f32 0.5, %v934_v29 }
 0x6a5   : > { %vm937_vm5 = vcmp.ge.f32.partialorder %v936_v30, 0.0  ;;  %v938_v31 = vsub.f32 0.0, %v936_v30 }
 0x6a7   : > { %v939_v32 = vsel %vm937_vm5, %v936_v30, %v938_v31  ;;  %v2818_v30 = vld [vmem:[%s3526_s3 + $0x40] sm:$0xff]  }
 0x6a8   : > { %v940_v33 = vmul.f32 0.3275911, %v939_v32  ;;  %v953_v35 = vsub.f32 0.0, %v939_v32 }
 0x6aa   : > { %v941_v34 = vadd.f32 1.0, %v940_v33  ;;  %v954_v37 = vmul.f32 %v953_v35, %v939_v32  ;;  %v2820_v32 = vld [vmem:[%s3526_s3 + $0x48] sm:$0xff]   ;;  %v2822_v33 = vld [vmem:[%s3526_s3 + $0x50] sm:$0xff]   ;;  %v2826_v35 = vld [vmem:[%s3526_s3 + $0x60] sm:$0xff]  }
 0x6ac   : > { %2867 = vrcp.f32 %v941_v34  ;;  %v955_v40 = vmul.f32 1.442695, %v954_v37  ;;  %v2824_v34 = vld [vmem:[%s3526_s3 + $0x58] sm:$0xff]   ;;  %v2829_v37 = vld [vmem:[%s3524_s1 + $0x70] sm:$0xff]  }
 0x6ae   : > { %2869 = vpow2.f32 %v955_v40  ;;  %v2832_v40 = vld [vmem:[%s3526_s3 + $0x78] sm:$0xff]  }
 0x6b6   : > { %v2868_v36 = vpop.eup %2867 }
 0x6b7   : > { %v944_v38 = vmul.f32 1.0614054, %v2868_v36 }
 0x6b8   : > { %v2870_v48 = vpop.eup %2869 }
 0x6b9   : > { %v945_v39 = vadd.f32 -1.4531521, %v944_v38  ;;  %v2830_v38 = vld [vmem:[%s3526_s3 + $0x70] sm:$0xff]  }
 0x6bb   : > { %v946_v41 = vmul.f32 %v2868_v36, %v945_v39  ;;  %v2831_v39 = vld [vmem:[%s3524_s1 + $0x78] sm:$0xff]  }
 0x6bd   : > { %v947_v42 = vadd.f32 1.4214138, %v946_v41  ;;  %v2273_v41 = vld [vmem:[%s3534_s11] ss:$0 sm:$0xff] }
 0x6bf   : > { %v948_v43 = vmul.f32 %v2868_v36, %v947_v42 }
 0x6c1   : > { %v949_v44 = vadd.f32 -0.28449672, %v948_v43 }
 0x6c3   : > { %v950_v45 = vmul.f32 %v2868_v36, %v949_v44 }
 0x6c5   : > { %v951_v46 = vadd.f32 0.2548296, %v950_v45 }
 0x6c7   : > { %v952_v47 = vmul.f32 %v2868_v36, %v951_v46  ;;  %v2828_v36 = vld [vmem:[%s3526_s3 + $0x68] sm:$0xff]  }
 0x6c9   : > { %v957_v49 = vmul.f32 %v2870_v48, %v952_v47 }
 0x6cb   : > { %v958_v50 = vsub.f32 1.0, %v957_v49  ;;  %v2325_v49 = vld [vmem:[%s3527_s4 + $0x1] ss:$0 sm:$0xff] }
 0x6cd   : > { %v959_v51 = vsub.f32 0.0, %v958_v50 }
 0x6cf   : > { %v960_v52 = vsel %vm937_vm5, %v958_v50, %v959_v51  ;;  %v2299_v50 = vld [vmem:[%s3525_s2 + $0x1] ss:$0 sm:$0xff] }
 0x6d0   : > { %v961_v54 = vadd.f32 1.0, %v960_v52 }
 0x6d2   : > { %v962_v55 = vmul.f32 %v961_v54, %v935_v53 }
 0x6d4   : > { %v963_v56 = vpack.c.bf16 %v962_v55, %v962_v55 }
 0x6d6   : > { %2583 = vmatmul.mubr.msk.bf16.vlgmr.msra.gmra.mrb[4].mxu0 %vm987_vm6, %v963_v56 }
 0x6d7   : > { %2622 = vmatprep.mubr.msk.bf16.mxu0 %vm2925_vm0, %v2924_v0  ;;  %2607 = vmatpush3.bf16.msra.mxu0 %v2809_v59 }
 0x6d8   : > { %2608 = vmatprep.subr.bf16.mxu0 %v2924_v0 }
 0x6db   : > { %2609 = vmatpush3.bf16.msra.mxu0 %v2810_v60 }
 0x6dc   : > { %2610 = vmatprep.subr.bf16.mxu0 %v2924_v0 }
 0x6df   : > { %2611 = vmatpush3.bf16.msra.mxu0 %v2811_v61 }
 0x6e0   : > { %2612 = vmatprep.subr.bf16.mxu0 %v2924_v0 }
 0x6e3   : > { %2613 = vmatpush3.bf16.msra.mxu0 %v2812_v62 }
 0x6e4   : > { %2614 = vmatprep.subr.bf16.mxu0 %v2924_v0 }
 0x6e7   : > { %2615 = vmatpush3.bf16.msra.mxu0 %v2813_v9 }
 0x6e8   : > { %2616 = vmatprep.subr.bf16.mxu0 %v2924_v0 }
 0x6eb   : > { %2617 = vmatpush3.bf16.msra.mxu0 %v2814_v17 }
 0x6ec   : > { %2618 = vmatprep.subr.bf16.mxu0 %v2924_v0 }
 0x6ef   : > { %2619 = vmatpush3.bf16.msra.mxu0 %v2815_v10 }
 0x6f0   : > { %2620 = vmatprep.subr.bf16.mxu0 %v2924_v0 }
 0x6f3   : > { %2621 = vmatpush3.bf16.msra.mxu0 %v2816_v11 }
 0x6f4   : > { %2646 = vmatprep.subr.bf16.mxu0 %v2924_v0 }
 0x7a9   : > { %v1025_v2 = vpop.f32.mrb[4].mxu0 }
 0x7aa   : > { %v1026_v3 = vadd.f32 %v2260_v63, %v1025_v2  ;;  %v2584_v4 = vpop.f32.mrb[5].mxu0 }
 0x7ab   : > { %v1028_v5 = vpop.f32.mrb[6].mxu0 }
 0x7ac   : > { %v3252_v6 = vadd.f32 %v1026_v3, %v476_v1  ;;  %v2585_v7 = vpop.f32.mrb[7].mxu0  ;;  %v2335_v5 = vld [vmem:[%s3528_s5 + $0x8] sm:$0xf] }
 0x7ae   : > { %v1032_v8 = vpack.c.bf16 %v3252_v6, %v3252_v6 }
 0x7b0   : > { %2603 = vmatmul.mubr.bf16.vlgmr.msra.gmra.mrb[20].mxu1 %v1032_v8 }
 0x7b1   : > { %2642 = vmatprep.mubr.msk.bf16.mxu1 %vm2925_vm0, %v2924_v0  ;;  %2627 = vmatpush3.bf16.msra.mxu1 %v2817_v12  ;;  %v2338_v12 = vld [vmem:[%s3528_s5 + $0xc] sm:$0xf] }
 0x7b2   : > { %2628 = vmatprep.subr.bf16.mxu1 %v2924_v0 }
 0x7b5   : > { %2629 = vmatpush3.bf16.msra.mxu1 %v2819_v13 }
 0x7b6   : > { %2630 = vmatprep.subr.bf16.mxu1 %v2924_v0 }
 0x7b9   : > { %2631 = vmatpush3.bf16.msra.mxu1 %v2821_v14 }
 0x7ba   : > { %2632 = vmatprep.subr.bf16.mxu1 %v2924_v0 }
 0x7bd   : > { %2633 = vmatpush3.bf16.msra.mxu1 %v2823_v15 }
 0x7be   : > { %2634 = vmatprep.subr.bf16.mxu1 %v2924_v0 }
 0x7c1   : > { %2635 = vmatpush3.bf16.msra.mxu1 %v2825_v16 }
 0x7c2   : > { %2636 = vmatprep.subr.bf16.mxu1 %v2924_v0 }
 0x7c5   : > { %2637 = vmatpush3.bf16.msra.mxu1 %v2827_v18 }
 0x7c6   : > { %2638 = vmatprep.subr.bf16.mxu1 %v2924_v0 }
 0x7c9   : > { %2639 = vmatpush3.bf16.msra.mxu1 %v2829_v37 }
 0x7ca   : > { %2640 = vmatprep.subr.bf16.mxu1 %v2924_v0 }
 0x7cd   : > { %2641 = vmatpush3.bf16.msra.mxu1 %v2831_v39 }
 0x7ce   : > { %2666 = vmatprep.subr.bf16.mxu1 %v2924_v0 }
 0x883   : > { %v1138_v20 = vpop.f32.mrb[20].mxu1 }
 0x884   : > { %v1139_v21 = vadd.f32 %v2264_v19, %v1138_v20  ;;  %v2604_v22 = vpop.f32.mrb[21].mxu1 }
 0x885   : > { %v1141_v23 = vpop.f32.mrb[22].mxu1 }
 0x886   : > { %v1144_v24 = vadd.f32 3.0, %v1139_v21  ;;  %v2605_v25 = vpop.f32.mrb[23].mxu1 }
 0x888   : > { %v1145_v26 = vmax.f32 %v1144_v24, 0.0 }
 0x88a   : > { %v1146_v27 = vmin.f32 %v1145_v26, 6.0 }
 0x88c   : > { %v1147_v28 = vmul.f32 %v1146_v27, %v1139_v21 }
 0x88e   : > { %v1148_v29 = vmul.f32 0.16666667, %v1147_v28 }
 0x890   : > { %v1149_v31 = vpack.c.bf16 %v1148_v29, %v1148_v29 }
 0x892   : > { %2623 = vmatmul.mubr.bf16.vlgmr.msra.gmra.mrb[8].mxu0 %v1149_v31 }
 0x893   : > { %2647 = vmatpush3.bf16.msra.mxu0 %v2818_v30  ;;  %2662 = vmatprep.mubr.msk.bf16.mxu0 %vm2925_vm0, %v2924_v0 }
 0x894   : > { %2648 = vmatprep.subr.bf16.mxu0 %v2924_v0 }
 0x897   : > { %2649 = vmatpush3.bf16.msra.mxu0 %v2820_v32 }
 0x898   : > { %2650 = vmatprep.subr.bf16.mxu0 %v2924_v0 }
 0x89b   : > { %2651 = vmatpush3.bf16.msra.mxu0 %v2822_v33 }
 0x89c   : > { %2652 = vmatprep.subr.bf16.mxu0 %v2924_v0 }
 0x89f   : > { %2653 = vmatpush3.bf16.msra.mxu0 %v2824_v34 }
 0x8a0   : > { %2654 = vmatprep.subr.bf16.mxu0 %v2924_v0 }
 0x8a3   : > { %2655 = vmatpush3.bf16.msra.mxu0 %v2826_v35 }
 0x8a4   : > { %2656 = vmatprep.subr.bf16.mxu0 %v2924_v0 }
 0x8a7   : > { %2657 = vmatpush3.bf16.msra.mxu0 %v2828_v36 }
 0x8a8   : > { %2658 = vmatprep.subr.bf16.mxu0 %v2924_v0 }
 0x8ab   : > { %2659 = vmatpush3.bf16.msra.mxu0 %v2830_v38 }
 0x8ac   : > { %2660 = vmatprep.subr.bf16.mxu0 %v2924_v0 }
 0x8af   : > { %2661 = vmatpush3.bf16.msra.mxu0 %v2832_v40 }
 0x8b0   : > { %2672 = vmatprep.subr.bf16.mxu0 %v2924_v0 }
 0x965   : > { %v1255_v42 = vpop.f32.mrb[8].mxu0 }
 0x966   : > { %v1256_v43 = vadd.f32 %v2273_v41, %v1255_v42  ;;  %v2624_v44 = vpop.f32.mrb[9].mxu0 }
 0x967   : > { %v1258_v45 = vpop.f32.mrb[10].mxu0 }
 0x968   : > { %v3347_v46 = vadd.f32 %v1256_v43, %v3252_v6  ;;  %v2625_v47 = vpop.f32.mrb[11].mxu0 }
 0x96a   : > { %v1262_v48 = vpack.c.bf16 %v3347_v46, %v3347_v46 }
 0x96c   : > { %2643 = vmatmul.mubr.bf16.vlgmr.msra.gmra.mrb[24].mxu1 %v1262_v48  ;;  %2663 = vmatmul.mubr.bf16.vlgmr.msra.gmra.mrb[12].mxu0 %v1262_v48 }
 0x96d   : > { %2668 = vmatprep.mubr.msk.bf16.mxu1 %vm2925_vm0, %v2924_v0  ;;  %2674 = vmatprep.mubr.msk.bf16.mxu0 %vm2925_vm0, %v2924_v0 }
 0xa3f   : > { %v1370_v51 = vpop.f32.mrb[24].mxu1  ;;  %v1483_v52 = vpop.f32.mrb[12].mxu0 }
 0xa40   : > { %v1484_v53 = vadd.f32 %v2325_v49, %v1483_v52  ;;  %v2644_v54 = vpop.f32.mrb[25].mxu1  ;;  %v2664_v55 = vpop.f32.mrb[13].mxu0  ;;  %v1371_v58 = vadd.f32 %v2299_v50, %v1370_v51  ;;  %v2833_v51 = vld [vmem:[%s3529_s6 + $0x10] sm:$0xff]   ;;  %v2834_v52 = vld [vmem:[%s3529_s6 + $0x18] sm:$0xff]  }
 0xa41   : > { %v1373_v56 = vpop.f32.mrb[26].mxu1  ;;  %v1486_v57 = vpop.f32.mrb[14].mxu0  ;;  %v2836_v54 = vld [vmem:[%s3531_s8 + $0x48] sm:$0xff]   ;;  %v2837_v55 = vld [vmem:[%s3531_s8 + $0x50] sm:$0xff]  }
 0xa42   : > { %v1489_v59 = vpack.c.bf16 %v1484_v53, %v1484_v53  ;;  %v2645_v60 = vpop.f32.mrb[27].mxu1  ;;  %v2665_v61 = vpop.f32.mrb[15].mxu0  ;;  %v1490_v63 = vpack.c.bf16 %v1371_v58, %v1371_v58  ;;  %v2835_v53 = vld [vmem:[%s3531_s8 + $0x40] sm:$0xff]   ;;  %v2838_v56 = vld [vmem:[%s3531_s8 + $0x58] sm:$0xff]   ;;  %v2840_v58 = vld [vmem:[%s3531_s8 + $0x68] sm:$0xff]  }
 0xa43   : > { %v2839_v57 = vld [vmem:[%s3531_s8 + $0x60] sm:$0xff]  }
 0xa44   : > { %1605 = vrot.lane.b32.xlu1 %v1489_v59, %s2927_s16  ;;  %v1495_v62 = vsel %vm701_vm1, %v1489_v59, 0 }
 0xa45   : > { %2667 = vmatpush3.bf16.xpose.msra.mxu1 %v1495_v62 }
 0xa46   : > { %2678 = vmatprep.subr.bf16.mxu1 %v2924_v0 }
 0xa48   : > { %1603 = vrot.lane.b32.xlu1 %v1490_v63, %s2927_s16 }
 0xa4c   : > { %2669 = vmatmul.mubr.msk.bf16.vlgmr.msra.gmra.mrb[28].mxu1 %vm701_vm1, %v1490_v63 }
 0xa4d   : > { %2680 = vmatprep.mubr.msk.bf16.mxu1 %vm2925_vm0, %v2924_v0 }
 0xab6   : > { %v1606_v1 = vpop.permute.xlu1 %1605 }
 0xab7   : > { %v1611_v2 = vsel %vm701_vm1, %v1606_v1, 0 }
 0xab8   : > { %2679 = vmatpush3.bf16.xpose.msra.mxu1 %v1611_v2 }
 0xab9   : > { %2690 = vmatprep.subr.bf16.mxu1 %v2924_v0 }
 0xaba   : > { %v1604_v3 = vpop.permute.xlu1 %1603 }
 0xabf   : > { %2681 = vmatmul.mubr.msk.bf16.vlgmr.msra.gmra.mrb[32].mxu1 %vm701_vm1, %v1604_v3 }
 0xac0   : > { %2694 = vmatprep.mubr.msk.bf16.mxu1 %vm2925_vm0, %v2924_v0  ;;  %2691 = vmatpush3.bf16.msra.mxu1 %v2833_v51 }
 0xac1   : > { %2692 = vmatprep.subr.bf16.mxu1 %v2924_v0 }
 0xac4   : > { %2693 = vmatpush3.bf16.msra.mxu1 %v2834_v52 }
 0xac5   : > { %2718 = vmatprep.subr.bf16.mxu1 %v2924_v0 }
 0xb1f   : > { %v1531_v4 = vpop.f32.mrb[28].mxu1 }
 0xb20   : > { %v1537_v6 = vmul.f32 0.25, %v1531_v4  ;;  %v2670_v7 = vpop.f32.mrb[29].mxu1 }
 0xb21   : > { %v1534_v8 = vpop.f32.mrb[30].mxu1 }
 0xb22   : > { %v2671_v9 = vpop.f32.mrb[31].mxu1  ;;  %v1540_v17 = vadd.f32 %v2335_v5, %v1537_v6 }
 0xb24   : > { %v1541_v10 = vsel %vm751_vm3, %v1540_v17, -inf }
 0xb25   : > { %1542 = vmax.xlane.f32.xlu1 %v1541_v10 }
 0xb92   : > { %v1647_v11 = vpop.f32.mrb[32].mxu1 }
 0xb93   : > { %v1653_v13 = vmul.f32 0.25, %v1647_v11  ;;  %v2682_v14 = vpop.f32.mrb[33].mxu1 }
 0xb94   : > { %v1650_v15 = vpop.f32.mrb[34].mxu1 }
 0xb95   : > { %v2683_v16 = vpop.f32.mrb[35].mxu1  ;;  %v1656_v18 = vadd.f32 %v2338_v12, %v1653_v13 }
 0xb97   : > { %v1657_v19 = vsel %vm751_vm3, %v1656_v18, -inf }
 0xb98   : > { %1658 = vmax.xlane.f32.xlu0 %v1657_v19 }
 0xbae   : > { %1669 = vrot.lane.b32.xlu0 %v1489_v59, %s2928_s20 }
 0xbb2   : > { %v1543_v20 = vpop.xlane.xlu1 %1542 }
 0xbb3   : > { %v1544_v21 = vsub.f32 %v1540_v17, %v1543_v20 }
 0xbb5   : > { %v1545_v22 = vmul.f32 1.442695, %v1544_v21 }
 0xbb7   : > { %2871 = vpow2.f32 %v1545_v22 }
 0xbc1   : > { %v2872_v23 = vpop.eup %2871 }
 0xbc2   : > { %v1547_v24 = vsel %vm751_vm3, %v2872_v23, 0.0 }
 0xbc3   : > { %1548 = vadd.xlane.f32.xlu1 %v1547_v24 }
 0xc25   : > { %v1659_v25 = vpop.xlane.xlu0 %1658 }
 0xc26   : > { %v1660_v26 = vsub.f32 %v1656_v18, %v1659_v25  ;;  %v2841_v25 = vld [vmem:[%s3531_s8 + $0x70] sm:$0xff]  }
 0xc28   : > { %v1661_v27 = vmul.f32 1.442695, %v1660_v26  ;;  %v2842_v26 = vld [vmem:[%s3531_s8 + $0x78] sm:$0xff]  }
 0xc29   : > { %v1670_v36 = vpop.permute.xlu0 %1669 }
 0xc2a   : > { %2873 = vpow2.f32 %v1661_v27  ;;  %v1675_v38 = vsel %vm771_vm2, %v1670_v36, 0  ;;  %v2843_v27 = vld [vmem:[%s3533_s10 + $0x40] sm:$0xff]  }
 0xc34   : > { %v2874_v28 = vpop.eup %2873 }
 0xc35   : > { %v1663_v29 = vsel %vm751_vm3, %v2874_v28, 0.0 }
 0xc36   : > { %1664 = vadd.xlane.f32.xlu1 %v1663_v29  ;;  %v2845_v29 = vld [vmem:[%s3533_s10 + $0x50] sm:$0xff]  }
 0xc47   : > { %1554 = vrot.lane.b32.xlu1 %v1489_v59, %s2926_s28 }
 0xc50   : > { %v1549_v30 = vpop.xlane.xlu1 %1548 }
 0xc51   : > { %2875 = vrcp.f32 %v1549_v30  ;;  %v2846_v30 = vld [vmem:[%s3533_s10 + $0x58] sm:$0xff]  }
 0xc5b   : > { %v2876_v31 = vpop.eup %2875 }
 0xc5c   : > { %v1551_v33 = vmul.f32 %v2876_v31, %v2872_v23  ;;  %v2345_v31 = vld [vmem:[%s3530_s7 + $0x1] ss:$0 sm:$0xff] }
 0xc5e   : > { %v1552_v37 = vpack.c.bf16 %v1551_v33, %v1551_v33 }
 0xcc3   : > { %v1665_v32 = vpop.xlane.xlu1 %1664 }
 0xcc4   : > { %2877 = vrcp.f32 %v1665_v32 }
 0xcc7   : > { %v1555_v34 = vpop.permute.xlu1 %1554 }
 0xcc8   : > { %v1560_v35 = vsel %vm771_vm2, %v1555_v34, 0 }
 0xcc9   : > { %2673 = vmatpush3.bf16.msra.mxu0 %v1560_v35 }
 0xcca   : > { %2684 = vmatprep.subr.bf16.mxu0 %v2924_v0 }
 0xccc   : > { %2675 = vmatmul.mubr.msk.bf16.vlgmr.msra.gmra.mrb[16].mxu0 %vm767_vm4, %v1552_v37 }
 0xccd   : > { %2685 = vmatpush3.bf16.msra.mxu0 %v1675_v38  ;;  %2686 = vmatprep.mubr.msk.bf16.mxu0 %vm2925_vm0, %v2924_v0 }
 0xcce   : > { %v2878_v39 = vpop.eup %2877  ;;  %2698 = vmatprep.subr.bf16.mxu0 %v2924_v0 }
 0xccf   : > { %v1667_v40 = vmul.f32 %v2878_v39, %v2874_v28  ;;  %v2844_v28 = vld [vmem:[%s3533_s10 + $0x48] sm:$0xff]   ;;  %v2847_v39 = vld [vmem:[%s3533_s10 + $0x60] sm:$0xff]  }
 0xcd1   : > { %v1668_v41 = vpack.c.bf16 %v1667_v40, %v1667_v40  ;;  %v2848_v40 = vld [vmem:[%s3533_s10 + $0x68] sm:$0xff]  }
 0xcd4   : > { %2687 = vmatmul.mubr.msk.bf16.vlgmr.msra.gmra.mrb[20].mxu0 %vm767_vm4, %v1668_v41  ;;  %v2850_v41 = vld [vmem:[%s3533_s10 + $0x78] sm:$0xff]  }
 0xcd5   : > { %2714 = vmatprep.mubr.msk.bf16.mxu0 %vm2925_vm0, %v2924_v0  ;;  %2699 = vmatpush3.bf16.msra.mxu0 %v2835_v53 }
 0xcd6   : > { %2700 = vmatprep.subr.bf16.mxu0 %v2924_v0 }
 0xcd9   : > { %2701 = vmatpush3.bf16.msra.mxu0 %v2836_v54 }
 0xcda   : > { %2702 = vmatprep.subr.bf16.mxu0 %v2924_v0 }
 0xcdd   : > { %2703 = vmatpush3.bf16.msra.mxu0 %v2837_v55 }
 0xcde   : > { %2704 = vmatprep.subr.bf16.mxu0 %v2924_v0 }
 0xce1   : > { %2705 = vmatpush3.bf16.msra.mxu0 %v2838_v56 }
 0xce2   : > { %2706 = vmatprep.subr.bf16.mxu0 %v2924_v0 }
 0xce5   : > { %2707 = vmatpush3.bf16.msra.mxu0 %v2839_v57 }
 0xce6   : > { %2708 = vmatprep.subr.bf16.mxu0 %v2924_v0 }
 0xce9   : > { %2709 = vmatpush3.bf16.msra.mxu0 %v2840_v58  ;;  %v2854_v58 = vld [vmem:[%s3535_s12 + $0x18] sm:$0xff]  }
 0xcea   : > { %2710 = vmatprep.subr.bf16.mxu0 %v2924_v0 }
 0xced   : > { %2711 = vmatpush3.bf16.msra.mxu0 %v2841_v25 }
 0xcee   : > { %2712 = vmatprep.subr.bf16.mxu0 %v2924_v0 }
 0xcf1   : > { %2713 = vmatpush3.bf16.msra.mxu0 %v2842_v26 }
 0xcf2   : > { %2738 = vmatprep.subr.bf16.mxu0 %v2924_v0 }
 0xd9f   : > { %v1596_v42 = vpop.f32.mrb[16].mxu0 }
 0xda0   : > { %v2676_v43 = vpop.f32.mrb[17].mxu0 }
 0xda1   : > { %v1599_v44 = vpop.f32.mrb[18].mxu0  ;;  %v2852_v43 = vld [vmem:[%s3535_s12 + $0x8] sm:$0xff]  }
 0xda2   : > { %v2677_v45 = vpop.f32.mrb[19].mxu0  ;;  %v2853_v44 = vld [vmem:[%s3535_s12 + $0x10] sm:$0xff]  }
 0xda3   : > { %v2366_v45 = vld [vmem:[%s3532_s9 + $0x1] ss:$0 sm:$0xff] }
 0xda7   : > { %v1711_v47 = vpop.f32.mrb[20].mxu0 }
 0xda8   : > { %1718 = vrot.lane.b32.xlu1 %v1711_v47, %s2929_s21  ;;  %v2688_v48 = vpop.f32.mrb[21].mxu0 }
 0xda9   : > { %v1714_v49 = vpop.f32.mrb[22].mxu0 }
 0xdaa   : > { %v2689_v50 = vpop.f32.mrb[23].mxu0 }
 0xe1a   : > { %v1719_v59 = vpop.permute.xlu1 %1718 }
 0xe1b   : > { %v1721_v60 = vsel %vm701_vm1, %v1596_v42, %v1719_v59  ;;  %v2851_v42 = vld [vmem:[%s3535_s12] sm:$0xff]  }
 0xe1c   : > { %v1723_v61 = vmul.f32 0.70710677, %v1721_v60  ;;  %v1722_v21 = vmul.f32 0.5, %v1721_v60  ;;  %v2855_v59 = vld [vmem:[%s3535_s12 + $0x20] sm:$0xff]   ;;  %v2856_v60 = vld [vmem:[%s3535_s12 + $0x28] sm:$0xff]  }
 0xe1e   : > { %vm1724_vm7 = vcmp.ge.f32.partialorder %v1723_v61, 0.0  ;;  %v1725_v62 = vsub.f32 0.0, %v1723_v61 }
 0xe20   : > { %v1726_v63 = vsel %vm1724_vm7, %v1723_v61, %v1725_v62  ;;  %v2857_v61 = vld [vmem:[%s3535_s12 + $0x30] sm:$0xff]   ;;  %v2858_v62 = vld [vmem:[%s3535_s12 + $0x38] sm:$0xff]  }
 0xe21   : > { %v1727_v1 = vmul.f32 0.3275911, %v1726_v63  ;;  %v1740_v3 = vsub.f32 0.0, %v1726_v63 }
 0xe23   : > { %v1728_v2 = vadd.f32 1.0, %v1727_v1  ;;  %v1741_v5 = vmul.f32 %v1740_v3, %v1726_v63  ;;  %v2392_v63 = vld [vmem:[%s3534_s11 + $0x1] ss:$0 sm:$0xff] }
 0xe25   : > { %2879 = vrcp.f32 %v1728_v2  ;;  %v1742_v8 = vmul.f32 1.442695, %v1741_v5 }
 0xe27   : > { %2881 = vpow2.f32 %v1742_v8 }
 0xe2f   : > { %v2880_v4 = vpop.eup %2879 }
 0xe30   : > { %v1731_v6 = vmul.f32 1.0614054, %v2880_v4 }
 0xe31   : > { %v2882_v15 = vpop.eup %2881 }
 0xe32   : > { %v1732_v7 = vadd.f32 -1.4531521, %v1731_v6 }
 0xe34   : > { %v1733_v9 = vmul.f32 %v2880_v4, %v1732_v7 }
 0xe36   : > { %v1734_v17 = vadd.f32 1.4214138, %v1733_v9 }
 0xe38   : > { %v1735_v10 = vmul.f32 %v2880_v4, %v1734_v17 }
 0xe3a   : > { %v1736_v11 = vadd.f32 -0.28449672, %v1735_v10 }
 0xe3c   : > { %v1737_v12 = vmul.f32 %v2880_v4, %v1736_v11 }
 0xe3e   : > { %v1738_v13 = vadd.f32 0.2548296, %v1737_v12 }
 0xe40   : > { %v1739_v14 = vmul.f32 %v2880_v4, %v1738_v13 }
 0xe42   : > { %v1744_v16 = vmul.f32 %v2882_v15, %v1739_v14  ;;  %v2080_v14 = vld [vmem:[#allocation2] sm:$0x1] }
 0xe44   : > { %v1745_v18 = vsub.f32 1.0, %v1744_v16 }
 0xe46   : > { %v1746_v19 = vsub.f32 0.0, %v1745_v18 }
 0xe48   : > { %v1747_v20 = vsel %vm1724_vm7, %v1745_v18, %v1746_v19 }
 0xe49   : > { %v1748_v22 = vadd.f32 1.0, %v1747_v20 }
 0xe4b   : > { %v1749_v23 = vmul.f32 %v1748_v22, %v1722_v21 }
 0xe4d   : > { %v1750_v24 = vpack.c.bf16 %v1749_v23, %v1749_v23 }
 0xe4f   : > { %2695 = vmatmul.mubr.msk.bf16.vlgmr.msra.gmra.mrb[36].mxu1 %vm987_vm6, %v1750_v24 }
 0xe50   : > { %2734 = vmatprep.mubr.msk.bf16.mxu1 %vm2925_vm0, %v2924_v0  ;;  %2719 = vmatpush3.bf16.msra.mxu1 %v2843_v27 }
 0xe51   : > { %2720 = vmatprep.subr.bf16.mxu1 %v2924_v0 }
 0xe54   : > { %2721 = vmatpush3.bf16.msra.mxu1 %v2844_v28 }
 0xe55   : > { %2722 = vmatprep.subr.bf16.mxu1 %v2924_v0 }
 0xe58   : > { %2723 = vmatpush3.bf16.msra.mxu1 %v2845_v29 }
 0xe59   : > { %2724 = vmatprep.subr.bf16.mxu1 %v2924_v0 }
 0xe5c   : > { %2725 = vmatpush3.bf16.msra.mxu1 %v2846_v30 }
 0xe5d   : > { %2726 = vmatprep.subr.bf16.mxu1 %v2924_v0 }
 0xe60   : > { %2727 = vmatpush3.bf16.msra.mxu1 %v2847_v39 }
 0xe61   : > { %2728 = vmatprep.subr.bf16.mxu1 %v2924_v0 }
 0xe64   : > { %2729 = vmatpush3.bf16.msra.mxu1 %v2848_v40 }
 0xe65   : > { %2730 = vmatprep.subr.bf16.mxu1 %v2924_v0 }
 0xf22   : > { %v1813_v32 = vpop.f32.mrb[36].mxu1 }
 0xf23   : > { %v1814_v33 = vadd.f32 %v2345_v31, %v1813_v32  ;;  %v2696_v34 = vpop.f32.mrb[37].mxu1 }
 0xf24   : > { %v1816_v35 = vpop.f32.mrb[38].mxu1 }
 0xf25   : > { %v1819_v36 = vadd.f32 %v1814_v33, %v3347_v46  ;;  %v2697_v37 = vpop.f32.mrb[39].mxu1  ;;  %v2849_v46 = vld [vmem:[%s3533_s10 + $0x70] sm:$0xff]  }
 0xf26   : > { %2731 = vmatpush3.bf16.msra.mxu1 %v2849_v46 }
 0xf27   : > { %v1820_v38 = vpack.c.bf16 %v1819_v36, %v1819_v36  ;;  %2732 = vmatprep.subr.bf16.mxu1 %v2924_v0 }
 0xf29   : > { %2715 = vmatmul.mubr.bf16.vlgmr.msra.gmra.mrb[24].mxu0 %v1820_v38 }
 0xf2a   : > { %2754 = vmatprep.mubr.msk.bf16.mxu0 %vm2925_vm0, %v2924_v0  ;;  %2733 = vmatpush3.bf16.msra.mxu1 %v2850_v41 }
 0xf2b   : > { %2739 = vmatpush3.bf16.msra.mxu0 %v2851_v42 }
 0xf2c   : > { %2740 = vmatprep.subr.bf16.mxu0 %v2924_v0 }
 0xf2f   : > { %2741 = vmatpush3.bf16.msra.mxu0 %v2852_v43 }
 0xf30   : > { %2742 = vmatprep.subr.bf16.mxu0 %v2924_v0 }
 0xf33   : > { %2743 = vmatpush3.bf16.msra.mxu0 %v2853_v44 }
 0xf34   : > { %2744 = vmatprep.subr.bf16.mxu0 %v2924_v0 }
 0xf37   : > { %2745 = vmatpush3.bf16.msra.mxu0 %v2854_v58 }
 0xf38   : > { %2746 = vmatprep.subr.bf16.mxu0 %v2924_v0 }
 0xf3b   : > { %2747 = vmatpush3.bf16.msra.mxu0 %v2855_v59 }
 0xf3c   : > { %2748 = vmatprep.subr.bf16.mxu0 %v2924_v0 }
 0xf3f   : > { %2749 = vmatpush3.bf16.msra.mxu0 %v2856_v60 }
 0xf40   : > { %2750 = vmatprep.subr.bf16.mxu0 %v2924_v0 }
 0xf43   : > { %2751 = vmatpush3.bf16.msra.mxu0 %v2857_v61 }
 0xf44   : > { %2752 = vmatprep.subr.bf16.mxu0 %v2924_v0 }
 0xf47   : > { %2753 = vmatpush3.bf16.msra.mxu0 %v2858_v62 }
 0xffc   : > { %v1928_v47 = vpop.f32.mrb[24].mxu0 }
 0xffd   : > { %v1929_v48 = vadd.f32 %v2366_v45, %v1928_v47  ;;  %v2716_v49 = vpop.f32.mrb[25].mxu0 }
 0xffe   : > { %v1931_v50 = vpop.f32.mrb[26].mxu0 }
 0xfff   : > { %v1934_v51 = vadd.f32 3.0, %v1929_v48  ;;  %v2717_v52 = vpop.f32.mrb[27].mxu0 }
0x1001   : > { %v1935_v53 = vmax.f32 %v1934_v51, 0.0 }
0x1003   : > { %v1936_v54 = vmin.f32 %v1935_v53, 6.0 }
0x1005   : > { %v1937_v55 = vmul.f32 %v1936_v54, %v1929_v48 }
0x1007   : > { %v1938_v56 = vmul.f32 0.16666667, %v1937_v55 }
0x1009   : > { %v1939_v57 = vpack.c.bf16 %v1938_v56, %v1938_v56 }
0x100b   : > { %2735 = vmatmul.mubr.bf16.vlgmr.msra.gmra.mrb[40].mxu1 %v1939_v57 }
0x10de   : > { %v2047_v1 = vpop.f32.mrb[40].mxu1 }
0x10df   : > { %v2048_v2 = vadd.f32 %v2392_v63, %v2047_v1  ;;  %v2736_v3 = vpop.f32.mrb[41].mxu1 }
0x10e0   : > { %v2050_v4 = vpop.f32.mrb[42].mxu1 }
0x10e1   : > { %v2053_v5 = vadd.f32 %v2048_v2, %v1819_v36  ;;  %v2737_v6 = vpop.f32.mrb[43].mxu1 }
0x10e3   : > { %v2055_v7 = vsel %vm2054_vm8, %v2053_v5, 0.0 }
0x10e4   : > { %v2056_v8 = vrot.slane %v2055_v7, 4 }
0x10e6   : > { %v2057_v9 = vadd.f32 %v2056_v8, %v2055_v7 }
0x10e8   : > { %v2058_v17 = vrot.slane %v2057_v9, 2 }
0x10ea   : > { %v2059_v10 = vadd.f32 %v2058_v17, %v2057_v9 }
0x10ec   : > { %v2060_v11 = vrot.slane %v2059_v10, 1 }
0x10ee   : > { %v2061_v0 = vadd.f32 %v2060_v11, %v2059_v10 }
0x10f0   : > { %v2062_v12 = vmul.f32 0.25, %v2061_v0 }
0x10f2   : > { %v2063_v13 = vpack.c.bf16 %v2062_v12, %v2062_v12 }
0x10f4   : > { %2755 = vmatmul.mubr.bf16.vlgmr.msra.gmra.mrb[28].mxu0 %v2063_v13 }
0x11c7   : > { %v2163_v15 = vpop.f32.mrb[28].mxu0 }
0x11c8   : > { %v2164_v16 = vadd.f32 %v2163_v15, %v2080_v14  ;;  %v2756_v18 = vpop.f32.mrb[29].mxu0 }
0x11c9   : > { %v2166_v19 = vpop.f32.mrb[30].mxu0 }
0x11ca   : > { %2169 = vst [vmem:[%s473_s25] sm:$0x1] %v2164_v16  ;;  %v2757_v20 = vpop.f32.mrb[31].mxu0 }
0x11cb PF: > { %s25_s29 = sadd.s32 1, %s2921_s29  }
0x11cc   : > { %p22_p3 = scmp.ge.s32.totalorder %s25_s29, 4  }
0x11ce   :  { %24 = sbr.rel (!%p22_p3) target bundleno = 1 (0x1), region = 124 }
0x11d5   :  { %2187 = vsyncpa [#allocation3], 1 }
0x11d6   :  { %2189 = vsyncpa [#allocation3 + $0x1], 1 }

</bundles_post_ra>
